<compile_context>
chip_gen: v5e
topology: v5e:2x2
jax: 0.10.0
libtpu: 0.0.40
codegen_flags: <defaults>
</compile_context>

<pallas_src>
import numpy as np
import jax
import jax.numpy as jnp
from jax.experimental import pallas as pl
from jax.experimental.pallas import tpu as pltpu

LEAKY_SLOPE = 0.01   # F.leaky_relu default
BN_EPS = 1e-5        # nn.BatchNorm2d default
NORM_EPS = 1e-6      # the +1e-06 in the module
LANE = 128

NUM_CONV = 16
NUM_BNA = 8
# Residual wiring of BasicalResNet.forward.  bnA1/2/5/6 are dead (overwritten
# before use) and are never computed.
_BNA_SAVE_BEFORE = {0: 0, 6: 3, 8: 4, 14: 7}   # conv-block idx -> bnA idx snapshotted before it
_BNA_ADD_AFTER = frozenset({1, 7, 9, 15})      # conv-block idx after which the snapshot is added


def _make_kernel(N, C, H, W, P):
    """Fused 16-layer kernel for a fixed (N, C, H, W) problem.

    Layout: activations are (N*C, P) f32 — batch*channels on the sublane axis,
    P = (H+2)*(W+2) flattened zero-padded per-image positions rounded up to a
    multiple of 128 lanes."""
    Wp = W + 2
    NC = N * C
    inv_n = 1.0 / float(N * H * W)      # BatchNorm divisor: per channel over N*H*W

    def lane_roll(v, k):
        # Circular lane rotation; non-negative static shift.
        k = k % P
        return pltpu.roll(v, shift=k, axis=1) if k else v

    def pool_batch(s_row):
        # (NC, 1) per-(image, channel) sums -> per-channel totals replicated
        # back onto every (image, channel) row.
        tot = s_row[0:C, :]
        for n in range(1, N):
            tot = tot + s_row[n * C:(n + 1) * C, :]
        return tot if N == 1 else jnp.concatenate([tot] * N, axis=0)

    def kernel(x_ref, mask_ref, w_ref, b_ref, bng_ref, bnb_ref, bag_ref, bab_ref,
               out_ref, state_ref, xa_ref, ones_ref):
        mask = mask_ref[...]                                   # (1, P)
        ones_ref[...] = jnp.ones((P, LANE), jnp.float32)       # lane-sum operand (MXU)

        def sums(v):
            # s1 = sum(v), s2 = sum(v*v) per row, via ONE MXU dot: keeps the
            # cross-lane reductions off the XLU (which handles the im2col rolls).
            stacked = jnp.concatenate([v, v * v], axis=0)                   # (2*NC, P)
            s = jnp.dot(stacked, ones_ref[...],
                        preferred_element_type=jnp.float32)[:, 0:1]         # (2*NC, 1)
            return s[:NC, :], s[NC:, :]

        def bn_affine(s1_row, s2_row, frob_r, gamma, beta):
            # Per-channel (scale, shift) such that BN(frob_r * y) == y*scale + shift,
            # with batch statistics pooled over the N images.  All stats in f32.
            s1 = pool_batch(s1_row)
            s2 = pool_batch(s2_row)
            mean = s1 * inv_n
            var = s2 * inv_n - mean * mean                     # E[x^2] - E[x]^2
            inv_std = jax.lax.rsqrt((frob_r * frob_r) * var + BN_EPS)
            scale = (frob_r * inv_std) * gamma
            shift = beta - (frob_r * mean) * inv_std * gamma
            return scale, shift

        def snapshot_bnA(a):
            # xA = bnA_a(current state), spilled to VMEM scratch (bounded live range).
            x = state_ref[...]
            s1_row, s2_row = sums(x)
            scale, shift = bn_affine(s1_row, s2_row, 1.0,
                                     bag_ref[:, a:a + 1], bab_ref[:, a:a + 1])
            xa_ref[...] = (x * scale + shift) * mask

        def conv_block(l, add_residual):
            # im2col: 9 lane-rolled copies of the state, stacked on sublanes.
            # Rolled-in wrap lanes only ever hit masked halo/pad output positions.
            st = state_ref[...]                                # (NC, P)
            taps = []
            for ky in range(3):
                base = lane_roll(st, -(ky - 1) * Wp)
                for kx in range(3):
                    taps.append(lane_roll(base, -(kx - 1)))
            patch = jnp.concatenate(taps, axis=0)              # (9*NC, P)

            # One MXU contraction per layer (weight is block-diagonal over batch).
            acc = jnp.dot(w_ref[l], patch,
                          preferred_element_type=jnp.float32)  # (NC, P)
            v = (acc + b_ref[:, l:l + 1]) * mask               # bias; zero halo/pad
            y = jnp.where(v >= 0, v, LEAKY_SLOPE * v)          # leaky_relu

            # Fused  y/(||y||_F + 1e-6)  +  BatchNorm  ->  one FMA + mask.
            s1_row, s2_row = sums(y)
            ss = jnp.sum(s2_row, axis=0, keepdims=True)        # (1,1) Frobenius sum-sq
            frob_r = 1.0 / (jnp.sqrt(ss) + NORM_EPS)           # exact; scalar-sized now
            scale, shift = bn_affine(s1_row, s2_row, frob_r,
                                     bng_ref[:, l:l + 1], bnb_ref[:, l:l + 1])
            out = (y * scale + shift) * mask
            if add_residual:
                out = out + xa_ref[...]
            state_ref[...] = out

        # Load input once (already zero at halo / lane-pad positions).
        state_ref[...] = x_ref[...] * mask

        for l in range(NUM_CONV):
            if l in _BNA_SAVE_BEFORE:
                snapshot_bnA(_BNA_SAVE_BEFORE[l])
            conv_block(l, l in _BNA_ADD_AFTER)

        out_ref[...] = state_ref[...]

    return kernel


def _full_spec(shape):
    # Tiny problem: every array lives whole in VMEM as a single block.
    return pl.BlockSpec(shape, lambda i: (0,) * len(shape))


def _valid_mask(H, W, P):
    """(1, P) f32 mask: 1.0 at the H*W interior positions of the flattened
    zero-padded per-image layout, 0.0 at halo and lane-padding positions."""
    Hp, Wp = H + 2, W + 2
    m = np.zeros((1, P), np.float32)
    idx = np.arange(Hp * Wp)
    r, c = idx // Wp, idx % Wp
    m[0, :Hp * Wp] = ((r >= 1) & (r <= H) & (c >= 1) & (c <= W)).astype(np.float32)
    return jnp.asarray(m)


def init_params(key, channels):
    """Deterministic parameter init (shapes follow BasicalResNet.__init__):
    conv weights (layer, C_out, C_in, 3, 3) like PyTorch OIHW; BN affine params
    at the PyTorch defaults (gamma=1, beta=0)."""
    C = channels
    kw, kb = jax.random.split(key)
    conv_w = 0.1 * jax.random.normal(kw, (NUM_CONV, C, C, 3, 3), jnp.float32)
    conv_b = 0.1 * jax.random.normal(kb, (NUM_CONV, C), jnp.float32)
    bn_g = jnp.ones((NUM_CONV, C), jnp.float32)
    bn_b = jnp.zeros((NUM_CONV, C), jnp.float32)
    bnA_g = jnp.ones((NUM_BNA, C), jnp.float32)
    bnA_b = jnp.zeros((NUM_BNA, C), jnp.float32)
    return conv_w, conv_b, bn_g, bn_b, bnA_g, bnA_b


def _rows(per_channel_lc, N):
    # (L, C) per-channel params -> (N*C, L) per-row (image-major) layout.
    return jnp.tile(jnp.transpose(per_channel_lc), (N, 1))


@jax.jit
def run_model(x_nchw, params):
    conv_w, conv_b, bn_g, bn_b, bnA_g, bnA_b = params
    N, C, H, W = x_nchw.shape
    Hp, Wp = H + 2, W + 2
    NC = N * C
    P = ((Hp * Wp + LANE - 1) // LANE) * LANE      # lane-dense per-image spatial axis

    # NCHW -> (N*C, P): per-image zero halo, flattened, lane-padded.
    xp = jnp.pad(x_nchw.astype(jnp.float32), ((0, 0), (0, 0), (1, 1), (1, 1)))
    x_flat = jnp.pad(xp.reshape(NC, Hp * Wp), ((0, 0), (0, P - Hp * Wp)))
    mask = _valid_mask(H, W, P)

    # OIHW conv weights -> block-diagonal-over-batch im2col weights
    # (L, N*C_out, 9*N*C_in); tap index t = ky*3 + kx, contraction row
    # t*(N*C) + n*C + c_in matches the kernel's patch layout.
    w_taps = jnp.transpose(conv_w, (0, 3, 4, 1, 2)).reshape(NUM_CONV, 9, C, C)
    eye_n = jnp.eye(N, dtype=jnp.float32)
    w_big = jnp.einsum('nm,ltoi->lnotmi', eye_n, w_taps).reshape(NUM_CONV, NC, 9 * NC)

    b_row = _rows(conv_b, N)
    bng_row, bnb_row = _rows(bn_g, N), _rows(bn_b, N)
    bag_row, bab_row = _rows(bnA_g, N), _rows(bnA_b, N)

    y_flat = pl.pallas_call(
        _make_kernel(N, C, H, W, P),
        grid=(1,),
        out_shape=jax.ShapeDtypeStruct((NC, P), jnp.float32),
        in_specs=[_full_spec(x_flat.shape), _full_spec(mask.shape),
                  _full_spec(w_big.shape), _full_spec(b_row.shape),
                  _full_spec(bng_row.shape), _full_spec(bnb_row.shape),
                  _full_spec(bag_row.shape), _full_spec(bab_row.shape)],
        out_specs=_full_spec((NC, P)),
        scratch_shapes=[pltpu.VMEM((NC, P), jnp.float32),      # running activation
                        pltpu.VMEM((NC, P), jnp.float32),      # bnA residual snapshot
                        pltpu.VMEM((P, LANE), jnp.float32)],   # ones operand for MXU lane sums
        compiler_params=pltpu.CompilerParams(
            dimension_semantics=("arbitrary",),
            vmem_limit_bytes=16 * 1024 * 1024),
    )(x_flat, mask, w_big, b_row, bng_row, bnb_row, bag_row, bab_row)

    # (N*C, P) -> NCHW, dropping halo and lane padding.
    y = y_flat[:, :Hp * Wp].reshape(N, C, Hp, Wp)[:, :, 1:H + 1, 1:W + 1]
    return y


if __name__ == "__main__":
    key = jax.random.PRNGKey(0)
    k_x, k_p = jax.random.split(key)

    N, C, H, W = 2, 4, 16, 16                      # small shapes consistent with the module
    x = jax.random.normal(k_x, (N, C, H, W), jnp.float32)   # NCHW like PyTorch
    params = init_params(k_p, C)

    y = jax.block_until_ready(run_model(x, params))
    assert y.shape == (N, C, H, W)
    assert bool(jnp.all(jnp.isfinite(y)))
    print("KERNEL_OK")
</pallas_src>

<mosaic_0001>
module attributes {stable_mosaic.version = 11 : i64} {
  func.func @kernel(%arg0: i32, %arg1: memref<8x384xf32, #tpu.memory_space<vmem>>, %arg2: memref<1x384xf32, #tpu.memory_space<vmem>>, %arg3: memref<16x8x72xf32, #tpu.memory_space<vmem>>, %arg4: memref<8x16xf32, #tpu.memory_space<vmem>>, %arg5: memref<8x16xf32, #tpu.memory_space<vmem>>, %arg6: memref<8x16xf32, #tpu.memory_space<vmem>>, %arg7: memref<8x8xf32, #tpu.memory_space<vmem>>, %arg8: memref<8x8xf32, #tpu.memory_space<vmem>>, %arg9: memref<8x384xf32, #tpu.memory_space<vmem>>, %arg10: memref<8x384xf32, #tpu.memory_space<vmem>>, %arg11: memref<8x384xf32, #tpu.memory_space<vmem>>, %arg12: memref<384x128xf32, #tpu.memory_space<vmem>>) attributes {dimension_semantics = [#tpu.dimension_semantics<arbitrary>], iteration_bounds = array<i64: 1>, scalar_prefetch = 0 : i64, scratch_operands = 3 : i64, tpu.core_type = #tpu.core_type<tc>, window_params = [{pipeline_mode = #tpu.pipeline_mode<synchronous>, transform_indices = @transform_0, window_bounds = array<i64: 8, 384>}, {pipeline_mode = #tpu.pipeline_mode<synchronous>, transform_indices = @transform_1, window_bounds = array<i64: 1, 384>}, {pipeline_mode = #tpu.pipeline_mode<synchronous>, transform_indices = @transform_2, window_bounds = array<i64: 16, 8, 72>}, {pipeline_mode = #tpu.pipeline_mode<synchronous>, transform_indices = @transform_3, window_bounds = array<i64: 8, 16>}, {pipeline_mode = #tpu.pipeline_mode<synchronous>, transform_indices = @transform_4, window_bounds = array<i64: 8, 16>}, {pipeline_mode = #tpu.pipeline_mode<synchronous>, transform_indices = @transform_5, window_bounds = array<i64: 8, 16>}, {pipeline_mode = #tpu.pipeline_mode<synchronous>, transform_indices = @transform_6, window_bounds = array<i64: 8, 8>}, {pipeline_mode = #tpu.pipeline_mode<synchronous>, transform_indices = @transform_7, window_bounds = array<i64: 8, 8>}, {pipeline_mode = #tpu.pipeline_mode<synchronous>, transform_indices = @transform_8, window_bounds = array<i64: 8, 384>}]} {
    %c0 = arith.constant 0 : index
    %c0_0 = arith.constant 0 : index
    %0 = vector.load %arg2[%c0, %c0_0] : memref<1x384xf32, #tpu.memory_space<vmem>>, vector<1x384xf32>
    %cst = arith.constant 1.000000e+00 : f32
    %1 = vector.broadcast %cst : f32 to vector<384x128xf32>
    %c0_1 = arith.constant 0 : index
    %c0_2 = arith.constant 0 : index
    %2 = vector.load %arg12[%c0_1, %c0_2] : memref<384x128xf32, #tpu.memory_space<vmem>>, vector<384x128xf32>
    tpu.vector_store %arg12[%c0_1, %c0_2], %1 {strides = array<i32>} : memref<384x128xf32, #tpu.memory_space<vmem>>, vector<384x128xf32>,
    %c0_3 = arith.constant 0 : index
    %c0_4 = arith.constant 0 : index
    %3 = vector.load %arg1[%c0_3, %c0_4] : memref<8x384xf32, #tpu.memory_space<vmem>>, vector<8x384xf32>
    %4 = vector.broadcast %0 : vector<1x384xf32> to vector<8x384xf32>
    %5 = arith.mulf %3, %4 : vector<8x384xf32>
    %c0_5 = arith.constant 0 : index
    %c0_6 = arith.constant 0 : index
    %6 = vector.load %arg10[%c0_5, %c0_6] : memref<8x384xf32, #tpu.memory_space<vmem>>, vector<8x384xf32>
    tpu.vector_store %arg10[%c0_5, %c0_6], %5 {strides = array<i32>} : memref<8x384xf32, #tpu.memory_space<vmem>>, vector<8x384xf32>,
    %c0_7 = arith.constant 0 : index
    %c0_8 = arith.constant 0 : index
    %7 = vector.load %arg10[%c0_7, %c0_8] : memref<8x384xf32, #tpu.memory_space<vmem>>, vector<8x384xf32>
    %8 = arith.mulf %7, %7 : vector<8x384xf32>
    %9 = tpu.concatenate %7, %8 in 0 : vector<8x384xf32>, vector<8x384xf32> -> vector<16x384xf32>
    %c0_9 = arith.constant 0 : index
    %c0_10 = arith.constant 0 : index
    %10 = vector.load %arg12[%c0_9, %c0_10] : memref<384x128xf32, #tpu.memory_space<vmem>>, vector<384x128xf32>
    %cst_11 = arith.constant dense<0.000000e+00> : vector<16x128xf32>
    %11 = tpu.matmul %9, %10, %cst_11 {dimension_numbers = #tpu.dot_dimension_numbers<[1], [0], [0], [1], [0, 0, 1, 1], [], []>} : vector<16x384xf32>, vector<384x128xf32>, vector<16x128xf32> -> vector<16x128xf32>
    %12 = vector.extract_strided_slice %11 {offsets = [0, 0], sizes = [16, 1], strides = [1, 1]} : vector<16x128xf32> to vector<16x1xf32>
    %13 = vector.extract_strided_slice %12 {offsets = [0, 0], sizes = [8, 1], strides = [1, 1]} : vector<16x1xf32> to vector<8x1xf32>
    %14 = vector.extract_strided_slice %12 {offsets = [8, 0], sizes = [8, 1], strides = [1, 1]} : vector<16x1xf32> to vector<8x1xf32>
    %c0_12 = arith.constant 0 : index
    %c0_13 = arith.constant 0 : index
    %15 = vector.load %arg7[%c0_12, %c0_13] : memref<8x8xf32, #tpu.memory_space<vmem>>, vector<8x1xf32>
    %c0_14 = arith.constant 0 : index
    %c0_15 = arith.constant 0 : index
    %16 = vector.load %arg8[%c0_14, %c0_15] : memref<8x8xf32, #tpu.memory_space<vmem>>, vector<8x1xf32>
    %17 = vector.extract_strided_slice %13 {offsets = [0, 0], sizes = [4, 1], strides = [1, 1]} : vector<8x1xf32> to vector<4x1xf32>
    %18 = vector.extract_strided_slice %13 {offsets = [4, 0], sizes = [4, 1], strides = [1, 1]} : vector<8x1xf32> to vector<4x1xf32>
    %19 = arith.addf %17, %18 : vector<4x1xf32>
    %20 = tpu.concatenate %19, %19 in 0 : vector<4x1xf32>, vector<4x1xf32> -> vector<8x1xf32>
    %21 = vector.extract_strided_slice %14 {offsets = [0, 0], sizes = [4, 1], strides = [1, 1]} : vector<8x1xf32> to vector<4x1xf32>
    %22 = vector.extract_strided_slice %14 {offsets = [4, 0], sizes = [4, 1], strides = [1, 1]} : vector<8x1xf32> to vector<4x1xf32>
    %23 = arith.addf %21, %22 : vector<4x1xf32>
    %24 = tpu.concatenate %23, %23 in 0 : vector<4x1xf32>, vector<4x1xf32> -> vector<8x1xf32>
    %cst_16 = arith.constant 0.001953125 : f32
    %25 = vector.broadcast %cst_16 : f32 to vector<8x1xf32>
    %26 = arith.mulf %20, %25 : vector<8x1xf32>
    %cst_17 = arith.constant 0.001953125 : f32
    %27 = vector.broadcast %cst_17 : f32 to vector<8x1xf32>
    %28 = arith.mulf %24, %27 : vector<8x1xf32>
    %29 = arith.mulf %26, %26 : vector<8x1xf32>
    %30 = arith.subf %28, %29 : vector<8x1xf32>
    %cst_18 = arith.constant 1.000000e+00 : f32
    %31 = vector.broadcast %cst_18 : f32 to vector<8x1xf32>
    %32 = arith.mulf %31, %30 : vector<8x1xf32>
    %cst_19 = arith.constant 9.99999974E-6 : f32
    %33 = vector.broadcast %cst_19 : f32 to vector<8x1xf32>
    %34 = arith.addf %32, %33 : vector<8x1xf32>
    %35 = math.rsqrt %34 : vector<8x1xf32>
    %cst_20 = arith.constant 1.000000e+00 : f32
    %36 = vector.broadcast %cst_20 : f32 to vector<8x1xf32>
    %37 = arith.mulf %36, %35 : vector<8x1xf32>
    %38 = arith.mulf %37, %15 : vector<8x1xf32>
    %cst_21 = arith.constant 1.000000e+00 : f32
    %39 = vector.broadcast %cst_21 : f32 to vector<8x1xf32>
    %40 = arith.mulf %39, %26 : vector<8x1xf32>
    %41 = arith.mulf %40, %35 : vector<8x1xf32>
    %42 = arith.mulf %41, %15 : vector<8x1xf32>
    %43 = arith.subf %16, %42 : vector<8x1xf32>
    %44 = vector.broadcast %38 : vector<8x1xf32> to vector<8x384xf32>
    %45 = arith.mulf %7, %44 : vector<8x384xf32>
    %46 = vector.broadcast %43 : vector<8x1xf32> to vector<8x384xf32>
    %47 = arith.addf %45, %46 : vector<8x384xf32>
    %48 = vector.broadcast %0 : vector<1x384xf32> to vector<8x384xf32>
    %49 = arith.mulf %47, %48 : vector<8x384xf32>
    %c0_22 = arith.constant 0 : index
    %c0_23 = arith.constant 0 : index
    %50 = vector.load %arg11[%c0_22, %c0_23] : memref<8x384xf32, #tpu.memory_space<vmem>>, vector<8x384xf32>
    tpu.vector_store %arg11[%c0_22, %c0_23], %49 {strides = array<i32>} : memref<8x384xf32, #tpu.memory_space<vmem>>, vector<8x384xf32>,
    %c0_24 = arith.constant 0 : index
    %c0_25 = arith.constant 0 : index
    %51 = vector.load %arg10[%c0_24, %c0_25] : memref<8x384xf32, #tpu.memory_space<vmem>>, vector<8x384xf32>
    %c18_i32 = arith.constant 18 : i32
    %52 = tpu.dynamic_rotate %51 by %c18_i32 dim 1 : vector<8x384xf32>, i32 -> vector<8x384xf32>
    %c1_i32 = arith.constant 1 : i32
    %53 = tpu.dynamic_rotate %52 by %c1_i32 dim 1 : vector<8x384xf32>, i32 -> vector<8x384xf32>
    %c383_i32 = arith.constant 383 : i32
    %54 = tpu.dynamic_rotate %52 by %c383_i32 dim 1 : vector<8x384xf32>, i32 -> vector<8x384xf32>
    %c1_i32_26 = arith.constant 1 : i32
    %55 = tpu.dynamic_rotate %51 by %c1_i32_26 dim 1 : vector<8x384xf32>, i32 -> vector<8x384xf32>
    %c383_i32_27 = arith.constant 383 : i32
    %56 = tpu.dynamic_rotate %51 by %c383_i32_27 dim 1 : vector<8x384xf32>, i32 -> vector<8x384xf32>
    %c366_i32 = arith.constant 366 : i32
    %57 = tpu.dynamic_rotate %51 by %c366_i32 dim 1 : vector<8x384xf32>, i32 -> vector<8x384xf32>
    %c1_i32_28 = arith.constant 1 : i32
    %58 = tpu.dynamic_rotate %57 by %c1_i32_28 dim 1 : vector<8x384xf32>, i32 -> vector<8x384xf32>
    %c383_i32_29 = arith.constant 383 : i32
    %59 = tpu.dynamic_rotate %57 by %c383_i32_29 dim 1 : vector<8x384xf32>, i32 -> vector<8x384xf32>
    %60 = tpu.concatenate %53, %52, %54, %55, %51, %56, %58, %57, %59 in 0 : vector<8x384xf32>, vector<8x384xf32>, vector<8x384xf32>, vector<8x384xf32>, vector<8x384xf32>, vector<8x384xf32>, vector<8x384xf32>, vector<8x384xf32>, vector<8x384xf32> -> vector<72x384xf32>
    %c0_30 = arith.constant 0 : index
    %c0_31 = arith.constant 0 : index
    %c0_32 = arith.constant 0 : index
    %61 = vector.load %arg3[%c0_30, %c0_31, %c0_32] : memref<16x8x72xf32, #tpu.memory_space<vmem>>, vector<1x8x72xf32>
    %62 = vector.shape_cast %61 : vector<1x8x72xf32> to vector<8x72xf32>
    %cst_33 = arith.constant dense<0.000000e+00> : vector<8x384xf32>
    %63 = tpu.matmul %62, %60, %cst_33 {dimension_numbers = #tpu.dot_dimension_numbers<[1], [0], [0], [1], [0, 0, 1, 1], [], []>} : vector<8x72xf32>, vector<72x384xf32>, vector<8x384xf32> -> vector<8x384xf32>
    %c0_34 = arith.constant 0 : index
    %c0_35 = arith.constant 0 : index
    %64 = vector.load %arg4[%c0_34, %c0_35] : memref<8x16xf32, #tpu.memory_space<vmem>>, vector<8x1xf32>
    %65 = vector.broadcast %64 : vector<8x1xf32> to vector<8x384xf32>
    %66 = arith.addf %63, %65 : vector<8x384xf32>
    %67 = vector.broadcast %0 : vector<1x384xf32> to vector<8x384xf32>
    %68 = arith.mulf %66, %67 : vector<8x384xf32>
    %cst_36 = arith.constant 0.000000e+00 : f32
    %69 = vector.broadcast %cst_36 : f32 to vector<8x384xf32>
    %70 = arith.cmpf oge, %68, %69 : vector<8x384xf32>
    %cst_37 = arith.constant 0.00999999977 : f32
    %71 = vector.broadcast %cst_37 : f32 to vector<8x384xf32>
    %72 = arith.mulf %71, %68 : vector<8x384xf32>
    %73 = arith.select %70, %68, %72 : vector<8x384xi1>, vector<8x384xf32>
    %74 = arith.mulf %73, %73 : vector<8x384xf32>
    %75 = tpu.concatenate %73, %74 in 0 : vector<8x384xf32>, vector<8x384xf32> -> vector<16x384xf32>
    %c0_38 = arith.constant 0 : index
    %c0_39 = arith.constant 0 : index
    %76 = vector.load %arg12[%c0_38, %c0_39] : memref<384x128xf32, #tpu.memory_space<vmem>>, vector<384x128xf32>
    %cst_40 = arith.constant dense<0.000000e+00> : vector<16x128xf32>
    %77 = tpu.matmul %75, %76, %cst_40 {dimension_numbers = #tpu.dot_dimension_numbers<[1], [0], [0], [1], [0, 0, 1, 1], [], []>} : vector<16x384xf32>, vector<384x128xf32>, vector<16x128xf32> -> vector<16x128xf32>
    %78 = vector.extract_strided_slice %77 {offsets = [0, 0], sizes = [16, 1], strides = [1, 1]} : vector<16x128xf32> to vector<16x1xf32>
    %79 = vector.extract_strided_slice %78 {offsets = [0, 0], sizes = [8, 1], strides = [1, 1]} : vector<16x1xf32> to vector<8x1xf32>
    %80 = vector.extract_strided_slice %78 {offsets = [8, 0], sizes = [8, 1], strides = [1, 1]} : vector<16x1xf32> to vector<8x1xf32>
    %cst_41 = arith.constant dense<0.000000e+00> : vector<1xf32>
    %81 = vector.multi_reduction <add>, %80, %cst_41 [0] : vector<8x1xf32> to vector<1xf32>
    %82 = vector.shape_cast %81 : vector<1xf32> to vector<1x1xf32>
    %83 = math.sqrt %82 : vector<1x1xf32>
    %cst_42 = arith.constant 9.99999997E-7 : f32
    %84 = vector.broadcast %cst_42 : f32 to vector<1x1xf32>
    %85 = arith.addf %83, %84 : vector<1x1xf32>
    %cst_43 = arith.constant 1.000000e+00 : f32
    %86 = vector.broadcast %cst_43 : f32 to vector<1x1xf32>
    %87 = arith.divf %86, %85 : vector<1x1xf32>
    %c0_44 = arith.constant 0 : index
    %c0_45 = arith.constant 0 : index
    %88 = vector.load %arg5[%c0_44, %c0_45] : memref<8x16xf32, #tpu.memory_space<vmem>>, vector<8x1xf32>
    %c0_46 = arith.constant 0 : index
    %c0_47 = arith.constant 0 : index
    %89 = vector.load %arg6[%c0_46, %c0_47] : memref<8x16xf32, #tpu.memory_space<vmem>>, vector<8x1xf32>
    %90 = vector.extract_strided_slice %79 {offsets = [0, 0], sizes = [4, 1], strides = [1, 1]} : vector<8x1xf32> to vector<4x1xf32>
    %91 = vector.extract_strided_slice %79 {offsets = [4, 0], sizes = [4, 1], strides = [1, 1]} : vector<8x1xf32> to vector<4x1xf32>
    %92 = arith.addf %90, %91 : vector<4x1xf32>
    %93 = tpu.concatenate %92, %92 in 0 : vector<4x1xf32>, vector<4x1xf32> -> vector<8x1xf32>
    %94 = vector.extract_strided_slice %80 {offsets = [0, 0], sizes = [4, 1], strides = [1, 1]} : vector<8x1xf32> to vector<4x1xf32>
    %95 = vector.extract_strided_slice %80 {offsets = [4, 0], sizes = [4, 1], strides = [1, 1]} : vector<8x1xf32> to vector<4x1xf32>
    %96 = arith.addf %94, %95 : vector<4x1xf32>
    %97 = tpu.concatenate %96, %96 in 0 : vector<4x1xf32>, vector<4x1xf32> -> vector<8x1xf32>
    %cst_48 = arith.constant 0.001953125 : f32
    %98 = vector.broadcast %cst_48 : f32 to vector<8x1xf32>
    %99 = arith.mulf %93, %98 : vector<8x1xf32>
    %cst_49 = arith.constant 0.001953125 : f32
    %100 = vector.broadcast %cst_49 : f32 to vector<8x1xf32>
    %101 = arith.mulf %97, %100 : vector<8x1xf32>
    %102 = arith.mulf %99, %99 : vector<8x1xf32>
    %103 = arith.subf %101, %102 : vector<8x1xf32>
    %104 = arith.mulf %87, %87 : vector<1x1xf32>
    %105 = vector.broadcast %104 : vector<1x1xf32> to vector<8x1xf32>
    %106 = arith.mulf %105, %103 : vector<8x1xf32>
    %cst_50 = arith.constant 9.99999974E-6 : f32
    %107 = vector.broadcast %cst_50 : f32 to vector<8x1xf32>
    %108 = arith.addf %106, %107 : vector<8x1xf32>
    %109 = math.rsqrt %108 : vector<8x1xf32>
    %110 = vector.broadcast %87 : vector<1x1xf32> to vector<8x1xf32>
    %111 = arith.mulf %110, %109 : vector<8x1xf32>
    %112 = arith.mulf %111, %88 : vector<8x1xf32>
    %113 = vector.broadcast %87 : vector<1x1xf32> to vector<8x1xf32>
    %114 = arith.mulf %113, %99 : vector<8x1xf32>
    %115 = arith.mulf %114, %109 : vector<8x1xf32>
    %116 = arith.mulf %115, %88 : vector<8x1xf32>
    %117 = arith.subf %89, %116 : vector<8x1xf32>
    %118 = vector.broadcast %112 : vector<8x1xf32> to vector<8x384xf32>
    %119 = arith.mulf %73, %118 : vector<8x384xf32>
    %120 = vector.broadcast %117 : vector<8x1xf32> to vector<8x384xf32>
    %121 = arith.addf %119, %120 : vector<8x384xf32>
    %122 = vector.broadcast %0 : vector<1x384xf32> to vector<8x384xf32>
    %123 = arith.mulf %121, %122 : vector<8x384xf32>
    %c0_51 = arith.constant 0 : index
    %c0_52 = arith.constant 0 : index
    %124 = vector.load %arg10[%c0_51, %c0_52] : memref<8x384xf32, #tpu.memory_space<vmem>>, vector<8x384xf32>
    tpu.vector_store %arg10[%c0_51, %c0_52], %123 {strides = array<i32>} : memref<8x384xf32, #tpu.memory_space<vmem>>, vector<8x384xf32>,
    %c0_53 = arith.constant 0 : index
    %c0_54 = arith.constant 0 : index
    %125 = vector.load %arg10[%c0_53, %c0_54] : memref<8x384xf32, #tpu.memory_space<vmem>>, vector<8x384xf32>
    %c18_i32_55 = arith.constant 18 : i32
    %126 = tpu.dynamic_rotate %125 by %c18_i32_55 dim 1 : vector<8x384xf32>, i32 -> vector<8x384xf32>
    %c1_i32_56 = arith.constant 1 : i32
    %127 = tpu.dynamic_rotate %126 by %c1_i32_56 dim 1 : vector<8x384xf32>, i32 -> vector<8x384xf32>
    %c383_i32_57 = arith.constant 383 : i32
    %128 = tpu.dynamic_rotate %126 by %c383_i32_57 dim 1 : vector<8x384xf32>, i32 -> vector<8x384xf32>
    %c1_i32_58 = arith.constant 1 : i32
    %129 = tpu.dynamic_rotate %125 by %c1_i32_58 dim 1 : vector<8x384xf32>, i32 -> vector<8x384xf32>
    %c383_i32_59 = arith.constant 383 : i32
    %130 = tpu.dynamic_rotate %125 by %c383_i32_59 dim 1 : vector<8x384xf32>, i32 -> vector<8x384xf32>
    %c366_i32_60 = arith.constant 366 : i32
    %131 = tpu.dynamic_rotate %125 by %c366_i32_60 dim 1 : vector<8x384xf32>, i32 -> vector<8x384xf32>
    %c1_i32_61 = arith.constant 1 : i32
    %132 = tpu.dynamic_rotate %131 by %c1_i32_61 dim 1 : vector<8x384xf32>, i32 -> vector<8x384xf32>
    %c383_i32_62 = arith.constant 383 : i32
    %133 = tpu.dynamic_rotate %131 by %c383_i32_62 dim 1 : vector<8x384xf32>, i32 -> vector<8x384xf32>
    %134 = tpu.concatenate %127, %126, %128, %129, %125, %130, %132, %131, %133 in 0 : vector<8x384xf32>, vector<8x384xf32>, vector<8x384xf32>, vector<8x384xf32>, vector<8x384xf32>, vector<8x384xf32>, vector<8x384xf32>, vector<8x384xf32>, vector<8x384xf32> -> vector<72x384xf32>
    %c1 = arith.constant 1 : index
    %c0_63 = arith.constant 0 : index
    %c0_64 = arith.constant 0 : index
    %135 = vector.load %arg3[%c1, %c0_63, %c0_64] : memref<16x8x72xf32, #tpu.memory_space<vmem>>, vector<1x8x72xf32>
    %136 = vector.shape_cast %135 : vector<1x8x72xf32> to vector<8x72xf32>
    %cst_65 = arith.constant dense<0.000000e+00> : vector<8x384xf32>
    %137 = tpu.matmul %136, %134, %cst_65 {dimension_numbers = #tpu.dot_dimension_numbers<[1], [0], [0], [1], [0, 0, 1, 1], [], []>} : vector<8x72xf32>, vector<72x384xf32>, vector<8x384xf32> -> vector<8x384xf32>
    %c0_66 = arith.constant 0 : index
    %c1_67 = arith.constant 1 : index
    %138 = vector.load %arg4[%c0_66, %c1_67] : memref<8x16xf32, #tpu.memory_space<vmem>>, vector<8x1xf32>
    %139 = vector.broadcast %138 : vector<8x1xf32> to vector<8x384xf32>
    %140 = arith.addf %137, %139 : vector<8x384xf32>
    %141 = vector.broadcast %0 : vector<1x384xf32> to vector<8x384xf32>
    %142 = arith.mulf %140, %141 : vector<8x384xf32>
    %cst_68 = arith.constant 0.000000e+00 : f32
    %143 = vector.broadcast %cst_68 : f32 to vector<8x384xf32>
    %144 = arith.cmpf oge, %142, %143 : vector<8x384xf32>
    %cst_69 = arith.constant 0.00999999977 : f32
    %145 = vector.broadcast %cst_69 : f32 to vector<8x384xf32>
    %146 = arith.mulf %145, %142 : vector<8x384xf32>
    %147 = arith.select %144, %142, %146 : vector<8x384xi1>, vector<8x384xf32>
    %148 = arith.mulf %147, %147 : vector<8x384xf32>
    %149 = tpu.concatenate %147, %148 in 0 : vector<8x384xf32>, vector<8x384xf32> -> vector<16x384xf32>
    %c0_70 = arith.constant 0 : index
    %c0_71 = arith.constant 0 : index
    %150 = vector.load %arg12[%c0_70, %c0_71] : memref<384x128xf32, #tpu.memory_space<vmem>>, vector<384x128xf32>
    %cst_72 = arith.constant dense<0.000000e+00> : vector<16x128xf32>
    %151 = tpu.matmul %149, %150, %cst_72 {dimension_numbers = #tpu.dot_dimension_numbers<[1], [0], [0], [1], [0, 0, 1, 1], [], []>} : vector<16x384xf32>, vector<384x128xf32>, vector<16x128xf32> -> vector<16x128xf32>
    %152 = vector.extract_strided_slice %151 {offsets = [0, 0], sizes = [16, 1], strides = [1, 1]} : vector<16x128xf32> to vector<16x1xf32>
    %153 = vector.extract_strided_slice %152 {offsets = [0, 0], sizes = [8, 1], strides = [1, 1]} : vector<16x1xf32> to vector<8x1xf32>
    %154 = vector.extract_strided_slice %152 {offsets = [8, 0], sizes = [8, 1], strides = [1, 1]} : vector<16x1xf32> to vector<8x1xf32>
    %cst_73 = arith.constant dense<0.000000e+00> : vector<1xf32>
    %155 = vector.multi_reduction <add>, %154, %cst_73 [0] : vector<8x1xf32> to vector<1xf32>
    %156 = vector.shape_cast %155 : vector<1xf32> to vector<1x1xf32>
    %157 = math.sqrt %156 : vector<1x1xf32>
    %cst_74 = arith.constant 9.99999997E-7 : f32
    %158 = vector.broadcast %cst_74 : f32 to vector<1x1xf32>
    %159 = arith.addf %157, %158 : vector<1x1xf32>
    %cst_75 = arith.constant 1.000000e+00 : f32
    %160 = vector.broadcast %cst_75 : f32 to vector<1x1xf32>
    %161 = arith.divf %160, %159 : vector<1x1xf32>
    %c0_76 = arith.constant 0 : index
    %c1_77 = arith.constant 1 : index
    %162 = vector.load %arg5[%c0_76, %c1_77] : memref<8x16xf32, #tpu.memory_space<vmem>>, vector<8x1xf32>
    %c0_78 = arith.constant 0 : index
    %c1_79 = arith.constant 1 : index
    %163 = vector.load %arg6[%c0_78, %c1_79] : memref<8x16xf32, #tpu.memory_space<vmem>>, vector<8x1xf32>
    %164 = vector.extract_strided_slice %153 {offsets = [0, 0], sizes = [4, 1], strides = [1, 1]} : vector<8x1xf32> to vector<4x1xf32>
    %165 = vector.extract_strided_slice %153 {offsets = [4, 0], sizes = [4, 1], strides = [1, 1]} : vector<8x1xf32> to vector<4x1xf32>
    %166 = arith.addf %164, %165 : vector<4x1xf32>
    %167 = tpu.concatenate %166, %166 in 0 : vector<4x1xf32>, vector<4x1xf32> -> vector<8x1xf32>
    %168 = vector.extract_strided_slice %154 {offsets = [0, 0], sizes = [4, 1], strides = [1, 1]} : vector<8x1xf32> to vector<4x1xf32>
    %169 = vector.extract_strided_slice %154 {offsets = [4, 0], sizes = [4, 1], strides = [1, 1]} : vector<8x1xf32> to vector<4x1xf32>
    %170 = arith.addf %168, %169 : vector<4x1xf32>
    %171 = tpu.concatenate %170, %170 in 0 : vector<4x1xf32>, vector<4x1xf32> -> vector<8x1xf32>
    %cst_80 = arith.constant 0.001953125 : f32
    %172 = vector.broadcast %cst_80 : f32 to vector<8x1xf32>
    %173 = arith.mulf %167, %172 : vector<8x1xf32>
    %cst_81 = arith.constant 0.001953125 : f32
    %174 = vector.broadcast %cst_81 : f32 to vector<8x1xf32>
    %175 = arith.mulf %171, %174 : vector<8x1xf32>
    %176 = arith.mulf %173, %173 : vector<8x1xf32>
    %177 = arith.subf %175, %176 : vector<8x1xf32>
    %178 = arith.mulf %161, %161 : vector<1x1xf32>
    %179 = vector.broadcast %178 : vector<1x1xf32> to vector<8x1xf32>
    %180 = arith.mulf %179, %177 : vector<8x1xf32>
    %cst_82 = arith.constant 9.99999974E-6 : f32
    %181 = vector.broadcast %cst_82 : f32 to vector<8x1xf32>
    %182 = arith.addf %180, %181 : vector<8x1xf32>
    %183 = math.rsqrt %182 : vector<8x1xf32>
    %184 = vector.broadcast %161 : vector<1x1xf32> to vector<8x1xf32>
    %185 = arith.mulf %184, %183 : vector<8x1xf32>
    %186 = arith.mulf %185, %162 : vector<8x1xf32>
    %187 = vector.broadcast %161 : vector<1x1xf32> to vector<8x1xf32>
    %188 = arith.mulf %187, %173 : vector<8x1xf32>
    %189 = arith.mulf %188, %183 : vector<8x1xf32>
    %190 = arith.mulf %189, %162 : vector<8x1xf32>
    %191 = arith.subf %163, %190 : vector<8x1xf32>
    %192 = vector.broadcast %186 : vector<8x1xf32> to vector<8x384xf32>
    %193 = arith.mulf %147, %192 : vector<8x384xf32>
    %194 = vector.broadcast %191 : vector<8x1xf32> to vector<8x384xf32>
    %195 = arith.addf %193, %194 : vector<8x384xf32>
    %196 = vector.broadcast %0 : vector<1x384xf32> to vector<8x384xf32>
    %197 = arith.mulf %195, %196 : vector<8x384xf32>
    %c0_83 = arith.constant 0 : index
    %c0_84 = arith.constant 0 : index
    %198 = vector.load %arg11[%c0_83, %c0_84] : memref<8x384xf32, #tpu.memory_space<vmem>>, vector<8x384xf32>
    %199 = arith.addf %197, %198 : vector<8x384xf32>
    %c0_85 = arith.constant 0 : index
    %c0_86 = arith.constant 0 : index
    %200 = vector.load %arg10[%c0_85, %c0_86] : memref<8x384xf32, #tpu.memory_space<vmem>>, vector<8x384xf32>
    tpu.vector_store %arg10[%c0_85, %c0_86], %199 {strides = array<i32>} : memref<8x384xf32, #tpu.memory_space<vmem>>, vector<8x384xf32>,
    %c0_87 = arith.constant 0 : index
    %c0_88 = arith.constant 0 : index
    %201 = vector.load %arg10[%c0_87, %c0_88] : memref<8x384xf32, #tpu.memory_space<vmem>>, vector<8x384xf32>
    %c18_i32_89 = arith.constant 18 : i32
    %202 = tpu.dynamic_rotate %201 by %c18_i32_89 dim 1 : vector<8x384xf32>, i32 -> vector<8x384xf32>
    %c1_i32_90 = arith.constant 1 : i32
    %203 = tpu.dynamic_rotate %202 by %c1_i32_90 dim 1 : vector<8x384xf32>, i32 -> vector<8x384xf32>
    %c383_i32_91 = arith.constant 383 : i32
    %204 = tpu.dynamic_rotate %202 by %c383_i32_91 dim 1 : vector<8x384xf32>, i32 -> vector<8x384xf32>
    %c1_i32_92 = arith.constant 1 : i32
    %205 = tpu.dynamic_rotate %201 by %c1_i32_92 dim 1 : vector<8x384xf32>, i32 -> vector<8x384xf32>
    %c383_i32_93 = arith.constant 383 : i32
    %206 = tpu.dynamic_rotate %201 by %c383_i32_93 dim 1 : vector<8x384xf32>, i32 -> vector<8x384xf32>
    %c366_i32_94 = arith.constant 366 : i32
    %207 = tpu.dynamic_rotate %201 by %c366_i32_94 dim 1 : vector<8x384xf32>, i32 -> vector<8x384xf32>
    %c1_i32_95 = arith.constant 1 : i32
    %208 = tpu.dynamic_rotate %207 by %c1_i32_95 dim 1 : vector<8x384xf32>, i32 -> vector<8x384xf32>
    %c383_i32_96 = arith.constant 383 : i32
    %209 = tpu.dynamic_rotate %207 by %c383_i32_96 dim 1 : vector<8x384xf32>, i32 -> vector<8x384xf32>
    %210 = tpu.concatenate %203, %202, %204, %205, %201, %206, %208, %207, %209 in 0 : vector<8x384xf32>, vector<8x384xf32>, vector<8x384xf32>, vector<8x384xf32>, vector<8x384xf32>, vector<8x384xf32>, vector<8x384xf32>, vector<8x384xf32>, vector<8x384xf32> -> vector<72x384xf32>
    %c2 = arith.constant 2 : index
    %c0_97 = arith.constant 0 : index
    %c0_98 = arith.constant 0 : index
    %211 = vector.load %arg3[%c2, %c0_97, %c0_98] : memref<16x8x72xf32, #tpu.memory_space<vmem>>, vector<1x8x72xf32>
    %212 = vector.shape_cast %211 : vector<1x8x72xf32> to vector<8x72xf32>
    %cst_99 = arith.constant dense<0.000000e+00> : vector<8x384xf32>
    %213 = tpu.matmul %212, %210, %cst_99 {dimension_numbers = #tpu.dot_dimension_numbers<[1], [0], [0], [1], [0, 0, 1, 1], [], []>} : vector<8x72xf32>, vector<72x384xf32>, vector<8x384xf32> -> vector<8x384xf32>
    %c0_100 = arith.constant 0 : index
    %c2_101 = arith.constant 2 : index
    %214 = vector.load %arg4[%c0_100, %c2_101] : memref<8x16xf32, #tpu.memory_space<vmem>>, vector<8x1xf32>
    %215 = vector.broadcast %214 : vector<8x1xf32> to vector<8x384xf32>
    %216 = arith.addf %213, %215 : vector<8x384xf32>
    %217 = vector.broadcast %0 : vector<1x384xf32> to vector<8x384xf32>
    %218 = arith.mulf %216, %217 : vector<8x384xf32>
    %cst_102 = arith.constant 0.000000e+00 : f32
    %219 = vector.broadcast %cst_102 : f32 to vector<8x384xf32>
    %220 = arith.cmpf oge, %218, %219 : vector<8x384xf32>
    %cst_103 = arith.constant 0.00999999977 : f32
    %221 = vector.broadcast %cst_103 : f32 to vector<8x384xf32>
    %222 = arith.mulf %221, %218 : vector<8x384xf32>
    %223 = arith.select %220, %218, %222 : vector<8x384xi1>, vector<8x384xf32>
    %224 = arith.mulf %223, %223 : vector<8x384xf32>
    %225 = tpu.concatenate %223, %224 in 0 : vector<8x384xf32>, vector<8x384xf32> -> vector<16x384xf32>
    %c0_104 = arith.constant 0 : index
    %c0_105 = arith.constant 0 : index
    %226 = vector.load %arg12[%c0_104, %c0_105] : memref<384x128xf32, #tpu.memory_space<vmem>>, vector<384x128xf32>
    %cst_106 = arith.constant dense<0.000000e+00> : vector<16x128xf32>
    %227 = tpu.matmul %225, %226, %cst_106 {dimension_numbers = #tpu.dot_dimension_numbers<[1], [0], [0], [1], [0, 0, 1, 1], [], []>} : vector<16x384xf32>, vector<384x128xf32>, vector<16x128xf32> -> vector<16x128xf32>
    %228 = vector.extract_strided_slice %227 {offsets = [0, 0], sizes = [16, 1], strides = [1, 1]} : vector<16x128xf32> to vector<16x1xf32>
    %229 = vector.extract_strided_slice %228 {offsets = [0, 0], sizes = [8, 1], strides = [1, 1]} : vector<16x1xf32> to vector<8x1xf32>
    %230 = vector.extract_strided_slice %228 {offsets = [8, 0], sizes = [8, 1], strides = [1, 1]} : vector<16x1xf32> to vector<8x1xf32>
    %cst_107 = arith.constant dense<0.000000e+00> : vector<1xf32>
    %231 = vector.multi_reduction <add>, %230, %cst_107 [0] : vector<8x1xf32> to vector<1xf32>
    %232 = vector.shape_cast %231 : vector<1xf32> to vector<1x1xf32>
    %233 = math.sqrt %232 : vector<1x1xf32>
    %cst_108 = arith.constant 9.99999997E-7 : f32
    %234 = vector.broadcast %cst_108 : f32 to vector<1x1xf32>
    %235 = arith.addf %233, %234 : vector<1x1xf32>
    %cst_109 = arith.constant 1.000000e+00 : f32
    %236 = vector.broadcast %cst_109 : f32 to vector<1x1xf32>
    %237 = arith.divf %236, %235 : vector<1x1xf32>
    %c0_110 = arith.constant 0 : index
    %c2_111 = arith.constant 2 : index
    %238 = vector.load %arg5[%c0_110, %c2_111] : memref<8x16xf32, #tpu.memory_space<vmem>>, vector<8x1xf32>
    %c0_112 = arith.constant 0 : index
    %c2_113 = arith.constant 2 : index
    %239 = vector.load %arg6[%c0_112, %c2_113] : memref<8x16xf32, #tpu.memory_space<vmem>>, vector<8x1xf32>
    %240 = vector.extract_strided_slice %229 {offsets = [0, 0], sizes = [4, 1], strides = [1, 1]} : vector<8x1xf32> to vector<4x1xf32>
    %241 = vector.extract_strided_slice %229 {offsets = [4, 0], sizes = [4, 1], strides = [1, 1]} : vector<8x1xf32> to vector<4x1xf32>
    %242 = arith.addf %240, %241 : vector<4x1xf32>
    %243 = tpu.concatenate %242, %242 in 0 : vector<4x1xf32>, vector<4x1xf32> -> vector<8x1xf32>
    %244 = vector.extract_strided_slice %230 {offsets = [0, 0], sizes = [4, 1], strides = [1, 1]} : vector<8x1xf32> to vector<4x1xf32>
    %245 = vector.extract_strided_slice %230 {offsets = [4, 0], sizes = [4, 1], strides = [1, 1]} : vector<8x1xf32> to vector<4x1xf32>
    %246 = arith.addf %244, %245 : vector<4x1xf32>
    %247 = tpu.concatenate %246, %246 in 0 : vector<4x1xf32>, vector<4x1xf32> -> vector<8x1xf32>
    %cst_114 = arith.constant 0.001953125 : f32
    %248 = vector.broadcast %cst_114 : f32 to vector<8x1xf32>
    %249 = arith.mulf %243, %248 : vector<8x1xf32>
    %cst_115 = arith.constant 0.001953125 : f32
    %250 = vector.broadcast %cst_115 : f32 to vector<8x1xf32>
    %251 = arith.mulf %247, %250 : vector<8x1xf32>
    %252 = arith.mulf %249, %249 : vector<8x1xf32>
    %253 = arith.subf %251, %252 : vector<8x1xf32>
    %254 = arith.mulf %237, %237 : vector<1x1xf32>
    %255 = vector.broadcast %254 : vector<1x1xf32> to vector<8x1xf32>
    %256 = arith.mulf %255, %253 : vector<8x1xf32>
    %cst_116 = arith.constant 9.99999974E-6 : f32
    %257 = vector.broadcast %cst_116 : f32 to vector<8x1xf32>
    %258 = arith.addf %256, %257 : vector<8x1xf32>
    %259 = math.rsqrt %258 : vector<8x1xf32>
    %260 = vector.broadcast %237 : vector<1x1xf32> to vector<8x1xf32>
    %261 = arith.mulf %260, %259 : vector<8x1xf32>
    %262 = arith.mulf %261, %238 : vector<8x1xf32>
    %263 = vector.broadcast %237 : vector<1x1xf32> to vector<8x1xf32>
    %264 = arith.mulf %263, %249 : vector<8x1xf32>
    %265 = arith.mulf %264, %259 : vector<8x1xf32>
    %266 = arith.mulf %265, %238 : vector<8x1xf32>
    %267 = arith.subf %239, %266 : vector<8x1xf32>
    %268 = vector.broadcast %262 : vector<8x1xf32> to vector<8x384xf32>
    %269 = arith.mulf %223, %268 : vector<8x384xf32>
    %270 = vector.broadcast %267 : vector<8x1xf32> to vector<8x384xf32>
    %271 = arith.addf %269, %270 : vector<8x384xf32>
    %272 = vector.broadcast %0 : vector<1x384xf32> to vector<8x384xf32>
    %273 = arith.mulf %271, %272 : vector<8x384xf32>
    %c0_117 = arith.constant 0 : index
    %c0_118 = arith.constant 0 : index
    %274 = vector.load %arg10[%c0_117, %c0_118] : memref<8x384xf32, #tpu.memory_space<vmem>>, vector<8x384xf32>
    tpu.vector_store %arg10[%c0_117, %c0_118], %273 {strides = array<i32>} : memref<8x384xf32, #tpu.memory_space<vmem>>, vector<8x384xf32>,
    %c0_119 = arith.constant 0 : index
    %c0_120 = arith.constant 0 : index
    %275 = vector.load %arg10[%c0_119, %c0_120] : memref<8x384xf32, #tpu.memory_space<vmem>>, vector<8x384xf32>
    %c18_i32_121 = arith.constant 18 : i32
    %276 = tpu.dynamic_rotate %275 by %c18_i32_121 dim 1 : vector<8x384xf32>, i32 -> vector<8x384xf32>
    %c1_i32_122 = arith.constant 1 : i32
    %277 = tpu.dynamic_rotate %276 by %c1_i32_122 dim 1 : vector<8x384xf32>, i32 -> vector<8x384xf32>
    %c383_i32_123 = arith.constant 383 : i32
    %278 = tpu.dynamic_rotate %276 by %c383_i32_123 dim 1 : vector<8x384xf32>, i32 -> vector<8x384xf32>
    %c1_i32_124 = arith.constant 1 : i32
    %279 = tpu.dynamic_rotate %275 by %c1_i32_124 dim 1 : vector<8x384xf32>, i32 -> vector<8x384xf32>
    %c383_i32_125 = arith.constant 383 : i32
    %280 = tpu.dynamic_rotate %275 by %c383_i32_125 dim 1 : vector<8x384xf32>, i32 -> vector<8x384xf32>
    %c366_i32_126 = arith.constant 366 : i32
    %281 = tpu.dynamic_rotate %275 by %c366_i32_126 dim 1 : vector<8x384xf32>, i32 -> vector<8x384xf32>
    %c1_i32_127 = arith.constant 1 : i32
    %282 = tpu.dynamic_rotate %281 by %c1_i32_127 dim 1 : vector<8x384xf32>, i32 -> vector<8x384xf32>
    %c383_i32_128 = arith.constant 383 : i32
    %283 = tpu.dynamic_rotate %281 by %c383_i32_128 dim 1 : vector<8x384xf32>, i32 -> vector<8x384xf32>
    %284 = tpu.concatenate %277, %276, %278, %279, %275, %280, %282, %281, %283 in 0 : vector<8x384xf32>, vector<8x384xf32>, vector<8x384xf32>, vector<8x384xf32>, vector<8x384xf32>, vector<8x384xf32>, vector<8x384xf32>, vector<8x384xf32>, vector<8x384xf32> -> vector<72x384xf32>
    %c3 = arith.constant 3 : index
    %c0_129 = arith.constant 0 : index
    %c0_130 = arith.constant 0 : index
    %285 = vector.load %arg3[%c3, %c0_129, %c0_130] : memref<16x8x72xf32, #tpu.memory_space<vmem>>, vector<1x8x72xf32>
    %286 = vector.shape_cast %285 : vector<1x8x72xf32> to vector<8x72xf32>
    %cst_131 = arith.constant dense<0.000000e+00> : vector<8x384xf32>
    %287 = tpu.matmul %286, %284, %cst_131 {dimension_numbers = #tpu.dot_dimension_numbers<[1], [0], [0], [1], [0, 0, 1, 1], [], []>} : vector<8x72xf32>, vector<72x384xf32>, vector<8x384xf32> -> vector<8x384xf32>
    %c0_132 = arith.constant 0 : index
    %c3_133 = arith.constant 3 : index
    %288 = vector.load %arg4[%c0_132, %c3_133] : memref<8x16xf32, #tpu.memory_space<vmem>>, vector<8x1xf32>
    %289 = vector.broadcast %288 : vector<8x1xf32> to vector<8x384xf32>
    %290 = arith.addf %287, %289 : vector<8x384xf32>
    %291 = vector.broadcast %0 : vector<1x384xf32> to vector<8x384xf32>
    %292 = arith.mulf %290, %291 : vector<8x384xf32>
    %cst_134 = arith.constant 0.000000e+00 : f32
    %293 = vector.broadcast %cst_134 : f32 to vector<8x384xf32>
    %294 = arith.cmpf oge, %292, %293 : vector<8x384xf32>
    %cst_135 = arith.constant 0.00999999977 : f32
    %295 = vector.broadcast %cst_135 : f32 to vector<8x384xf32>
    %296 = arith.mulf %295, %292 : vector<8x384xf32>
    %297 = arith.select %294, %292, %296 : vector<8x384xi1>, vector<8x384xf32>
    %298 = arith.mulf %297, %297 : vector<8x384xf32>
    %299 = tpu.concatenate %297, %298 in 0 : vector<8x384xf32>, vector<8x384xf32> -> vector<16x384xf32>
    %c0_136 = arith.constant 0 : index
    %c0_137 = arith.constant 0 : index
    %300 = vector.load %arg12[%c0_136, %c0_137] : memref<384x128xf32, #tpu.memory_space<vmem>>, vector<384x128xf32>
    %cst_138 = arith.constant dense<0.000000e+00> : vector<16x128xf32>
    %301 = tpu.matmul %299, %300, %cst_138 {dimension_numbers = #tpu.dot_dimension_numbers<[1], [0], [0], [1], [0, 0, 1, 1], [], []>} : vector<16x384xf32>, vector<384x128xf32>, vector<16x128xf32> -> vector<16x128xf32>
    %302 = vector.extract_strided_slice %301 {offsets = [0, 0], sizes = [16, 1], strides = [1, 1]} : vector<16x128xf32> to vector<16x1xf32>
    %303 = vector.extract_strided_slice %302 {offsets = [0, 0], sizes = [8, 1], strides = [1, 1]} : vector<16x1xf32> to vector<8x1xf32>
    %304 = vector.extract_strided_slice %302 {offsets = [8, 0], sizes = [8, 1], strides = [1, 1]} : vector<16x1xf32> to vector<8x1xf32>
    %cst_139 = arith.constant dense<0.000000e+00> : vector<1xf32>
    %305 = vector.multi_reduction <add>, %304, %cst_139 [0] : vector<8x1xf32> to vector<1xf32>
    %306 = vector.shape_cast %305 : vector<1xf32> to vector<1x1xf32>
    %307 = math.sqrt %306 : vector<1x1xf32>
    %cst_140 = arith.constant 9.99999997E-7 : f32
    %308 = vector.broadcast %cst_140 : f32 to vector<1x1xf32>
    %309 = arith.addf %307, %308 : vector<1x1xf32>
    %cst_141 = arith.constant 1.000000e+00 : f32
    %310 = vector.broadcast %cst_141 : f32 to vector<1x1xf32>
    %311 = arith.divf %310, %309 : vector<1x1xf32>
    %c0_142 = arith.constant 0 : index
    %c3_143 = arith.constant 3 : index
    %312 = vector.load %arg5[%c0_142, %c3_143] : memref<8x16xf32, #tpu.memory_space<vmem>>, vector<8x1xf32>
    %c0_144 = arith.constant 0 : index
    %c3_145 = arith.constant 3 : index
    %313 = vector.load %arg6[%c0_144, %c3_145] : memref<8x16xf32, #tpu.memory_space<vmem>>, vector<8x1xf32>
    %314 = vector.extract_strided_slice %303 {offsets = [0, 0], sizes = [4, 1], strides = [1, 1]} : vector<8x1xf32> to vector<4x1xf32>
    %315 = vector.extract_strided_slice %303 {offsets = [4, 0], sizes = [4, 1], strides = [1, 1]} : vector<8x1xf32> to vector<4x1xf32>
    %316 = arith.addf %314, %315 : vector<4x1xf32>
    %317 = tpu.concatenate %316, %316 in 0 : vector<4x1xf32>, vector<4x1xf32> -> vector<8x1xf32>
    %318 = vector.extract_strided_slice %304 {offsets = [0, 0], sizes = [4, 1], strides = [1, 1]} : vector<8x1xf32> to vector<4x1xf32>
    %319 = vector.extract_strided_slice %304 {offsets = [4, 0], sizes = [4, 1], strides = [1, 1]} : vector<8x1xf32> to vector<4x1xf32>
    %320 = arith.addf %318, %319 : vector<4x1xf32>
    %321 = tpu.concatenate %320, %320 in 0 : vector<4x1xf32>, vector<4x1xf32> -> vector<8x1xf32>
    %cst_146 = arith.constant 0.001953125 : f32
    %322 = vector.broadcast %cst_146 : f32 to vector<8x1xf32>
    %323 = arith.mulf %317, %322 : vector<8x1xf32>
    %cst_147 = arith.constant 0.001953125 : f32
    %324 = vector.broadcast %cst_147 : f32 to vector<8x1xf32>
    %325 = arith.mulf %321, %324 : vector<8x1xf32>
    %326 = arith.mulf %323, %323 : vector<8x1xf32>
    %327 = arith.subf %325, %326 : vector<8x1xf32>
    %328 = arith.mulf %311, %311 : vector<1x1xf32>
    %329 = vector.broadcast %328 : vector<1x1xf32> to vector<8x1xf32>
    %330 = arith.mulf %329, %327 : vector<8x1xf32>
    %cst_148 = arith.constant 9.99999974E-6 : f32
    %331 = vector.broadcast %cst_148 : f32 to vector<8x1xf32>
    %332 = arith.addf %330, %331 : vector<8x1xf32>
    %333 = math.rsqrt %332 : vector<8x1xf32>
    %334 = vector.broadcast %311 : vector<1x1xf32> to vector<8x1xf32>
    %335 = arith.mulf %334, %333 : vector<8x1xf32>
    %336 = arith.mulf %335, %312 : vector<8x1xf32>
    %337 = vector.broadcast %311 : vector<1x1xf32> to vector<8x1xf32>
    %338 = arith.mulf %337, %323 : vector<8x1xf32>
    %339 = arith.mulf %338, %333 : vector<8x1xf32>
    %340 = arith.mulf %339, %312 : vector<8x1xf32>
    %341 = arith.subf %313, %340 : vector<8x1xf32>
    %342 = vector.broadcast %336 : vector<8x1xf32> to vector<8x384xf32>
    %343 = arith.mulf %297, %342 : vector<8x384xf32>
    %344 = vector.broadcast %341 : vector<8x1xf32> to vector<8x384xf32>
    %345 = arith.addf %343, %344 : vector<8x384xf32>
    %346 = vector.broadcast %0 : vector<1x384xf32> to vector<8x384xf32>
    %347 = arith.mulf %345, %346 : vector<8x384xf32>
    %c0_149 = arith.constant 0 : index
    %c0_150 = arith.constant 0 : index
    %348 = vector.load %arg10[%c0_149, %c0_150] : memref<8x384xf32, #tpu.memory_space<vmem>>, vector<8x384xf32>
    tpu.vector_store %arg10[%c0_149, %c0_150], %347 {strides = array<i32>} : memref<8x384xf32, #tpu.memory_space<vmem>>, vector<8x384xf32>,
    %c0_151 = arith.constant 0 : index
    %c0_152 = arith.constant 0 : index
    %349 = vector.load %arg10[%c0_151, %c0_152] : memref<8x384xf32, #tpu.memory_space<vmem>>, vector<8x384xf32>
    %c18_i32_153 = arith.constant 18 : i32
    %350 = tpu.dynamic_rotate %349 by %c18_i32_153 dim 1 : vector<8x384xf32>, i32 -> vector<8x384xf32>
    %c1_i32_154 = arith.constant 1 : i32
    %351 = tpu.dynamic_rotate %350 by %c1_i32_154 dim 1 : vector<8x384xf32>, i32 -> vector<8x384xf32>
    %c383_i32_155 = arith.constant 383 : i32
    %352 = tpu.dynamic_rotate %350 by %c383_i32_155 dim 1 : vector<8x384xf32>, i32 -> vector<8x384xf32>
    %c1_i32_156 = arith.constant 1 : i32
    %353 = tpu.dynamic_rotate %349 by %c1_i32_156 dim 1 : vector<8x384xf32>, i32 -> vector<8x384xf32>
    %c383_i32_157 = arith.constant 383 : i32
    %354 = tpu.dynamic_rotate %349 by %c383_i32_157 dim 1 : vector<8x384xf32>, i32 -> vector<8x384xf32>
    %c366_i32_158 = arith.constant 366 : i32
    %355 = tpu.dynamic_rotate %349 by %c366_i32_158 dim 1 : vector<8x384xf32>, i32 -> vector<8x384xf32>
    %c1_i32_159 = arith.constant 1 : i32
    %356 = tpu.dynamic_rotate %355 by %c1_i32_159 dim 1 : vector<8x384xf32>, i32 -> vector<8x384xf32>
    %c383_i32_160 = arith.constant 383 : i32
    %357 = tpu.dynamic_rotate %355 by %c383_i32_160 dim 1 : vector<8x384xf32>, i32 -> vector<8x384xf32>
    %358 = tpu.concatenate %351, %350, %352, %353, %349, %354, %356, %355, %357 in 0 : vector<8x384xf32>, vector<8x384xf32>, vector<8x384xf32>, vector<8x384xf32>, vector<8x384xf32>, vector<8x384xf32>, vector<8x384xf32>, vector<8x384xf32>, vector<8x384xf32> -> vector<72x384xf32>
    %c4 = arith.constant 4 : index
    %c0_161 = arith.constant 0 : index
    %c0_162 = arith.constant 0 : index
    %359 = vector.load %arg3[%c4, %c0_161, %c0_162] : memref<16x8x72xf32, #tpu.memory_space<vmem>>, vector<1x8x72xf32>
    %360 = vector.shape_cast %359 : vector<1x8x72xf32> to vector<8x72xf32>
    %cst_163 = arith.constant dense<0.000000e+00> : vector<8x384xf32>
    %361 = tpu.matmul %360, %358, %cst_163 {dimension_numbers = #tpu.dot_dimension_numbers<[1], [0], [0], [1], [0, 0, 1, 1], [], []>} : vector<8x72xf32>, vector<72x384xf32>, vector<8x384xf32> -> vector<8x384xf32>
    %c0_164 = arith.constant 0 : index
    %c4_165 = arith.constant 4 : index
    %362 = vector.load %arg4[%c0_164, %c4_165] : memref<8x16xf32, #tpu.memory_space<vmem>>, vector<8x1xf32>
    %363 = vector.broadcast %362 : vector<8x1xf32> to vector<8x384xf32>
    %364 = arith.addf %361, %363 : vector<8x384xf32>
    %365 = vector.broadcast %0 : vector<1x384xf32> to vector<8x384xf32>
    %366 = arith.mulf %364, %365 : vector<8x384xf32>
    %cst_166 = arith.constant 0.000000e+00 : f32
    %367 = vector.broadcast %cst_166 : f32 to vector<8x384xf32>
    %368 = arith.cmpf oge, %366, %367 : vector<8x384xf32>
    %cst_167 = arith.constant 0.00999999977 : f32
    %369 = vector.broadcast %cst_167 : f32 to vector<8x384xf32>
    %370 = arith.mulf %369, %366 : vector<8x384xf32>
    %371 = arith.select %368, %366, %370 : vector<8x384xi1>, vector<8x384xf32>
    %372 = arith.mulf %371, %371 : vector<8x384xf32>
    %373 = tpu.concatenate %371, %372 in 0 : vector<8x384xf32>, vector<8x384xf32> -> vector<16x384xf32>
    %c0_168 = arith.constant 0 : index
    %c0_169 = arith.constant 0 : index
    %374 = vector.load %arg12[%c0_168, %c0_169] : memref<384x128xf32, #tpu.memory_space<vmem>>, vector<384x128xf32>
    %cst_170 = arith.constant dense<0.000000e+00> : vector<16x128xf32>
    %375 = tpu.matmul %373, %374, %cst_170 {dimension_numbers = #tpu.dot_dimension_numbers<[1], [0], [0], [1], [0, 0, 1, 1], [], []>} : vector<16x384xf32>, vector<384x128xf32>, vector<16x128xf32> -> vector<16x128xf32>
    %376 = vector.extract_strided_slice %375 {offsets = [0, 0], sizes = [16, 1], strides = [1, 1]} : vector<16x128xf32> to vector<16x1xf32>
    %377 = vector.extract_strided_slice %376 {offsets = [0, 0], sizes = [8, 1], strides = [1, 1]} : vector<16x1xf32> to vector<8x1xf32>
    %378 = vector.extract_strided_slice %376 {offsets = [8, 0], sizes = [8, 1], strides = [1, 1]} : vector<16x1xf32> to vector<8x1xf32>
    %cst_171 = arith.constant dense<0.000000e+00> : vector<1xf32>
    %379 = vector.multi_reduction <add>, %378, %cst_171 [0] : vector<8x1xf32> to vector<1xf32>
    %380 = vector.shape_cast %379 : vector<1xf32> to vector<1x1xf32>
    %381 = math.sqrt %380 : vector<1x1xf32>
    %cst_172 = arith.constant 9.99999997E-7 : f32
    %382 = vector.broadcast %cst_172 : f32 to vector<1x1xf32>
    %383 = arith.addf %381, %382 : vector<1x1xf32>
    %cst_173 = arith.constant 1.000000e+00 : f32
    %384 = vector.broadcast %cst_173 : f32 to vector<1x1xf32>
    %385 = arith.divf %384, %383 : vector<1x1xf32>
    %c0_174 = arith.constant 0 : index
    %c4_175 = arith.constant 4 : index
    %386 = vector.load %arg5[%c0_174, %c4_175] : memref<8x16xf32, #tpu.memory_space<vmem>>, vector<8x1xf32>
    %c0_176 = arith.constant 0 : index
    %c4_177 = arith.constant 4 : index
    %387 = vector.load %arg6[%c0_176, %c4_177] : memref<8x16xf32, #tpu.memory_space<vmem>>, vector<8x1xf32>
    %388 = vector.extract_strided_slice %377 {offsets = [0, 0], sizes = [4, 1], strides = [1, 1]} : vector<8x1xf32> to vector<4x1xf32>
    %389 = vector.extract_strided_slice %377 {offsets = [4, 0], sizes = [4, 1], strides = [1, 1]} : vector<8x1xf32> to vector<4x1xf32>
    %390 = arith.addf %388, %389 : vector<4x1xf32>
    %391 = tpu.concatenate %390, %390 in 0 : vector<4x1xf32>, vector<4x1xf32> -> vector<8x1xf32>
    %392 = vector.extract_strided_slice %378 {offsets = [0, 0], sizes = [4, 1], strides = [1, 1]} : vector<8x1xf32> to vector<4x1xf32>
    %393 = vector.extract_strided_slice %378 {offsets = [4, 0], sizes = [4, 1], strides = [1, 1]} : vector<8x1xf32> to vector<4x1xf32>
    %394 = arith.addf %392, %393 : vector<4x1xf32>
    %395 = tpu.concatenate %394, %394 in 0 : vector<4x1xf32>, vector<4x1xf32> -> vector<8x1xf32>
    %cst_178 = arith.constant 0.001953125 : f32
    %396 = vector.broadcast %cst_178 : f32 to vector<8x1xf32>
    %397 = arith.mulf %391, %396 : vector<8x1xf32>
    %cst_179 = arith.constant 0.001953125 : f32
    %398 = vector.broadcast %cst_179 : f32 to vector<8x1xf32>
    %399 = arith.mulf %395, %398 : vector<8x1xf32>
    %400 = arith.mulf %397, %397 : vector<8x1xf32>
    %401 = arith.subf %399, %400 : vector<8x1xf32>
    %402 = arith.mulf %385, %385 : vector<1x1xf32>
    %403 = vector.broadcast %402 : vector<1x1xf32> to vector<8x1xf32>
    %404 = arith.mulf %403, %401 : vector<8x1xf32>
    %cst_180 = arith.constant 9.99999974E-6 : f32
    %405 = vector.broadcast %cst_180 : f32 to vector<8x1xf32>
    %406 = arith.addf %404, %405 : vector<8x1xf32>
    %407 = math.rsqrt %406 : vector<8x1xf32>
    %408 = vector.broadcast %385 : vector<1x1xf32> to vector<8x1xf32>
    %409 = arith.mulf %408, %407 : vector<8x1xf32>
    %410 = arith.mulf %409, %386 : vector<8x1xf32>
    %411 = vector.broadcast %385 : vector<1x1xf32> to vector<8x1xf32>
    %412 = arith.mulf %411, %397 : vector<8x1xf32>
    %413 = arith.mulf %412, %407 : vector<8x1xf32>
    %414 = arith.mulf %413, %386 : vector<8x1xf32>
    %415 = arith.subf %387, %414 : vector<8x1xf32>
    %416 = vector.broadcast %410 : vector<8x1xf32> to vector<8x384xf32>
    %417 = arith.mulf %371, %416 : vector<8x384xf32>
    %418 = vector.broadcast %415 : vector<8x1xf32> to vector<8x384xf32>
    %419 = arith.addf %417, %418 : vector<8x384xf32>
    %420 = vector.broadcast %0 : vector<1x384xf32> to vector<8x384xf32>
    %421 = arith.mulf %419, %420 : vector<8x384xf32>
    %c0_181 = arith.constant 0 : index
    %c0_182 = arith.constant 0 : index
    %422 = vector.load %arg10[%c0_181, %c0_182] : memref<8x384xf32, #tpu.memory_space<vmem>>, vector<8x384xf32>
    tpu.vector_store %arg10[%c0_181, %c0_182], %421 {strides = array<i32>} : memref<8x384xf32, #tpu.memory_space<vmem>>, vector<8x384xf32>,
    %c0_183 = arith.constant 0 : index
    %c0_184 = arith.constant 0 : index
    %423 = vector.load %arg10[%c0_183, %c0_184] : memref<8x384xf32, #tpu.memory_space<vmem>>, vector<8x384xf32>
    %c18_i32_185 = arith.constant 18 : i32
    %424 = tpu.dynamic_rotate %423 by %c18_i32_185 dim 1 : vector<8x384xf32>, i32 -> vector<8x384xf32>
    %c1_i32_186 = arith.constant 1 : i32
    %425 = tpu.dynamic_rotate %424 by %c1_i32_186 dim 1 : vector<8x384xf32>, i32 -> vector<8x384xf32>
    %c383_i32_187 = arith.constant 383 : i32
    %426 = tpu.dynamic_rotate %424 by %c383_i32_187 dim 1 : vector<8x384xf32>, i32 -> vector<8x384xf32>
    %c1_i32_188 = arith.constant 1 : i32
    %427 = tpu.dynamic_rotate %423 by %c1_i32_188 dim 1 : vector<8x384xf32>, i32 -> vector<8x384xf32>
    %c383_i32_189 = arith.constant 383 : i32
    %428 = tpu.dynamic_rotate %423 by %c383_i32_189 dim 1 : vector<8x384xf32>, i32 -> vector<8x384xf32>
    %c366_i32_190 = arith.constant 366 : i32
    %429 = tpu.dynamic_rotate %423 by %c366_i32_190 dim 1 : vector<8x384xf32>, i32 -> vector<8x384xf32>
    %c1_i32_191 = arith.constant 1 : i32
    %430 = tpu.dynamic_rotate %429 by %c1_i32_191 dim 1 : vector<8x384xf32>, i32 -> vector<8x384xf32>
    %c383_i32_192 = arith.constant 383 : i32
    %431 = tpu.dynamic_rotate %429 by %c383_i32_192 dim 1 : vector<8x384xf32>, i32 -> vector<8x384xf32>
    %432 = tpu.concatenate %425, %424, %426, %427, %423, %428, %430, %429, %431 in 0 : vector<8x384xf32>, vector<8x384xf32>, vector<8x384xf32>, vector<8x384xf32>, vector<8x384xf32>, vector<8x384xf32>, vector<8x384xf32>, vector<8x384xf32>, vector<8x384xf32> -> vector<72x384xf32>
    %c5 = arith.constant 5 : index
    %c0_193 = arith.constant 0 : index
    %c0_194 = arith.constant 0 : index
    %433 = vector.load %arg3[%c5, %c0_193, %c0_194] : memref<16x8x72xf32, #tpu.memory_space<vmem>>, vector<1x8x72xf32>
    %434 = vector.shape_cast %433 : vector<1x8x72xf32> to vector<8x72xf32>
    %cst_195 = arith.constant dense<0.000000e+00> : vector<8x384xf32>
    %435 = tpu.matmul %434, %432, %cst_195 {dimension_numbers = #tpu.dot_dimension_numbers<[1], [0], [0], [1], [0, 0, 1, 1], [], []>} : vector<8x72xf32>, vector<72x384xf32>, vector<8x384xf32> -> vector<8x384xf32>
    %c0_196 = arith.constant 0 : index
    %c5_197 = arith.constant 5 : index
    %436 = vector.load %arg4[%c0_196, %c5_197] : memref<8x16xf32, #tpu.memory_space<vmem>>, vector<8x1xf32>
    %437 = vector.broadcast %436 : vector<8x1xf32> to vector<8x384xf32>
    %438 = arith.addf %435, %437 : vector<8x384xf32>
    %439 = vector.broadcast %0 : vector<1x384xf32> to vector<8x384xf32>
    %440 = arith.mulf %438, %439 : vector<8x384xf32>
    %cst_198 = arith.constant 0.000000e+00 : f32
    %441 = vector.broadcast %cst_198 : f32 to vector<8x384xf32>
    %442 = arith.cmpf oge, %440, %441 : vector<8x384xf32>
    %cst_199 = arith.constant 0.00999999977 : f32
    %443 = vector.broadcast %cst_199 : f32 to vector<8x384xf32>
    %444 = arith.mulf %443, %440 : vector<8x384xf32>
    %445 = arith.select %442, %440, %444 : vector<8x384xi1>, vector<8x384xf32>
    %446 = arith.mulf %445, %445 : vector<8x384xf32>
    %447 = tpu.concatenate %445, %446 in 0 : vector<8x384xf32>, vector<8x384xf32> -> vector<16x384xf32>
    %c0_200 = arith.constant 0 : index
    %c0_201 = arith.constant 0 : index
    %448 = vector.load %arg12[%c0_200, %c0_201] : memref<384x128xf32, #tpu.memory_space<vmem>>, vector<384x128xf32>
    %cst_202 = arith.constant dense<0.000000e+00> : vector<16x128xf32>
    %449 = tpu.matmul %447, %448, %cst_202 {dimension_numbers = #tpu.dot_dimension_numbers<[1], [0], [0], [1], [0, 0, 1, 1], [], []>} : vector<16x384xf32>, vector<384x128xf32>, vector<16x128xf32> -> vector<16x128xf32>
    %450 = vector.extract_strided_slice %449 {offsets = [0, 0], sizes = [16, 1], strides = [1, 1]} : vector<16x128xf32> to vector<16x1xf32>
    %451 = vector.extract_strided_slice %450 {offsets = [0, 0], sizes = [8, 1], strides = [1, 1]} : vector<16x1xf32> to vector<8x1xf32>
    %452 = vector.extract_strided_slice %450 {offsets = [8, 0], sizes = [8, 1], strides = [1, 1]} : vector<16x1xf32> to vector<8x1xf32>
    %cst_203 = arith.constant dense<0.000000e+00> : vector<1xf32>
    %453 = vector.multi_reduction <add>, %452, %cst_203 [0] : vector<8x1xf32> to vector<1xf32>
    %454 = vector.shape_cast %453 : vector<1xf32> to vector<1x1xf32>
    %455 = math.sqrt %454 : vector<1x1xf32>
    %cst_204 = arith.constant 9.99999997E-7 : f32
    %456 = vector.broadcast %cst_204 : f32 to vector<1x1xf32>
    %457 = arith.addf %455, %456 : vector<1x1xf32>
    %cst_205 = arith.constant 1.000000e+00 : f32
    %458 = vector.broadcast %cst_205 : f32 to vector<1x1xf32>
    %459 = arith.divf %458, %457 : vector<1x1xf32>
    %c0_206 = arith.constant 0 : index
    %c5_207 = arith.constant 5 : index
    %460 = vector.load %arg5[%c0_206, %c5_207] : memref<8x16xf32, #tpu.memory_space<vmem>>, vector<8x1xf32>
    %c0_208 = arith.constant 0 : index
    %c5_209 = arith.constant 5 : index
    %461 = vector.load %arg6[%c0_208, %c5_209] : memref<8x16xf32, #tpu.memory_space<vmem>>, vector<8x1xf32>
    %462 = vector.extract_strided_slice %451 {offsets = [0, 0], sizes = [4, 1], strides = [1, 1]} : vector<8x1xf32> to vector<4x1xf32>
    %463 = vector.extract_strided_slice %451 {offsets = [4, 0], sizes = [4, 1], strides = [1, 1]} : vector<8x1xf32> to vector<4x1xf32>
    %464 = arith.addf %462, %463 : vector<4x1xf32>
    %465 = tpu.concatenate %464, %464 in 0 : vector<4x1xf32>, vector<4x1xf32> -> vector<8x1xf32>
    %466 = vector.extract_strided_slice %452 {offsets = [0, 0], sizes = [4, 1], strides = [1, 1]} : vector<8x1xf32> to vector<4x1xf32>
    %467 = vector.extract_strided_slice %452 {offsets = [4, 0], sizes = [4, 1], strides = [1, 1]} : vector<8x1xf32> to vector<4x1xf32>
    %468 = arith.addf %466, %467 : vector<4x1xf32>
    %469 = tpu.concatenate %468, %468 in 0 : vector<4x1xf32>, vector<4x1xf32> -> vector<8x1xf32>
    %cst_210 = arith.constant 0.001953125 : f32
    %470 = vector.broadcast %cst_210 : f32 to vector<8x1xf32>
    %471 = arith.mulf %465, %470 : vector<8x1xf32>
    %cst_211 = arith.constant 0.001953125 : f32
    %472 = vector.broadcast %cst_211 : f32 to vector<8x1xf32>
    %473 = arith.mulf %469, %472 : vector<8x1xf32>
    %474 = arith.mulf %471, %471 : vector<8x1xf32>
    %475 = arith.subf %473, %474 : vector<8x1xf32>
    %476 = arith.mulf %459, %459 : vector<1x1xf32>
    %477 = vector.broadcast %476 : vector<1x1xf32> to vector<8x1xf32>
    %478 = arith.mulf %477, %475 : vector<8x1xf32>
    %cst_212 = arith.constant 9.99999974E-6 : f32
    %479 = vector.broadcast %cst_212 : f32 to vector<8x1xf32>
    %480 = arith.addf %478, %479 : vector<8x1xf32>
    %481 = math.rsqrt %480 : vector<8x1xf32>
    %482 = vector.broadcast %459 : vector<1x1xf32> to vector<8x1xf32>
    %483 = arith.mulf %482, %481 : vector<8x1xf32>
    %484 = arith.mulf %483, %460 : vector<8x1xf32>
    %485 = vector.broadcast %459 : vector<1x1xf32> to vector<8x1xf32>
    %486 = arith.mulf %485, %471 : vector<8x1xf32>
    %487 = arith.mulf %486, %481 : vector<8x1xf32>
    %488 = arith.mulf %487, %460 : vector<8x1xf32>
    %489 = arith.subf %461, %488 : vector<8x1xf32>
    %490 = vector.broadcast %484 : vector<8x1xf32> to vector<8x384xf32>
    %491 = arith.mulf %445, %490 : vector<8x384xf32>
    %492 = vector.broadcast %489 : vector<8x1xf32> to vector<8x384xf32>
    %493 = arith.addf %491, %492 : vector<8x384xf32>
    %494 = vector.broadcast %0 : vector<1x384xf32> to vector<8x384xf32>
    %495 = arith.mulf %493, %494 : vector<8x384xf32>
    %c0_213 = arith.constant 0 : index
    %c0_214 = arith.constant 0 : index
    %496 = vector.load %arg10[%c0_213, %c0_214] : memref<8x384xf32, #tpu.memory_space<vmem>>, vector<8x384xf32>
    tpu.vector_store %arg10[%c0_213, %c0_214], %495 {strides = array<i32>} : memref<8x384xf32, #tpu.memory_space<vmem>>, vector<8x384xf32>,
    %c0_215 = arith.constant 0 : index
    %c0_216 = arith.constant 0 : index
    %497 = vector.load %arg10[%c0_215, %c0_216] : memref<8x384xf32, #tpu.memory_space<vmem>>, vector<8x384xf32>
    %498 = arith.mulf %497, %497 : vector<8x384xf32>
    %499 = tpu.concatenate %497, %498 in 0 : vector<8x384xf32>, vector<8x384xf32> -> vector<16x384xf32>
    %c0_217 = arith.constant 0 : index
    %c0_218 = arith.constant 0 : index
    %500 = vector.load %arg12[%c0_217, %c0_218] : memref<384x128xf32, #tpu.memory_space<vmem>>, vector<384x128xf32>
    %cst_219 = arith.constant dense<0.000000e+00> : vector<16x128xf32>
    %501 = tpu.matmul %499, %500, %cst_219 {dimension_numbers = #tpu.dot_dimension_numbers<[1], [0], [0], [1], [0, 0, 1, 1], [], []>} : vector<16x384xf32>, vector<384x128xf32>, vector<16x128xf32> -> vector<16x128xf32>
    %502 = vector.extract_strided_slice %501 {offsets = [0, 0], sizes = [16, 1], strides = [1, 1]} : vector<16x128xf32> to vector<16x1xf32>
    %503 = vector.extract_strided_slice %502 {offsets = [0, 0], sizes = [8, 1], strides = [1, 1]} : vector<16x1xf32> to vector<8x1xf32>
    %504 = vector.extract_strided_slice %502 {offsets = [8, 0], sizes = [8, 1], strides = [1, 1]} : vector<16x1xf32> to vector<8x1xf32>
    %c0_220 = arith.constant 0 : index
    %c3_221 = arith.constant 3 : index
    %505 = vector.load %arg7[%c0_220, %c3_221] : memref<8x8xf32, #tpu.memory_space<vmem>>, vector<8x1xf32>
    %c0_222 = arith.constant 0 : index
    %c3_223 = arith.constant 3 : index
    %506 = vector.load %arg8[%c0_222, %c3_223] : memref<8x8xf32, #tpu.memory_space<vmem>>, vector<8x1xf32>
    %507 = vector.extract_strided_slice %503 {offsets = [0, 0], sizes = [4, 1], strides = [1, 1]} : vector<8x1xf32> to vector<4x1xf32>
    %508 = vector.extract_strided_slice %503 {offsets = [4, 0], sizes = [4, 1], strides = [1, 1]} : vector<8x1xf32> to vector<4x1xf32>
    %509 = arith.addf %507, %508 : vector<4x1xf32>
    %510 = tpu.concatenate %509, %509 in 0 : vector<4x1xf32>, vector<4x1xf32> -> vector<8x1xf32>
    %511 = vector.extract_strided_slice %504 {offsets = [0, 0], sizes = [4, 1], strides = [1, 1]} : vector<8x1xf32> to vector<4x1xf32>
    %512 = vector.extract_strided_slice %504 {offsets = [4, 0], sizes = [4, 1], strides = [1, 1]} : vector<8x1xf32> to vector<4x1xf32>
    %513 = arith.addf %511, %512 : vector<4x1xf32>
    %514 = tpu.concatenate %513, %513 in 0 : vector<4x1xf32>, vector<4x1xf32> -> vector<8x1xf32>
    %cst_224 = arith.constant 0.001953125 : f32
    %515 = vector.broadcast %cst_224 : f32 to vector<8x1xf32>
    %516 = arith.mulf %510, %515 : vector<8x1xf32>
    %cst_225 = arith.constant 0.001953125 : f32
    %517 = vector.broadcast %cst_225 : f32 to vector<8x1xf32>
    %518 = arith.mulf %514, %517 : vector<8x1xf32>
    %519 = arith.mulf %516, %516 : vector<8x1xf32>
    %520 = arith.subf %518, %519 : vector<8x1xf32>
    %cst_226 = arith.constant 1.000000e+00 : f32
    %521 = vector.broadcast %cst_226 : f32 to vector<8x1xf32>
    %522 = arith.mulf %521, %520 : vector<8x1xf32>
    %cst_227 = arith.constant 9.99999974E-6 : f32
    %523 = vector.broadcast %cst_227 : f32 to vector<8x1xf32>
    %524 = arith.addf %522, %523 : vector<8x1xf32>
    %525 = math.rsqrt %524 : vector<8x1xf32>
    %cst_228 = arith.constant 1.000000e+00 : f32
    %526 = vector.broadcast %cst_228 : f32 to vector<8x1xf32>
    %527 = arith.mulf %526, %525 : vector<8x1xf32>
    %528 = arith.mulf %527, %505 : vector<8x1xf32>
    %cst_229 = arith.constant 1.000000e+00 : f32
    %529 = vector.broadcast %cst_229 : f32 to vector<8x1xf32>
    %530 = arith.mulf %529, %516 : vector<8x1xf32>
    %531 = arith.mulf %530, %525 : vector<8x1xf32>
    %532 = arith.mulf %531, %505 : vector<8x1xf32>
    %533 = arith.subf %506, %532 : vector<8x1xf32>
    %534 = vector.broadcast %528 : vector<8x1xf32> to vector<8x384xf32>
    %535 = arith.mulf %497, %534 : vector<8x384xf32>
    %536 = vector.broadcast %533 : vector<8x1xf32> to vector<8x384xf32>
    %537 = arith.addf %535, %536 : vector<8x384xf32>
    %538 = vector.broadcast %0 : vector<1x384xf32> to vector<8x384xf32>
    %539 = arith.mulf %537, %538 : vector<8x384xf32>
    %c0_230 = arith.constant 0 : index
    %c0_231 = arith.constant 0 : index
    %540 = vector.load %arg11[%c0_230, %c0_231] : memref<8x384xf32, #tpu.memory_space<vmem>>, vector<8x384xf32>
    tpu.vector_store %arg11[%c0_230, %c0_231], %539 {strides = array<i32>} : memref<8x384xf32, #tpu.memory_space<vmem>>, vector<8x384xf32>,
    %c0_232 = arith.constant 0 : index
    %c0_233 = arith.constant 0 : index
    %541 = vector.load %arg10[%c0_232, %c0_233] : memref<8x384xf32, #tpu.memory_space<vmem>>, vector<8x384xf32>
    %c18_i32_234 = arith.constant 18 : i32
    %542 = tpu.dynamic_rotate %541 by %c18_i32_234 dim 1 : vector<8x384xf32>, i32 -> vector<8x384xf32>
    %c1_i32_235 = arith.constant 1 : i32
    %543 = tpu.dynamic_rotate %542 by %c1_i32_235 dim 1 : vector<8x384xf32>, i32 -> vector<8x384xf32>
    %c383_i32_236 = arith.constant 383 : i32
    %544 = tpu.dynamic_rotate %542 by %c383_i32_236 dim 1 : vector<8x384xf32>, i32 -> vector<8x384xf32>
    %c1_i32_237 = arith.constant 1 : i32
    %545 = tpu.dynamic_rotate %541 by %c1_i32_237 dim 1 : vector<8x384xf32>, i32 -> vector<8x384xf32>
    %c383_i32_238 = arith.constant 383 : i32
    %546 = tpu.dynamic_rotate %541 by %c383_i32_238 dim 1 : vector<8x384xf32>, i32 -> vector<8x384xf32>
    %c366_i32_239 = arith.constant 366 : i32
    %547 = tpu.dynamic_rotate %541 by %c366_i32_239 dim 1 : vector<8x384xf32>, i32 -> vector<8x384xf32>
    %c1_i32_240 = arith.constant 1 : i32
    %548 = tpu.dynamic_rotate %547 by %c1_i32_240 dim 1 : vector<8x384xf32>, i32 -> vector<8x384xf32>
    %c383_i32_241 = arith.constant 383 : i32
    %549 = tpu.dynamic_rotate %547 by %c383_i32_241 dim 1 : vector<8x384xf32>, i32 -> vector<8x384xf32>
    %550 = tpu.concatenate %543, %542, %544, %545, %541, %546, %548, %547, %549 in 0 : vector<8x384xf32>, vector<8x384xf32>, vector<8x384xf32>, vector<8x384xf32>, vector<8x384xf32>, vector<8x384xf32>, vector<8x384xf32>, vector<8x384xf32>, vector<8x384xf32> -> vector<72x384xf32>
    %c6 = arith.constant 6 : index
    %c0_242 = arith.constant 0 : index
    %c0_243 = arith.constant 0 : index
    %551 = vector.load %arg3[%c6, %c0_242, %c0_243] : memref<16x8x72xf32, #tpu.memory_space<vmem>>, vector<1x8x72xf32>
    %552 = vector.shape_cast %551 : vector<1x8x72xf32> to vector<8x72xf32>
    %cst_244 = arith.constant dense<0.000000e+00> : vector<8x384xf32>
    %553 = tpu.matmul %552, %550, %cst_244 {dimension_numbers = #tpu.dot_dimension_numbers<[1], [0], [0], [1], [0, 0, 1, 1], [], []>} : vector<8x72xf32>, vector<72x384xf32>, vector<8x384xf32> -> vector<8x384xf32>
    %c0_245 = arith.constant 0 : index
    %c6_246 = arith.constant 6 : index
    %554 = vector.load %arg4[%c0_245, %c6_246] : memref<8x16xf32, #tpu.memory_space<vmem>>, vector<8x1xf32>
    %555 = vector.broadcast %554 : vector<8x1xf32> to vector<8x384xf32>
    %556 = arith.addf %553, %555 : vector<8x384xf32>
    %557 = vector.broadcast %0 : vector<1x384xf32> to vector<8x384xf32>
    %558 = arith.mulf %556, %557 : vector<8x384xf32>
    %cst_247 = arith.constant 0.000000e+00 : f32
    %559 = vector.broadcast %cst_247 : f32 to vector<8x384xf32>
    %560 = arith.cmpf oge, %558, %559 : vector<8x384xf32>
    %cst_248 = arith.constant 0.00999999977 : f32
    %561 = vector.broadcast %cst_248 : f32 to vector<8x384xf32>
    %562 = arith.mulf %561, %558 : vector<8x384xf32>
    %563 = arith.select %560, %558, %562 : vector<8x384xi1>, vector<8x384xf32>
    %564 = arith.mulf %563, %563 : vector<8x384xf32>
    %565 = tpu.concatenate %563, %564 in 0 : vector<8x384xf32>, vector<8x384xf32> -> vector<16x384xf32>
    %c0_249 = arith.constant 0 : index
    %c0_250 = arith.constant 0 : index
    %566 = vector.load %arg12[%c0_249, %c0_250] : memref<384x128xf32, #tpu.memory_space<vmem>>, vector<384x128xf32>
    %cst_251 = arith.constant dense<0.000000e+00> : vector<16x128xf32>
    %567 = tpu.matmul %565, %566, %cst_251 {dimension_numbers = #tpu.dot_dimension_numbers<[1], [0], [0], [1], [0, 0, 1, 1], [], []>} : vector<16x384xf32>, vector<384x128xf32>, vector<16x128xf32> -> vector<16x128xf32>
    %568 = vector.extract_strided_slice %567 {offsets = [0, 0], sizes = [16, 1], strides = [1, 1]} : vector<16x128xf32> to vector<16x1xf32>
    %569 = vector.extract_strided_slice %568 {offsets = [0, 0], sizes = [8, 1], strides = [1, 1]} : vector<16x1xf32> to vector<8x1xf32>
    %570 = vector.extract_strided_slice %568 {offsets = [8, 0], sizes = [8, 1], strides = [1, 1]} : vector<16x1xf32> to vector<8x1xf32>
    %cst_252 = arith.constant dense<0.000000e+00> : vector<1xf32>
    %571 = vector.multi_reduction <add>, %570, %cst_252 [0] : vector<8x1xf32> to vector<1xf32>
    %572 = vector.shape_cast %571 : vector<1xf32> to vector<1x1xf32>
    %573 = math.sqrt %572 : vector<1x1xf32>
    %cst_253 = arith.constant 9.99999997E-7 : f32
    %574 = vector.broadcast %cst_253 : f32 to vector<1x1xf32>
    %575 = arith.addf %573, %574 : vector<1x1xf32>
    %cst_254 = arith.constant 1.000000e+00 : f32
    %576 = vector.broadcast %cst_254 : f32 to vector<1x1xf32>
    %577 = arith.divf %576, %575 : vector<1x1xf32>
    %c0_255 = arith.constant 0 : index
    %c6_256 = arith.constant 6 : index
    %578 = vector.load %arg5[%c0_255, %c6_256] : memref<8x16xf32, #tpu.memory_space<vmem>>, vector<8x1xf32>
    %c0_257 = arith.constant 0 : index
    %c6_258 = arith.constant 6 : index
    %579 = vector.load %arg6[%c0_257, %c6_258] : memref<8x16xf32, #tpu.memory_space<vmem>>, vector<8x1xf32>
    %580 = vector.extract_strided_slice %569 {offsets = [0, 0], sizes = [4, 1], strides = [1, 1]} : vector<8x1xf32> to vector<4x1xf32>
    %581 = vector.extract_strided_slice %569 {offsets = [4, 0], sizes = [4, 1], strides = [1, 1]} : vector<8x1xf32> to vector<4x1xf32>
    %582 = arith.addf %580, %581 : vector<4x1xf32>
    %583 = tpu.concatenate %582, %582 in 0 : vector<4x1xf32>, vector<4x1xf32> -> vector<8x1xf32>
    %584 = vector.extract_strided_slice %570 {offsets = [0, 0], sizes = [4, 1], strides = [1, 1]} : vector<8x1xf32> to vector<4x1xf32>
    %585 = vector.extract_strided_slice %570 {offsets = [4, 0], sizes = [4, 1], strides = [1, 1]} : vector<8x1xf32> to vector<4x1xf32>
    %586 = arith.addf %584, %585 : vector<4x1xf32>
    %587 = tpu.concatenate %586, %586 in 0 : vector<4x1xf32>, vector<4x1xf32> -> vector<8x1xf32>
    %cst_259 = arith.constant 0.001953125 : f32
    %588 = vector.broadcast %cst_259 : f32 to vector<8x1xf32>
    %589 = arith.mulf %583, %588 : vector<8x1xf32>
    %cst_260 = arith.constant 0.001953125 : f32
    %590 = vector.broadcast %cst_260 : f32 to vector<8x1xf32>
    %591 = arith.mulf %587, %590 : vector<8x1xf32>
    %592 = arith.mulf %589, %589 : vector<8x1xf32>
    %593 = arith.subf %591, %592 : vector<8x1xf32>
    %594 = arith.mulf %577, %577 : vector<1x1xf32>
    %595 = vector.broadcast %594 : vector<1x1xf32> to vector<8x1xf32>
    %596 = arith.mulf %595, %593 : vector<8x1xf32>
    %cst_261 = arith.constant 9.99999974E-6 : f32
    %597 = vector.broadcast %cst_261 : f32 to vector<8x1xf32>
    %598 = arith.addf %596, %597 : vector<8x1xf32>
    %599 = math.rsqrt %598 : vector<8x1xf32>
    %600 = vector.broadcast %577 : vector<1x1xf32> to vector<8x1xf32>
    %601 = arith.mulf %600, %599 : vector<8x1xf32>
    %602 = arith.mulf %601, %578 : vector<8x1xf32>
    %603 = vector.broadcast %577 : vector<1x1xf32> to vector<8x1xf32>
    %604 = arith.mulf %603, %589 : vector<8x1xf32>
    %605 = arith.mulf %604, %599 : vector<8x1xf32>
    %606 = arith.mulf %605, %578 : vector<8x1xf32>
    %607 = arith.subf %579, %606 : vector<8x1xf32>
    %608 = vector.broadcast %602 : vector<8x1xf32> to vector<8x384xf32>
    %609 = arith.mulf %563, %608 : vector<8x384xf32>
    %610 = vector.broadcast %607 : vector<8x1xf32> to vector<8x384xf32>
    %611 = arith.addf %609, %610 : vector<8x384xf32>
    %612 = vector.broadcast %0 : vector<1x384xf32> to vector<8x384xf32>
    %613 = arith.mulf %611, %612 : vector<8x384xf32>
    %c0_262 = arith.constant 0 : index
    %c0_263 = arith.constant 0 : index
    %614 = vector.load %arg10[%c0_262, %c0_263] : memref<8x384xf32, #tpu.memory_space<vmem>>, vector<8x384xf32>
    tpu.vector_store %arg10[%c0_262, %c0_263], %613 {strides = array<i32>} : memref<8x384xf32, #tpu.memory_space<vmem>>, vector<8x384xf32>,
    %c0_264 = arith.constant 0 : index
    %c0_265 = arith.constant 0 : index
    %615 = vector.load %arg10[%c0_264, %c0_265] : memref<8x384xf32, #tpu.memory_space<vmem>>, vector<8x384xf32>
    %c18_i32_266 = arith.constant 18 : i32
    %616 = tpu.dynamic_rotate %615 by %c18_i32_266 dim 1 : vector<8x384xf32>, i32 -> vector<8x384xf32>
    %c1_i32_267 = arith.constant 1 : i32
    %617 = tpu.dynamic_rotate %616 by %c1_i32_267 dim 1 : vector<8x384xf32>, i32 -> vector<8x384xf32>
    %c383_i32_268 = arith.constant 383 : i32
    %618 = tpu.dynamic_rotate %616 by %c383_i32_268 dim 1 : vector<8x384xf32>, i32 -> vector<8x384xf32>
    %c1_i32_269 = arith.constant 1 : i32
    %619 = tpu.dynamic_rotate %615 by %c1_i32_269 dim 1 : vector<8x384xf32>, i32 -> vector<8x384xf32>
    %c383_i32_270 = arith.constant 383 : i32
    %620 = tpu.dynamic_rotate %615 by %c383_i32_270 dim 1 : vector<8x384xf32>, i32 -> vector<8x384xf32>
    %c366_i32_271 = arith.constant 366 : i32
    %621 = tpu.dynamic_rotate %615 by %c366_i32_271 dim 1 : vector<8x384xf32>, i32 -> vector<8x384xf32>
    %c1_i32_272 = arith.constant 1 : i32
    %622 = tpu.dynamic_rotate %621 by %c1_i32_272 dim 1 : vector<8x384xf32>, i32 -> vector<8x384xf32>
    %c383_i32_273 = arith.constant 383 : i32
    %623 = tpu.dynamic_rotate %621 by %c383_i32_273 dim 1 : vector<8x384xf32>, i32 -> vector<8x384xf32>
    %624 = tpu.concatenate %617, %616, %618, %619, %615, %620, %622, %621, %623 in 0 : vector<8x384xf32>, vector<8x384xf32>, vector<8x384xf32>, vector<8x384xf32>, vector<8x384xf32>, vector<8x384xf32>, vector<8x384xf32>, vector<8x384xf32>, vector<8x384xf32> -> vector<72x384xf32>
    %c7 = arith.constant 7 : index
    %c0_274 = arith.constant 0 : index
    %c0_275 = arith.constant 0 : index
    %625 = vector.load %arg3[%c7, %c0_274, %c0_275] : memref<16x8x72xf32, #tpu.memory_space<vmem>>, vector<1x8x72xf32>
    %626 = vector.shape_cast %625 : vector<1x8x72xf32> to vector<8x72xf32>
    %cst_276 = arith.constant dense<0.000000e+00> : vector<8x384xf32>
    %627 = tpu.matmul %626, %624, %cst_276 {dimension_numbers = #tpu.dot_dimension_numbers<[1], [0], [0], [1], [0, 0, 1, 1], [], []>} : vector<8x72xf32>, vector<72x384xf32>, vector<8x384xf32> -> vector<8x384xf32>
    %c0_277 = arith.constant 0 : index
    %c7_278 = arith.constant 7 : index
    %628 = vector.load %arg4[%c0_277, %c7_278] : memref<8x16xf32, #tpu.memory_space<vmem>>, vector<8x1xf32>
    %629 = vector.broadcast %628 : vector<8x1xf32> to vector<8x384xf32>
    %630 = arith.addf %627, %629 : vector<8x384xf32>
    %631 = vector.broadcast %0 : vector<1x384xf32> to vector<8x384xf32>
    %632 = arith.mulf %630, %631 : vector<8x384xf32>
    %cst_279 = arith.constant 0.000000e+00 : f32
    %633 = vector.broadcast %cst_279 : f32 to vector<8x384xf32>
    %634 = arith.cmpf oge, %632, %633 : vector<8x384xf32>
    %cst_280 = arith.constant 0.00999999977 : f32
    %635 = vector.broadcast %cst_280 : f32 to vector<8x384xf32>
    %636 = arith.mulf %635, %632 : vector<8x384xf32>
    %637 = arith.select %634, %632, %636 : vector<8x384xi1>, vector<8x384xf32>
    %638 = arith.mulf %637, %637 : vector<8x384xf32>
    %639 = tpu.concatenate %637, %638 in 0 : vector<8x384xf32>, vector<8x384xf32> -> vector<16x384xf32>
    %c0_281 = arith.constant 0 : index
    %c0_282 = arith.constant 0 : index
    %640 = vector.load %arg12[%c0_281, %c0_282] : memref<384x128xf32, #tpu.memory_space<vmem>>, vector<384x128xf32>
    %cst_283 = arith.constant dense<0.000000e+00> : vector<16x128xf32>
    %641 = tpu.matmul %639, %640, %cst_283 {dimension_numbers = #tpu.dot_dimension_numbers<[1], [0], [0], [1], [0, 0, 1, 1], [], []>} : vector<16x384xf32>, vector<384x128xf32>, vector<16x128xf32> -> vector<16x128xf32>
    %642 = vector.extract_strided_slice %641 {offsets = [0, 0], sizes = [16, 1], strides = [1, 1]} : vector<16x128xf32> to vector<16x1xf32>
    %643 = vector.extract_strided_slice %642 {offsets = [0, 0], sizes = [8, 1], strides = [1, 1]} : vector<16x1xf32> to vector<8x1xf32>
    %644 = vector.extract_strided_slice %642 {offsets = [8, 0], sizes = [8, 1], strides = [1, 1]} : vector<16x1xf32> to vector<8x1xf32>
    %cst_284 = arith.constant dense<0.000000e+00> : vector<1xf32>
    %645 = vector.multi_reduction <add>, %644, %cst_284 [0] : vector<8x1xf32> to vector<1xf32>
    %646 = vector.shape_cast %645 : vector<1xf32> to vector<1x1xf32>
    %647 = math.sqrt %646 : vector<1x1xf32>
    %cst_285 = arith.constant 9.99999997E-7 : f32
    %648 = vector.broadcast %cst_285 : f32 to vector<1x1xf32>
    %649 = arith.addf %647, %648 : vector<1x1xf32>
    %cst_286 = arith.constant 1.000000e+00 : f32
    %650 = vector.broadcast %cst_286 : f32 to vector<1x1xf32>
    %651 = arith.divf %650, %649 : vector<1x1xf32>
    %c0_287 = arith.constant 0 : index
    %c7_288 = arith.constant 7 : index
    %652 = vector.load %arg5[%c0_287, %c7_288] : memref<8x16xf32, #tpu.memory_space<vmem>>, vector<8x1xf32>
    %c0_289 = arith.constant 0 : index
    %c7_290 = arith.constant 7 : index
    %653 = vector.load %arg6[%c0_289, %c7_290] : memref<8x16xf32, #tpu.memory_space<vmem>>, vector<8x1xf32>
    %654 = vector.extract_strided_slice %643 {offsets = [0, 0], sizes = [4, 1], strides = [1, 1]} : vector<8x1xf32> to vector<4x1xf32>
    %655 = vector.extract_strided_slice %643 {offsets = [4, 0], sizes = [4, 1], strides = [1, 1]} : vector<8x1xf32> to vector<4x1xf32>
    %656 = arith.addf %654, %655 : vector<4x1xf32>
    %657 = tpu.concatenate %656, %656 in 0 : vector<4x1xf32>, vector<4x1xf32> -> vector<8x1xf32>
    %658 = vector.extract_strided_slice %644 {offsets = [0, 0], sizes = [4, 1], strides = [1, 1]} : vector<8x1xf32> to vector<4x1xf32>
    %659 = vector.extract_strided_slice %644 {offsets = [4, 0], sizes = [4, 1], strides = [1, 1]} : vector<8x1xf32> to vector<4x1xf32>
    %660 = arith.addf %658, %659 : vector<4x1xf32>
    %661 = tpu.concatenate %660, %660 in 0 : vector<4x1xf32>, vector<4x1xf32> -> vector<8x1xf32>
    %cst_291 = arith.constant 0.001953125 : f32
    %662 = vector.broadcast %cst_291 : f32 to vector<8x1xf32>
    %663 = arith.mulf %657, %662 : vector<8x1xf32>
    %cst_292 = arith.constant 0.001953125 : f32
    %664 = vector.broadcast %cst_292 : f32 to vector<8x1xf32>
    %665 = arith.mulf %661, %664 : vector<8x1xf32>
    %666 = arith.mulf %663, %663 : vector<8x1xf32>
    %667 = arith.subf %665, %666 : vector<8x1xf32>
    %668 = arith.mulf %651, %651 : vector<1x1xf32>
    %669 = vector.broadcast %668 : vector<1x1xf32> to vector<8x1xf32>
    %670 = arith.mulf %669, %667 : vector<8x1xf32>
    %cst_293 = arith.constant 9.99999974E-6 : f32
    %671 = vector.broadcast %cst_293 : f32 to vector<8x1xf32>
    %672 = arith.addf %670, %671 : vector<8x1xf32>
    %673 = math.rsqrt %672 : vector<8x1xf32>
    %674 = vector.broadcast %651 : vector<1x1xf32> to vector<8x1xf32>
    %675 = arith.mulf %674, %673 : vector<8x1xf32>
    %676 = arith.mulf %675, %652 : vector<8x1xf32>
    %677 = vector.broadcast %651 : vector<1x1xf32> to vector<8x1xf32>
    %678 = arith.mulf %677, %663 : vector<8x1xf32>
    %679 = arith.mulf %678, %673 : vector<8x1xf32>
    %680 = arith.mulf %679, %652 : vector<8x1xf32>
    %681 = arith.subf %653, %680 : vector<8x1xf32>
    %682 = vector.broadcast %676 : vector<8x1xf32> to vector<8x384xf32>
    %683 = arith.mulf %637, %682 : vector<8x384xf32>
    %684 = vector.broadcast %681 : vector<8x1xf32> to vector<8x384xf32>
    %685 = arith.addf %683, %684 : vector<8x384xf32>
    %686 = vector.broadcast %0 : vector<1x384xf32> to vector<8x384xf32>
    %687 = arith.mulf %685, %686 : vector<8x384xf32>
    %c0_294 = arith.constant 0 : index
    %c0_295 = arith.constant 0 : index
    %688 = vector.load %arg11[%c0_294, %c0_295] : memref<8x384xf32, #tpu.memory_space<vmem>>, vector<8x384xf32>
    %689 = arith.addf %687, %688 : vector<8x384xf32>
    %c0_296 = arith.constant 0 : index
    %c0_297 = arith.constant 0 : index
    %690 = vector.load %arg10[%c0_296, %c0_297] : memref<8x384xf32, #tpu.memory_space<vmem>>, vector<8x384xf32>
    tpu.vector_store %arg10[%c0_296, %c0_297], %689 {strides = array<i32>} : memref<8x384xf32, #tpu.memory_space<vmem>>, vector<8x384xf32>,
    %c0_298 = arith.constant 0 : index
    %c0_299 = arith.constant 0 : index
    %691 = vector.load %arg10[%c0_298, %c0_299] : memref<8x384xf32, #tpu.memory_space<vmem>>, vector<8x384xf32>
    %692 = arith.mulf %691, %691 : vector<8x384xf32>
    %693 = tpu.concatenate %691, %692 in 0 : vector<8x384xf32>, vector<8x384xf32> -> vector<16x384xf32>
    %c0_300 = arith.constant 0 : index
    %c0_301 = arith.constant 0 : index
    %694 = vector.load %arg12[%c0_300, %c0_301] : memref<384x128xf32, #tpu.memory_space<vmem>>, vector<384x128xf32>
    %cst_302 = arith.constant dense<0.000000e+00> : vector<16x128xf32>
    %695 = tpu.matmul %693, %694, %cst_302 {dimension_numbers = #tpu.dot_dimension_numbers<[1], [0], [0], [1], [0, 0, 1, 1], [], []>} : vector<16x384xf32>, vector<384x128xf32>, vector<16x128xf32> -> vector<16x128xf32>
    %696 = vector.extract_strided_slice %695 {offsets = [0, 0], sizes = [16, 1], strides = [1, 1]} : vector<16x128xf32> to vector<16x1xf32>
    %697 = vector.extract_strided_slice %696 {offsets = [0, 0], sizes = [8, 1], strides = [1, 1]} : vector<16x1xf32> to vector<8x1xf32>
    %698 = vector.extract_strided_slice %696 {offsets = [8, 0], sizes = [8, 1], strides = [1, 1]} : vector<16x1xf32> to vector<8x1xf32>
    %c0_303 = arith.constant 0 : index
    %c4_304 = arith.constant 4 : index
    %699 = vector.load %arg7[%c0_303, %c4_304] : memref<8x8xf32, #tpu.memory_space<vmem>>, vector<8x1xf32>
    %c0_305 = arith.constant 0 : index
    %c4_306 = arith.constant 4 : index
    %700 = vector.load %arg8[%c0_305, %c4_306] : memref<8x8xf32, #tpu.memory_space<vmem>>, vector<8x1xf32>
    %701 = vector.extract_strided_slice %697 {offsets = [0, 0], sizes = [4, 1], strides = [1, 1]} : vector<8x1xf32> to vector<4x1xf32>
    %702 = vector.extract_strided_slice %697 {offsets = [4, 0], sizes = [4, 1], strides = [1, 1]} : vector<8x1xf32> to vector<4x1xf32>
    %703 = arith.addf %701, %702 : vector<4x1xf32>
    %704 = tpu.concatenate %703, %703 in 0 : vector<4x1xf32>, vector<4x1xf32> -> vector<8x1xf32>
    %705 = vector.extract_strided_slice %698 {offsets = [0, 0], sizes = [4, 1], strides = [1, 1]} : vector<8x1xf32> to vector<4x1xf32>
    %706 = vector.extract_strided_slice %698 {offsets = [4, 0], sizes = [4, 1], strides = [1, 1]} : vector<8x1xf32> to vector<4x1xf32>
    %707 = arith.addf %705, %706 : vector<4x1xf32>
    %708 = tpu.concatenate %707, %707 in 0 : vector<4x1xf32>, vector<4x1xf32> -> vector<8x1xf32>
    %cst_307 = arith.constant 0.001953125 : f32
    %709 = vector.broadcast %cst_307 : f32 to vector<8x1xf32>
    %710 = arith.mulf %704, %709 : vector<8x1xf32>
    %cst_308 = arith.constant 0.001953125 : f32
    %711 = vector.broadcast %cst_308 : f32 to vector<8x1xf32>
    %712 = arith.mulf %708, %711 : vector<8x1xf32>
    %713 = arith.mulf %710, %710 : vector<8x1xf32>
    %714 = arith.subf %712, %713 : vector<8x1xf32>
    %cst_309 = arith.constant 1.000000e+00 : f32
    %715 = vector.broadcast %cst_309 : f32 to vector<8x1xf32>
    %716 = arith.mulf %715, %714 : vector<8x1xf32>
    %cst_310 = arith.constant 9.99999974E-6 : f32
    %717 = vector.broadcast %cst_310 : f32 to vector<8x1xf32>
    %718 = arith.addf %716, %717 : vector<8x1xf32>
    %719 = math.rsqrt %718 : vector<8x1xf32>
    %cst_311 = arith.constant 1.000000e+00 : f32
    %720 = vector.broadcast %cst_311 : f32 to vector<8x1xf32>
    %721 = arith.mulf %720, %719 : vector<8x1xf32>
    %722 = arith.mulf %721, %699 : vector<8x1xf32>
    %cst_312 = arith.constant 1.000000e+00 : f32
    %723 = vector.broadcast %cst_312 : f32 to vector<8x1xf32>
    %724 = arith.mulf %723, %710 : vector<8x1xf32>
    %725 = arith.mulf %724, %719 : vector<8x1xf32>
    %726 = arith.mulf %725, %699 : vector<8x1xf32>
    %727 = arith.subf %700, %726 : vector<8x1xf32>
    %728 = vector.broadcast %722 : vector<8x1xf32> to vector<8x384xf32>
    %729 = arith.mulf %691, %728 : vector<8x384xf32>
    %730 = vector.broadcast %727 : vector<8x1xf32> to vector<8x384xf32>
    %731 = arith.addf %729, %730 : vector<8x384xf32>
    %732 = vector.broadcast %0 : vector<1x384xf32> to vector<8x384xf32>
    %733 = arith.mulf %731, %732 : vector<8x384xf32>
    %c0_313 = arith.constant 0 : index
    %c0_314 = arith.constant 0 : index
    %734 = vector.load %arg11[%c0_313, %c0_314] : memref<8x384xf32, #tpu.memory_space<vmem>>, vector<8x384xf32>
    tpu.vector_store %arg11[%c0_313, %c0_314], %733 {strides = array<i32>} : memref<8x384xf32, #tpu.memory_space<vmem>>, vector<8x384xf32>,
    %c0_315 = arith.constant 0 : index
    %c0_316 = arith.constant 0 : index
    %735 = vector.load %arg10[%c0_315, %c0_316] : memref<8x384xf32, #tpu.memory_space<vmem>>, vector<8x384xf32>
    %c18_i32_317 = arith.constant 18 : i32
    %736 = tpu.dynamic_rotate %735 by %c18_i32_317 dim 1 : vector<8x384xf32>, i32 -> vector<8x384xf32>
    %c1_i32_318 = arith.constant 1 : i32
    %737 = tpu.dynamic_rotate %736 by %c1_i32_318 dim 1 : vector<8x384xf32>, i32 -> vector<8x384xf32>
    %c383_i32_319 = arith.constant 383 : i32
    %738 = tpu.dynamic_rotate %736 by %c383_i32_319 dim 1 : vector<8x384xf32>, i32 -> vector<8x384xf32>
    %c1_i32_320 = arith.constant 1 : i32
    %739 = tpu.dynamic_rotate %735 by %c1_i32_320 dim 1 : vector<8x384xf32>, i32 -> vector<8x384xf32>
    %c383_i32_321 = arith.constant 383 : i32
    %740 = tpu.dynamic_rotate %735 by %c383_i32_321 dim 1 : vector<8x384xf32>, i32 -> vector<8x384xf32>
    %c366_i32_322 = arith.constant 366 : i32
    %741 = tpu.dynamic_rotate %735 by %c366_i32_322 dim 1 : vector<8x384xf32>, i32 -> vector<8x384xf32>
    %c1_i32_323 = arith.constant 1 : i32
    %742 = tpu.dynamic_rotate %741 by %c1_i32_323 dim 1 : vector<8x384xf32>, i32 -> vector<8x384xf32>
    %c383_i32_324 = arith.constant 383 : i32
    %743 = tpu.dynamic_rotate %741 by %c383_i32_324 dim 1 : vector<8x384xf32>, i32 -> vector<8x384xf32>
    %744 = tpu.concatenate %737, %736, %738, %739, %735, %740, %742, %741, %743 in 0 : vector<8x384xf32>, vector<8x384xf32>, vector<8x384xf32>, vector<8x384xf32>, vector<8x384xf32>, vector<8x384xf32>, vector<8x384xf32>, vector<8x384xf32>, vector<8x384xf32> -> vector<72x384xf32>
    %c8 = arith.constant 8 : index
    %c0_325 = arith.constant 0 : index
    %c0_326 = arith.constant 0 : index
    %745 = vector.load %arg3[%c8, %c0_325, %c0_326] : memref<16x8x72xf32, #tpu.memory_space<vmem>>, vector<1x8x72xf32>
    %746 = vector.shape_cast %745 : vector<1x8x72xf32> to vector<8x72xf32>
    %cst_327 = arith.constant dense<0.000000e+00> : vector<8x384xf32>
    %747 = tpu.matmul %746, %744, %cst_327 {dimension_numbers = #tpu.dot_dimension_numbers<[1], [0], [0], [1], [0, 0, 1, 1], [], []>} : vector<8x72xf32>, vector<72x384xf32>, vector<8x384xf32> -> vector<8x384xf32>
    %c0_328 = arith.constant 0 : index
    %c8_329 = arith.constant 8 : index
    %748 = vector.load %arg4[%c0_328, %c8_329] : memref<8x16xf32, #tpu.memory_space<vmem>>, vector<8x1xf32>
    %749 = vector.broadcast %748 : vector<8x1xf32> to vector<8x384xf32>
    %750 = arith.addf %747, %749 : vector<8x384xf32>
    %751 = vector.broadcast %0 : vector<1x384xf32> to vector<8x384xf32>
    %752 = arith.mulf %750, %751 : vector<8x384xf32>
    %cst_330 = arith.constant 0.000000e+00 : f32
    %753 = vector.broadcast %cst_330 : f32 to vector<8x384xf32>
    %754 = arith.cmpf oge, %752, %753 : vector<8x384xf32>
    %cst_331 = arith.constant 0.00999999977 : f32
    %755 = vector.broadcast %cst_331 : f32 to vector<8x384xf32>
    %756 = arith.mulf %755, %752 : vector<8x384xf32>
    %757 = arith.select %754, %752, %756 : vector<8x384xi1>, vector<8x384xf32>
    %758 = arith.mulf %757, %757 : vector<8x384xf32>
    %759 = tpu.concatenate %757, %758 in 0 : vector<8x384xf32>, vector<8x384xf32> -> vector<16x384xf32>
    %c0_332 = arith.constant 0 : index
    %c0_333 = arith.constant 0 : index
    %760 = vector.load %arg12[%c0_332, %c0_333] : memref<384x128xf32, #tpu.memory_space<vmem>>, vector<384x128xf32>
    %cst_334 = arith.constant dense<0.000000e+00> : vector<16x128xf32>
    %761 = tpu.matmul %759, %760, %cst_334 {dimension_numbers = #tpu.dot_dimension_numbers<[1], [0], [0], [1], [0, 0, 1, 1], [], []>} : vector<16x384xf32>, vector<384x128xf32>, vector<16x128xf32> -> vector<16x128xf32>
    %762 = vector.extract_strided_slice %761 {offsets = [0, 0], sizes = [16, 1], strides = [1, 1]} : vector<16x128xf32> to vector<16x1xf32>
    %763 = vector.extract_strided_slice %762 {offsets = [0, 0], sizes = [8, 1], strides = [1, 1]} : vector<16x1xf32> to vector<8x1xf32>
    %764 = vector.extract_strided_slice %762 {offsets = [8, 0], sizes = [8, 1], strides = [1, 1]} : vector<16x1xf32> to vector<8x1xf32>
    %cst_335 = arith.constant dense<0.000000e+00> : vector<1xf32>
    %765 = vector.multi_reduction <add>, %764, %cst_335 [0] : vector<8x1xf32> to vector<1xf32>
    %766 = vector.shape_cast %765 : vector<1xf32> to vector<1x1xf32>
    %767 = math.sqrt %766 : vector<1x1xf32>
    %cst_336 = arith.constant 9.99999997E-7 : f32
    %768 = vector.broadcast %cst_336 : f32 to vector<1x1xf32>
    %769 = arith.addf %767, %768 : vector<1x1xf32>
    %cst_337 = arith.constant 1.000000e+00 : f32
    %770 = vector.broadcast %cst_337 : f32 to vector<1x1xf32>
    %771 = arith.divf %770, %769 : vector<1x1xf32>
    %c0_338 = arith.constant 0 : index
    %c8_339 = arith.constant 8 : index
    %772 = vector.load %arg5[%c0_338, %c8_339] : memref<8x16xf32, #tpu.memory_space<vmem>>, vector<8x1xf32>
    %c0_340 = arith.constant 0 : index
    %c8_341 = arith.constant 8 : index
    %773 = vector.load %arg6[%c0_340, %c8_341] : memref<8x16xf32, #tpu.memory_space<vmem>>, vector<8x1xf32>
    %774 = vector.extract_strided_slice %763 {offsets = [0, 0], sizes = [4, 1], strides = [1, 1]} : vector<8x1xf32> to vector<4x1xf32>
    %775 = vector.extract_strided_slice %763 {offsets = [4, 0], sizes = [4, 1], strides = [1, 1]} : vector<8x1xf32> to vector<4x1xf32>
    %776 = arith.addf %774, %775 : vector<4x1xf32>
    %777 = tpu.concatenate %776, %776 in 0 : vector<4x1xf32>, vector<4x1xf32> -> vector<8x1xf32>
    %778 = vector.extract_strided_slice %764 {offsets = [0, 0], sizes = [4, 1], strides = [1, 1]} : vector<8x1xf32> to vector<4x1xf32>
    %779 = vector.extract_strided_slice %764 {offsets = [4, 0], sizes = [4, 1], strides = [1, 1]} : vector<8x1xf32> to vector<4x1xf32>
    %780 = arith.addf %778, %779 : vector<4x1xf32>
    %781 = tpu.concatenate %780, %780 in 0 : vector<4x1xf32>, vector<4x1xf32> -> vector<8x1xf32>
    %cst_342 = arith.constant 0.001953125 : f32
    %782 = vector.broadcast %cst_342 : f32 to vector<8x1xf32>
    %783 = arith.mulf %777, %782 : vector<8x1xf32>
    %cst_343 = arith.constant 0.001953125 : f32
    %784 = vector.broadcast %cst_343 : f32 to vector<8x1xf32>
    %785 = arith.mulf %781, %784 : vector<8x1xf32>
    %786 = arith.mulf %783, %783 : vector<8x1xf32>
    %787 = arith.subf %785, %786 : vector<8x1xf32>
    %788 = arith.mulf %771, %771 : vector<1x1xf32>
    %789 = vector.broadcast %788 : vector<1x1xf32> to vector<8x1xf32>
    %790 = arith.mulf %789, %787 : vector<8x1xf32>
    %cst_344 = arith.constant 9.99999974E-6 : f32
    %791 = vector.broadcast %cst_344 : f32 to vector<8x1xf32>
    %792 = arith.addf %790, %791 : vector<8x1xf32>
    %793 = math.rsqrt %792 : vector<8x1xf32>
    %794 = vector.broadcast %771 : vector<1x1xf32> to vector<8x1xf32>
    %795 = arith.mulf %794, %793 : vector<8x1xf32>
    %796 = arith.mulf %795, %772 : vector<8x1xf32>
    %797 = vector.broadcast %771 : vector<1x1xf32> to vector<8x1xf32>
    %798 = arith.mulf %797, %783 : vector<8x1xf32>
    %799 = arith.mulf %798, %793 : vector<8x1xf32>
    %800 = arith.mulf %799, %772 : vector<8x1xf32>
    %801 = arith.subf %773, %800 : vector<8x1xf32>
    %802 = vector.broadcast %796 : vector<8x1xf32> to vector<8x384xf32>
    %803 = arith.mulf %757, %802 : vector<8x384xf32>
    %804 = vector.broadcast %801 : vector<8x1xf32> to vector<8x384xf32>
    %805 = arith.addf %803, %804 : vector<8x384xf32>
    %806 = vector.broadcast %0 : vector<1x384xf32> to vector<8x384xf32>
    %807 = arith.mulf %805, %806 : vector<8x384xf32>
    %c0_345 = arith.constant 0 : index
    %c0_346 = arith.constant 0 : index
    %808 = vector.load %arg10[%c0_345, %c0_346] : memref<8x384xf32, #tpu.memory_space<vmem>>, vector<8x384xf32>
    tpu.vector_store %arg10[%c0_345, %c0_346], %807 {strides = array<i32>} : memref<8x384xf32, #tpu.memory_space<vmem>>, vector<8x384xf32>,
    %c0_347 = arith.constant 0 : index
    %c0_348 = arith.constant 0 : index
    %809 = vector.load %arg10[%c0_347, %c0_348] : memref<8x384xf32, #tpu.memory_space<vmem>>, vector<8x384xf32>
    %c18_i32_349 = arith.constant 18 : i32
    %810 = tpu.dynamic_rotate %809 by %c18_i32_349 dim 1 : vector<8x384xf32>, i32 -> vector<8x384xf32>
    %c1_i32_350 = arith.constant 1 : i32
    %811 = tpu.dynamic_rotate %810 by %c1_i32_350 dim 1 : vector<8x384xf32>, i32 -> vector<8x384xf32>
    %c383_i32_351 = arith.constant 383 : i32
    %812 = tpu.dynamic_rotate %810 by %c383_i32_351 dim 1 : vector<8x384xf32>, i32 -> vector<8x384xf32>
    %c1_i32_352 = arith.constant 1 : i32
    %813 = tpu.dynamic_rotate %809 by %c1_i32_352 dim 1 : vector<8x384xf32>, i32 -> vector<8x384xf32>
    %c383_i32_353 = arith.constant 383 : i32
    %814 = tpu.dynamic_rotate %809 by %c383_i32_353 dim 1 : vector<8x384xf32>, i32 -> vector<8x384xf32>
    %c366_i32_354 = arith.constant 366 : i32
    %815 = tpu.dynamic_rotate %809 by %c366_i32_354 dim 1 : vector<8x384xf32>, i32 -> vector<8x384xf32>
    %c1_i32_355 = arith.constant 1 : i32
    %816 = tpu.dynamic_rotate %815 by %c1_i32_355 dim 1 : vector<8x384xf32>, i32 -> vector<8x384xf32>
    %c383_i32_356 = arith.constant 383 : i32
    %817 = tpu.dynamic_rotate %815 by %c383_i32_356 dim 1 : vector<8x384xf32>, i32 -> vector<8x384xf32>
    %818 = tpu.concatenate %811, %810, %812, %813, %809, %814, %816, %815, %817 in 0 : vector<8x384xf32>, vector<8x384xf32>, vector<8x384xf32>, vector<8x384xf32>, vector<8x384xf32>, vector<8x384xf32>, vector<8x384xf32>, vector<8x384xf32>, vector<8x384xf32> -> vector<72x384xf32>
    %c9 = arith.constant 9 : index
    %c0_357 = arith.constant 0 : index
    %c0_358 = arith.constant 0 : index
    %819 = vector.load %arg3[%c9, %c0_357, %c0_358] : memref<16x8x72xf32, #tpu.memory_space<vmem>>, vector<1x8x72xf32>
    %820 = vector.shape_cast %819 : vector<1x8x72xf32> to vector<8x72xf32>
    %cst_359 = arith.constant dense<0.000000e+00> : vector<8x384xf32>
    %821 = tpu.matmul %820, %818, %cst_359 {dimension_numbers = #tpu.dot_dimension_numbers<[1], [0], [0], [1], [0, 0, 1, 1], [], []>} : vector<8x72xf32>, vector<72x384xf32>, vector<8x384xf32> -> vector<8x384xf32>
    %c0_360 = arith.constant 0 : index
    %c9_361 = arith.constant 9 : index
    %822 = vector.load %arg4[%c0_360, %c9_361] : memref<8x16xf32, #tpu.memory_space<vmem>>, vector<8x1xf32>
    %823 = vector.broadcast %822 : vector<8x1xf32> to vector<8x384xf32>
    %824 = arith.addf %821, %823 : vector<8x384xf32>
    %825 = vector.broadcast %0 : vector<1x384xf32> to vector<8x384xf32>
    %826 = arith.mulf %824, %825 : vector<8x384xf32>
    %cst_362 = arith.constant 0.000000e+00 : f32
    %827 = vector.broadcast %cst_362 : f32 to vector<8x384xf32>
    %828 = arith.cmpf oge, %826, %827 : vector<8x384xf32>
    %cst_363 = arith.constant 0.00999999977 : f32
    %829 = vector.broadcast %cst_363 : f32 to vector<8x384xf32>
    %830 = arith.mulf %829, %826 : vector<8x384xf32>
    %831 = arith.select %828, %826, %830 : vector<8x384xi1>, vector<8x384xf32>
    %832 = arith.mulf %831, %831 : vector<8x384xf32>
    %833 = tpu.concatenate %831, %832 in 0 : vector<8x384xf32>, vector<8x384xf32> -> vector<16x384xf32>
    %c0_364 = arith.constant 0 : index
    %c0_365 = arith.constant 0 : index
    %834 = vector.load %arg12[%c0_364, %c0_365] : memref<384x128xf32, #tpu.memory_space<vmem>>, vector<384x128xf32>
    %cst_366 = arith.constant dense<0.000000e+00> : vector<16x128xf32>
    %835 = tpu.matmul %833, %834, %cst_366 {dimension_numbers = #tpu.dot_dimension_numbers<[1], [0], [0], [1], [0, 0, 1, 1], [], []>} : vector<16x384xf32>, vector<384x128xf32>, vector<16x128xf32> -> vector<16x128xf32>
    %836 = vector.extract_strided_slice %835 {offsets = [0, 0], sizes = [16, 1], strides = [1, 1]} : vector<16x128xf32> to vector<16x1xf32>
    %837 = vector.extract_strided_slice %836 {offsets = [0, 0], sizes = [8, 1], strides = [1, 1]} : vector<16x1xf32> to vector<8x1xf32>
    %838 = vector.extract_strided_slice %836 {offsets = [8, 0], sizes = [8, 1], strides = [1, 1]} : vector<16x1xf32> to vector<8x1xf32>
    %cst_367 = arith.constant dense<0.000000e+00> : vector<1xf32>
    %839 = vector.multi_reduction <add>, %838, %cst_367 [0] : vector<8x1xf32> to vector<1xf32>
    %840 = vector.shape_cast %839 : vector<1xf32> to vector<1x1xf32>
    %841 = math.sqrt %840 : vector<1x1xf32>
    %cst_368 = arith.constant 9.99999997E-7 : f32
    %842 = vector.broadcast %cst_368 : f32 to vector<1x1xf32>
    %843 = arith.addf %841, %842 : vector<1x1xf32>
    %cst_369 = arith.constant 1.000000e+00 : f32
    %844 = vector.broadcast %cst_369 : f32 to vector<1x1xf32>
    %845 = arith.divf %844, %843 : vector<1x1xf32>
    %c0_370 = arith.constant 0 : index
    %c9_371 = arith.constant 9 : index
    %846 = vector.load %arg5[%c0_370, %c9_371] : memref<8x16xf32, #tpu.memory_space<vmem>>, vector<8x1xf32>
    %c0_372 = arith.constant 0 : index
    %c9_373 = arith.constant 9 : index
    %847 = vector.load %arg6[%c0_372, %c9_373] : memref<8x16xf32, #tpu.memory_space<vmem>>, vector<8x1xf32>
    %848 = vector.extract_strided_slice %837 {offsets = [0, 0], sizes = [4, 1], strides = [1, 1]} : vector<8x1xf32> to vector<4x1xf32>
    %849 = vector.extract_strided_slice %837 {offsets = [4, 0], sizes = [4, 1], strides = [1, 1]} : vector<8x1xf32> to vector<4x1xf32>
    %850 = arith.addf %848, %849 : vector<4x1xf32>
    %851 = tpu.concatenate %850, %850 in 0 : vector<4x1xf32>, vector<4x1xf32> -> vector<8x1xf32>
    %852 = vector.extract_strided_slice %838 {offsets = [0, 0], sizes = [4, 1], strides = [1, 1]} : vector<8x1xf32> to vector<4x1xf32>
    %853 = vector.extract_strided_slice %838 {offsets = [4, 0], sizes = [4, 1], strides = [1, 1]} : vector<8x1xf32> to vector<4x1xf32>
    %854 = arith.addf %852, %853 : vector<4x1xf32>
    %855 = tpu.concatenate %854, %854 in 0 : vector<4x1xf32>, vector<4x1xf32> -> vector<8x1xf32>
    %cst_374 = arith.constant 0.001953125 : f32
    %856 = vector.broadcast %cst_374 : f32 to vector<8x1xf32>
    %857 = arith.mulf %851, %856 : vector<8x1xf32>
    %cst_375 = arith.constant 0.001953125 : f32
    %858 = vector.broadcast %cst_375 : f32 to vector<8x1xf32>
    %859 = arith.mulf %855, %858 : vector<8x1xf32>
    %860 = arith.mulf %857, %857 : vector<8x1xf32>
    %861 = arith.subf %859, %860 : vector<8x1xf32>
    %862 = arith.mulf %845, %845 : vector<1x1xf32>
    %863 = vector.broadcast %862 : vector<1x1xf32> to vector<8x1xf32>
    %864 = arith.mulf %863, %861 : vector<8x1xf32>
    %cst_376 = arith.constant 9.99999974E-6 : f32
    %865 = vector.broadcast %cst_376 : f32 to vector<8x1xf32>
    %866 = arith.addf %864, %865 : vector<8x1xf32>
    %867 = math.rsqrt %866 : vector<8x1xf32>
    %868 = vector.broadcast %845 : vector<1x1xf32> to vector<8x1xf32>
    %869 = arith.mulf %868, %867 : vector<8x1xf32>
    %870 = arith.mulf %869, %846 : vector<8x1xf32>
    %871 = vector.broadcast %845 : vector<1x1xf32> to vector<8x1xf32>
    %872 = arith.mulf %871, %857 : vector<8x1xf32>
    %873 = arith.mulf %872, %867 : vector<8x1xf32>
    %874 = arith.mulf %873, %846 : vector<8x1xf32>
    %875 = arith.subf %847, %874 : vector<8x1xf32>
    %876 = vector.broadcast %870 : vector<8x1xf32> to vector<8x384xf32>
    %877 = arith.mulf %831, %876 : vector<8x384xf32>
    %878 = vector.broadcast %875 : vector<8x1xf32> to vector<8x384xf32>
    %879 = arith.addf %877, %878 : vector<8x384xf32>
    %880 = vector.broadcast %0 : vector<1x384xf32> to vector<8x384xf32>
    %881 = arith.mulf %879, %880 : vector<8x384xf32>
    %c0_377 = arith.constant 0 : index
    %c0_378 = arith.constant 0 : index
    %882 = vector.load %arg11[%c0_377, %c0_378] : memref<8x384xf32, #tpu.memory_space<vmem>>, vector<8x384xf32>
    %883 = arith.addf %881, %882 : vector<8x384xf32>
    %c0_379 = arith.constant 0 : index
    %c0_380 = arith.constant 0 : index
    %884 = vector.load %arg10[%c0_379, %c0_380] : memref<8x384xf32, #tpu.memory_space<vmem>>, vector<8x384xf32>
    tpu.vector_store %arg10[%c0_379, %c0_380], %883 {strides = array<i32>} : memref<8x384xf32, #tpu.memory_space<vmem>>, vector<8x384xf32>,
    %c0_381 = arith.constant 0 : index
    %c0_382 = arith.constant 0 : index
    %885 = vector.load %arg10[%c0_381, %c0_382] : memref<8x384xf32, #tpu.memory_space<vmem>>, vector<8x384xf32>
    %c18_i32_383 = arith.constant 18 : i32
    %886 = tpu.dynamic_rotate %885 by %c18_i32_383 dim 1 : vector<8x384xf32>, i32 -> vector<8x384xf32>
    %c1_i32_384 = arith.constant 1 : i32
    %887 = tpu.dynamic_rotate %886 by %c1_i32_384 dim 1 : vector<8x384xf32>, i32 -> vector<8x384xf32>
    %c383_i32_385 = arith.constant 383 : i32
    %888 = tpu.dynamic_rotate %886 by %c383_i32_385 dim 1 : vector<8x384xf32>, i32 -> vector<8x384xf32>
    %c1_i32_386 = arith.constant 1 : i32
    %889 = tpu.dynamic_rotate %885 by %c1_i32_386 dim 1 : vector<8x384xf32>, i32 -> vector<8x384xf32>
    %c383_i32_387 = arith.constant 383 : i32
    %890 = tpu.dynamic_rotate %885 by %c383_i32_387 dim 1 : vector<8x384xf32>, i32 -> vector<8x384xf32>
    %c366_i32_388 = arith.constant 366 : i32
    %891 = tpu.dynamic_rotate %885 by %c366_i32_388 dim 1 : vector<8x384xf32>, i32 -> vector<8x384xf32>
    %c1_i32_389 = arith.constant 1 : i32
    %892 = tpu.dynamic_rotate %891 by %c1_i32_389 dim 1 : vector<8x384xf32>, i32 -> vector<8x384xf32>
    %c383_i32_390 = arith.constant 383 : i32
    %893 = tpu.dynamic_rotate %891 by %c383_i32_390 dim 1 : vector<8x384xf32>, i32 -> vector<8x384xf32>
    %894 = tpu.concatenate %887, %886, %888, %889, %885, %890, %892, %891, %893 in 0 : vector<8x384xf32>, vector<8x384xf32>, vector<8x384xf32>, vector<8x384xf32>, vector<8x384xf32>, vector<8x384xf32>, vector<8x384xf32>, vector<8x384xf32>, vector<8x384xf32> -> vector<72x384xf32>
    %c10 = arith.constant 10 : index
    %c0_391 = arith.constant 0 : index
    %c0_392 = arith.constant 0 : index
    %895 = vector.load %arg3[%c10, %c0_391, %c0_392] : memref<16x8x72xf32, #tpu.memory_space<vmem>>, vector<1x8x72xf32>
    %896 = vector.shape_cast %895 : vector<1x8x72xf32> to vector<8x72xf32>
    %cst_393 = arith.constant dense<0.000000e+00> : vector<8x384xf32>
    %897 = tpu.matmul %896, %894, %cst_393 {dimension_numbers = #tpu.dot_dimension_numbers<[1], [0], [0], [1], [0, 0, 1, 1], [], []>} : vector<8x72xf32>, vector<72x384xf32>, vector<8x384xf32> -> vector<8x384xf32>
    %c0_394 = arith.constant 0 : index
    %c10_395 = arith.constant 10 : index
    %898 = vector.load %arg4[%c0_394, %c10_395] : memref<8x16xf32, #tpu.memory_space<vmem>>, vector<8x1xf32>
    %899 = vector.broadcast %898 : vector<8x1xf32> to vector<8x384xf32>
    %900 = arith.addf %897, %899 : vector<8x384xf32>
    %901 = vector.broadcast %0 : vector<1x384xf32> to vector<8x384xf32>
    %902 = arith.mulf %900, %901 : vector<8x384xf32>
    %cst_396 = arith.constant 0.000000e+00 : f32
    %903 = vector.broadcast %cst_396 : f32 to vector<8x384xf32>
    %904 = arith.cmpf oge, %902, %903 : vector<8x384xf32>
    %cst_397 = arith.constant 0.00999999977 : f32
    %905 = vector.broadcast %cst_397 : f32 to vector<8x384xf32>
    %906 = arith.mulf %905, %902 : vector<8x384xf32>
    %907 = arith.select %904, %902, %906 : vector<8x384xi1>, vector<8x384xf32>
    %908 = arith.mulf %907, %907 : vector<8x384xf32>
    %909 = tpu.concatenate %907, %908 in 0 : vector<8x384xf32>, vector<8x384xf32> -> vector<16x384xf32>
    %c0_398 = arith.constant 0 : index
    %c0_399 = arith.constant 0 : index
    %910 = vector.load %arg12[%c0_398, %c0_399] : memref<384x128xf32, #tpu.memory_space<vmem>>, vector<384x128xf32>
    %cst_400 = arith.constant dense<0.000000e+00> : vector<16x128xf32>
    %911 = tpu.matmul %909, %910, %cst_400 {dimension_numbers = #tpu.dot_dimension_numbers<[1], [0], [0], [1], [0, 0, 1, 1], [], []>} : vector<16x384xf32>, vector<384x128xf32>, vector<16x128xf32> -> vector<16x128xf32>
    %912 = vector.extract_strided_slice %911 {offsets = [0, 0], sizes = [16, 1], strides = [1, 1]} : vector<16x128xf32> to vector<16x1xf32>
    %913 = vector.extract_strided_slice %912 {offsets = [0, 0], sizes = [8, 1], strides = [1, 1]} : vector<16x1xf32> to vector<8x1xf32>
    %914 = vector.extract_strided_slice %912 {offsets = [8, 0], sizes = [8, 1], strides = [1, 1]} : vector<16x1xf32> to vector<8x1xf32>
    %cst_401 = arith.constant dense<0.000000e+00> : vector<1xf32>
    %915 = vector.multi_reduction <add>, %914, %cst_401 [0] : vector<8x1xf32> to vector<1xf32>
    %916 = vector.shape_cast %915 : vector<1xf32> to vector<1x1xf32>
    %917 = math.sqrt %916 : vector<1x1xf32>
    %cst_402 = arith.constant 9.99999997E-7 : f32
    %918 = vector.broadcast %cst_402 : f32 to vector<1x1xf32>
    %919 = arith.addf %917, %918 : vector<1x1xf32>
    %cst_403 = arith.constant 1.000000e+00 : f32
    %920 = vector.broadcast %cst_403 : f32 to vector<1x1xf32>
    %921 = arith.divf %920, %919 : vector<1x1xf32>
    %c0_404 = arith.constant 0 : index
    %c10_405 = arith.constant 10 : index
    %922 = vector.load %arg5[%c0_404, %c10_405] : memref<8x16xf32, #tpu.memory_space<vmem>>, vector<8x1xf32>
    %c0_406 = arith.constant 0 : index
    %c10_407 = arith.constant 10 : index
    %923 = vector.load %arg6[%c0_406, %c10_407] : memref<8x16xf32, #tpu.memory_space<vmem>>, vector<8x1xf32>
    %924 = vector.extract_strided_slice %913 {offsets = [0, 0], sizes = [4, 1], strides = [1, 1]} : vector<8x1xf32> to vector<4x1xf32>
    %925 = vector.extract_strided_slice %913 {offsets = [4, 0], sizes = [4, 1], strides = [1, 1]} : vector<8x1xf32> to vector<4x1xf32>
    %926 = arith.addf %924, %925 : vector<4x1xf32>
    %927 = tpu.concatenate %926, %926 in 0 : vector<4x1xf32>, vector<4x1xf32> -> vector<8x1xf32>
    %928 = vector.extract_strided_slice %914 {offsets = [0, 0], sizes = [4, 1], strides = [1, 1]} : vector<8x1xf32> to vector<4x1xf32>
    %929 = vector.extract_strided_slice %914 {offsets = [4, 0], sizes = [4, 1], strides = [1, 1]} : vector<8x1xf32> to vector<4x1xf32>
    %930 = arith.addf %928, %929 : vector<4x1xf32>
    %931 = tpu.concatenate %930, %930 in 0 : vector<4x1xf32>, vector<4x1xf32> -> vector<8x1xf32>
    %cst_408 = arith.constant 0.001953125 : f32
    %932 = vector.broadcast %cst_408 : f32 to vector<8x1xf32>
    %933 = arith.mulf %927, %932 : vector<8x1xf32>
    %cst_409 = arith.constant 0.001953125 : f32
    %934 = vector.broadcast %cst_409 : f32 to vector<8x1xf32>
    %935 = arith.mulf %931, %934 : vector<8x1xf32>
    %936 = arith.mulf %933, %933 : vector<8x1xf32>
    %937 = arith.subf %935, %936 : vector<8x1xf32>
    %938 = arith.mulf %921, %921 : vector<1x1xf32>
    %939 = vector.broadcast %938 : vector<1x1xf32> to vector<8x1xf32>
    %940 = arith.mulf %939, %937 : vector<8x1xf32>
    %cst_410 = arith.constant 9.99999974E-6 : f32
    %941 = vector.broadcast %cst_410 : f32 to vector<8x1xf32>
    %942 = arith.addf %940, %941 : vector<8x1xf32>
    %943 = math.rsqrt %942 : vector<8x1xf32>
    %944 = vector.broadcast %921 : vector<1x1xf32> to vector<8x1xf32>
    %945 = arith.mulf %944, %943 : vector<8x1xf32>
    %946 = arith.mulf %945, %922 : vector<8x1xf32>
    %947 = vector.broadcast %921 : vector<1x1xf32> to vector<8x1xf32>
    %948 = arith.mulf %947, %933 : vector<8x1xf32>
    %949 = arith.mulf %948, %943 : vector<8x1xf32>
    %950 = arith.mulf %949, %922 : vector<8x1xf32>
    %951 = arith.subf %923, %950 : vector<8x1xf32>
    %952 = vector.broadcast %946 : vector<8x1xf32> to vector<8x384xf32>
    %953 = arith.mulf %907, %952 : vector<8x384xf32>
    %954 = vector.broadcast %951 : vector<8x1xf32> to vector<8x384xf32>
    %955 = arith.addf %953, %954 : vector<8x384xf32>
    %956 = vector.broadcast %0 : vector<1x384xf32> to vector<8x384xf32>
    %957 = arith.mulf %955, %956 : vector<8x384xf32>
    %c0_411 = arith.constant 0 : index
    %c0_412 = arith.constant 0 : index
    %958 = vector.load %arg10[%c0_411, %c0_412] : memref<8x384xf32, #tpu.memory_space<vmem>>, vector<8x384xf32>
    tpu.vector_store %arg10[%c0_411, %c0_412], %957 {strides = array<i32>} : memref<8x384xf32, #tpu.memory_space<vmem>>, vector<8x384xf32>,
    %c0_413 = arith.constant 0 : index
    %c0_414 = arith.constant 0 : index
    %959 = vector.load %arg10[%c0_413, %c0_414] : memref<8x384xf32, #tpu.memory_space<vmem>>, vector<8x384xf32>
    %c18_i32_415 = arith.constant 18 : i32
    %960 = tpu.dynamic_rotate %959 by %c18_i32_415 dim 1 : vector<8x384xf32>, i32 -> vector<8x384xf32>
    %c1_i32_416 = arith.constant 1 : i32
    %961 = tpu.dynamic_rotate %960 by %c1_i32_416 dim 1 : vector<8x384xf32>, i32 -> vector<8x384xf32>
    %c383_i32_417 = arith.constant 383 : i32
    %962 = tpu.dynamic_rotate %960 by %c383_i32_417 dim 1 : vector<8x384xf32>, i32 -> vector<8x384xf32>
    %c1_i32_418 = arith.constant 1 : i32
    %963 = tpu.dynamic_rotate %959 by %c1_i32_418 dim 1 : vector<8x384xf32>, i32 -> vector<8x384xf32>
    %c383_i32_419 = arith.constant 383 : i32
    %964 = tpu.dynamic_rotate %959 by %c383_i32_419 dim 1 : vector<8x384xf32>, i32 -> vector<8x384xf32>
    %c366_i32_420 = arith.constant 366 : i32
    %965 = tpu.dynamic_rotate %959 by %c366_i32_420 dim 1 : vector<8x384xf32>, i32 -> vector<8x384xf32>
    %c1_i32_421 = arith.constant 1 : i32
    %966 = tpu.dynamic_rotate %965 by %c1_i32_421 dim 1 : vector<8x384xf32>, i32 -> vector<8x384xf32>
    %c383_i32_422 = arith.constant 383 : i32
    %967 = tpu.dynamic_rotate %965 by %c383_i32_422 dim 1 : vector<8x384xf32>, i32 -> vector<8x384xf32>
    %968 = tpu.concatenate %961, %960, %962, %963, %959, %964, %966, %965, %967 in 0 : vector<8x384xf32>, vector<8x384xf32>, vector<8x384xf32>, vector<8x384xf32>, vector<8x384xf32>, vector<8x384xf32>, vector<8x384xf32>, vector<8x384xf32>, vector<8x384xf32> -> vector<72x384xf32>
    %c11 = arith.constant 11 : index
    %c0_423 = arith.constant 0 : index
    %c0_424 = arith.constant 0 : index
    %969 = vector.load %arg3[%c11, %c0_423, %c0_424] : memref<16x8x72xf32, #tpu.memory_space<vmem>>, vector<1x8x72xf32>
    %970 = vector.shape_cast %969 : vector<1x8x72xf32> to vector<8x72xf32>
    %cst_425 = arith.constant dense<0.000000e+00> : vector<8x384xf32>
    %971 = tpu.matmul %970, %968, %cst_425 {dimension_numbers = #tpu.dot_dimension_numbers<[1], [0], [0], [1], [0, 0, 1, 1], [], []>} : vector<8x72xf32>, vector<72x384xf32>, vector<8x384xf32> -> vector<8x384xf32>
    %c0_426 = arith.constant 0 : index
    %c11_427 = arith.constant 11 : index
    %972 = vector.load %arg4[%c0_426, %c11_427] : memref<8x16xf32, #tpu.memory_space<vmem>>, vector<8x1xf32>
    %973 = vector.broadcast %972 : vector<8x1xf32> to vector<8x384xf32>
    %974 = arith.addf %971, %973 : vector<8x384xf32>
    %975 = vector.broadcast %0 : vector<1x384xf32> to vector<8x384xf32>
    %976 = arith.mulf %974, %975 : vector<8x384xf32>
    %cst_428 = arith.constant 0.000000e+00 : f32
    %977 = vector.broadcast %cst_428 : f32 to vector<8x384xf32>
    %978 = arith.cmpf oge, %976, %977 : vector<8x384xf32>
    %cst_429 = arith.constant 0.00999999977 : f32
    %979 = vector.broadcast %cst_429 : f32 to vector<8x384xf32>
    %980 = arith.mulf %979, %976 : vector<8x384xf32>
    %981 = arith.select %978, %976, %980 : vector<8x384xi1>, vector<8x384xf32>
    %982 = arith.mulf %981, %981 : vector<8x384xf32>
    %983 = tpu.concatenate %981, %982 in 0 : vector<8x384xf32>, vector<8x384xf32> -> vector<16x384xf32>
    %c0_430 = arith.constant 0 : index
    %c0_431 = arith.constant 0 : index
    %984 = vector.load %arg12[%c0_430, %c0_431] : memref<384x128xf32, #tpu.memory_space<vmem>>, vector<384x128xf32>
    %cst_432 = arith.constant dense<0.000000e+00> : vector<16x128xf32>
    %985 = tpu.matmul %983, %984, %cst_432 {dimension_numbers = #tpu.dot_dimension_numbers<[1], [0], [0], [1], [0, 0, 1, 1], [], []>} : vector<16x384xf32>, vector<384x128xf32>, vector<16x128xf32> -> vector<16x128xf32>
    %986 = vector.extract_strided_slice %985 {offsets = [0, 0], sizes = [16, 1], strides = [1, 1]} : vector<16x128xf32> to vector<16x1xf32>
    %987 = vector.extract_strided_slice %986 {offsets = [0, 0], sizes = [8, 1], strides = [1, 1]} : vector<16x1xf32> to vector<8x1xf32>
    %988 = vector.extract_strided_slice %986 {offsets = [8, 0], sizes = [8, 1], strides = [1, 1]} : vector<16x1xf32> to vector<8x1xf32>
    %cst_433 = arith.constant dense<0.000000e+00> : vector<1xf32>
    %989 = vector.multi_reduction <add>, %988, %cst_433 [0] : vector<8x1xf32> to vector<1xf32>
    %990 = vector.shape_cast %989 : vector<1xf32> to vector<1x1xf32>
    %991 = math.sqrt %990 : vector<1x1xf32>
    %cst_434 = arith.constant 9.99999997E-7 : f32
    %992 = vector.broadcast %cst_434 : f32 to vector<1x1xf32>
    %993 = arith.addf %991, %992 : vector<1x1xf32>
    %cst_435 = arith.constant 1.000000e+00 : f32
    %994 = vector.broadcast %cst_435 : f32 to vector<1x1xf32>
    %995 = arith.divf %994, %993 : vector<1x1xf32>
    %c0_436 = arith.constant 0 : index
    %c11_437 = arith.constant 11 : index
    %996 = vector.load %arg5[%c0_436, %c11_437] : memref<8x16xf32, #tpu.memory_space<vmem>>, vector<8x1xf32>
    %c0_438 = arith.constant 0 : index
    %c11_439 = arith.constant 11 : index
    %997 = vector.load %arg6[%c0_438, %c11_439] : memref<8x16xf32, #tpu.memory_space<vmem>>, vector<8x1xf32>
    %998 = vector.extract_strided_slice %987 {offsets = [0, 0], sizes = [4, 1], strides = [1, 1]} : vector<8x1xf32> to vector<4x1xf32>
    %999 = vector.extract_strided_slice %987 {offsets = [4, 0], sizes = [4, 1], strides = [1, 1]} : vector<8x1xf32> to vector<4x1xf32>
    %1000 = arith.addf %998, %999 : vector<4x1xf32>
    %1001 = tpu.concatenate %1000, %1000 in 0 : vector<4x1xf32>, vector<4x1xf32> -> vector<8x1xf32>
    %1002 = vector.extract_strided_slice %988 {offsets = [0, 0], sizes = [4, 1], strides = [1, 1]} : vector<8x1xf32> to vector<4x1xf32>
    %1003 = vector.extract_strided_slice %988 {offsets = [4, 0], sizes = [4, 1], strides = [1, 1]} : vector<8x1xf32> to vector<4x1xf32>
    %1004 = arith.addf %1002, %1003 : vector<4x1xf32>
    %1005 = tpu.concatenate %1004, %1004 in 0 : vector<4x1xf32>, vector<4x1xf32> -> vector<8x1xf32>
    %cst_440 = arith.constant 0.001953125 : f32
    %1006 = vector.broadcast %cst_440 : f32 to vector<8x1xf32>
    %1007 = arith.mulf %1001, %1006 : vector<8x1xf32>
    %cst_441 = arith.constant 0.001953125 : f32
    %1008 = vector.broadcast %cst_441 : f32 to vector<8x1xf32>
    %1009 = arith.mulf %1005, %1008 : vector<8x1xf32>
    %1010 = arith.mulf %1007, %1007 : vector<8x1xf32>
    %1011 = arith.subf %1009, %1010 : vector<8x1xf32>
    %1012 = arith.mulf %995, %995 : vector<1x1xf32>
    %1013 = vector.broadcast %1012 : vector<1x1xf32> to vector<8x1xf32>
    %1014 = arith.mulf %1013, %1011 : vector<8x1xf32>
    %cst_442 = arith.constant 9.99999974E-6 : f32
    %1015 = vector.broadcast %cst_442 : f32 to vector<8x1xf32>
    %1016 = arith.addf %1014, %1015 : vector<8x1xf32>
    %1017 = math.rsqrt %1016 : vector<8x1xf32>
    %1018 = vector.broadcast %995 : vector<1x1xf32> to vector<8x1xf32>
    %1019 = arith.mulf %1018, %1017 : vector<8x1xf32>
    %1020 = arith.mulf %1019, %996 : vector<8x1xf32>
    %1021 = vector.broadcast %995 : vector<1x1xf32> to vector<8x1xf32>
    %1022 = arith.mulf %1021, %1007 : vector<8x1xf32>
    %1023 = arith.mulf %1022, %1017 : vector<8x1xf32>
    %1024 = arith.mulf %1023, %996 : vector<8x1xf32>
    %1025 = arith.subf %997, %1024 : vector<8x1xf32>
    %1026 = vector.broadcast %1020 : vector<8x1xf32> to vector<8x384xf32>
    %1027 = arith.mulf %981, %1026 : vector<8x384xf32>
    %1028 = vector.broadcast %1025 : vector<8x1xf32> to vector<8x384xf32>
    %1029 = arith.addf %1027, %1028 : vector<8x384xf32>
    %1030 = vector.broadcast %0 : vector<1x384xf32> to vector<8x384xf32>
    %1031 = arith.mulf %1029, %1030 : vector<8x384xf32>
    %c0_443 = arith.constant 0 : index
    %c0_444 = arith.constant 0 : index
    %1032 = vector.load %arg10[%c0_443, %c0_444] : memref<8x384xf32, #tpu.memory_space<vmem>>, vector<8x384xf32>
    tpu.vector_store %arg10[%c0_443, %c0_444], %1031 {strides = array<i32>} : memref<8x384xf32, #tpu.memory_space<vmem>>, vector<8x384xf32>,
    %c0_445 = arith.constant 0 : index
    %c0_446 = arith.constant 0 : index
    %1033 = vector.load %arg10[%c0_445, %c0_446] : memref<8x384xf32, #tpu.memory_space<vmem>>, vector<8x384xf32>
    %c18_i32_447 = arith.constant 18 : i32
    %1034 = tpu.dynamic_rotate %1033 by %c18_i32_447 dim 1 : vector<8x384xf32>, i32 -> vector<8x384xf32>
    %c1_i32_448 = arith.constant 1 : i32
    %1035 = tpu.dynamic_rotate %1034 by %c1_i32_448 dim 1 : vector<8x384xf32>, i32 -> vector<8x384xf32>
    %c383_i32_449 = arith.constant 383 : i32
    %1036 = tpu.dynamic_rotate %1034 by %c383_i32_449 dim 1 : vector<8x384xf32>, i32 -> vector<8x384xf32>
    %c1_i32_450 = arith.constant 1 : i32
    %1037 = tpu.dynamic_rotate %1033 by %c1_i32_450 dim 1 : vector<8x384xf32>, i32 -> vector<8x384xf32>
    %c383_i32_451 = arith.constant 383 : i32
    %1038 = tpu.dynamic_rotate %1033 by %c383_i32_451 dim 1 : vector<8x384xf32>, i32 -> vector<8x384xf32>
    %c366_i32_452 = arith.constant 366 : i32
    %1039 = tpu.dynamic_rotate %1033 by %c366_i32_452 dim 1 : vector<8x384xf32>, i32 -> vector<8x384xf32>
    %c1_i32_453 = arith.constant 1 : i32
    %1040 = tpu.dynamic_rotate %1039 by %c1_i32_453 dim 1 : vector<8x384xf32>, i32 -> vector<8x384xf32>
    %c383_i32_454 = arith.constant 383 : i32
    %1041 = tpu.dynamic_rotate %1039 by %c383_i32_454 dim 1 : vector<8x384xf32>, i32 -> vector<8x384xf32>
    %1042 = tpu.concatenate %1035, %1034, %1036, %1037, %1033, %1038, %1040, %1039, %1041 in 0 : vector<8x384xf32>, vector<8x384xf32>, vector<8x384xf32>, vector<8x384xf32>, vector<8x384xf32>, vector<8x384xf32>, vector<8x384xf32>, vector<8x384xf32>, vector<8x384xf32> -> vector<72x384xf32>
    %c12 = arith.constant 12 : index
    %c0_455 = arith.constant 0 : index
    %c0_456 = arith.constant 0 : index
    %1043 = vector.load %arg3[%c12, %c0_455, %c0_456] : memref<16x8x72xf32, #tpu.memory_space<vmem>>, vector<1x8x72xf32>
    %1044 = vector.shape_cast %1043 : vector<1x8x72xf32> to vector<8x72xf32>
    %cst_457 = arith.constant dense<0.000000e+00> : vector<8x384xf32>
    %1045 = tpu.matmul %1044, %1042, %cst_457 {dimension_numbers = #tpu.dot_dimension_numbers<[1], [0], [0], [1], [0, 0, 1, 1], [], []>} : vector<8x72xf32>, vector<72x384xf32>, vector<8x384xf32> -> vector<8x384xf32>
    %c0_458 = arith.constant 0 : index
    %c12_459 = arith.constant 12 : index
    %1046 = vector.load %arg4[%c0_458, %c12_459] : memref<8x16xf32, #tpu.memory_space<vmem>>, vector<8x1xf32>
    %1047 = vector.broadcast %1046 : vector<8x1xf32> to vector<8x384xf32>
    %1048 = arith.addf %1045, %1047 : vector<8x384xf32>
    %1049 = vector.broadcast %0 : vector<1x384xf32> to vector<8x384xf32>
    %1050 = arith.mulf %1048, %1049 : vector<8x384xf32>
    %cst_460 = arith.constant 0.000000e+00 : f32
    %1051 = vector.broadcast %cst_460 : f32 to vector<8x384xf32>
    %1052 = arith.cmpf oge, %1050, %1051 : vector<8x384xf32>
    %cst_461 = arith.constant 0.00999999977 : f32
    %1053 = vector.broadcast %cst_461 : f32 to vector<8x384xf32>
    %1054 = arith.mulf %1053, %1050 : vector<8x384xf32>
    %1055 = arith.select %1052, %1050, %1054 : vector<8x384xi1>, vector<8x384xf32>
    %1056 = arith.mulf %1055, %1055 : vector<8x384xf32>
    %1057 = tpu.concatenate %1055, %1056 in 0 : vector<8x384xf32>, vector<8x384xf32> -> vector<16x384xf32>
    %c0_462 = arith.constant 0 : index
    %c0_463 = arith.constant 0 : index
    %1058 = vector.load %arg12[%c0_462, %c0_463] : memref<384x128xf32, #tpu.memory_space<vmem>>, vector<384x128xf32>
    %cst_464 = arith.constant dense<0.000000e+00> : vector<16x128xf32>
    %1059 = tpu.matmul %1057, %1058, %cst_464 {dimension_numbers = #tpu.dot_dimension_numbers<[1], [0], [0], [1], [0, 0, 1, 1], [], []>} : vector<16x384xf32>, vector<384x128xf32>, vector<16x128xf32> -> vector<16x128xf32>
    %1060 = vector.extract_strided_slice %1059 {offsets = [0, 0], sizes = [16, 1], strides = [1, 1]} : vector<16x128xf32> to vector<16x1xf32>
    %1061 = vector.extract_strided_slice %1060 {offsets = [0, 0], sizes = [8, 1], strides = [1, 1]} : vector<16x1xf32> to vector<8x1xf32>
    %1062 = vector.extract_strided_slice %1060 {offsets = [8, 0], sizes = [8, 1], strides = [1, 1]} : vector<16x1xf32> to vector<8x1xf32>
    %cst_465 = arith.constant dense<0.000000e+00> : vector<1xf32>
    %1063 = vector.multi_reduction <add>, %1062, %cst_465 [0] : vector<8x1xf32> to vector<1xf32>
    %1064 = vector.shape_cast %1063 : vector<1xf32> to vector<1x1xf32>
    %1065 = math.sqrt %1064 : vector<1x1xf32>
    %cst_466 = arith.constant 9.99999997E-7 : f32
    %1066 = vector.broadcast %cst_466 : f32 to vector<1x1xf32>
    %1067 = arith.addf %1065, %1066 : vector<1x1xf32>
    %cst_467 = arith.constant 1.000000e+00 : f32
    %1068 = vector.broadcast %cst_467 : f32 to vector<1x1xf32>
    %1069 = arith.divf %1068, %1067 : vector<1x1xf32>
    %c0_468 = arith.constant 0 : index
    %c12_469 = arith.constant 12 : index
    %1070 = vector.load %arg5[%c0_468, %c12_469] : memref<8x16xf32, #tpu.memory_space<vmem>>, vector<8x1xf32>
    %c0_470 = arith.constant 0 : index
    %c12_471 = arith.constant 12 : index
    %1071 = vector.load %arg6[%c0_470, %c12_471] : memref<8x16xf32, #tpu.memory_space<vmem>>, vector<8x1xf32>
    %1072 = vector.extract_strided_slice %1061 {offsets = [0, 0], sizes = [4, 1], strides = [1, 1]} : vector<8x1xf32> to vector<4x1xf32>
    %1073 = vector.extract_strided_slice %1061 {offsets = [4, 0], sizes = [4, 1], strides = [1, 1]} : vector<8x1xf32> to vector<4x1xf32>
    %1074 = arith.addf %1072, %1073 : vector<4x1xf32>
    %1075 = tpu.concatenate %1074, %1074 in 0 : vector<4x1xf32>, vector<4x1xf32> -> vector<8x1xf32>
    %1076 = vector.extract_strided_slice %1062 {offsets = [0, 0], sizes = [4, 1], strides = [1, 1]} : vector<8x1xf32> to vector<4x1xf32>
    %1077 = vector.extract_strided_slice %1062 {offsets = [4, 0], sizes = [4, 1], strides = [1, 1]} : vector<8x1xf32> to vector<4x1xf32>
    %1078 = arith.addf %1076, %1077 : vector<4x1xf32>
    %1079 = tpu.concatenate %1078, %1078 in 0 : vector<4x1xf32>, vector<4x1xf32> -> vector<8x1xf32>
    %cst_472 = arith.constant 0.001953125 : f32
    %1080 = vector.broadcast %cst_472 : f32 to vector<8x1xf32>
    %1081 = arith.mulf %1075, %1080 : vector<8x1xf32>
    %cst_473 = arith.constant 0.001953125 : f32
    %1082 = vector.broadcast %cst_473 : f32 to vector<8x1xf32>
    %1083 = arith.mulf %1079, %1082 : vector<8x1xf32>
    %1084 = arith.mulf %1081, %1081 : vector<8x1xf32>
    %1085 = arith.subf %1083, %1084 : vector<8x1xf32>
    %1086 = arith.mulf %1069, %1069 : vector<1x1xf32>
    %1087 = vector.broadcast %1086 : vector<1x1xf32> to vector<8x1xf32>
    %1088 = arith.mulf %1087, %1085 : vector<8x1xf32>
    %cst_474 = arith.constant 9.99999974E-6 : f32
    %1089 = vector.broadcast %cst_474 : f32 to vector<8x1xf32>
    %1090 = arith.addf %1088, %1089 : vector<8x1xf32>
    %1091 = math.rsqrt %1090 : vector<8x1xf32>
    %1092 = vector.broadcast %1069 : vector<1x1xf32> to vector<8x1xf32>
    %1093 = arith.mulf %1092, %1091 : vector<8x1xf32>
    %1094 = arith.mulf %1093, %1070 : vector<8x1xf32>
    %1095 = vector.broadcast %1069 : vector<1x1xf32> to vector<8x1xf32>
    %1096 = arith.mulf %1095, %1081 : vector<8x1xf32>
    %1097 = arith.mulf %1096, %1091 : vector<8x1xf32>
    %1098 = arith.mulf %1097, %1070 : vector<8x1xf32>
    %1099 = arith.subf %1071, %1098 : vector<8x1xf32>
    %1100 = vector.broadcast %1094 : vector<8x1xf32> to vector<8x384xf32>
    %1101 = arith.mulf %1055, %1100 : vector<8x384xf32>
    %1102 = vector.broadcast %1099 : vector<8x1xf32> to vector<8x384xf32>
    %1103 = arith.addf %1101, %1102 : vector<8x384xf32>
    %1104 = vector.broadcast %0 : vector<1x384xf32> to vector<8x384xf32>
    %1105 = arith.mulf %1103, %1104 : vector<8x384xf32>
    %c0_475 = arith.constant 0 : index
    %c0_476 = arith.constant 0 : index
    %1106 = vector.load %arg10[%c0_475, %c0_476] : memref<8x384xf32, #tpu.memory_space<vmem>>, vector<8x384xf32>
    tpu.vector_store %arg10[%c0_475, %c0_476], %1105 {strides = array<i32>} : memref<8x384xf32, #tpu.memory_space<vmem>>, vector<8x384xf32>,
    %c0_477 = arith.constant 0 : index
    %c0_478 = arith.constant 0 : index
    %1107 = vector.load %arg10[%c0_477, %c0_478] : memref<8x384xf32, #tpu.memory_space<vmem>>, vector<8x384xf32>
    %c18_i32_479 = arith.constant 18 : i32
    %1108 = tpu.dynamic_rotate %1107 by %c18_i32_479 dim 1 : vector<8x384xf32>, i32 -> vector<8x384xf32>
    %c1_i32_480 = arith.constant 1 : i32
    %1109 = tpu.dynamic_rotate %1108 by %c1_i32_480 dim 1 : vector<8x384xf32>, i32 -> vector<8x384xf32>
    %c383_i32_481 = arith.constant 383 : i32
    %1110 = tpu.dynamic_rotate %1108 by %c383_i32_481 dim 1 : vector<8x384xf32>, i32 -> vector<8x384xf32>
    %c1_i32_482 = arith.constant 1 : i32
    %1111 = tpu.dynamic_rotate %1107 by %c1_i32_482 dim 1 : vector<8x384xf32>, i32 -> vector<8x384xf32>
    %c383_i32_483 = arith.constant 383 : i32
    %1112 = tpu.dynamic_rotate %1107 by %c383_i32_483 dim 1 : vector<8x384xf32>, i32 -> vector<8x384xf32>
    %c366_i32_484 = arith.constant 366 : i32
    %1113 = tpu.dynamic_rotate %1107 by %c366_i32_484 dim 1 : vector<8x384xf32>, i32 -> vector<8x384xf32>
    %c1_i32_485 = arith.constant 1 : i32
    %1114 = tpu.dynamic_rotate %1113 by %c1_i32_485 dim 1 : vector<8x384xf32>, i32 -> vector<8x384xf32>
    %c383_i32_486 = arith.constant 383 : i32
    %1115 = tpu.dynamic_rotate %1113 by %c383_i32_486 dim 1 : vector<8x384xf32>, i32 -> vector<8x384xf32>
    %1116 = tpu.concatenate %1109, %1108, %1110, %1111, %1107, %1112, %1114, %1113, %1115 in 0 : vector<8x384xf32>, vector<8x384xf32>, vector<8x384xf32>, vector<8x384xf32>, vector<8x384xf32>, vector<8x384xf32>, vector<8x384xf32>, vector<8x384xf32>, vector<8x384xf32> -> vector<72x384xf32>
    %c13 = arith.constant 13 : index
    %c0_487 = arith.constant 0 : index
    %c0_488 = arith.constant 0 : index
    %1117 = vector.load %arg3[%c13, %c0_487, %c0_488] : memref<16x8x72xf32, #tpu.memory_space<vmem>>, vector<1x8x72xf32>
    %1118 = vector.shape_cast %1117 : vector<1x8x72xf32> to vector<8x72xf32>
    %cst_489 = arith.constant dense<0.000000e+00> : vector<8x384xf32>
    %1119 = tpu.matmul %1118, %1116, %cst_489 {dimension_numbers = #tpu.dot_dimension_numbers<[1], [0], [0], [1], [0, 0, 1, 1], [], []>} : vector<8x72xf32>, vector<72x384xf32>, vector<8x384xf32> -> vector<8x384xf32>
    %c0_490 = arith.constant 0 : index
    %c13_491 = arith.constant 13 : index
    %1120 = vector.load %arg4[%c0_490, %c13_491] : memref<8x16xf32, #tpu.memory_space<vmem>>, vector<8x1xf32>
    %1121 = vector.broadcast %1120 : vector<8x1xf32> to vector<8x384xf32>
    %1122 = arith.addf %1119, %1121 : vector<8x384xf32>
    %1123 = vector.broadcast %0 : vector<1x384xf32> to vector<8x384xf32>
    %1124 = arith.mulf %1122, %1123 : vector<8x384xf32>
    %cst_492 = arith.constant 0.000000e+00 : f32
    %1125 = vector.broadcast %cst_492 : f32 to vector<8x384xf32>
    %1126 = arith.cmpf oge, %1124, %1125 : vector<8x384xf32>
    %cst_493 = arith.constant 0.00999999977 : f32
    %1127 = vector.broadcast %cst_493 : f32 to vector<8x384xf32>
    %1128 = arith.mulf %1127, %1124 : vector<8x384xf32>
    %1129 = arith.select %1126, %1124, %1128 : vector<8x384xi1>, vector<8x384xf32>
    %1130 = arith.mulf %1129, %1129 : vector<8x384xf32>
    %1131 = tpu.concatenate %1129, %1130 in 0 : vector<8x384xf32>, vector<8x384xf32> -> vector<16x384xf32>
    %c0_494 = arith.constant 0 : index
    %c0_495 = arith.constant 0 : index
    %1132 = vector.load %arg12[%c0_494, %c0_495] : memref<384x128xf32, #tpu.memory_space<vmem>>, vector<384x128xf32>
    %cst_496 = arith.constant dense<0.000000e+00> : vector<16x128xf32>
    %1133 = tpu.matmul %1131, %1132, %cst_496 {dimension_numbers = #tpu.dot_dimension_numbers<[1], [0], [0], [1], [0, 0, 1, 1], [], []>} : vector<16x384xf32>, vector<384x128xf32>, vector<16x128xf32> -> vector<16x128xf32>
    %1134 = vector.extract_strided_slice %1133 {offsets = [0, 0], sizes = [16, 1], strides = [1, 1]} : vector<16x128xf32> to vector<16x1xf32>
    %1135 = vector.extract_strided_slice %1134 {offsets = [0, 0], sizes = [8, 1], strides = [1, 1]} : vector<16x1xf32> to vector<8x1xf32>
    %1136 = vector.extract_strided_slice %1134 {offsets = [8, 0], sizes = [8, 1], strides = [1, 1]} : vector<16x1xf32> to vector<8x1xf32>
    %cst_497 = arith.constant dense<0.000000e+00> : vector<1xf32>
    %1137 = vector.multi_reduction <add>, %1136, %cst_497 [0] : vector<8x1xf32> to vector<1xf32>
    %1138 = vector.shape_cast %1137 : vector<1xf32> to vector<1x1xf32>
    %1139 = math.sqrt %1138 : vector<1x1xf32>
    %cst_498 = arith.constant 9.99999997E-7 : f32
    %1140 = vector.broadcast %cst_498 : f32 to vector<1x1xf32>
    %1141 = arith.addf %1139, %1140 : vector<1x1xf32>
    %cst_499 = arith.constant 1.000000e+00 : f32
    %1142 = vector.broadcast %cst_499 : f32 to vector<1x1xf32>
    %1143 = arith.divf %1142, %1141 : vector<1x1xf32>
    %c0_500 = arith.constant 0 : index
    %c13_501 = arith.constant 13 : index
    %1144 = vector.load %arg5[%c0_500, %c13_501] : memref<8x16xf32, #tpu.memory_space<vmem>>, vector<8x1xf32>
    %c0_502 = arith.constant 0 : index
    %c13_503 = arith.constant 13 : index
    %1145 = vector.load %arg6[%c0_502, %c13_503] : memref<8x16xf32, #tpu.memory_space<vmem>>, vector<8x1xf32>
    %1146 = vector.extract_strided_slice %1135 {offsets = [0, 0], sizes = [4, 1], strides = [1, 1]} : vector<8x1xf32> to vector<4x1xf32>
    %1147 = vector.extract_strided_slice %1135 {offsets = [4, 0], sizes = [4, 1], strides = [1, 1]} : vector<8x1xf32> to vector<4x1xf32>
    %1148 = arith.addf %1146, %1147 : vector<4x1xf32>
    %1149 = tpu.concatenate %1148, %1148 in 0 : vector<4x1xf32>, vector<4x1xf32> -> vector<8x1xf32>
    %1150 = vector.extract_strided_slice %1136 {offsets = [0, 0], sizes = [4, 1], strides = [1, 1]} : vector<8x1xf32> to vector<4x1xf32>
    %1151 = vector.extract_strided_slice %1136 {offsets = [4, 0], sizes = [4, 1], strides = [1, 1]} : vector<8x1xf32> to vector<4x1xf32>
    %1152 = arith.addf %1150, %1151 : vector<4x1xf32>
    %1153 = tpu.concatenate %1152, %1152 in 0 : vector<4x1xf32>, vector<4x1xf32> -> vector<8x1xf32>
    %cst_504 = arith.constant 0.001953125 : f32
    %1154 = vector.broadcast %cst_504 : f32 to vector<8x1xf32>
    %1155 = arith.mulf %1149, %1154 : vector<8x1xf32>
    %cst_505 = arith.constant 0.001953125 : f32
    %1156 = vector.broadcast %cst_505 : f32 to vector<8x1xf32>
    %1157 = arith.mulf %1153, %1156 : vector<8x1xf32>
    %1158 = arith.mulf %1155, %1155 : vector<8x1xf32>
    %1159 = arith.subf %1157, %1158 : vector<8x1xf32>
    %1160 = arith.mulf %1143, %1143 : vector<1x1xf32>
    %1161 = vector.broadcast %1160 : vector<1x1xf32> to vector<8x1xf32>
    %1162 = arith.mulf %1161, %1159 : vector<8x1xf32>
    %cst_506 = arith.constant 9.99999974E-6 : f32
    %1163 = vector.broadcast %cst_506 : f32 to vector<8x1xf32>
    %1164 = arith.addf %1162, %1163 : vector<8x1xf32>
    %1165 = math.rsqrt %1164 : vector<8x1xf32>
    %1166 = vector.broadcast %1143 : vector<1x1xf32> to vector<8x1xf32>
    %1167 = arith.mulf %1166, %1165 : vector<8x1xf32>
    %1168 = arith.mulf %1167, %1144 : vector<8x1xf32>
    %1169 = vector.broadcast %1143 : vector<1x1xf32> to vector<8x1xf32>
    %1170 = arith.mulf %1169, %1155 : vector<8x1xf32>
    %1171 = arith.mulf %1170, %1165 : vector<8x1xf32>
    %1172 = arith.mulf %1171, %1144 : vector<8x1xf32>
    %1173 = arith.subf %1145, %1172 : vector<8x1xf32>
    %1174 = vector.broadcast %1168 : vector<8x1xf32> to vector<8x384xf32>
    %1175 = arith.mulf %1129, %1174 : vector<8x384xf32>
    %1176 = vector.broadcast %1173 : vector<8x1xf32> to vector<8x384xf32>
    %1177 = arith.addf %1175, %1176 : vector<8x384xf32>
    %1178 = vector.broadcast %0 : vector<1x384xf32> to vector<8x384xf32>
    %1179 = arith.mulf %1177, %1178 : vector<8x384xf32>
    %c0_507 = arith.constant 0 : index
    %c0_508 = arith.constant 0 : index
    %1180 = vector.load %arg10[%c0_507, %c0_508] : memref<8x384xf32, #tpu.memory_space<vmem>>, vector<8x384xf32>
    tpu.vector_store %arg10[%c0_507, %c0_508], %1179 {strides = array<i32>} : memref<8x384xf32, #tpu.memory_space<vmem>>, vector<8x384xf32>,
    %c0_509 = arith.constant 0 : index
    %c0_510 = arith.constant 0 : index
    %1181 = vector.load %arg10[%c0_509, %c0_510] : memref<8x384xf32, #tpu.memory_space<vmem>>, vector<8x384xf32>
    %1182 = arith.mulf %1181, %1181 : vector<8x384xf32>
    %1183 = tpu.concatenate %1181, %1182 in 0 : vector<8x384xf32>, vector<8x384xf32> -> vector<16x384xf32>
    %c0_511 = arith.constant 0 : index
    %c0_512 = arith.constant 0 : index
    %1184 = vector.load %arg12[%c0_511, %c0_512] : memref<384x128xf32, #tpu.memory_space<vmem>>, vector<384x128xf32>
    %cst_513 = arith.constant dense<0.000000e+00> : vector<16x128xf32>
    %1185 = tpu.matmul %1183, %1184, %cst_513 {dimension_numbers = #tpu.dot_dimension_numbers<[1], [0], [0], [1], [0, 0, 1, 1], [], []>} : vector<16x384xf32>, vector<384x128xf32>, vector<16x128xf32> -> vector<16x128xf32>
    %1186 = vector.extract_strided_slice %1185 {offsets = [0, 0], sizes = [16, 1], strides = [1, 1]} : vector<16x128xf32> to vector<16x1xf32>
    %1187 = vector.extract_strided_slice %1186 {offsets = [0, 0], sizes = [8, 1], strides = [1, 1]} : vector<16x1xf32> to vector<8x1xf32>
    %1188 = vector.extract_strided_slice %1186 {offsets = [8, 0], sizes = [8, 1], strides = [1, 1]} : vector<16x1xf32> to vector<8x1xf32>
    %c0_514 = arith.constant 0 : index
    %c7_515 = arith.constant 7 : index
    %1189 = vector.load %arg7[%c0_514, %c7_515] : memref<8x8xf32, #tpu.memory_space<vmem>>, vector<8x1xf32>
    %c0_516 = arith.constant 0 : index
    %c7_517 = arith.constant 7 : index
    %1190 = vector.load %arg8[%c0_516, %c7_517] : memref<8x8xf32, #tpu.memory_space<vmem>>, vector<8x1xf32>
    %1191 = vector.extract_strided_slice %1187 {offsets = [0, 0], sizes = [4, 1], strides = [1, 1]} : vector<8x1xf32> to vector<4x1xf32>
    %1192 = vector.extract_strided_slice %1187 {offsets = [4, 0], sizes = [4, 1], strides = [1, 1]} : vector<8x1xf32> to vector<4x1xf32>
    %1193 = arith.addf %1191, %1192 : vector<4x1xf32>
    %1194 = tpu.concatenate %1193, %1193 in 0 : vector<4x1xf32>, vector<4x1xf32> -> vector<8x1xf32>
    %1195 = vector.extract_strided_slice %1188 {offsets = [0, 0], sizes = [4, 1], strides = [1, 1]} : vector<8x1xf32> to vector<4x1xf32>
    %1196 = vector.extract_strided_slice %1188 {offsets = [4, 0], sizes = [4, 1], strides = [1, 1]} : vector<8x1xf32> to vector<4x1xf32>
    %1197 = arith.addf %1195, %1196 : vector<4x1xf32>
    %1198 = tpu.concatenate %1197, %1197 in 0 : vector<4x1xf32>, vector<4x1xf32> -> vector<8x1xf32>
    %cst_518 = arith.constant 0.001953125 : f32
    %1199 = vector.broadcast %cst_518 : f32 to vector<8x1xf32>
    %1200 = arith.mulf %1194, %1199 : vector<8x1xf32>
    %cst_519 = arith.constant 0.001953125 : f32
    %1201 = vector.broadcast %cst_519 : f32 to vector<8x1xf32>
    %1202 = arith.mulf %1198, %1201 : vector<8x1xf32>
    %1203 = arith.mulf %1200, %1200 : vector<8x1xf32>
    %1204 = arith.subf %1202, %1203 : vector<8x1xf32>
    %cst_520 = arith.constant 1.000000e+00 : f32
    %1205 = vector.broadcast %cst_520 : f32 to vector<8x1xf32>
    %1206 = arith.mulf %1205, %1204 : vector<8x1xf32>
    %cst_521 = arith.constant 9.99999974E-6 : f32
    %1207 = vector.broadcast %cst_521 : f32 to vector<8x1xf32>
    %1208 = arith.addf %1206, %1207 : vector<8x1xf32>
    %1209 = math.rsqrt %1208 : vector<8x1xf32>
    %cst_522 = arith.constant 1.000000e+00 : f32
    %1210 = vector.broadcast %cst_522 : f32 to vector<8x1xf32>
    %1211 = arith.mulf %1210, %1209 : vector<8x1xf32>
    %1212 = arith.mulf %1211, %1189 : vector<8x1xf32>
    %cst_523 = arith.constant 1.000000e+00 : f32
    %1213 = vector.broadcast %cst_523 : f32 to vector<8x1xf32>
    %1214 = arith.mulf %1213, %1200 : vector<8x1xf32>
    %1215 = arith.mulf %1214, %1209 : vector<8x1xf32>
    %1216 = arith.mulf %1215, %1189 : vector<8x1xf32>
    %1217 = arith.subf %1190, %1216 : vector<8x1xf32>
    %1218 = vector.broadcast %1212 : vector<8x1xf32> to vector<8x384xf32>
    %1219 = arith.mulf %1181, %1218 : vector<8x384xf32>
    %1220 = vector.broadcast %1217 : vector<8x1xf32> to vector<8x384xf32>
    %1221 = arith.addf %1219, %1220 : vector<8x384xf32>
    %1222 = vector.broadcast %0 : vector<1x384xf32> to vector<8x384xf32>
    %1223 = arith.mulf %1221, %1222 : vector<8x384xf32>
    %c0_524 = arith.constant 0 : index
    %c0_525 = arith.constant 0 : index
    %1224 = vector.load %arg11[%c0_524, %c0_525] : memref<8x384xf32, #tpu.memory_space<vmem>>, vector<8x384xf32>
    tpu.vector_store %arg11[%c0_524, %c0_525], %1223 {strides = array<i32>} : memref<8x384xf32, #tpu.memory_space<vmem>>, vector<8x384xf32>,
    %c0_526 = arith.constant 0 : index
    %c0_527 = arith.constant 0 : index
    %1225 = vector.load %arg10[%c0_526, %c0_527] : memref<8x384xf32, #tpu.memory_space<vmem>>, vector<8x384xf32>
    %c18_i32_528 = arith.constant 18 : i32
    %1226 = tpu.dynamic_rotate %1225 by %c18_i32_528 dim 1 : vector<8x384xf32>, i32 -> vector<8x384xf32>
    %c1_i32_529 = arith.constant 1 : i32
    %1227 = tpu.dynamic_rotate %1226 by %c1_i32_529 dim 1 : vector<8x384xf32>, i32 -> vector<8x384xf32>
    %c383_i32_530 = arith.constant 383 : i32
    %1228 = tpu.dynamic_rotate %1226 by %c383_i32_530 dim 1 : vector<8x384xf32>, i32 -> vector<8x384xf32>
    %c1_i32_531 = arith.constant 1 : i32
    %1229 = tpu.dynamic_rotate %1225 by %c1_i32_531 dim 1 : vector<8x384xf32>, i32 -> vector<8x384xf32>
    %c383_i32_532 = arith.constant 383 : i32
    %1230 = tpu.dynamic_rotate %1225 by %c383_i32_532 dim 1 : vector<8x384xf32>, i32 -> vector<8x384xf32>
    %c366_i32_533 = arith.constant 366 : i32
    %1231 = tpu.dynamic_rotate %1225 by %c366_i32_533 dim 1 : vector<8x384xf32>, i32 -> vector<8x384xf32>
    %c1_i32_534 = arith.constant 1 : i32
    %1232 = tpu.dynamic_rotate %1231 by %c1_i32_534 dim 1 : vector<8x384xf32>, i32 -> vector<8x384xf32>
    %c383_i32_535 = arith.constant 383 : i32
    %1233 = tpu.dynamic_rotate %1231 by %c383_i32_535 dim 1 : vector<8x384xf32>, i32 -> vector<8x384xf32>
    %1234 = tpu.concatenate %1227, %1226, %1228, %1229, %1225, %1230, %1232, %1231, %1233 in 0 : vector<8x384xf32>, vector<8x384xf32>, vector<8x384xf32>, vector<8x384xf32>, vector<8x384xf32>, vector<8x384xf32>, vector<8x384xf32>, vector<8x384xf32>, vector<8x384xf32> -> vector<72x384xf32>
    %c14 = arith.constant 14 : index
    %c0_536 = arith.constant 0 : index
    %c0_537 = arith.constant 0 : index
    %1235 = vector.load %arg3[%c14, %c0_536, %c0_537] : memref<16x8x72xf32, #tpu.memory_space<vmem>>, vector<1x8x72xf32>
    %1236 = vector.shape_cast %1235 : vector<1x8x72xf32> to vector<8x72xf32>
    %cst_538 = arith.constant dense<0.000000e+00> : vector<8x384xf32>
    %1237 = tpu.matmul %1236, %1234, %cst_538 {dimension_numbers = #tpu.dot_dimension_numbers<[1], [0], [0], [1], [0, 0, 1, 1], [], []>} : vector<8x72xf32>, vector<72x384xf32>, vector<8x384xf32> -> vector<8x384xf32>
    %c0_539 = arith.constant 0 : index
    %c14_540 = arith.constant 14 : index
    %1238 = vector.load %arg4[%c0_539, %c14_540] : memref<8x16xf32, #tpu.memory_space<vmem>>, vector<8x1xf32>
    %1239 = vector.broadcast %1238 : vector<8x1xf32> to vector<8x384xf32>
    %1240 = arith.addf %1237, %1239 : vector<8x384xf32>
    %1241 = vector.broadcast %0 : vector<1x384xf32> to vector<8x384xf32>
    %1242 = arith.mulf %1240, %1241 : vector<8x384xf32>
    %cst_541 = arith.constant 0.000000e+00 : f32
    %1243 = vector.broadcast %cst_541 : f32 to vector<8x384xf32>
    %1244 = arith.cmpf oge, %1242, %1243 : vector<8x384xf32>
    %cst_542 = arith.constant 0.00999999977 : f32
    %1245 = vector.broadcast %cst_542 : f32 to vector<8x384xf32>
    %1246 = arith.mulf %1245, %1242 : vector<8x384xf32>
    %1247 = arith.select %1244, %1242, %1246 : vector<8x384xi1>, vector<8x384xf32>
    %1248 = arith.mulf %1247, %1247 : vector<8x384xf32>
    %1249 = tpu.concatenate %1247, %1248 in 0 : vector<8x384xf32>, vector<8x384xf32> -> vector<16x384xf32>
    %c0_543 = arith.constant 0 : index
    %c0_544 = arith.constant 0 : index
    %1250 = vector.load %arg12[%c0_543, %c0_544] : memref<384x128xf32, #tpu.memory_space<vmem>>, vector<384x128xf32>
    %cst_545 = arith.constant dense<0.000000e+00> : vector<16x128xf32>
    %1251 = tpu.matmul %1249, %1250, %cst_545 {dimension_numbers = #tpu.dot_dimension_numbers<[1], [0], [0], [1], [0, 0, 1, 1], [], []>} : vector<16x384xf32>, vector<384x128xf32>, vector<16x128xf32> -> vector<16x128xf32>
    %1252 = vector.extract_strided_slice %1251 {offsets = [0, 0], sizes = [16, 1], strides = [1, 1]} : vector<16x128xf32> to vector<16x1xf32>
    %1253 = vector.extract_strided_slice %1252 {offsets = [0, 0], sizes = [8, 1], strides = [1, 1]} : vector<16x1xf32> to vector<8x1xf32>
    %1254 = vector.extract_strided_slice %1252 {offsets = [8, 0], sizes = [8, 1], strides = [1, 1]} : vector<16x1xf32> to vector<8x1xf32>
    %cst_546 = arith.constant dense<0.000000e+00> : vector<1xf32>
    %1255 = vector.multi_reduction <add>, %1254, %cst_546 [0] : vector<8x1xf32> to vector<1xf32>
    %1256 = vector.shape_cast %1255 : vector<1xf32> to vector<1x1xf32>
    %1257 = math.sqrt %1256 : vector<1x1xf32>
    %cst_547 = arith.constant 9.99999997E-7 : f32
    %1258 = vector.broadcast %cst_547 : f32 to vector<1x1xf32>
    %1259 = arith.addf %1257, %1258 : vector<1x1xf32>
    %cst_548 = arith.constant 1.000000e+00 : f32
    %1260 = vector.broadcast %cst_548 : f32 to vector<1x1xf32>
    %1261 = arith.divf %1260, %1259 : vector<1x1xf32>
    %c0_549 = arith.constant 0 : index
    %c14_550 = arith.constant 14 : index
    %1262 = vector.load %arg5[%c0_549, %c14_550] : memref<8x16xf32, #tpu.memory_space<vmem>>, vector<8x1xf32>
    %c0_551 = arith.constant 0 : index
    %c14_552 = arith.constant 14 : index
    %1263 = vector.load %arg6[%c0_551, %c14_552] : memref<8x16xf32, #tpu.memory_space<vmem>>, vector<8x1xf32>
    %1264 = vector.extract_strided_slice %1253 {offsets = [0, 0], sizes = [4, 1], strides = [1, 1]} : vector<8x1xf32> to vector<4x1xf32>
    %1265 = vector.extract_strided_slice %1253 {offsets = [4, 0], sizes = [4, 1], strides = [1, 1]} : vector<8x1xf32> to vector<4x1xf32>
    %1266 = arith.addf %1264, %1265 : vector<4x1xf32>
    %1267 = tpu.concatenate %1266, %1266 in 0 : vector<4x1xf32>, vector<4x1xf32> -> vector<8x1xf32>
    %1268 = vector.extract_strided_slice %1254 {offsets = [0, 0], sizes = [4, 1], strides = [1, 1]} : vector<8x1xf32> to vector<4x1xf32>
    %1269 = vector.extract_strided_slice %1254 {offsets = [4, 0], sizes = [4, 1], strides = [1, 1]} : vector<8x1xf32> to vector<4x1xf32>
    %1270 = arith.addf %1268, %1269 : vector<4x1xf32>
    %1271 = tpu.concatenate %1270, %1270 in 0 : vector<4x1xf32>, vector<4x1xf32> -> vector<8x1xf32>
    %cst_553 = arith.constant 0.001953125 : f32
    %1272 = vector.broadcast %cst_553 : f32 to vector<8x1xf32>
    %1273 = arith.mulf %1267, %1272 : vector<8x1xf32>
    %cst_554 = arith.constant 0.001953125 : f32
    %1274 = vector.broadcast %cst_554 : f32 to vector<8x1xf32>
    %1275 = arith.mulf %1271, %1274 : vector<8x1xf32>
    %1276 = arith.mulf %1273, %1273 : vector<8x1xf32>
    %1277 = arith.subf %1275, %1276 : vector<8x1xf32>
    %1278 = arith.mulf %1261, %1261 : vector<1x1xf32>
    %1279 = vector.broadcast %1278 : vector<1x1xf32> to vector<8x1xf32>
    %1280 = arith.mulf %1279, %1277 : vector<8x1xf32>
    %cst_555 = arith.constant 9.99999974E-6 : f32
    %1281 = vector.broadcast %cst_555 : f32 to vector<8x1xf32>
    %1282 = arith.addf %1280, %1281 : vector<8x1xf32>
    %1283 = math.rsqrt %1282 : vector<8x1xf32>
    %1284 = vector.broadcast %1261 : vector<1x1xf32> to vector<8x1xf32>
    %1285 = arith.mulf %1284, %1283 : vector<8x1xf32>
    %1286 = arith.mulf %1285, %1262 : vector<8x1xf32>
    %1287 = vector.broadcast %1261 : vector<1x1xf32> to vector<8x1xf32>
    %1288 = arith.mulf %1287, %1273 : vector<8x1xf32>
    %1289 = arith.mulf %1288, %1283 : vector<8x1xf32>
    %1290 = arith.mulf %1289, %1262 : vector<8x1xf32>
    %1291 = arith.subf %1263, %1290 : vector<8x1xf32>
    %1292 = vector.broadcast %1286 : vector<8x1xf32> to vector<8x384xf32>
    %1293 = arith.mulf %1247, %1292 : vector<8x384xf32>
    %1294 = vector.broadcast %1291 : vector<8x1xf32> to vector<8x384xf32>
    %1295 = arith.addf %1293, %1294 : vector<8x384xf32>
    %1296 = vector.broadcast %0 : vector<1x384xf32> to vector<8x384xf32>
    %1297 = arith.mulf %1295, %1296 : vector<8x384xf32>
    %c0_556 = arith.constant 0 : index
    %c0_557 = arith.constant 0 : index
    %1298 = vector.load %arg10[%c0_556, %c0_557] : memref<8x384xf32, #tpu.memory_space<vmem>>, vector<8x384xf32>
    tpu.vector_store %arg10[%c0_556, %c0_557], %1297 {strides = array<i32>} : memref<8x384xf32, #tpu.memory_space<vmem>>, vector<8x384xf32>,
    %c0_558 = arith.constant 0 : index
    %c0_559 = arith.constant 0 : index
    %1299 = vector.load %arg10[%c0_558, %c0_559] : memref<8x384xf32, #tpu.memory_space<vmem>>, vector<8x384xf32>
    %c18_i32_560 = arith.constant 18 : i32
    %1300 = tpu.dynamic_rotate %1299 by %c18_i32_560 dim 1 : vector<8x384xf32>, i32 -> vector<8x384xf32>
    %c1_i32_561 = arith.constant 1 : i32
    %1301 = tpu.dynamic_rotate %1300 by %c1_i32_561 dim 1 : vector<8x384xf32>, i32 -> vector<8x384xf32>
    %c383_i32_562 = arith.constant 383 : i32
    %1302 = tpu.dynamic_rotate %1300 by %c383_i32_562 dim 1 : vector<8x384xf32>, i32 -> vector<8x384xf32>
    %c1_i32_563 = arith.constant 1 : i32
    %1303 = tpu.dynamic_rotate %1299 by %c1_i32_563 dim 1 : vector<8x384xf32>, i32 -> vector<8x384xf32>
    %c383_i32_564 = arith.constant 383 : i32
    %1304 = tpu.dynamic_rotate %1299 by %c383_i32_564 dim 1 : vector<8x384xf32>, i32 -> vector<8x384xf32>
    %c366_i32_565 = arith.constant 366 : i32
    %1305 = tpu.dynamic_rotate %1299 by %c366_i32_565 dim 1 : vector<8x384xf32>, i32 -> vector<8x384xf32>
    %c1_i32_566 = arith.constant 1 : i32
    %1306 = tpu.dynamic_rotate %1305 by %c1_i32_566 dim 1 : vector<8x384xf32>, i32 -> vector<8x384xf32>
    %c383_i32_567 = arith.constant 383 : i32
    %1307 = tpu.dynamic_rotate %1305 by %c383_i32_567 dim 1 : vector<8x384xf32>, i32 -> vector<8x384xf32>
    %1308 = tpu.concatenate %1301, %1300, %1302, %1303, %1299, %1304, %1306, %1305, %1307 in 0 : vector<8x384xf32>, vector<8x384xf32>, vector<8x384xf32>, vector<8x384xf32>, vector<8x384xf32>, vector<8x384xf32>, vector<8x384xf32>, vector<8x384xf32>, vector<8x384xf32> -> vector<72x384xf32>
    %c15 = arith.constant 15 : index
    %c0_568 = arith.constant 0 : index
    %c0_569 = arith.constant 0 : index
    %1309 = vector.load %arg3[%c15, %c0_568, %c0_569] : memref<16x8x72xf32, #tpu.memory_space<vmem>>, vector<1x8x72xf32>
    %1310 = vector.shape_cast %1309 : vector<1x8x72xf32> to vector<8x72xf32>
    %cst_570 = arith.constant dense<0.000000e+00> : vector<8x384xf32>
    %1311 = tpu.matmul %1310, %1308, %cst_570 {dimension_numbers = #tpu.dot_dimension_numbers<[1], [0], [0], [1], [0, 0, 1, 1], [], []>} : vector<8x72xf32>, vector<72x384xf32>, vector<8x384xf32> -> vector<8x384xf32>
    %c0_571 = arith.constant 0 : index
    %c15_572 = arith.constant 15 : index
    %1312 = vector.load %arg4[%c0_571, %c15_572] : memref<8x16xf32, #tpu.memory_space<vmem>>, vector<8x1xf32>
    %1313 = vector.broadcast %1312 : vector<8x1xf32> to vector<8x384xf32>
    %1314 = arith.addf %1311, %1313 : vector<8x384xf32>
    %1315 = vector.broadcast %0 : vector<1x384xf32> to vector<8x384xf32>
    %1316 = arith.mulf %1314, %1315 : vector<8x384xf32>
    %cst_573 = arith.constant 0.000000e+00 : f32
    %1317 = vector.broadcast %cst_573 : f32 to vector<8x384xf32>
    %1318 = arith.cmpf oge, %1316, %1317 : vector<8x384xf32>
    %cst_574 = arith.constant 0.00999999977 : f32
    %1319 = vector.broadcast %cst_574 : f32 to vector<8x384xf32>
    %1320 = arith.mulf %1319, %1316 : vector<8x384xf32>
    %1321 = arith.select %1318, %1316, %1320 : vector<8x384xi1>, vector<8x384xf32>
    %1322 = arith.mulf %1321, %1321 : vector<8x384xf32>
    %1323 = tpu.concatenate %1321, %1322 in 0 : vector<8x384xf32>, vector<8x384xf32> -> vector<16x384xf32>
    %c0_575 = arith.constant 0 : index
    %c0_576 = arith.constant 0 : index
    %1324 = vector.load %arg12[%c0_575, %c0_576] : memref<384x128xf32, #tpu.memory_space<vmem>>, vector<384x128xf32>
    %cst_577 = arith.constant dense<0.000000e+00> : vector<16x128xf32>
    %1325 = tpu.matmul %1323, %1324, %cst_577 {dimension_numbers = #tpu.dot_dimension_numbers<[1], [0], [0], [1], [0, 0, 1, 1], [], []>} : vector<16x384xf32>, vector<384x128xf32>, vector<16x128xf32> -> vector<16x128xf32>
    %1326 = vector.extract_strided_slice %1325 {offsets = [0, 0], sizes = [16, 1], strides = [1, 1]} : vector<16x128xf32> to vector<16x1xf32>
    %1327 = vector.extract_strided_slice %1326 {offsets = [0, 0], sizes = [8, 1], strides = [1, 1]} : vector<16x1xf32> to vector<8x1xf32>
    %1328 = vector.extract_strided_slice %1326 {offsets = [8, 0], sizes = [8, 1], strides = [1, 1]} : vector<16x1xf32> to vector<8x1xf32>
    %cst_578 = arith.constant dense<0.000000e+00> : vector<1xf32>
    %1329 = vector.multi_reduction <add>, %1328, %cst_578 [0] : vector<8x1xf32> to vector<1xf32>
    %1330 = vector.shape_cast %1329 : vector<1xf32> to vector<1x1xf32>
    %1331 = math.sqrt %1330 : vector<1x1xf32>
    %cst_579 = arith.constant 9.99999997E-7 : f32
    %1332 = vector.broadcast %cst_579 : f32 to vector<1x1xf32>
    %1333 = arith.addf %1331, %1332 : vector<1x1xf32>
    %cst_580 = arith.constant 1.000000e+00 : f32
    %1334 = vector.broadcast %cst_580 : f32 to vector<1x1xf32>
    %1335 = arith.divf %1334, %1333 : vector<1x1xf32>
    %c0_581 = arith.constant 0 : index
    %c15_582 = arith.constant 15 : index
    %1336 = vector.load %arg5[%c0_581, %c15_582] : memref<8x16xf32, #tpu.memory_space<vmem>>, vector<8x1xf32>
    %c0_583 = arith.constant 0 : index
    %c15_584 = arith.constant 15 : index
    %1337 = vector.load %arg6[%c0_583, %c15_584] : memref<8x16xf32, #tpu.memory_space<vmem>>, vector<8x1xf32>
    %1338 = vector.extract_strided_slice %1327 {offsets = [0, 0], sizes = [4, 1], strides = [1, 1]} : vector<8x1xf32> to vector<4x1xf32>
    %1339 = vector.extract_strided_slice %1327 {offsets = [4, 0], sizes = [4, 1], strides = [1, 1]} : vector<8x1xf32> to vector<4x1xf32>
    %1340 = arith.addf %1338, %1339 : vector<4x1xf32>
    %1341 = tpu.concatenate %1340, %1340 in 0 : vector<4x1xf32>, vector<4x1xf32> -> vector<8x1xf32>
    %1342 = vector.extract_strided_slice %1328 {offsets = [0, 0], sizes = [4, 1], strides = [1, 1]} : vector<8x1xf32> to vector<4x1xf32>
    %1343 = vector.extract_strided_slice %1328 {offsets = [4, 0], sizes = [4, 1], strides = [1, 1]} : vector<8x1xf32> to vector<4x1xf32>
    %1344 = arith.addf %1342, %1343 : vector<4x1xf32>
    %1345 = tpu.concatenate %1344, %1344 in 0 : vector<4x1xf32>, vector<4x1xf32> -> vector<8x1xf32>
    %cst_585 = arith.constant 0.001953125 : f32
    %1346 = vector.broadcast %cst_585 : f32 to vector<8x1xf32>
    %1347 = arith.mulf %1341, %1346 : vector<8x1xf32>
    %cst_586 = arith.constant 0.001953125 : f32
    %1348 = vector.broadcast %cst_586 : f32 to vector<8x1xf32>
    %1349 = arith.mulf %1345, %1348 : vector<8x1xf32>
    %1350 = arith.mulf %1347, %1347 : vector<8x1xf32>
    %1351 = arith.subf %1349, %1350 : vector<8x1xf32>
    %1352 = arith.mulf %1335, %1335 : vector<1x1xf32>
    %1353 = vector.broadcast %1352 : vector<1x1xf32> to vector<8x1xf32>
    %1354 = arith.mulf %1353, %1351 : vector<8x1xf32>
    %cst_587 = arith.constant 9.99999974E-6 : f32
    %1355 = vector.broadcast %cst_587 : f32 to vector<8x1xf32>
    %1356 = arith.addf %1354, %1355 : vector<8x1xf32>
    %1357 = math.rsqrt %1356 : vector<8x1xf32>
    %1358 = vector.broadcast %1335 : vector<1x1xf32> to vector<8x1xf32>
    %1359 = arith.mulf %1358, %1357 : vector<8x1xf32>
    %1360 = arith.mulf %1359, %1336 : vector<8x1xf32>
    %1361 = vector.broadcast %1335 : vector<1x1xf32> to vector<8x1xf32>
    %1362 = arith.mulf %1361, %1347 : vector<8x1xf32>
    %1363 = arith.mulf %1362, %1357 : vector<8x1xf32>
    %1364 = arith.mulf %1363, %1336 : vector<8x1xf32>
    %1365 = arith.subf %1337, %1364 : vector<8x1xf32>
    %1366 = vector.broadcast %1360 : vector<8x1xf32> to vector<8x384xf32>
    %1367 = arith.mulf %1321, %1366 : vector<8x384xf32>
    %1368 = vector.broadcast %1365 : vector<8x1xf32> to vector<8x384xf32>
    %1369 = arith.addf %1367, %1368 : vector<8x384xf32>
    %1370 = vector.broadcast %0 : vector<1x384xf32> to vector<8x384xf32>
    %1371 = arith.mulf %1369, %1370 : vector<8x384xf32>
    %c0_588 = arith.constant 0 : index
    %c0_589 = arith.constant 0 : index
    %1372 = vector.load %arg11[%c0_588, %c0_589] : memref<8x384xf32, #tpu.memory_space<vmem>>, vector<8x384xf32>
    %1373 = arith.addf %1371, %1372 : vector<8x384xf32>
    %c0_590 = arith.constant 0 : index
    %c0_591 = arith.constant 0 : index
    %1374 = vector.load %arg10[%c0_590, %c0_591] : memref<8x384xf32, #tpu.memory_space<vmem>>, vector<8x384xf32>
    tpu.vector_store %arg10[%c0_590, %c0_591], %1373 {strides = array<i32>} : memref<8x384xf32, #tpu.memory_space<vmem>>, vector<8x384xf32>,
    %c0_592 = arith.constant 0 : index
    %c0_593 = arith.constant 0 : index
    %1375 = vector.load %arg10[%c0_592, %c0_593] : memref<8x384xf32, #tpu.memory_space<vmem>>, vector<8x384xf32>
    %c0_594 = arith.constant 0 : index
    %c0_595 = arith.constant 0 : index
    %1376 = vector.load %arg9[%c0_594, %c0_595] : memref<8x384xf32, #tpu.memory_space<vmem>>, vector<8x384xf32>
    tpu.vector_store %arg9[%c0_594, %c0_595], %1375 {strides = array<i32>} : memref<8x384xf32, #tpu.memory_space<vmem>>, vector<8x384xf32>,
    return
  }
  func.func @transform_0(%arg0: i32) -> (i32, i32) {
    %c0_i32 = arith.constant 0 : i32
    %c0_i32_0 = arith.constant 0 : i32
    %c0_i32_1 = arith.constant 0 : i32
    return %c0_i32, %c0_i32_0 : i32, i32
  }
  func.func @transform_1(%arg0: i32) -> (i32, i32) {
    %c0_i32 = arith.constant 0 : i32
    %c0_i32_0 = arith.constant 0 : i32
    %c0_i32_1 = arith.constant 0 : i32
    return %c0_i32, %c0_i32_0 : i32, i32
  }
  func.func @transform_2(%arg0: i32) -> (i32, i32, i32) {
    %c0_i32 = arith.constant 0 : i32
    %c0_i32_0 = arith.constant 0 : i32
    %c0_i32_1 = arith.constant 0 : i32
    %c0_i32_2 = arith.constant 0 : i32
    return %c0_i32, %c0_i32_0, %c0_i32_1 : i32, i32, i32
  }
  func.func @transform_3(%arg0: i32) -> (i32, i32) {
    %c0_i32 = arith.constant 0 : i32
    %c0_i32_0 = arith.constant 0 : i32
    %c0_i32_1 = arith.constant 0 : i32
    return %c0_i32, %c0_i32_0 : i32, i32
  }
  func.func @transform_4(%arg0: i32) -> (i32, i32) {
    %c0_i32 = arith.constant 0 : i32
    %c0_i32_0 = arith.constant 0 : i32
    %c0_i32_1 = arith.constant 0 : i32
    return %c0_i32, %c0_i32_0 : i32, i32
  }
  func.func @transform_5(%arg0: i32) -> (i32, i32) {
    %c0_i32 = arith.constant 0 : i32
    %c0_i32_0 = arith.constant 0 : i32
    %c0_i32_1 = arith.constant 0 : i32
    return %c0_i32, %c0_i32_0 : i32, i32
  }
  func.func @transform_6(%arg0: i32) -> (i32, i32) {
    %c0_i32 = arith.constant 0 : i32
    %c0_i32_0 = arith.constant 0 : i32
    %c0_i32_1 = arith.constant 0 : i32
    return %c0_i32, %c0_i32_0 : i32, i32
  }
  func.func @transform_7(%arg0: i32) -> (i32, i32) {
    %c0_i32 = arith.constant 0 : i32
    %c0_i32_0 = arith.constant 0 : i32
    %c0_i32_1 = arith.constant 0 : i32
    return %c0_i32, %c0_i32_0 : i32, i32
  }
  func.func @transform_8(%arg0: i32) -> (i32, i32) {
    %c0_i32 = arith.constant 0 : i32
    %c0_i32_0 = arith.constant 0 : i32
    %c0_i32_1 = arith.constant 0 : i32
    return %c0_i32, %c0_i32_0 : i32, i32
  }
}

</mosaic_0001>

<bundles_post_ra>
// kernel: run_model.1
= control target key start
LH: loop header
LB: loop body
LE: loop exit
PB: predicated region body
PF: predicated region fallthrough
CT: control target
= control target key end

     0   :  { %s8074_s11 = smov 110   ;;  %s8075_s14 = smov 127   ;;  %v286_v11 = vlaneseq  ;;  %v8076_v21 = vmov 1.0   ;;  %v8078_v56 = vmov 0   ;;  %vm365_vm4 = vcmask 588800   ;;  %s11703_s0 = inlined_call_operand.vmem [shape: f32[8,384], index: 0, kind: input, shape index: {}]   ;;  %s11704_s1 = inlined_call_operand.vmem [shape: f32[1,384], index: 1, kind: input, shape index: {}]   ;;  %s11705_s3 = inlined_call_operand.vmem [shape: f32[8,16], index: 3, kind: input, shape index: {}]   ;;  %s11706_s2 = inlined_call_operand.vmem [shape: f32[16,8,72], index: 2, kind: input, shape index: {}]   ;;  %s11707_s6 = inlined_call_operand.vmem [shape: f32[8,8], index: 6, kind: input, shape index: {}]   ;;  %s11708_s4 = inlined_call_operand.vmem [shape: f32[8,16], index: 4, kind: input, shape index: {}]   ;;  %s11709_s5 = inlined_call_operand.vmem [shape: f32[8,16], index: 5, kind: input, shape index: {}]   ;;  %s11710_s7 = inlined_call_operand.vmem [shape: f32[8,8], index: 7, kind: input, shape index: {}]   ;;  %s11711_s8 = inlined_call_operand.vmem [shape: f32[8,384], index: 8, kind: output, shape index: {}]  }
   0x1   :  { %v29_v0 = vld [vmem:[%s11704_s1] sm:$0x7]  ;;  %v79_v2 = vld [vmem:[%s11703_s0 + $0x8] sm:$0xff]  ;;  %s8073_s1 = smov 18   ;;  %v80_v9 = vld [vmem:[%s11703_s0 + $0x10] sm:$0xff]  ;;  %194 = vmatpush.msra.mxu2 %v8076_v21  ;;  %148 = vmatpush.msra.mxu0 %v8076_v21  ;;  %vm226_vm5 = vcmask 1043456  }
   0x2   :  { %v78_v1 = vld [vmem:[%s11703_s0] sm:$0xff]  ;;  %v8176_v3 = vperm.slane %v29_v0, 0  ;;  %v8178_v4 = vperm.slane %v29_v0, 1  ;;  %v8190_v8 = vperm.slane %v29_v0, 2  ;;  %v8203_v12 = vand.u32 127, %v286_v11  ;;  %171 = vmatpush.msra.mxu1 %v8076_v21  ;;  %s8077_s0 = smov 1   ;;  %7186 = vset.pattern.permute.xlu2 %v8078_v56 }
   0x3   :  { %195 = vmatpush.msra.mxu2 %v8076_v21  ;;  %149 = vmatpush.msra.mxu0 %v8076_v21  ;;  %v8364_v55 = vld [vmem:[%s11705_s3] sm:$0xff]  ;;  %vm561_vm12 = vcmask 7168   ;;  %s8081_s15 = smov 126   ;;  %s8082_s16 = smov 2  }
   0x4   :  { %v8181_v5 = vmul.f32 %v8176_v3, %v78_v1  ;;  %v8184_v6 = vmul.f32 %v8178_v4, %v79_v2  ;;  %v8196_v10 = vmul.f32 %v8190_v8, %v80_v9  ;;  %vm288_vm0 = vcmp.lt.s32.totalorder %v8203_v12, 18  ;;  %172 = vmatpush.msra.mxu1 %v8076_v21  ;;  %7187 = vset.pattern.permute.xlu0 %v8078_v56  ;;  %s8084_s21 = smov 125   ;;  %s8085_s22 = smov 3  }
   0x5   :  { %vm336_vm1 = vcmp.lt.s32.totalorder %v8203_v12, 110  ;;  %196 = vmatpush.msra.mxu2 %v8076_v21  ;;  %150 = vmatpush.msra.mxu0 %v8076_v21  ;;  %vm308_vm2 = vcmp.lt.s32.totalorder %v8203_v12, 127  ;;  %vm298_vm3 = vcmp.lt.s32.totalorder %v8203_v12, 1  ;;  %s8087_s29 = smov 124   ;;  %s8088_s30 = smov 4  }
   0x6   :  { %v7141_v7 = vpack.i.bf16 %v8184_v6, %v8181_v5  ;;  %173 = vmatpush.msra.mxu1 %v8076_v21  ;;  %v7161_v33 = vpack.i.bf16 %v8196_v10, %v8181_v5  ;;  %v99_v35 = vmul.f32 %v8196_v10, %v8196_v10  ;;  %v97_v36 = vmul.f32 %v8181_v5, %v8181_v5  ;;  %s8093_s25 = smov 122   ;;  %s8094_s26 = smov 6  }
   0x7   :  { %197 = vmatpush.msra.mxu2 %v8076_v21  ;;  %151 = vmatpush.msra.mxu0 %v8076_v21  ;;  %v98_v37 = vmul.f32 %v8184_v6, %v8184_v6  ;;  %s8095_s12 = smov 121   ;;  %s8111_s19 = smov 116  }
   0x8   :  { %7142 = vrot.lane.b32.xlu1 %v7141_v7, %s8073_s1  ;;  %7137 = vrot.lane.b32.xlu0 %v7141_v7, %s8074_s11  ;;  %s8112_s20 = smov 12   ;;  %s8114_s27 = smov 115  }
   0x9   :  { %198 = vmatpush.msra.mxu2 %v8076_v21  ;;  %174 = vmatpush.msra.mxu1 %v8076_v21  ;;  %s8115_s28 = smov 13  }
   0xa   :  { %152 = vmatpush.msra.mxu0 %v8076_v21  ;;  %7188 = vset.pattern.permute.xlu1 %v8078_v56 }
   0xb   :  { %199 = vmatpush.msra.mxu2 %v8076_v21  ;;  %175 = vmatpush.msra.mxu1 %v8076_v21 }
   0xc   :  { %153 = vmatpush.msra.mxu0 %v8076_v21 }
   0xd   :  { %200 = vmatpush.msra.mxu2 %v8076_v21  ;;  %176 = vmatpush.msra.mxu1 %v8076_v21 }
   0xe   :  { %154 = vmatpush.msra.mxu0 %v8076_v21 }
   0xf   :  { %201 = vmatpush.msra.mxu2 %v8076_v21  ;;  %177 = vmatpush.msra.mxu1 %v8076_v21 }
  0x10   :  { %284 = vrot.lane.b32.xlu1 %v8196_v10, %s8073_s1  ;;  %334 = vrot.lane.b32.xlu0 %v8196_v10, %s8074_s11 }
  0x11   :  { %202 = vmatpush.msra.mxu2 %v8076_v21  ;;  %155 = vmatpush.msra.mxu0 %v8076_v21 }
  0x12   :  { %178 = vmatpush.msra.mxu1 %v8076_v21 }
  0x13   :  { %203 = vmatpush.msra.mxu2 %v8076_v21  ;;  %156 = vmatpush.msra.mxu0 %v8076_v21 }
  0x14   :  { %179 = vmatpush.msra.mxu1 %v8076_v21 }
  0x15   :  { %204 = vmatpush.msra.mxu2 %v8076_v21  ;;  %157 = vmatpush.msra.mxu0 %v8076_v21 }
  0x16   :  { %180 = vmatpush.msra.mxu1 %v8076_v21 }
  0x17   :  { %205 = vmatpush.msra.mxu2 %v8076_v21  ;;  %158 = vmatpush.msra.mxu0 %v8076_v21 }
  0x18   :  { %7147 = vrot.lane.b32.xlu0 %v7141_v7, %s8075_s14  ;;  %181 = vmatpush.msra.mxu1 %v8076_v21 }
  0x19   :  { %206 = vmatpush.msra.mxu2 %v8076_v21  ;;  %159 = vmatpush.msra.mxu0 %v8076_v21 }
  0x1a   :  { %182 = vmatpush.msra.mxu1 %v8076_v21 }
  0x1b   :  { %207 = vmatpush.msra.mxu2 %v8076_v21  ;;  %160 = vmatpush.msra.mxu0 %v8076_v21 }
  0x1c   :  { %183 = vmatpush.msra.mxu1 %v8076_v21 }
  0x1d   :  { %208 = vmatpush.msra.mxu2 %v8076_v21  ;;  %161 = vmatpush.msra.mxu0 %v8076_v21 }
  0x1e   :  { %184 = vmatpush.msra.mxu1 %v8076_v21 }
  0x1f   :  { %209 = vmatpush.msra.mxu2 %v8076_v21  ;;  %162 = vmatpush.msra.mxu0 %v8076_v21 }
  0x20   :  { %210 = vmatmul.f32.vlgmr.msra.gmra.mxu2 %v8196_v10  ;;  %185 = vmatpush.msra.mxu1 %v8076_v21 }
  0x21   :  { %515 = vmatpush.msrb.mxu2 %v8076_v21  ;;  %163 = vmatpush.msra.mxu0 %v8076_v21 }
  0x22   :  { %186 = vmatpush.msra.mxu1 %v8076_v21  ;;  %164 = vmatmul.f32.vlgmr.msra.gmra.mxu0 %v8181_v5 }
  0x23   :  { %187 = vmatmul.f32.vlgmr.msra.gmra.mxu1 %v8184_v6  ;;  %516 = vmatpush.msrb.mxu2 %v8076_v21 }
  0x24   :  { %492 = vmatpush.msrb.mxu1 %v8076_v21 }
  0x25   :  { %517 = vmatpush.msrb.mxu2 %v8076_v21 }
  0x26   :  { %493 = vmatpush.msrb.mxu1 %v8076_v21 }
  0x27   :  { %518 = vmatpush.msrb.mxu2 %v8076_v21 }
  0x28   :  { %494 = vmatpush.msrb.mxu1 %v8076_v21  ;;  %213 = vmatmul.f32.gmra.mxu2 %v99_v35 }
  0x29   :  { %519 = vmatpush.msrb.mxu2 %v8076_v21 }
  0x2a   :  { %495 = vmatpush.msrb.mxu1 %v8076_v21  ;;  %167 = vmatmul.f32.gmra.mxu0 %v97_v36 }
  0x2b   :  { %520 = vmatpush.msrb.mxu2 %v8076_v21  ;;  %190 = vmatmul.f32.gmra.mxu1 %v98_v37 }
  0x2c   :  { %496 = vmatpush.msrb.mxu1 %v8076_v21 }
  0x2d   :  { %521 = vmatpush.msrb.mxu2 %v8076_v21 }
  0x2e   :  { %497 = vmatpush.msrb.mxu1 %v8076_v21 }
  0x2f   :  { %522 = vmatpush.msrb.mxu2 %v8076_v21 }
  0x30   :  { %498 = vmatpush.msrb.mxu1 %v8076_v21 }
  0x31   :  { %523 = vmatpush.msrb.mxu2 %v8076_v21 }
  0x32   :  { %499 = vmatpush.msrb.mxu1 %v8076_v21 }
  0x33   :  { %524 = vmatpush.msrb.mxu2 %v8076_v21 }
  0x34   :  { %500 = vmatpush.msrb.mxu1 %v8076_v21 }
  0x35   :  { %525 = vmatpush.msrb.mxu2 %v8076_v21 }
  0x36   :  { %501 = vmatpush.msrb.mxu1 %v8076_v21 }
  0x37   :  { %526 = vmatpush.msrb.mxu2 %v8076_v21 }
  0x38   :  { %502 = vmatpush.msrb.mxu1 %v8076_v21 }
  0x39   :  { %527 = vmatpush.msrb.mxu2 %v8076_v21 }
  0x3a   :  { %503 = vmatpush.msrb.mxu1 %v8076_v21 }
  0x3b   :  { %528 = vmatpush.msrb.mxu2 %v8076_v21 }
  0x3c   :  { %504 = vmatpush.msrb.mxu1 %v8076_v21 }
  0x3d   :  { %529 = vmatpush.msrb.mxu2 %v8076_v21 }
  0x3e   :  { %505 = vmatpush.msrb.mxu1 %v8076_v21 }
  0x3f   :  { %530 = vmatpush.msrb.mxu2 %v8076_v21 }
  0x40   :  { %506 = vmatpush.msrb.mxu1 %v8076_v21 }
  0x42   :  { %507 = vmatpush.msrb.mxu1 %v8076_v21 }
  0x7a   :  { %v7143_v13 = vpop.permute.xlu1 %7142  ;;  %v7138_v14 = vpop.permute.xlu0 %7137 }
  0x7b   :  { %v7145_v15 = vunpack.i.h.bf16 %v7143_v13  ;;  %v7144_v16 = vunpack.i.l.bf16 %v7143_v13  ;;  %v7140_v19 = vunpack.i.h.bf16 %v7138_v14  ;;  %v7139_v20 = vunpack.i.l.bf16 %v7138_v14  ;;  %v358_v14 = vld [vmem:[%s11706_s2] sm:$0xff] }
  0x7d   :  { %v8208_v17 = vsel %vm288_vm0, %v7144_v16, %v7145_v15  ;;  %v8234_v27 = vsel %vm336_vm1, %v7139_v20, %v7140_v19 }
  0x7e   :  { %v7171_v18 = vpack.i.bf16 %v8196_v10, %v8208_v17 }
  0x80   :  { %7172 = vrot.lane.b32.xlu0 %v7171_v18, %s8075_s14 }
  0x82   :  { %v285_v22 = vpop.permute.xlu1 %284  ;;  %v335_v23 = vpop.permute.xlu0 %334 }
  0x83   :  { %v8222_v24 = vsel %vm288_vm0, %v285_v22, %v7144_v16  ;;  %v8226_v25 = vsel %vm336_vm1, %v7140_v19, %v335_v23  ;;  %v8230_v26 = vsel %vm336_vm1, %v335_v23, %v7139_v20  ;;  %v8248_v30 = vsel %vm288_vm0, %v7145_v15, %v285_v22 }
  0x84   :  { %v7166_v28 = vpack.i.bf16 %v8222_v24, %v8230_v26  ;;  %v7151_v29 = vpack.i.bf16 %v8226_v25, %v8234_v27  ;;  %v7176_v31 = vpack.i.bf16 %v8222_v24, %v8226_v25  ;;  %v7156_v32 = vpack.i.bf16 %v8230_v26, %v8234_v27 }
  0x85   :  { %v7181_v34 = vpack.i.bf16 %v8184_v6, %v8248_v30 }
  0x86   :  { %7167 = vrot.lane.b32.xlu1 %v7166_v28, %s8075_s14  ;;  %7152 = vrot.lane.b32.xlu2 %v7151_v29, %s8075_s14 }
  0x88   :  { %306 = vrot.lane.b32.xlu0 %v8248_v30, %s8075_s14 }
  0x8a   :  { %v8349_v42 = vpop.permute.xlu0 %7147 }
  0x8b   :  { %v7150_v43 = vunpack.i.h.bf16 %v8349_v42  ;;  %v7149_v44 = vunpack.i.l.bf16 %v8349_v42 }
  0x8d   :  { %v328_v49 = vsel %vm308_vm2, %v7149_v44, %v7150_v43 }
  0x8e   :  { %7177 = vrot.lane.b32.xlu1 %v7176_v31, %s8077_s0  ;;  %7157 = vrot.lane.b32.xlu2 %v7156_v32, %s8077_s0 }
  0x96   :  { %294 = vrot.lane.b32.xlu1 %v8208_v17, %s8077_s0  ;;  %7162 = vrot.lane.b32.xlu2 %v7161_v33, %s8077_s0 }
  0x9e   :  { %7182 = vrot.lane.b32.xlu2 %v7181_v34, %s8077_s0 }
  0xa3   :  { %v211_v32 = vpop.f32.mrf.mxu2 }
  0xa6   :  { %362 = vperm.xlu2 %7186, %v8364_v55  }
  0xab   :  { %v214_v35 = vpop.f32.mrf.mxu2 }
  0xe0   :  { %v7153_v38 = vpop.permute.xlu2 %7152 }
  0xe1   :  { %v7155_v39 = vunpack.i.h.bf16 %v7153_v38  ;;  %v7154_v40 = vunpack.i.l.bf16 %v7153_v38 }
  0xe3   :  { %v356_v41 = vsel %vm308_vm2, %v7154_v40, %v7155_v39 }
  0xe4   :  { %376 = vmatpush.msra.mxu3 %v356_v41 }
  0xe6   :  { %377 = vmatpush.msra.mxu3 %v8234_v27 }
  0xe8   :  { %v7158_v45 = vpop.permute.xlu2 %7157 }
  0xe9   :  { %v7160_v46 = vunpack.i.h.bf16 %v7158_v45  ;;  %v7159_v47 = vunpack.i.l.bf16 %v7158_v45 }
  0xeb   :  { %v348_v48 = vsel %vm298_vm3, %v7160_v46, %v7159_v47 }
  0xec   :  { %378 = vmatpush.msra.mxu3 %v348_v48 }
  0xee   :  { %379 = vmatpush.msra.mxu3 %v328_v49 }
  0xf0   :  { %v7163_v50 = vpop.permute.xlu2 %7162  ;;  %380 = vmatpush.msra.mxu3 %v8181_v5 }
  0xf1   :  { %v7165_v51 = vunpack.i.h.bf16 %v7163_v50  ;;  %v7164_v52 = vunpack.i.l.bf16 %v7163_v50 }
  0xf2   :  { %v7173_v54 = vpop.permute.xlu0 %7172 }
  0xf3   :  { %v320_v53 = vsel %vm298_vm3, %v7165_v51, %v7164_v52  ;;  %v7174_v58 = vunpack.i.l.bf16 %v7173_v54  ;;  %v7175_v1 = vunpack.i.h.bf16 %v7173_v54 }
  0xf4   :  { %381 = vmatpush.msra.mxu3 %v320_v53 }
  0xf5   :  { %v329_v18 = vsel %vm308_vm2, %v7175_v1, %v7149_v44  ;;  %v327_v23 = vsel %vm308_vm2, %v7150_v43, %v7175_v1 }
  0xf8   :  { %v7168_v57 = vpop.permute.xlu1 %7167  ;;  %v7183_v63 = vpop.permute.xlu2 %7182 }
  0xf9   :  { %v7170_v59 = vunpack.i.h.bf16 %v7168_v57  ;;  %v7169_v60 = vunpack.i.l.bf16 %v7168_v57  ;;  %v7184_v2 = vunpack.i.l.bf16 %v7183_v63  ;;  %v7185_v16 = vunpack.i.h.bf16 %v7183_v63 }
  0xfa   :  { %v307_v19 = vpop.permute.xlu0 %306 }
  0xfb   :  { %v310_v61 = vsel %vm308_vm2, %v7170_v59, %v7174_v58  ;;  %v357_v62 = vsel %vm308_vm2, %v7169_v60, %v7154_v40  ;;  %v355_v15 = vsel %vm308_vm2, %v7155_v39, %v7169_v60  ;;  %v318_v22 = vsel %vm298_vm3, %v7185_v16, %v7165_v51 }
  0xfc   :  { %382 = vmatpush.msra.mxu3 %v310_v61  ;;  %416 = vmatpush.msrb.mxu0 %v357_v62  ;;  %v309_v28 = vsel %vm308_vm2, %v7174_v58, %v307_v19  ;;  %v8451_v62 = vld [vmem:[%s11707_s6] sm:$0xff] }
  0xfe   :  { %383 = vmatpush.msra.mxu3 %v8222_v24  ;;  %417 = vmatpush.msrb.mxu0 %v8230_v26  ;;  %v311_v24 = vsel %vm308_vm2, %v307_v19, %v7170_v59 }
 0x100   :  { %v7178_v0 = vpop.permute.xlu1 %7177 }
 0x101   :  { %v7180_v7 = vunpack.i.h.bf16 %v7178_v0  ;;  %v7179_v9 = vunpack.i.l.bf16 %v7178_v0  ;;  %v363_v0 = vpop.permute.xlu2 %362 }
 0x103   :  { %v301_v11 = vsel %vm298_vm3, %v7184_v2, %v7180_v7  ;;  %v346_v13 = vsel %vm298_vm3, %v7179_v9, %v7160_v46  ;;  %v347_v20 = vsel %vm298_vm3, %v7159_v47, %v7179_v9 }
 0x104   :  { %384 = vmatpush.msra.mxu3 %v301_v11  ;;  %418 = vmatpush.msrb.mxu0 %v346_v13 }
 0x105   :  { %7024 = vmatmul.msk.f32.vlgmr.msra.gmra.mxu3 %vm365_vm4, %v358_v14 }
 0x106   :  { %396 = vmatpush.msrb.mxu3 %v355_v15  ;;  %419 = vmatpush.msrb.mxu0 %v329_v18 }
 0x108   :  { %397 = vmatpush.msrb.mxu3 %v8226_v25  ;;  %420 = vmatpush.msrb.mxu0 %v8196_v10  ;;  %v295_v26 = vpop.permute.xlu1 %294  ;;  %v319_v25 = vsel %vm298_vm3, %v7164_v52, %v7185_v16 }
 0x109   :  { %v299_v27 = vsel %vm298_vm3, %v295_v26, %v7184_v2  ;;  %v300_v29 = vsel %vm298_vm3, %v7180_v7, %v295_v26 }
 0x10a   :  { %398 = vmatpush.msrb.mxu3 %v347_v20  ;;  %421 = vmatpush.msrb.mxu0 %v318_v22 }
 0x10c   :  { %399 = vmatpush.msrb.mxu3 %v327_v23  ;;  %422 = vmatpush.msrb.mxu0 %v311_v24 }
 0x10e   :  { %400 = vmatpush.msrb.mxu3 %v8184_v6  ;;  %423 = vmatpush.msrb.mxu0 %v8248_v30  ;;  %v188_v30 = vpop.f32.mrf.mxu1 }
 0x110   :  { %401 = vmatpush.msrb.mxu3 %v319_v25  ;;  %424 = vmatpush.msrb.mxu0 %v299_v27 }
 0x111   :  { %7026 = vmatmul.msk.f32.vlgmr.msrb.gmra.mxu0 %vm365_vm4, %v358_v14 }
 0x112   :  { %402 = vmatpush.msrb.mxu3 %v309_v28 }
 0x114   :  { %403 = vmatpush.msrb.mxu3 %v8208_v17  ;;  %v165_v17 = vpop.f32.mrf.mxu0 }
 0x115   :  { %v189_v31 = vadd.f32 %v188_v30, %v165_v17 }
 0x116   :  { %404 = vmatpush.msrb.mxu3 %v300_v29  ;;  %v191_v37 = vpop.f32.mrf.mxu1 }
 0x117   :  { %7025 = vmatmul.msk.f32.vlgmr.msrb.gmra.mxu3 %vm365_vm4, %v358_v14  ;;  %v212_v33 = vadd.f32 %v211_v32, %v189_v31 }
 0x118   :  { %538 = vmatpush.msra.mxu3 %v8076_v21 }
 0x119   :  { %v220_v34 = vrot.slane %v212_v33, 4 }
 0x11a   :  { %539 = vmatpush.msra.mxu3 %v8076_v21 }
 0x11b   :  { %v222_v38 = vadd.f32 %v220_v34, %v212_v33 }
 0x11c   :  { %540 = vmatpush.msra.mxu3 %v8076_v21  ;;  %v168_v36 = vpop.f32.mrf.mxu0 }
 0x11d   :  { %v192_v39 = vadd.f32 %v191_v37, %v168_v36  ;;  %v224_v41 = vrot.slane %v222_v38, 4 }
 0x11e   :  { %541 = vmatpush.msra.mxu3 %v8076_v21 }
 0x11f   :  { %v215_v40 = vadd.f32 %v214_v35, %v192_v39  ;;  %v227_v45 = vsel %vm226_vm5, %v222_v38, %v224_v41 }
 0x120   :  { %542 = vmatpush.msra.mxu3 %v8076_v21  ;;  %v236_v46 = vmul.f32 0.001953125, %v227_v45 }
 0x121   :  { %v229_v42 = vrot.slane %v215_v40, 4 }
 0x122   :  { %543 = vmatpush.msra.mxu3 %v8076_v21  ;;  %v238_v49 = vmul.f32 %v236_v46, %v236_v46 }
 0x123   :  { %v231_v43 = vadd.f32 %v229_v42, %v215_v40 }
 0x124   :  { %544 = vmatpush.msra.mxu3 %v8076_v21 }
 0x125   :  { %v233_v44 = vrot.slane %v231_v43, 4 }
 0x126   :  { %545 = vmatpush.msra.mxu3 %v8076_v21 }
 0x127   :  { %v235_v47 = vsel %vm226_vm5, %v231_v43, %v233_v44 }
 0x128   :  { %546 = vmatpush.msra.mxu3 %v8076_v21  ;;  %v237_v48 = vmul.f32 0.001953125, %v235_v47 }
 0x12a   :  { %547 = vmatpush.msra.mxu3 %v8076_v21  ;;  %v239_v50 = vsub.f32 %v237_v48, %v238_v49 }
 0x12c   :  { %548 = vmatpush.msra.mxu3 %v8076_v21  ;;  %v240_v51 = vadd.f32 1e-05, %v239_v50 }
 0x12e   :  { %549 = vmatpush.msra.mxu3 %v8076_v21  ;;  %7969 = vrsqrt.f32 %v240_v51  ;;  %vm247_vm6 = vweird.f32 %v240_v51 }
 0x130   :  { %550 = vmatpush.msra.mxu3 %v8076_v21 }
 0x132   :  { %551 = vmatpush.msra.mxu3 %v8076_v21 }
 0x134   :  { %552 = vmatpush.msra.mxu3 %v8076_v21  ;;  %v7970_v52 = vpop.eup %7969 }
 0x135   :  { %v242_v53 = vmul.f32 %v7970_v52, %v240_v51  ;;  %vm248_vm7 = vweird.f32 %v7970_v52 }
 0x136   :  { %553 = vmatpush.msra.mxu3 %v8076_v21  ;;  %vm249_vm8 = vmor %vm247_vm6, %vm248_vm7 }
 0x137   :  { %v243_v54 = vmul.f32 %v7970_v52, %v242_v53 }
 0x138   :  { %892 = vmatpush.msrb.mxu3 %v8076_v21 }
 0x139   :  { %v244_v57 = vmul.f32 0.5, %v243_v54 }
 0x13a   :  { %893 = vmatpush.msrb.mxu3 %v8076_v21 }
 0x13b   :  { %v245_v58 = vsub.f32 1.5, %v244_v57 }
 0x13c   :  { %894 = vmatpush.msrb.mxu3 %v8076_v21 }
 0x13d   :  { %v246_v59 = vmul.f32 %v7970_v52, %v245_v58 }
 0x13e   :  { %895 = vmatpush.msrb.mxu3 %v8076_v21 }
 0x13f   :  { %v8445_v60 = vsel %vm249_vm8, %v7970_v52, %v246_v59 }
 0x140   :  { %896 = vmatpush.msrb.mxu3 %v8076_v21  ;;  %v252_v61 = vmul.f32 %v8445_v60, %v236_v46 }
 0x142   :  { %897 = vmatpush.msrb.mxu3 %v8076_v21  ;;  %v8454_v63 = vmul.f32 %v252_v61, %v8451_v62 }
 0x144   :  { %898 = vmatpush.msrb.mxu3 %v8076_v21 }
 0x146   :  { %899 = vmatpush.msrb.mxu3 %v8076_v21 }
 0x148   :  { %900 = vmatpush.msrb.mxu3 %v8076_v21 }
 0x14a   :  { %901 = vmatpush.msrb.mxu3 %v8076_v21 }
 0x14c   :  { %902 = vmatpush.msrb.mxu3 %v8076_v21 }
 0x14e   :  { %903 = vmatpush.msrb.mxu3 %v8076_v21 }
 0x150   :  { %904 = vmatpush.msrb.mxu3 %v8076_v21 }
 0x152   :  { %905 = vmatpush.msrb.mxu3 %v8076_v21 }
 0x154   :  { %906 = vmatpush.msrb.mxu3 %v8076_v21 }
 0x156   :  { %907 = vmatpush.msrb.mxu3 %v8076_v21 }
 0x188   :  { %v386_v1 = vpop.f32.mrf.mxu3 }
 0x189   :  { %v387_v2 = vadd.f32 %v386_v1, %v363_v0 }
 0x18b   :  { %v429_v7 = vmul.f32 %v387_v2, %v8176_v3 }
 0x18d   :  { %vm432_vm9 = vcmp.ge.f32.partialorder %v429_v7, 0.0  ;;  %v435_v11 = vmul.f32 0.01, %v429_v7 }
 0x18e   :  { %v426_v9 = vpop.f32.mrf.mxu0 }
 0x18f   :  { %v427_v13 = vadd.f32 %v426_v9, %v363_v0  ;;  %v8457_v14 = vsel %vm432_vm9, %v429_v7, %v435_v11 }
 0x190   :  { %508 = vmatmul.f32.vlgmr.msrb.gmra.mxu1 %v8457_v14  ;;  %v441_v18 = vmul.f32 %v8457_v14, %v8457_v14 }
 0x191   :  { %v431_v15 = vmul.f32 %v427_v13, %v8190_v8 }
 0x193   :  { %vm434_vm10 = vcmp.ge.f32.partialorder %v431_v15, 0.0  ;;  %v437_v16 = vmul.f32 0.01, %v431_v15 }
 0x195   :  { %v8463_v19 = vsel %vm434_vm10, %v431_v15, %v437_v16 }
 0x196   :  { %554 = vmatmul.f32.vlgmr.msra.gmra.mxu3 %v8463_v19  ;;  %v443_v23 = vmul.f32 %v8463_v19, %v8463_v19 }
 0x197   :  { %1259 = vmatpush.msra.mxu3 %v8076_v21 }
 0x198   :  { %511 = vmatmul.f32.gmra.mxu1 %v441_v18 }
 0x199   :  { %1260 = vmatpush.msra.mxu3 %v8076_v21 }
 0x19a   :  { %v406_v20 = vpop.f32.mrf.mxu3 }
 0x19b   :  { %v407_v22 = vadd.f32 %v406_v20, %v363_v0  ;;  %1261 = vmatpush.msra.mxu3 %v8076_v21 }
 0x19d   :  { %v430_v24 = vmul.f32 %v407_v22, %v8178_v4  ;;  %1262 = vmatpush.msra.mxu3 %v8076_v21 }
 0x19e   :  { %557 = vmatmul.f32.gmra.mxu3 %v443_v23 }
 0x19f   :  { %vm433_vm11 = vcmp.ge.f32.partialorder %v430_v24, 0.0  ;;  %v436_v26 = vmul.f32 0.01, %v430_v24  ;;  %1263 = vmatpush.msra.mxu3 %v8076_v21 }
 0x1a1   :  { %v8474_v25 = vsel %vm433_vm11, %v430_v24, %v436_v26  ;;  %1264 = vmatpush.msra.mxu3 %v8076_v21 }
 0x1a2   :  { %531 = vmatmul.f32.vlgmr.msrb.gmra.mxu2 %v8474_v25  ;;  %v442_v27 = vmul.f32 %v8474_v25, %v8474_v25 }
 0x1a3   :  { %1265 = vmatpush.msra.mxu3 %v8076_v21 }
 0x1a5   :  { %1266 = vmatpush.msra.mxu3 %v8076_v21 }
 0x1a7   :  { %1267 = vmatpush.msra.mxu3 %v8076_v21 }
 0x1a9   :  { %1268 = vmatpush.msra.mxu3 %v8076_v21 }
 0x1aa   :  { %534 = vmatmul.f32.gmra.mxu2 %v442_v27 }
 0x1ab   :  { %1269 = vmatpush.msra.mxu3 %v8076_v21 }
 0x1ad   :  { %1270 = vmatpush.msra.mxu3 %v8076_v21 }
 0x1af   :  { %1271 = vmatpush.msra.mxu3 %v8076_v21 }
 0x1b1   :  { %1272 = vmatpush.msra.mxu3 %v8076_v21 }
 0x1b3   :  { %1273 = vmatpush.msra.mxu3 %v8076_v21 }
 0x1b5   :  { %1274 = vmatpush.msra.mxu3 %v8076_v21 }
 0x20d   :  { %v509_v28 = vpop.f32.mrf.mxu1 }
 0x215   :  { %v512_v30 = vpop.f32.mrf.mxu1 }
 0x219   :  { %v555_v29 = vpop.f32.mrf.mxu3 }
 0x221   :  { %v558_v33 = vpop.f32.mrf.mxu3 }
 0x225   :  { %v532_v17 = vpop.f32.mrf.mxu2 }
 0x226   :  { %v533_v45 = vadd.f32 %v532_v17, %v509_v28 }
 0x228   :  { %v556_v48 = vadd.f32 %v555_v29, %v533_v45 }
 0x22a   :  { %v600_v52 = vrot.slane %v556_v48, 4 }
 0x22c   :  { %v602_v59 = vadd.f32 %v600_v52, %v556_v48 }
 0x22d   :  { %v535_v31 = vpop.f32.mrf.mxu2 }
 0x22e   :  { %v536_v32 = vadd.f32 %v535_v31, %v512_v30  ;;  %v604_v0 = vrot.slane %v602_v59, 4 }
 0x230   :  { %v559_v34 = vadd.f32 %v558_v33, %v536_v32  ;;  %v606_v9 = vsel %vm226_vm5, %v602_v59, %v604_v0 }
 0x231   :  { %v615_v16 = vmul.f32 0.001953125, %v606_v9 }
 0x232   :  { %v562_v35 = vsel %vm561_vm12, %v559_v34, 0.0  ;;  %v608_v57 = vrot.slane %v559_v34, 4 }
 0x233   :  { %v563_v36 = vrot.slane %v562_v35, 4  ;;  %v617_v26 = vmul.f32 %v615_v16, %v615_v16 }
 0x234   :  { %v610_v61 = vadd.f32 %v608_v57, %v559_v34 }
 0x235   :  { %v564_v37 = vadd.f32 %v563_v36, %v562_v35 }
 0x236   :  { %v612_v2 = vrot.slane %v610_v61, 4 }
 0x237   :  { %v565_v38 = vrot.slane %v564_v37, 2 }
 0x238   :  { %v614_v13 = vsel %vm226_vm5, %v610_v61, %v612_v2 }
 0x239   :  { %v566_v39 = vadd.f32 %v565_v38, %v564_v37  ;;  %v616_v22 = vmul.f32 0.001953125, %v614_v13 }
 0x23b   :  { %v567_v40 = vrot.slane %v566_v39, 1  ;;  %v618_v29 = vsub.f32 %v616_v22, %v617_v26 }
 0x23d   :  { %v568_v41 = vadd.f32 %v567_v40, %v566_v39  ;;  %v597_v39 = vld [vmem:[%s11708_s4] sm:$0xff] }
 0x23f   :  { %7971 = vrsqrt.f32 %v568_v41  ;;  %vm576_vm13 = vcmp.eq.f32.partialorder %v568_v41, inf  ;;  %v579_v51 = vand.u32 2147483648, %v568_v41  ;;  %vm578_vm14 = vcmp.eq.f32.partialorder %v568_v41, 0.0 }
 0x245   :  { %v7972_v42 = vpop.eup %7971 }
 0x246   :  { %v570_v43 = vmul.f32 %v7972_v42, %v568_v41 }
 0x248   :  { %v571_v44 = vmul.f32 %v7972_v42, %v570_v43  ;;  %v8499_v43 = vld [vmem:[%s11709_s5] sm:$0xff] }
 0x24a   :  { %v572_v46 = vmul.f32 0.5, %v571_v44 }
 0x24c   :  { %v573_v47 = vsub.f32 1.5, %v572_v46 }
 0x24e   :  { %v574_v49 = vmul.f32 %v7972_v42, %v573_v47 }
 0x250   :  { %v575_v50 = vmul.f32 %v574_v49, %v568_v41 }
 0x252   :  { %v577_v53 = vsel %vm576_vm13, %v568_v41, %v575_v50 }
 0x253   :  { %v580_v54 = vsel %vm578_vm14, %v579_v51, %v577_v53 }
 0x254   :  { %v581_v58 = vadd.f32 1e-06, %v580_v54 }
 0x256   :  { %7973 = vrcp.f32 %v581_v58  ;;  %v593_v15 = vand.u32 2147483648, %v581_v58  ;;  %v591_v20 = vand.u32 2147483647, %v581_v58  ;;  %vm587_vm6 = vweird.f32 %v581_v58 }
 0x258   :  { %v594_v24 = vor.u32 1.1754944e-38, %v593_v15  ;;  %vm592_vm8 = vcmp.eq.f32.partialorder %v591_v20, 8.507059e+37 }
 0x25c   :  { %v7974_v1 = vpop.eup %7973 }
 0x25d   :  { %v583_v7 = vmul.f32 %v7974_v1, %v581_v58  ;;  %vm588_vm15 = vweird.f32 %v7974_v1 }
 0x25e   :  { %vm589_vm7 = vmor %vm587_vm6, %vm588_vm15 }
 0x25f   :  { %v584_v11 = vsub.f32 1.0, %v583_v7 }
 0x261   :  { %v585_v18 = vmul.f32 %v7974_v1, %v584_v11 }
 0x263   :  { %v586_v23 = vadd.f32 %v7974_v1, %v585_v18 }
 0x265   :  { %v590_v27 = vsel %vm589_vm7, %v7974_v1, %v586_v23 }
 0x266   :  { %v595_v28 = vsel %vm592_vm8, %v594_v24, %v590_v27 }
 0x267   :  { %v619_v17 = vmul.f32 %v595_v28, %v595_v28  ;;  %v634_v38 = vmul.f32 %v615_v16, %v595_v28 }
 0x269   :  { %v620_v30 = vmul.f32 %v619_v17, %v618_v29 }
 0x26b   :  { %v621_v31 = vadd.f32 1e-05, %v620_v30 }
 0x26d   :  { %7975 = vrsqrt.f32 %v621_v31  ;;  %vm628_vm10 = vweird.f32 %v621_v31 }
 0x273   :  { %v7976_v32 = vpop.eup %7975 }
 0x274   :  { %v623_v33 = vmul.f32 %v7976_v32, %v621_v31  ;;  %vm629_vm9 = vweird.f32 %v7976_v32 }
 0x275   :  { %vm630_vm11 = vmor %vm628_vm10, %vm629_vm9 }
 0x276   :  { %v624_v34 = vmul.f32 %v7976_v32, %v623_v33 }
 0x278   :  { %v625_v35 = vmul.f32 0.5, %v624_v34 }
 0x27a   :  { %v626_v36 = vsub.f32 1.5, %v625_v35 }
 0x27c   :  { %v627_v37 = vmul.f32 %v7976_v32, %v626_v36 }
 0x27e   :  { %v631_v40 = vsel %vm630_vm11, %v7976_v32, %v627_v37 }
 0x27f   :  { %v632_v41 = vmul.f32 %v631_v40, %v595_v28  ;;  %v635_v42 = vmul.f32 %v634_v38, %v631_v40  ;;  %v251_v28 = vmul.f32 %v8445_v60, %v8451_v62 }
 0x281   :  { %v633_v44 = vmul.f32 %v632_v41, %v597_v39  ;;  %v636_v45 = vmul.f32 %v635_v42, %v597_v39 }
 0x283   :  { %640 = vperm.xlu0 %7187, %v633_v44   ;;  %v637_v46 = vsub.f32 %v8499_v43, %v636_v45 }
 0x285   :  { %648 = vperm.xlu1 %7188, %v637_v46  }
 0x2f5   :  { %v641_v47 = vpop.permute.xlu0 %640 }
 0x2f6   :  { %v643_v48 = vmul.f32 %v641_v47, %v8457_v14  ;;  %v644_v49 = vmul.f32 %v641_v47, %v8474_v25  ;;  %v645_v50 = vmul.f32 %v641_v47, %v8463_v19  ;;  %v8079_v19 = vmov 1  }
 0x2f7   :  { %v649_v51 = vpop.permute.xlu1 %648  ;;  %7239 = vset.pattern.permute.xlu2 %v8079_v19 }
 0x2f8   :  { %v651_v52 = vadd.f32 %v649_v51, %v643_v48  ;;  %v652_v53 = vadd.f32 %v649_v51, %v644_v49  ;;  %v653_v54 = vadd.f32 %v649_v51, %v645_v50 }
 0x2fa   :  { %v8506_v57 = vmul.f32 %v651_v52, %v8176_v3  ;;  %v8509_v58 = vmul.f32 %v652_v53, %v8178_v4  ;;  %v8512_v59 = vmul.f32 %v653_v54, %v8190_v8 }
 0x2fc   :  { %667 = vrot.lane.b32.xlu0 %v8512_v59, %s8073_s1  ;;  %712 = vrot.lane.b32.xlu1 %v8512_v59, %s8074_s11  ;;  %v7189_v14 = vpack.i.bf16 %v8509_v58, %v8506_v57  ;;  %v7209_v16 = vpack.i.bf16 %v8512_v59, %v8509_v58 }
 0x2fe   :  { %7190 = vrot.lane.b32.xlu2 %v7189_v14, %s8074_s11 }
 0x306   :  { %7195 = vrot.lane.b32.xlu2 %v7189_v14, %s8073_s1 }
 0x358   :  { %v7191_v25 = vpop.permute.xlu2 %7190 }
 0x359   :  { %v7193_v61 = vunpack.i.h.bf16 %v7191_v25  ;;  %v7192_v0 = vunpack.i.l.bf16 %v7191_v25 }
 0x35b   :  { %v715_v9 = vsel %vm336_vm1, %v7192_v0, %v7193_v61 }
 0x360   :  { %v7196_v15 = vpop.permute.xlu2 %7195 }
 0x361   :  { %v7198_v20 = vunpack.i.h.bf16 %v7196_v15  ;;  %v7197_v22 = vunpack.i.l.bf16 %v7196_v15 }
 0x363   :  { %v670_v24 = vsel %vm288_vm0, %v7197_v22, %v7198_v20 }
 0x36e   :  { %v713_v1 = vpop.permute.xlu1 %712  ;;  %v668_v18 = vpop.permute.xlu0 %667 }
 0x36f   :  { %v714_v2 = vsel %vm336_vm1, %v7193_v61, %v713_v1  ;;  %v8526_v7 = vsel %vm336_vm1, %v713_v1, %v7192_v0  ;;  %v671_v23 = vsel %vm288_vm0, %v668_v18, %v7197_v22  ;;  %v8546_v27 = vsel %vm288_vm0, %v7198_v20, %v668_v18 }
 0x370   :  { %v7204_v11 = vpack.i.bf16 %v8506_v57, %v8526_v7  ;;  %v7214_v13 = vpack.i.bf16 %v714_v2, %v715_v9  ;;  %v7234_v26 = vpack.i.bf16 %v670_v24, %v671_v23 }
 0x372   :  { %7205 = vrot.lane.b32.xlu2 %v7204_v11, %s8075_s14  ;;  %7215 = vrot.lane.b32.xlu0 %v7214_v13, %s8077_s0 }
 0x373   :  { %7200 = vrot.lane.b32.xlu1 %v7214_v13, %s8075_s14 }
 0x37a   :  { %7210 = vrot.lane.b32.xlu2 %v7209_v16, %s8075_s14  ;;  %7220 = vrot.lane.b32.xlu0 %v7209_v16, %s8077_s0 }
 0x37b   :  { %7225 = vrot.lane.b32.xlu1 %v7204_v11, %s8077_s0 }
 0x382   :  { %685 = vrot.lane.b32.xlu2 %v8546_v27, %s8075_s14  ;;  %7235 = vrot.lane.b32.xlu0 %v7234_v26, %s8077_s0 }
 0x383   :  { %7230 = vrot.lane.b32.xlu1 %v7234_v26, %s8075_s14 }
 0x38a   :  { %740 = vperm.xlu2 %7239, %v8364_v55   ;;  %1010 = vrot.lane.b32.xlu0 %v597_v39, %s8075_s14 }
 0x38b   :  { %676 = vrot.lane.b32.xlu1 %v8546_v27, %s8077_s0 }
 0x392   :  { %7240 = vset.pattern.permute.xlu2 %v8078_v56 }
 0x393   :  { %257 = vperm.xlu2 %7240, %v251_v28  }
 0x39b   :  { %7241 = vset.pattern.permute.xlu2 %v8079_v19 }
 0x3cc   :  { %v8559_v29 = vpop.permute.xlu2 %7205 }
 0x3cd   :  { %v7207_v31 = vunpack.i.l.bf16 %v8559_v29  ;;  %v7208_v46 = vunpack.i.h.bf16 %v8559_v29 }
 0x3d4   :  { %v8564_v33 = vpop.permute.xlu2 %7210 }
 0x3d5   :  { %v7213_v36 = vunpack.i.h.bf16 %v8564_v33  ;;  %v7212_v37 = vunpack.i.l.bf16 %v8564_v33 }
 0x3d7   :  { %v705_v45 = vsel %vm308_vm2, %v7212_v37, %v7213_v36  ;;  %v706_v49 = vsel %vm308_vm2, %v7208_v46, %v7212_v37  ;;  %v707_v15 = vsel %vm308_vm2, %v7213_v36, %v7208_v46 }
 0x3dc   :  { %v686_v19 = vpop.permute.xlu2 %685 }
 0x3e4   :  { %v8561_v17 = vpop.permute.xlu0 %7215 }
 0x3e5   :  { %v7201_v30 = vpop.permute.xlu1 %7200  ;;  %v7218_v34 = vunpack.i.h.bf16 %v8561_v17  ;;  %v7217_v35 = vunpack.i.l.bf16 %v8561_v17 }
 0x3e6   :  { %v7203_v55 = vunpack.i.h.bf16 %v7201_v30  ;;  %v7202_v32 = vunpack.i.l.bf16 %v7201_v30 }
 0x3e7   :  { %v724_v39 = vsel %vm298_vm3, %v7217_v35, %v7218_v34 }
 0x3e8   :  { %v733_v60 = vsel %vm308_vm2, %v7202_v32, %v7203_v55  ;;  %v732_v62 = vsel %vm308_vm2, %v7203_v55, %v7207_v31  ;;  %v734_v11 = vsel %vm308_vm2, %v7207_v31, %v7202_v32 }
 0x3e9   :  { %753 = vmatpush.msra.mxu0 %v733_v60  ;;  %773 = vmatpush.msra.mxu1 %v732_v62 }
 0x3eb   :  { %754 = vmatpush.msra.mxu0 %v715_v9  ;;  %774 = vmatpush.msra.mxu1 %v714_v2 }
 0x3ec   :  { %v7221_v38 = vpop.permute.xlu0 %7220 }
 0x3ed   :  { %v7226_v40 = vpop.permute.xlu1 %7225  ;;  %775 = vmatpush.msra.mxu1 %v724_v39  ;;  %v7222_v41 = vunpack.i.l.bf16 %v7221_v38  ;;  %v7223_v48 = vunpack.i.h.bf16 %v7221_v38 }
 0x3ee   :  { %v7228_v42 = vunpack.i.h.bf16 %v7226_v40  ;;  %v7227_v44 = vunpack.i.l.bf16 %v7226_v40 }
 0x3ef   :  { %776 = vmatpush.msra.mxu1 %v705_v45  ;;  %v696_v16 = vsel %vm298_vm3, %v7222_v41, %v7223_v48 }
 0x3f0   :  { %v725_v47 = vsel %vm298_vm3, %v7227_v44, %v7217_v35  ;;  %v697_v50 = vsel %vm298_vm3, %v7228_v42, %v7222_v41  ;;  %v698_v14 = vsel %vm298_vm3, %v7223_v48, %v7228_v42  ;;  %v723_v13 = vsel %vm298_vm3, %v7218_v34, %v7227_v44 }
 0x3f1   :  { %755 = vmatpush.msra.mxu0 %v725_v47  ;;  %777 = vmatpush.msra.mxu1 %v8509_v58 }
 0x3f3   :  { %756 = vmatpush.msra.mxu0 %v706_v49  ;;  %778 = vmatpush.msra.mxu1 %v697_v50 }
 0x3f4   :  { %v7236_v51 = vpop.permute.xlu0 %7235 }
 0x3f5   :  { %v7231_v52 = vpop.permute.xlu1 %7230  ;;  %757 = vmatpush.msra.mxu0 %v8506_v57  ;;  %v7238_v58 = vunpack.i.h.bf16 %v7236_v51  ;;  %v7237_v25 = vunpack.i.l.bf16 %v7236_v51  ;;  %v7027_v57 = vld [vmem:[%s11706_s2 + $0x8] sm:$0xff] }
 0x3f6   :  { %v7233_v53 = vunpack.i.h.bf16 %v7231_v52  ;;  %v7232_v54 = vunpack.i.l.bf16 %v7231_v52 }
 0x3f7   :  { %758 = vmatpush.msra.mxu0 %v698_v14  ;;  %v679_v1 = vsel %vm298_vm3, %v7237_v25, %v7238_v58 }
 0x3f8   :  { %v688_v61 = vsel %vm308_vm2, %v7232_v54, %v7233_v53  ;;  %v687_v0 = vsel %vm308_vm2, %v7233_v53, %v686_v19 }
 0x3f9   :  { %759 = vmatpush.msra.mxu0 %v688_v61  ;;  %779 = vmatpush.msra.mxu1 %v687_v0 }
 0x3fb   :  { %760 = vmatpush.msra.mxu0 %v671_v23  ;;  %780 = vmatpush.msra.mxu1 %v670_v24 }
 0x3fd   :  { %v677_v2 = vpop.permute.xlu1 %676  ;;  %781 = vmatpush.msra.mxu1 %v679_v1 }
 0x3fe   :  { %7029 = vmatmul.msk.f32.vlgmr.msra.gmra.mxu1 %vm365_vm4, %v7027_v57  ;;  %v680_v9 = vsel %vm298_vm3, %v677_v2, %v7237_v25  ;;  %v678_v18 = vsel %vm298_vm3, %v7238_v58, %v677_v2 }
 0x3ff   :  { %761 = vmatpush.msra.mxu0 %v680_v9  ;;  %915 = vmatpush.msrb.mxu1 %v8076_v21 }
 0x400   :  { %7028 = vmatmul.msk.f32.vlgmr.msra.gmra.mxu0 %vm365_vm4, %v7027_v57 }
 0x401   :  { %793 = vmatpush.msrb.mxu0 %v734_v11  ;;  %916 = vmatpush.msrb.mxu1 %v8076_v21 }
 0x403   :  { %794 = vmatpush.msrb.mxu0 %v8526_v7  ;;  %917 = vmatpush.msrb.mxu1 %v8076_v21  ;;  %v689_v7 = vsel %vm308_vm2, %v686_v19, %v7232_v54 }
 0x405   :  { %795 = vmatpush.msrb.mxu0 %v723_v13  ;;  %918 = vmatpush.msrb.mxu1 %v8076_v21 }
 0x407   :  { %796 = vmatpush.msrb.mxu0 %v707_v15  ;;  %919 = vmatpush.msrb.mxu1 %v8076_v21 }
 0x409   :  { %797 = vmatpush.msrb.mxu0 %v8512_v59  ;;  %920 = vmatpush.msrb.mxu1 %v8076_v21  ;;  %v741_v59 = vpop.permute.xlu2 %740 }
 0x40b   :  { %798 = vmatpush.msrb.mxu0 %v696_v16  ;;  %921 = vmatpush.msrb.mxu1 %v8076_v21 }
 0x40d   :  { %799 = vmatpush.msrb.mxu0 %v689_v7  ;;  %922 = vmatpush.msrb.mxu1 %v8076_v21 }
 0x40f   :  { %800 = vmatpush.msrb.mxu0 %v8546_v27  ;;  %923 = vmatpush.msrb.mxu1 %v8076_v21 }
 0x411   :  { %801 = vmatpush.msrb.mxu0 %v678_v18  ;;  %924 = vmatpush.msrb.mxu1 %v8076_v21 }
 0x412   :  { %7030 = vmatmul.msk.f32.vlgmr.msrb.gmra.mxu0 %vm365_vm4, %v7027_v57 }
 0x413   :  { %869 = vmatpush.msra.mxu0 %v8076_v21  ;;  %925 = vmatpush.msrb.mxu1 %v8076_v21 }
 0x415   :  { %870 = vmatpush.msra.mxu0 %v8076_v21  ;;  %926 = vmatpush.msrb.mxu1 %v8076_v21 }
 0x417   :  { %871 = vmatpush.msra.mxu0 %v8076_v21  ;;  %927 = vmatpush.msrb.mxu1 %v8076_v21 }
 0x419   :  { %872 = vmatpush.msra.mxu0 %v8076_v21  ;;  %928 = vmatpush.msrb.mxu1 %v8076_v21 }
 0x41b   :  { %873 = vmatpush.msra.mxu0 %v8076_v21  ;;  %929 = vmatpush.msrb.mxu1 %v8076_v21 }
 0x41d   :  { %874 = vmatpush.msra.mxu0 %v8076_v21  ;;  %930 = vmatpush.msrb.mxu1 %v8076_v21 }
 0x41f   :  { %875 = vmatpush.msra.mxu0 %v8076_v21  ;;  %1282 = vmatpush.msra.mxu1 %v8076_v21 }
 0x421   :  { %876 = vmatpush.msra.mxu0 %v8076_v21  ;;  %1283 = vmatpush.msra.mxu1 %v8076_v21 }
 0x423   :  { %877 = vmatpush.msra.mxu0 %v8076_v21  ;;  %1284 = vmatpush.msra.mxu1 %v8076_v21 }
 0x425   :  { %878 = vmatpush.msra.mxu0 %v8076_v21  ;;  %1285 = vmatpush.msra.mxu1 %v8076_v21 }
 0x427   :  { %879 = vmatpush.msra.mxu0 %v8076_v21  ;;  %1286 = vmatpush.msra.mxu1 %v8076_v21 }
 0x429   :  { %880 = vmatpush.msra.mxu0 %v8076_v21  ;;  %1287 = vmatpush.msra.mxu1 %v8076_v21 }
 0x42b   :  { %881 = vmatpush.msra.mxu0 %v8076_v21  ;;  %1288 = vmatpush.msra.mxu1 %v8076_v21 }
 0x42d   :  { %882 = vmatpush.msra.mxu0 %v8076_v21  ;;  %1289 = vmatpush.msra.mxu1 %v8076_v21 }
 0x42f   :  { %883 = vmatpush.msra.mxu0 %v8076_v21  ;;  %1290 = vmatpush.msra.mxu1 %v8076_v21 }
 0x431   :  { %884 = vmatpush.msra.mxu0 %v8076_v21  ;;  %1291 = vmatpush.msra.mxu1 %v8076_v21 }
 0x433   :  { %1292 = vmatpush.msra.mxu1 %v8076_v21 }
 0x435   :  { %1293 = vmatpush.msra.mxu1 %v8076_v21 }
 0x437   :  { %1294 = vmatpush.msra.mxu1 %v8076_v21 }
 0x439   :  { %1295 = vmatpush.msra.mxu1 %v8076_v21 }
 0x43b   :  { %1296 = vmatpush.msra.mxu1 %v8076_v21 }
 0x43d   :  { %1297 = vmatpush.msra.mxu1 %v8076_v21 }
 0x47b   :  { %v783_v20 = vpop.f32.mrf.mxu1 }
 0x47c   :  { %v784_v22 = vadd.f32 %v783_v20, %v741_v59 }
 0x47d   :  { %v763_v24 = vpop.f32.mrf.mxu0 }
 0x47e   :  { %v807_v23 = vmul.f32 %v784_v22, %v8178_v4  ;;  %v764_v26 = vadd.f32 %v763_v24, %v741_v59 }
 0x480   :  { %vm810_vm13 = vcmp.ge.f32.partialorder %v807_v23, 0.0  ;;  %v813_v27 = vmul.f32 0.01, %v807_v23  ;;  %v806_v28 = vmul.f32 %v764_v26, %v8176_v3 }
 0x482   :  { %v8668_v29 = vsel %vm810_vm13, %v807_v23, %v813_v27  ;;  %vm809_vm14 = vcmp.ge.f32.partialorder %v806_v28, 0.0  ;;  %v812_v17 = vmul.f32 0.01, %v806_v28 }
 0x483   :  { %908 = vmatmul.f32.vlgmr.msrb.gmra.mxu3 %v8668_v29  ;;  %v819_v31 = vmul.f32 %v8668_v29, %v8668_v29 }
 0x484   :  { %v8671_v30 = vsel %vm809_vm14, %v806_v28, %v812_v17 }
 0x485   :  { %885 = vmatmul.f32.vlgmr.msra.gmra.mxu0 %v8671_v30  ;;  %v818_v55 = vmul.f32 %v8671_v30, %v8671_v30 }
 0x48b   :  { %911 = vmatmul.f32.gmra.mxu3 %v819_v31 }
 0x48d   :  { %888 = vmatmul.f32.gmra.mxu0 %v818_v55 }
 0x48f   :  { %v803_v32 = vpop.f32.mrf.mxu0 }
 0x490   :  { %v804_v33 = vadd.f32 %v803_v32, %v741_v59 }
 0x492   :  { %v808_v34 = vmul.f32 %v804_v33, %v8190_v8 }
 0x494   :  { %vm811_vm15 = vcmp.ge.f32.partialorder %v808_v34, 0.0  ;;  %v814_v35 = vmul.f32 0.01, %v808_v34 }
 0x496   :  { %v8679_v60 = vsel %vm811_vm15, %v808_v34, %v814_v35 }
 0x497   :  { %931 = vmatmul.f32.vlgmr.msrb.gmra.mxu1 %v8679_v60  ;;  %v820_v62 = vmul.f32 %v8679_v60, %v8679_v60 }
 0x498   :  { %1643 = vmatpush.msrb.mxu1 %v8076_v21 }
 0x49a   :  { %1644 = vmatpush.msrb.mxu1 %v8076_v21 }
 0x49c   :  { %1645 = vmatpush.msrb.mxu1 %v8076_v21 }
 0x49e   :  { %1646 = vmatpush.msrb.mxu1 %v8076_v21 }
 0x49f   :  { %934 = vmatmul.f32.gmra.mxu1 %v820_v62 }
 0x4a0   :  { %1647 = vmatpush.msrb.mxu1 %v8076_v21 }
 0x4a2   :  { %1648 = vmatpush.msrb.mxu1 %v8076_v21 }
 0x4a4   :  { %1649 = vmatpush.msrb.mxu1 %v8076_v21 }
 0x4a6   :  { %1650 = vmatpush.msrb.mxu1 %v8076_v21 }
 0x4a8   :  { %1651 = vmatpush.msrb.mxu1 %v8076_v21 }
 0x4aa   :  { %1652 = vmatpush.msrb.mxu1 %v8076_v21 }
 0x4ac   :  { %1653 = vmatpush.msrb.mxu1 %v8076_v21 }
 0x4ae   :  { %1654 = vmatpush.msrb.mxu1 %v8076_v21 }
 0x4b0   :  { %1655 = vmatpush.msrb.mxu1 %v8076_v21 }
 0x4b2   :  { %1656 = vmatpush.msrb.mxu1 %v8076_v21 }
 0x4b4   :  { %1657 = vmatpush.msrb.mxu1 %v8076_v21 }
 0x4b6   :  { %1658 = vmatpush.msrb.mxu1 %v8076_v21 }
 0x502   :  { %v886_v37 = vpop.f32.mrf.mxu0 }
 0x506   :  { %v909_v36 = vpop.f32.mrf.mxu3 }
 0x507   :  { %v910_v19 = vadd.f32 %v909_v36, %v886_v37 }
 0x50a   :  { %v889_v40 = vpop.f32.mrf.mxu0 }
 0x50e   :  { %v912_v39 = vpop.f32.mrf.mxu3 }
 0x50f   :  { %v913_v41 = vadd.f32 %v912_v39, %v889_v40 }
 0x514   :  { %v932_v38 = vpop.f32.mrf.mxu1 }
 0x515   :  { %v933_v25 = vadd.f32 %v932_v38, %v910_v19 }
 0x517   :  { %v976_v1 = vrot.slane %v933_v25, 4 }
 0x519   :  { %v978_v15 = vadd.f32 %v976_v1, %v933_v25 }
 0x51b   :  { %v980_v7 = vrot.slane %v978_v15, 4 }
 0x51c   :  { %v935_v42 = vpop.f32.mrf.mxu1 }
 0x51d   :  { %v936_v44 = vadd.f32 %v935_v42, %v913_v41  ;;  %v982_v22 = vsel %vm226_vm5, %v978_v15, %v980_v7 }
 0x51e   :  { %v991_v27 = vmul.f32 0.001953125, %v982_v22 }
 0x51f   :  { %v938_v45 = vsel %vm561_vm12, %v936_v44, 0.0  ;;  %v984_v11 = vrot.slane %v936_v44, 4 }
 0x520   :  { %v939_v46 = vrot.slane %v938_v45, 4  ;;  %v993_v33 = vmul.f32 %v991_v27, %v991_v27 }
 0x521   :  { %v986_v16 = vadd.f32 %v984_v11, %v936_v44 }
 0x522   :  { %v940_v47 = vadd.f32 %v939_v46, %v938_v45 }
 0x523   :  { %v988_v59 = vrot.slane %v986_v16, 4 }
 0x524   :  { %v941_v48 = vrot.slane %v940_v47, 2 }
 0x525   :  { %v990_v24 = vsel %vm226_vm5, %v986_v16, %v988_v59 }
 0x526   :  { %v942_v49 = vadd.f32 %v941_v48, %v940_v47  ;;  %v992_v31 = vmul.f32 0.001953125, %v990_v24  ;;  %v1011_v47 = vpop.permute.xlu0 %1010 }
 0x528   :  { %v943_v50 = vrot.slane %v942_v49, 1  ;;  %v994_v62 = vsub.f32 %v992_v31, %v993_v33 }
 0x52a   :  { %v944_v51 = vadd.f32 %v943_v50, %v942_v49 }
 0x52c   :  { %7977 = vrsqrt.f32 %v944_v51  ;;  %vm952_vm6 = vcmp.eq.f32.partialorder %v944_v51, inf  ;;  %v955_v57 = vand.u32 2147483648, %v944_v51  ;;  %vm954_vm7 = vcmp.eq.f32.partialorder %v944_v51, 0.0 }
 0x532   :  { %v7978_v52 = vpop.eup %7977 }
 0x533   :  { %v946_v53 = vmul.f32 %v7978_v52, %v944_v51 }
 0x535   :  { %v947_v54 = vmul.f32 %v7978_v52, %v946_v53  ;;  %v218_v53 = vld [vmem:[%s11710_s7] sm:$0xff] }
 0x537   :  { %v948_v14 = vmul.f32 0.5, %v947_v54  ;;  %v254_v54 = vsub.f32 %v218_v53, %v8454_v63 }
 0x539   :  { %v949_v58 = vsub.f32 1.5, %v948_v14 }
 0x53b   :  { %v950_v61 = vmul.f32 %v7978_v52, %v949_v58  ;;  %v258_v58 = vpop.permute.xlu2 %257 }
 0x53c   :  { %v262_v1 = vmul.f32 %v258_v58, %v8196_v10 }
 0x53d   :  { %v951_v0 = vmul.f32 %v950_v61, %v944_v51  ;;  %v260_v61 = vmul.f32 %v258_v58, %v8181_v5 }
 0x53f   :  { %v953_v2 = vsel %vm952_vm6, %v944_v51, %v951_v0  ;;  %v261_v0 = vmul.f32 %v258_v58, %v8184_v6 }
 0x540   :  { %v956_v9 = vsel %vm954_vm7, %v955_v57, %v953_v2 }
 0x541   :  { %v957_v13 = vadd.f32 1e-06, %v956_v9 }
 0x543   :  { %7979 = vrcp.f32 %v957_v13  ;;  %v969_v26 = vand.u32 2147483648, %v957_v13  ;;  %v967_v17 = vand.u32 2147483647, %v957_v13  ;;  %vm963_vm9 = vweird.f32 %v957_v13 }
 0x545   :  { %v970_v32 = vor.u32 1.1754944e-38, %v969_v26  ;;  %vm968_vm11 = vcmp.eq.f32.partialorder %v967_v17, 8.507059e+37 }
 0x549   :  { %v7980_v18 = vpop.eup %7979 }
 0x54a   :  { %v959_v20 = vmul.f32 %v7980_v18, %v957_v13  ;;  %vm964_vm8 = vweird.f32 %v7980_v18 }
 0x54b   :  { %vm965_vm10 = vmor %vm963_vm9, %vm964_vm8 }
 0x54c   :  { %v960_v23 = vsub.f32 1.0, %v959_v20 }
 0x54e   :  { %v961_v28 = vmul.f32 %v7980_v18, %v960_v23 }
 0x550   :  { %v962_v55 = vadd.f32 %v7980_v18, %v961_v28 }
 0x552   :  { %v966_v34 = vsel %vm965_vm10, %v7980_v18, %v962_v55 }
 0x553   :  { %v971_v35 = vsel %vm968_vm11, %v970_v32, %v966_v34 }
 0x554   :  { %v995_v36 = vmul.f32 %v971_v35, %v971_v35  ;;  %v1014_v46 = vmul.f32 %v991_v27, %v971_v35 }
 0x556   :  { %v996_v37 = vmul.f32 %v995_v36, %v994_v62 }
 0x558   :  { %v997_v38 = vadd.f32 1e-05, %v996_v37 }
 0x55a   :  { %7981 = vrsqrt.f32 %v997_v38  ;;  %vm1004_vm14 = vweird.f32 %v997_v38 }
 0x560   :  { %v7982_v39 = vpop.eup %7981 }
 0x561   :  { %v999_v40 = vmul.f32 %v7982_v39, %v997_v38  ;;  %vm1005_vm13 = vweird.f32 %v7982_v39 }
 0x562   :  { %vm1006_vm15 = vmor %vm1004_vm14, %vm1005_vm13 }
 0x563   :  { %v1000_v41 = vmul.f32 %v7982_v39, %v999_v40 }
 0x565   :  { %v1001_v42 = vmul.f32 0.5, %v1000_v41 }
 0x567   :  { %v1002_v44 = vsub.f32 1.5, %v1001_v42 }
 0x569   :  { %v1003_v45 = vmul.f32 %v7982_v39, %v1002_v44 }
 0x56b   :  { %v1007_v48 = vsel %vm1006_vm15, %v7982_v39, %v1003_v45 }
 0x56c   :  { %v1008_v49 = vmul.f32 %v1007_v48, %v971_v35  ;;  %v1015_v50 = vmul.f32 %v1014_v46, %v1007_v48 }
 0x56e   :  { %v1013_v51 = vmul.f32 %v1011_v47, %v1008_v49  ;;  %v1016_v52 = vmul.f32 %v1015_v50, %v1011_v47 }
 0x570   :  { %1018 = vrot.lane.b32.xlu1 %v1016_v52, %s8077_s0  ;;  %1024 = vperm.xlu0 %7187, %v1013_v51  }
 0x578   :  { %265 = vperm.xlu1 %7188, %v254_v54  }
 0x5e2   :  { %v1019_v14 = vpop.permute.xlu1 %1018  ;;  %v1025_v57 = vpop.permute.xlu0 %1024 }
 0x5e3   :  { %v1021_v19 = vsub.f32 %v8499_v43, %v1019_v14  ;;  %v1027_v11 = vmul.f32 %v1025_v57, %v8671_v30  ;;  %v1028_v63 = vmul.f32 %v1025_v57, %v8668_v29  ;;  %v1029_v13 = vmul.f32 %v1025_v57, %v8679_v60 }
 0x5e5   :  { %1032 = vperm.xlu2 %7241, %v1021_v19  }
 0x5ea   :  { %v266_v25 = vpop.permute.xlu1 %265 }
 0x5eb   :  { %v268_v2 = vadd.f32 %v266_v25, %v260_v61  ;;  %v269_v9 = vadd.f32 %v266_v25, %v261_v0  ;;  %v270_v15 = vadd.f32 %v266_v25, %v262_v1  ;;  %v8782_v25 = vld [vmem:[%s11705_s3] sm:$0xff]  ;;  %v8080_v0 = vmov 2  }
 0x5ec   :  { %7294 = vset.pattern.permute.xlu0 %v8080_v0 }
 0x5ed   :  { %v271_v5 = vmul.f32 %v268_v2, %v8176_v3  ;;  %v272_v6 = vmul.f32 %v269_v9, %v8178_v4  ;;  %v273_v59 = vmul.f32 %v270_v15, %v8190_v8  ;;  %7292 = vset.pattern.permute.xlu2 %v8080_v0 }
 0x63f   :  { %v1033_v43 = vpop.permute.xlu2 %1032 }
 0x640   :  { %v1035_v16 = vadd.f32 %v1033_v43, %v1027_v11  ;;  %v1036_v7 = vadd.f32 %v1033_v43, %v1028_v63  ;;  %v1037_v18 = vadd.f32 %v1033_v43, %v1029_v13 }
 0x642   :  { %v1038_v10 = vmul.f32 %v1035_v16, %v8176_v3  ;;  %v1039_v20 = vmul.f32 %v1036_v7, %v8178_v4  ;;  %v1040_v30 = vmul.f32 %v1037_v18, %v8190_v8 }
 0x644   :  { %v8721_v29 = vadd.f32 %v1038_v10, %v271_v5  ;;  %v8723_v60 = vadd.f32 %v1039_v20, %v272_v6  ;;  %v8725_v22 = vadd.f32 %v1040_v30, %v273_v59  ;;  %v7031_v20 = vld [vmem:[%s11706_s2 + $0x10] sm:$0xff] }
 0x646   :  { %1102 = vrot.lane.b32.xlu1 %v8725_v22, %s8074_s11  ;;  %v7247_v23 = vpack.i.bf16 %v8723_v60, %v8721_v29  ;;  %v7267_v41 = vpack.i.bf16 %v8725_v22, %v8721_v29 }
 0x648   :  { %7248 = vrot.lane.b32.xlu2 %v7247_v23, %s8073_s1  ;;  %7243 = vrot.lane.b32.xlu0 %v7247_v23, %s8074_s11 }
 0x650   :  { %1057 = vrot.lane.b32.xlu0 %v8725_v22, %s8073_s1 }
 0x658   :  { %7253 = vrot.lane.b32.xlu0 %v7247_v23, %s8075_s14 }
 0x6a2   :  { %v7249_v24 = vpop.permute.xlu2 %7248 }
 0x6a3   :  { %v7251_v26 = vunpack.i.h.bf16 %v7249_v24  ;;  %v7250_v27 = vunpack.i.l.bf16 %v7249_v24 }
 0x6a5   :  { %v8738_v28 = vsel %vm288_vm0, %v7250_v27, %v7251_v26 }
 0x6a6   :  { %v7277_v17 = vpack.i.bf16 %v8725_v22, %v8738_v28 }
 0x6a8   :  { %7278 = vrot.lane.b32.xlu0 %v7277_v17, %s8075_s14 }
 0x6b8   :  { %v1103_v33 = vpop.permute.xlu1 %1102 }
 0x6ba   :  { %v7244_v31 = vpop.permute.xlu0 %7243 }
 0x6bb   :  { %v7246_v55 = vunpack.i.h.bf16 %v7244_v31  ;;  %v7245_v32 = vunpack.i.l.bf16 %v7244_v31 }
 0x6bd   :  { %v1105_v34 = vsel %vm336_vm1, %v7245_v32, %v7246_v55  ;;  %v8747_v35 = vsel %vm336_vm1, %v1103_v33, %v7245_v32  ;;  %v1104_v62 = vsel %vm336_vm1, %v7246_v55, %v1103_v33 }
 0x6be   :  { %v7262_v36 = vpack.i.bf16 %v8747_v35, %v1105_v34  ;;  %v7257_v37 = vpack.i.bf16 %v1104_v62, %v1105_v34 }
 0x6c0   :  { %7263 = vrot.lane.b32.xlu2 %v7262_v36, %s8077_s0  ;;  %7258 = vrot.lane.b32.xlu1 %v7257_v37, %s8075_s14  ;;  %v8867_v37 = vld [vmem:[%s11708_s4] sm:$0xff] }
 0x6c2   :  { %v1058_v38 = vpop.permute.xlu0 %1057 }
 0x6c3   :  { %v1061_v39 = vsel %vm288_vm0, %v1058_v38, %v7250_v27  ;;  %v8758_v40 = vsel %vm288_vm0, %v7251_v26, %v1058_v38 }
 0x6c4   :  { %1075 = vrot.lane.b32.xlu0 %v8758_v40, %s8075_s14  ;;  %v7272_v42 = vpack.i.bf16 %v1061_v39, %v8747_v35  ;;  %v7287_v44 = vpack.i.bf16 %v8723_v60, %v8758_v40  ;;  %v7282_v45 = vpack.i.bf16 %v1061_v39, %v1104_v62 }
 0x6c8   :  { %7268 = vrot.lane.b32.xlu2 %v7267_v41, %s8077_s0  ;;  %7273 = vrot.lane.b32.xlu1 %v7272_v42, %s8075_s14 }
 0x6ca   :  { %v7254_v50 = vpop.permute.xlu0 %7253 }
 0x6cb   :  { %v7256_v14 = vunpack.i.h.bf16 %v7254_v50  ;;  %v7255_v19 = vunpack.i.l.bf16 %v7254_v50 }
 0x6cc   :  { %1400 = vrot.lane.b32.xlu0 %v8867_v37, %s8081_s15  ;;  %s8090_s15 = smov 123  }
 0x6cd   :  { %v1096_v9 = vsel %vm308_vm2, %v7255_v19, %v7256_v14 }
 0x6d0   :  { %7288 = vrot.lane.b32.xlu2 %v7287_v44, %s8077_s0  ;;  %7283 = vrot.lane.b32.xlu1 %v7282_v45, %s8077_s0 }
 0x6d8   :  { %1064 = vrot.lane.b32.xlu1 %v8738_v28, %s8077_s0  ;;  %1130 = vperm.xlu2 %7292, %v8782_v25  }
 0x6e0   :  { %7293 = vset.pattern.permute.xlu2 %v8078_v56 }
 0x71a   :  { %v7264_v46 = vpop.permute.xlu2 %7263  ;;  %v7279_v11 = vpop.permute.xlu0 %7278 }
 0x71b   :  { %v7266_v51 = vunpack.i.h.bf16 %v7264_v46  ;;  %v7265_v52 = vunpack.i.l.bf16 %v7264_v46  ;;  %v7280_v15 = vunpack.i.l.bf16 %v7279_v11  ;;  %v7281_v5 = vunpack.i.h.bf16 %v7279_v11 }
 0x71d   :  { %v1115_v58 = vsel %vm298_vm3, %v7266_v51, %v7265_v52  ;;  %v1095_v26 = vsel %vm308_vm2, %v7256_v14, %v7281_v5  ;;  %v1097_v55 = vsel %vm308_vm2, %v7281_v5, %v7255_v19 }
 0x722   :  { %v8775_v54 = vpop.permute.xlu2 %7268 }
 0x723   :  { %v7271_v57 = vunpack.i.h.bf16 %v8775_v54  ;;  %v7270_v1 = vunpack.i.l.bf16 %v8775_v54 }
 0x725   :  { %v1088_v43 = vsel %vm298_vm3, %v7271_v57, %v7270_v1 }
 0x72a   :  { %v7289_v16 = vpop.permute.xlu2 %7288 }
 0x72b   :  { %v7290_v6 = vunpack.i.l.bf16 %v7289_v16  ;;  %v7291_v23 = vunpack.i.h.bf16 %v7289_v16 }
 0x72d   :  { %v1087_v31 = vsel %vm298_vm3, %v7270_v1, %v7291_v23 }
 0x732   :  { %v7259_v47 = vpop.permute.xlu1 %7258 }
 0x733   :  { %v7261_v48 = vunpack.i.h.bf16 %v7259_v47  ;;  %v7260_v49 = vunpack.i.l.bf16 %v7259_v47 }
 0x735   :  { %v1123_v53 = vsel %vm308_vm2, %v7260_v49, %v7261_v48 }
 0x736   :  { %1143 = vmatpush.msra.mxu2 %v1123_v53  ;;  %v1076_v27 = vpop.permute.xlu0 %1075 }
 0x737   :  { %v1077_v32 = vsel %vm308_vm2, %v7280_v15, %v1076_v27 }
 0x738   :  { %1144 = vmatpush.msra.mxu2 %v1105_v34 }
 0x73a   :  { %v7274_v61 = vpop.permute.xlu1 %7273  ;;  %1145 = vmatpush.msra.mxu2 %v1115_v58 }
 0x73b   :  { %v7275_v2 = vunpack.i.l.bf16 %v7274_v61  ;;  %v7276_v63 = vunpack.i.h.bf16 %v7274_v61 }
 0x73c   :  { %1146 = vmatpush.msra.mxu2 %v1096_v9 }
 0x73d   :  { %v1122_v13 = vsel %vm308_vm2, %v7261_v48, %v7275_v2  ;;  %v1078_v7 = vsel %vm308_vm2, %v7276_v63, %v7280_v15  ;;  %v1124_v24 = vsel %vm308_vm2, %v7275_v2, %v7260_v49 }
 0x73e   :  { %1147 = vmatpush.msra.mxu2 %v8721_v29  ;;  %1163 = vmatpush.msrb.mxu0 %v1122_v13 }
 0x740   :  { %1148 = vmatpush.msra.mxu2 %v1088_v43  ;;  %1164 = vmatpush.msrb.mxu0 %v1104_v62 }
 0x742   :  { %v7284_v18 = vpop.permute.xlu1 %7283  ;;  %1149 = vmatpush.msra.mxu2 %v1078_v7 }
 0x743   :  { %v7286_v59 = vunpack.i.h.bf16 %v7284_v18  ;;  %v7285_v10 = vunpack.i.l.bf16 %v7284_v18 }
 0x744   :  { %1150 = vmatpush.msra.mxu2 %v1061_v39 }
 0x745   :  { %v1070_v30 = vsel %vm298_vm3, %v7290_v6, %v7286_v59  ;;  %v1114_v29 = vsel %vm298_vm3, %v7265_v52, %v7285_v10  ;;  %v1113_v17 = vsel %vm298_vm3, %v7285_v10, %v7266_v51 }
 0x746   :  { %1151 = vmatpush.msra.mxu2 %v1070_v30  ;;  %1165 = vmatpush.msrb.mxu0 %v1114_v29 }
 0x747   :  { %7032 = vmatmul.msk.f32.vlgmr.msra.gmra.mxu2 %vm365_vm4, %v7031_v20 }
 0x748   :  { %1183 = vmatpush.msrb.mxu2 %v1124_v24  ;;  %1166 = vmatpush.msrb.mxu0 %v1095_v26 }
 0x74a   :  { %1184 = vmatpush.msrb.mxu2 %v8747_v35  ;;  %1167 = vmatpush.msrb.mxu0 %v8723_v60  ;;  %v1065_v33 = vpop.permute.xlu1 %1064  ;;  %v1086_v60 = vsel %vm298_vm3, %v7291_v23, %v7271_v57  ;;  %v1079_v35 = vsel %vm308_vm2, %v1076_v27, %v7276_v63 }
 0x74b   :  { %v1069_v34 = vsel %vm298_vm3, %v7286_v59, %v1065_v33 }
 0x74c   :  { %1185 = vmatpush.msrb.mxu2 %v1113_v17  ;;  %1168 = vmatpush.msrb.mxu0 %v1087_v31 }
 0x74e   :  { %1186 = vmatpush.msrb.mxu2 %v1097_v55  ;;  %1169 = vmatpush.msrb.mxu0 %v1077_v32 }
 0x750   :  { %1187 = vmatpush.msrb.mxu2 %v8725_v22  ;;  %1170 = vmatpush.msrb.mxu0 %v8738_v28  ;;  %v1068_v22 = vsel %vm298_vm3, %v1065_v33, %v7290_v6  ;;  %v1131_v28 = vpop.permute.xlu2 %1130 }
 0x752   :  { %1188 = vmatpush.msrb.mxu2 %v1086_v60  ;;  %1171 = vmatpush.msrb.mxu0 %v1069_v34 }
 0x753   :  { %7033 = vmatmul.msk.f32.vlgmr.msrb.gmra.mxu0 %vm365_vm4, %v7031_v20 }
 0x754   :  { %1189 = vmatpush.msrb.mxu2 %v1079_v35  ;;  %1305 = vmatpush.msra.mxu0 %v8076_v21 }
 0x756   :  { %1190 = vmatpush.msrb.mxu2 %v8758_v40  ;;  %1306 = vmatpush.msra.mxu0 %v8076_v21 }
 0x758   :  { %1191 = vmatpush.msrb.mxu2 %v1068_v22  ;;  %1307 = vmatpush.msra.mxu0 %v8076_v21 }
 0x759   :  { %7034 = vmatmul.msk.f32.vlgmr.msrb.gmra.mxu2 %vm365_vm4, %v7031_v20 }
 0x75a   :  { %1308 = vmatpush.msra.mxu0 %v8076_v21 }
 0x75c   :  { %1309 = vmatpush.msra.mxu0 %v8076_v21 }
 0x75e   :  { %1310 = vmatpush.msra.mxu0 %v8076_v21 }
 0x760   :  { %1311 = vmatpush.msra.mxu0 %v8076_v21 }
 0x762   :  { %1312 = vmatpush.msra.mxu0 %v8076_v21 }
 0x764   :  { %1313 = vmatpush.msra.mxu0 %v8076_v21 }
 0x766   :  { %1314 = vmatpush.msra.mxu0 %v8076_v21 }
 0x768   :  { %1315 = vmatpush.msra.mxu0 %v8076_v21 }
 0x76a   :  { %1316 = vmatpush.msra.mxu0 %v8076_v21 }
 0x76c   :  { %1317 = vmatpush.msra.mxu0 %v8076_v21 }
 0x76e   :  { %1318 = vmatpush.msra.mxu0 %v8076_v21 }
 0x770   :  { %1319 = vmatpush.msra.mxu0 %v8076_v21 }
 0x772   :  { %1320 = vmatpush.msra.mxu0 %v8076_v21 }
 0x774   :  { %1666 = vmatpush.msrb.mxu0 %v8076_v21 }
 0x776   :  { %1667 = vmatpush.msrb.mxu0 %v8076_v21 }
 0x778   :  { %1668 = vmatpush.msrb.mxu0 %v8076_v21 }
 0x77a   :  { %1669 = vmatpush.msrb.mxu0 %v8076_v21 }
 0x77c   :  { %1670 = vmatpush.msrb.mxu0 %v8076_v21 }
 0x77e   :  { %1671 = vmatpush.msrb.mxu0 %v8076_v21 }
 0x780   :  { %1672 = vmatpush.msrb.mxu0 %v8076_v21 }
 0x782   :  { %1673 = vmatpush.msrb.mxu0 %v8076_v21 }
 0x784   :  { %1674 = vmatpush.msrb.mxu0 %v8076_v21 }
 0x786   :  { %1675 = vmatpush.msrb.mxu0 %v8076_v21 }
 0x788   :  { %1676 = vmatpush.msrb.mxu0 %v8076_v21 }
 0x78a   :  { %1677 = vmatpush.msrb.mxu0 %v8076_v21 }
 0x78c   :  { %1678 = vmatpush.msrb.mxu0 %v8076_v21 }
 0x78e   :  { %1679 = vmatpush.msrb.mxu0 %v8076_v21 }
 0x790   :  { %1680 = vmatpush.msrb.mxu0 %v8076_v21 }
 0x792   :  { %1681 = vmatpush.msrb.mxu0 %v8076_v21 }
 0x7ca   :  { %v1153_v62 = vpop.f32.mrf.mxu2 }
 0x7cb   :  { %v1154_v36 = vadd.f32 %v1153_v62, %v1131_v28 }
 0x7cd   :  { %v1196_v38 = vmul.f32 %v1154_v36, %v8176_v3 }
 0x7cf   :  { %vm1199_vm6 = vcmp.ge.f32.partialorder %v1196_v38, 0.0  ;;  %v1202_v39 = vmul.f32 0.01, %v1196_v38 }
 0x7d0   :  { %v1173_v40 = vpop.f32.mrf.mxu0 }
 0x7d1   :  { %v1174_v41 = vadd.f32 %v1173_v40, %v1131_v28  ;;  %v8871_v42 = vsel %vm1199_vm6, %v1196_v38, %v1202_v39 }
 0x7d2   :  { %1275 = vmatmul.f32.vlgmr.msra.gmra.mxu3 %v8871_v42  ;;  %v1208_v46 = vmul.f32 %v8871_v42, %v8871_v42 }
 0x7d3   :  { %v1197_v44 = vmul.f32 %v1174_v41, %v8178_v4 }
 0x7d5   :  { %vm1200_vm7 = vcmp.ge.f32.partialorder %v1197_v44, 0.0  ;;  %v1203_v45 = vmul.f32 0.01, %v1197_v44 }
 0x7d7   :  { %v8877_v47 = vsel %vm1200_vm7, %v1197_v44, %v1203_v45 }
 0x7d8   :  { %1298 = vmatmul.f32.vlgmr.msra.gmra.mxu1 %v8877_v47  ;;  %v1209_v50 = vmul.f32 %v8877_v47, %v8877_v47 }
 0x7da   :  { %1278 = vmatmul.f32.gmra.mxu3 %v1208_v46 }
 0x7dc   :  { %v1193_v48 = vpop.f32.mrf.mxu2 }
 0x7dd   :  { %v1194_v49 = vadd.f32 %v1193_v48, %v1131_v28 }
 0x7df   :  { %v1198_v51 = vmul.f32 %v1194_v49, %v8190_v8 }
 0x7e0   :  { %1301 = vmatmul.f32.gmra.mxu1 %v1209_v50 }
 0x7e1   :  { %vm1201_vm8 = vcmp.ge.f32.partialorder %v1198_v51, 0.0  ;;  %v1204_v52 = vmul.f32 0.01, %v1198_v51 }
 0x7e3   :  { %v8883_v53 = vsel %vm1201_vm8, %v1198_v51, %v1204_v52 }
 0x7e4   :  { %1321 = vmatmul.f32.vlgmr.msra.gmra.mxu0 %v8883_v53  ;;  %v1210_v54 = vmul.f32 %v8883_v53, %v8883_v53 }
 0x7e5   :  { %2027 = vmatpush.msra.mxu0 %v8076_v21 }
 0x7e7   :  { %2028 = vmatpush.msra.mxu0 %v8076_v21 }
 0x7e9   :  { %2029 = vmatpush.msra.mxu0 %v8076_v21 }
 0x7eb   :  { %2030 = vmatpush.msra.mxu0 %v8076_v21 }
 0x7ec   :  { %1324 = vmatmul.f32.gmra.mxu0 %v1210_v54 }
 0x7ed   :  { %2031 = vmatpush.msra.mxu0 %v8076_v21 }
 0x7ef   :  { %2032 = vmatpush.msra.mxu0 %v8076_v21 }
 0x7f1   :  { %2033 = vmatpush.msra.mxu0 %v8076_v21 }
 0x7f3   :  { %2034 = vmatpush.msra.mxu0 %v8076_v21 }
 0x7f5   :  { %2035 = vmatpush.msra.mxu0 %v8076_v21 }
 0x7f7   :  { %2036 = vmatpush.msra.mxu0 %v8076_v21 }
 0x7f9   :  { %2037 = vmatpush.msra.mxu0 %v8076_v21 }
 0x7fb   :  { %2038 = vmatpush.msra.mxu0 %v8076_v21 }
 0x7fd   :  { %2039 = vmatpush.msra.mxu0 %v8076_v21 }
 0x7ff   :  { %2040 = vmatpush.msra.mxu0 %v8076_v21 }
 0x801   :  { %2041 = vmatpush.msra.mxu0 %v8076_v21 }
 0x803   :  { %2042 = vmatpush.msra.mxu0 %v8076_v21 }
 0x855   :  { %v1276_v14 = vpop.f32.mrf.mxu3  ;;  %v1299_v19 = vpop.f32.mrf.mxu1 }
 0x856   :  { %v1300_v59 = vadd.f32 %v1299_v19, %v1276_v14 }
 0x85d   :  { %v1279_v61 = vpop.f32.mrf.mxu3  ;;  %v1302_v0 = vpop.f32.mrf.mxu1 }
 0x85e   :  { %v1303_v57 = vadd.f32 %v1302_v0, %v1279_v61 }
 0x861   :  { %v1322_v58 = vpop.f32.mrf.mxu0 }
 0x862   :  { %v1323_v20 = vadd.f32 %v1322_v58, %v1300_v59 }
 0x864   :  { %v1366_v24 = vrot.slane %v1323_v20, 4 }
 0x866   :  { %v1368_v55 = vadd.f32 %v1366_v24, %v1323_v20 }
 0x868   :  { %v1370_v33 = vrot.slane %v1368_v55, 4 }
 0x869   :  { %v1325_v1 = vpop.f32.mrf.mxu0 }
 0x86a   :  { %v1326_v2 = vadd.f32 %v1325_v1, %v1303_v57  ;;  %v1372_v22 = vsel %vm226_vm5, %v1368_v55, %v1370_v33 }
 0x86b   :  { %v1381_v38 = vmul.f32 0.001953125, %v1372_v22 }
 0x86c   :  { %v1328_v9 = vsel %vm561_vm12, %v1326_v2, 0.0  ;;  %v1374_v17 = vrot.slane %v1326_v2, 4 }
 0x86d   :  { %v1329_v11 = vrot.slane %v1328_v9, 4  ;;  %v1383_v46 = vmul.f32 %v1381_v38, %v1381_v38 }
 0x86e   :  { %v1376_v32 = vadd.f32 %v1374_v17, %v1326_v2  ;;  %v1401_v2 = vpop.permute.xlu0 %1400 }
 0x86f   :  { %v1330_v63 = vadd.f32 %v1329_v11, %v1328_v9 }
 0x870   :  { %v1378_v34 = vrot.slane %v1376_v32, 4 }
 0x871   :  { %v1331_v13 = vrot.slane %v1330_v63, 2 }
 0x872   :  { %v1380_v62 = vsel %vm226_vm5, %v1376_v32, %v1378_v34 }
 0x873   :  { %v1332_v15 = vadd.f32 %v1331_v13, %v1330_v63  ;;  %v1382_v41 = vmul.f32 0.001953125, %v1380_v62 }
 0x875   :  { %v1333_v43 = vrot.slane %v1332_v15, 1  ;;  %v1384_v50 = vsub.f32 %v1382_v41, %v1383_v46 }
 0x877   :  { %v1334_v16 = vadd.f32 %v1333_v43, %v1332_v15  ;;  %v8910_v43 = vld [vmem:[%s11709_s5] sm:$0xff] }
 0x879   :  { %7983 = vrsqrt.f32 %v1334_v16  ;;  %vm1342_vm9 = vcmp.eq.f32.partialorder %v1334_v16, inf  ;;  %v1345_v23 = vand.u32 2147483648, %v1334_v16  ;;  %vm1344_vm10 = vcmp.eq.f32.partialorder %v1334_v16, 0.0 }
 0x87f   :  { %v7984_v7 = vpop.eup %7983 }
 0x880   :  { %v1336_v18 = vmul.f32 %v7984_v7, %v1334_v16 }
 0x882   :  { %v1337_v5 = vmul.f32 %v7984_v7, %v1336_v18 }
 0x884   :  { %v1338_v6 = vmul.f32 0.5, %v1337_v5 }
 0x886   :  { %v1339_v10 = vsub.f32 1.5, %v1338_v6 }
 0x888   :  { %v1340_v30 = vmul.f32 %v7984_v7, %v1339_v10 }
 0x88a   :  { %v1341_v29 = vmul.f32 %v1340_v30, %v1334_v16 }
 0x88c   :  { %v1343_v26 = vsel %vm1342_vm9, %v1334_v16, %v1341_v29 }
 0x88d   :  { %v1346_v27 = vsel %vm1344_vm10, %v1345_v23, %v1343_v26 }
 0x88e   :  { %v1347_v31 = vadd.f32 1e-06, %v1346_v27 }
 0x890   :  { %7985 = vrcp.f32 %v1347_v31  ;;  %v1359_v36 = vand.u32 2147483648, %v1347_v31  ;;  %v1357_v40 = vand.u32 2147483647, %v1347_v31  ;;  %vm1353_vm13 = vweird.f32 %v1347_v31 }
 0x892   :  { %v1360_v45 = vor.u32 1.1754944e-38, %v1359_v36  ;;  %vm1358_vm15 = vcmp.eq.f32.partialorder %v1357_v40, 8.507059e+37 }
 0x896   :  { %v7986_v60 = vpop.eup %7985 }
 0x897   :  { %v1349_v35 = vmul.f32 %v7986_v60, %v1347_v31  ;;  %vm1354_vm11 = vweird.f32 %v7986_v60 }
 0x898   :  { %vm1355_vm14 = vmor %vm1353_vm13, %vm1354_vm11 }
 0x899   :  { %v1350_v28 = vsub.f32 1.0, %v1349_v35 }
 0x89b   :  { %v1351_v39 = vmul.f32 %v7986_v60, %v1350_v28 }
 0x89d   :  { %v1352_v44 = vadd.f32 %v7986_v60, %v1351_v39 }
 0x89f   :  { %v1356_v48 = vsel %vm1355_vm14, %v7986_v60, %v1352_v44 }
 0x8a0   :  { %v1361_v49 = vsel %vm1358_vm15, %v1360_v45, %v1356_v48 }
 0x8a1   :  { %v1385_v51 = vmul.f32 %v1361_v49, %v1361_v49  ;;  %v1404_v1 = vmul.f32 %v1381_v38, %v1361_v49 }
 0x8a3   :  { %v1386_v52 = vmul.f32 %v1385_v51, %v1384_v50 }
 0x8a5   :  { %v1387_v54 = vadd.f32 1e-05, %v1386_v52 }
 0x8a7   :  { %7987 = vrsqrt.f32 %v1387_v54  ;;  %vm1394_vm7 = vweird.f32 %v1387_v54 }
 0x8ad   :  { %v7988_v14 = vpop.eup %7987 }
 0x8ae   :  { %v1389_v19 = vmul.f32 %v7988_v14, %v1387_v54  ;;  %vm1395_vm6 = vweird.f32 %v7988_v14 }
 0x8af   :  { %vm1396_vm8 = vmor %vm1394_vm7, %vm1395_vm6 }
 0x8b0   :  { %v1390_v58 = vmul.f32 %v7988_v14, %v1389_v19 }
 0x8b2   :  { %v1391_v61 = vmul.f32 0.5, %v1390_v58 }
 0x8b4   :  { %v1392_v0 = vsub.f32 1.5, %v1391_v61 }
 0x8b6   :  { %v1393_v57 = vmul.f32 %v7988_v14, %v1392_v0  ;;  %v8083_v0 = vmov 3  }
 0x8b7   :  { %7345 = vset.pattern.permute.xlu1 %v8083_v0 }
 0x8b8   :  { %v1397_v9 = vsel %vm1396_vm8, %v7988_v14, %v1393_v57 }
 0x8b9   :  { %v1398_v11 = vmul.f32 %v1397_v9, %v1361_v49  ;;  %v1405_v63 = vmul.f32 %v1404_v1, %v1397_v9 }
 0x8bb   :  { %v1403_v13 = vmul.f32 %v1401_v2, %v1398_v11  ;;  %v1406_v15 = vmul.f32 %v1405_v63, %v1401_v2 }
 0x8bd   :  { %1408 = vrot.lane.b32.xlu1 %v1406_v15, %s8082_s16  ;;  %1414 = vperm.xlu2 %7293, %v1403_v13   ;;  %s8091_s16 = smov 5  }
 0x8c5   :  { %7347 = vset.pattern.permute.xlu2 %v8083_v0 }
 0x917   :  { %v1415_v18 = vpop.permute.xlu2 %1414 }
 0x918   :  { %v1417_v5 = vmul.f32 %v1415_v18, %v8871_v42  ;;  %v1418_v6 = vmul.f32 %v1415_v18, %v8877_v47  ;;  %v1419_v59 = vmul.f32 %v1415_v18, %v8883_v53 }
 0x92f   :  { %v1409_v16 = vpop.permute.xlu1 %1408 }
 0x930   :  { %v1411_v7 = vsub.f32 %v8910_v43, %v1409_v16 }
 0x932   :  { %1422 = vperm.xlu0 %7294, %v1411_v7  }
 0x9a4   :  { %v1423_v10 = vpop.permute.xlu0 %1422 }
 0x9a5   :  { %v1425_v20 = vadd.f32 %v1423_v10, %v1417_v5  ;;  %v1426_v30 = vadd.f32 %v1423_v10, %v1418_v6  ;;  %v1427_v29 = vadd.f32 %v1423_v10, %v1419_v59 }
 0x9a7   :  { %v8917_v23 = vmul.f32 %v1425_v20, %v8176_v3  ;;  %v8920_v24 = vmul.f32 %v1426_v30, %v8178_v4  ;;  %v8923_v26 = vmul.f32 %v1427_v29, %v8190_v8 }
 0x9a9   :  { %1486 = vrot.lane.b32.xlu2 %v8923_v26, %s8074_s11  ;;  %v7295_v42 = vpack.i.bf16 %v8920_v24, %v8917_v23  ;;  %v7320_v39 = vpack.i.bf16 %v8923_v26, %v8917_v23 }
 0x9ab   :  { %7296 = vrot.lane.b32.xlu1 %v7295_v42, %s8074_s11 }
 0x9b1   :  { %1441 = vrot.lane.b32.xlu2 %v8923_v26, %s8073_s1 }
 0x9b3   :  { %7301 = vrot.lane.b32.xlu1 %v7295_v42, %s8073_s1 }
 0x9b9   :  { %7306 = vrot.lane.b32.xlu2 %v7295_v42, %s8075_s14  ;;  %v7035_v42 = vld [vmem:[%s11706_s2 + $0x18] sm:$0xff] }
 0xa03   :  { %v1487_v47 = vpop.permute.xlu2 %1486 }
 0xa0b   :  { %v1442_v28 = vpop.permute.xlu2 %1441 }
 0xa13   :  { %v7307_v51 = vpop.permute.xlu2 %7306 }
 0xa14   :  { %v7309_v19 = vunpack.i.h.bf16 %v7307_v51  ;;  %v7308_v58 = vunpack.i.l.bf16 %v7307_v51 }
 0xa16   :  { %v1480_v11 = vsel %vm308_vm2, %v7308_v58, %v7309_v19 }
 0xa1d   :  { %v7297_v53 = vpop.permute.xlu1 %7296 }
 0xa1e   :  { %v7299_v27 = vunpack.i.h.bf16 %v7297_v53  ;;  %v7298_v17 = vunpack.i.l.bf16 %v7297_v53 }
 0xa20   :  { %v1489_v31 = vsel %vm336_vm1, %v7298_v17, %v7299_v27  ;;  %v8938_v55 = vsel %vm336_vm1, %v1487_v47, %v7298_v17  ;;  %v1488_v32 = vsel %vm336_vm1, %v7299_v27, %v1487_v47 }
 0xa21   :  { %v7315_v33 = vpack.i.bf16 %v8938_v55, %v1489_v31  ;;  %v7310_v60 = vpack.i.bf16 %v1488_v32, %v1489_v31 }
 0xa23   :  { %7316 = vrot.lane.b32.xlu1 %v7315_v33, %s8077_s0  ;;  %7311 = vrot.lane.b32.xlu0 %v7310_v60, %s8075_s14 }
 0xa25   :  { %v7302_v34 = vpop.permute.xlu1 %7301 }
 0xa26   :  { %v7304_v35 = vunpack.i.h.bf16 %v7302_v34  ;;  %v7303_v22 = vunpack.i.l.bf16 %v7302_v34 }
 0xa28   :  { %v8947_v62 = vsel %vm288_vm0, %v7303_v22, %v7304_v35  ;;  %v1445_v36 = vsel %vm288_vm0, %v1442_v28, %v7303_v22  ;;  %v8961_v41 = vsel %vm288_vm0, %v7304_v35, %v1442_v28 }
 0xa29   :  { %v7330_v38 = vpack.i.bf16 %v8923_v26, %v8947_v62  ;;  %v7325_v40 = vpack.i.bf16 %v1445_v36, %v8938_v55  ;;  %v7340_v44 = vpack.i.bf16 %v8920_v24, %v8961_v41  ;;  %v7335_v45 = vpack.i.bf16 %v1445_v36, %v1488_v32 }
 0xa2b   :  { %7331 = vrot.lane.b32.xlu2 %v7330_v38, %s8075_s14  ;;  %7321 = vrot.lane.b32.xlu1 %v7320_v39, %s8077_s0 }
 0xa2c   :  { %7326 = vrot.lane.b32.xlu0 %v7325_v40, %s8075_s14 }
 0xa33   :  { %1459 = vrot.lane.b32.xlu2 %v8961_v41, %s8075_s14  ;;  %7341 = vrot.lane.b32.xlu1 %v7340_v44, %s8077_s0 }
 0xa34   :  { %7336 = vrot.lane.b32.xlu0 %v7335_v45, %s8077_s0 }
 0xa3b   :  { %1514 = vperm.xlu1 %7345, %v8782_v25   ;;  %1784 = vrot.lane.b32.xlu2 %v8867_v37, %s8084_s21 }
 0xa3c   :  { %1448 = vrot.lane.b32.xlu0 %v8947_v62, %s8077_s0 }
 0xa43   :  { %7346 = vset.pattern.permute.xlu1 %v8078_v56 }
 0xa85   :  { %v7332_v63 = vpop.permute.xlu2 %7331 }
 0xa86   :  { %v7333_v7 = vunpack.i.l.bf16 %v7332_v63  ;;  %v7334_v10 = vunpack.i.h.bf16 %v7332_v63 }
 0xa88   :  { %v1479_v27 = vsel %vm308_vm2, %v7309_v19, %v7334_v10  ;;  %v1481_v33 = vsel %vm308_vm2, %v7334_v10, %v7308_v58 }
 0xa8d   :  { %v1460_v17 = vpop.permute.xlu2 %1459 }
 0xa8e   :  { %v1461_v60 = vsel %vm308_vm2, %v7333_v7, %v1460_v17 }
 0xa95   :  { %v7317_v46 = vpop.permute.xlu1 %7316  ;;  %v7312_v48 = vpop.permute.xlu0 %7311 }
 0xa96   :  { %v7314_v49 = vunpack.i.h.bf16 %v7312_v48  ;;  %v7313_v50 = vunpack.i.l.bf16 %v7312_v48  ;;  %v7319_v52 = vunpack.i.h.bf16 %v7317_v46  ;;  %v7318_v54 = vunpack.i.l.bf16 %v7317_v46 }
 0xa98   :  { %v1507_v14 = vsel %vm308_vm2, %v7313_v50, %v7314_v49  ;;  %v1499_v61 = vsel %vm298_vm3, %v7319_v52, %v7318_v54 }
 0xa99   :  { %1527 = vmatpush.msra.mxu2 %v1507_v14 }
 0xa9b   :  { %1528 = vmatpush.msra.mxu2 %v1489_v31 }
 0xa9d   :  { %v7322_v57 = vpop.permute.xlu1 %7321  ;;  %1529 = vmatpush.msra.mxu2 %v1499_v61 }
 0xa9e   :  { %v7324_v1 = vunpack.i.h.bf16 %v7322_v57  ;;  %v7323_v2 = vunpack.i.l.bf16 %v7322_v57  ;;  %v7327_v9 = vpop.permute.xlu0 %7326 }
 0xa9f   :  { %v7328_v13 = vunpack.i.l.bf16 %v7327_v9  ;;  %1530 = vmatpush.msra.mxu2 %v1480_v11  ;;  %v7329_v15 = vunpack.i.h.bf16 %v7327_v9 }
 0xaa0   :  { %v1472_v25 = vsel %vm298_vm3, %v7324_v1, %v7323_v2 }
 0xaa1   :  { %1531 = vmatpush.msra.mxu2 %v8917_v23  ;;  %v1506_v16 = vsel %vm308_vm2, %v7314_v49, %v7328_v13  ;;  %v1462_v18 = vsel %vm308_vm2, %v7329_v15, %v7333_v7  ;;  %v1508_v47 = vsel %vm308_vm2, %v7328_v13, %v7313_v50  ;;  %v1463_v35 = vsel %vm308_vm2, %v1460_v17, %v7329_v15 }
 0xaa2   :  { %1547 = vmatpush.msrb.mxu3 %v1506_v16 }
 0xaa3   :  { %1532 = vmatpush.msra.mxu2 %v1472_v25 }
 0xaa4   :  { %1548 = vmatpush.msrb.mxu3 %v1488_v32 }
 0xaa5   :  { %v7342_v5 = vpop.permute.xlu1 %7341  ;;  %1533 = vmatpush.msra.mxu2 %v1462_v18 }
 0xaa6   :  { %v7343_v6 = vunpack.i.l.bf16 %v7342_v5  ;;  %v7337_v59 = vpop.permute.xlu0 %7336  ;;  %v7344_v53 = vunpack.i.h.bf16 %v7342_v5 }
 0xaa7   :  { %v7339_v20 = vunpack.i.h.bf16 %v7337_v59  ;;  %v7338_v30 = vunpack.i.l.bf16 %v7337_v59  ;;  %1534 = vmatpush.msra.mxu2 %v1445_v36 }
 0xaa8   :  { %v1471_v32 = vsel %vm298_vm3, %v7323_v2, %v7344_v53 }
 0xaa9   :  { %v1454_v29 = vsel %vm298_vm3, %v7343_v6, %v7339_v20  ;;  %v1498_v23 = vsel %vm298_vm3, %v7318_v54, %v7338_v30  ;;  %v1497_v31 = vsel %vm298_vm3, %v7338_v30, %v7319_v52 }
 0xaaa   :  { %1535 = vmatpush.msra.mxu2 %v1454_v29  ;;  %1549 = vmatpush.msrb.mxu3 %v1498_v23 }
 0xaab   :  { %7036 = vmatmul.msk.f32.vlgmr.msra.gmra.mxu2 %vm365_vm4, %v7035_v42 }
 0xaac   :  { %1567 = vmatpush.msrb.mxu2 %v1508_v47  ;;  %1550 = vmatpush.msrb.mxu3 %v1479_v27 }
 0xaad   :  { %v1515_v22 = vpop.permute.xlu1 %1514 }
 0xaae   :  { %1568 = vmatpush.msrb.mxu2 %v8938_v55  ;;  %1551 = vmatpush.msrb.mxu3 %v8920_v24  ;;  %v1449_v34 = vpop.permute.xlu0 %1448  ;;  %v1470_v24 = vsel %vm298_vm3, %v7344_v53, %v7324_v1 }
 0xaaf   :  { %v1453_v55 = vsel %vm298_vm3, %v7339_v20, %v1449_v34 }
 0xab0   :  { %1569 = vmatpush.msrb.mxu2 %v1497_v31  ;;  %1552 = vmatpush.msrb.mxu3 %v1471_v32 }
 0xab2   :  { %1570 = vmatpush.msrb.mxu2 %v1481_v33  ;;  %1553 = vmatpush.msrb.mxu3 %v1461_v60 }
 0xab4   :  { %1571 = vmatpush.msrb.mxu2 %v8923_v26  ;;  %1554 = vmatpush.msrb.mxu3 %v8947_v62  ;;  %v1452_v26 = vsel %vm298_vm3, %v1449_v34, %v7343_v6 }
 0xab6   :  { %1572 = vmatpush.msrb.mxu2 %v1470_v24  ;;  %1555 = vmatpush.msrb.mxu3 %v1453_v55 }
 0xab7   :  { %7037 = vmatmul.msk.f32.vlgmr.msrb.gmra.mxu3 %vm365_vm4, %v7035_v42 }
 0xab8   :  { %1573 = vmatpush.msrb.mxu2 %v1463_v35  ;;  %1689 = vmatpush.msra.mxu3 %v8076_v21 }
 0xaba   :  { %1574 = vmatpush.msrb.mxu2 %v8961_v41  ;;  %1690 = vmatpush.msra.mxu3 %v8076_v21 }
 0xabc   :  { %1575 = vmatpush.msrb.mxu2 %v1452_v26  ;;  %1691 = vmatpush.msra.mxu3 %v8076_v21 }
 0xabd   :  { %7038 = vmatmul.msk.f32.vlgmr.msrb.gmra.mxu2 %vm365_vm4, %v7035_v42 }
 0xabe   :  { %1692 = vmatpush.msra.mxu3 %v8076_v21 }
 0xac0   :  { %1693 = vmatpush.msra.mxu3 %v8076_v21 }
 0xac2   :  { %1694 = vmatpush.msra.mxu3 %v8076_v21 }
 0xac4   :  { %1695 = vmatpush.msra.mxu3 %v8076_v21 }
 0xac6   :  { %1696 = vmatpush.msra.mxu3 %v8076_v21 }
 0xac8   :  { %1697 = vmatpush.msra.mxu3 %v8076_v21 }
 0xaca   :  { %1698 = vmatpush.msra.mxu3 %v8076_v21 }
 0xacc   :  { %1699 = vmatpush.msra.mxu3 %v8076_v21 }
 0xace   :  { %1700 = vmatpush.msra.mxu3 %v8076_v21 }
 0xad0   :  { %1701 = vmatpush.msra.mxu3 %v8076_v21 }
 0xad2   :  { %1702 = vmatpush.msra.mxu3 %v8076_v21 }
 0xad4   :  { %1703 = vmatpush.msra.mxu3 %v8076_v21 }
 0xad6   :  { %1704 = vmatpush.msra.mxu3 %v8076_v21 }
 0xad8   :  { %2050 = vmatpush.msrb.mxu3 %v8076_v21 }
 0xada   :  { %2051 = vmatpush.msrb.mxu3 %v8076_v21 }
 0xadc   :  { %2052 = vmatpush.msrb.mxu3 %v8076_v21 }
 0xade   :  { %2053 = vmatpush.msrb.mxu3 %v8076_v21 }
 0xae0   :  { %2054 = vmatpush.msrb.mxu3 %v8076_v21 }
 0xae2   :  { %2055 = vmatpush.msrb.mxu3 %v8076_v21 }
 0xae4   :  { %2056 = vmatpush.msrb.mxu3 %v8076_v21 }
 0xae6   :  { %2057 = vmatpush.msrb.mxu3 %v8076_v21 }
 0xae8   :  { %2058 = vmatpush.msrb.mxu3 %v8076_v21 }
 0xaea   :  { %2059 = vmatpush.msrb.mxu3 %v8076_v21 }
 0xaec   :  { %2060 = vmatpush.msrb.mxu3 %v8076_v21 }
 0xaee   :  { %2061 = vmatpush.msrb.mxu3 %v8076_v21 }
 0xaf0   :  { %2062 = vmatpush.msrb.mxu3 %v8076_v21 }
 0xaf2   :  { %2063 = vmatpush.msrb.mxu3 %v8076_v21 }
 0xaf4   :  { %2064 = vmatpush.msrb.mxu3 %v8076_v21 }
 0xaf6   :  { %2065 = vmatpush.msrb.mxu3 %v8076_v21 }
 0xb2e   :  { %v1537_v28 = vpop.f32.mrf.mxu2 }
 0xb2f   :  { %v1538_v62 = vadd.f32 %v1537_v28, %v1515_v22 }
 0xb31   :  { %v1580_v36 = vmul.f32 %v1538_v62, %v8176_v3 }
 0xb33   :  { %vm1583_vm9 = vcmp.ge.f32.partialorder %v1580_v36, 0.0  ;;  %v1586_v38 = vmul.f32 0.01, %v1580_v36 }
 0xb35   :  { %v9056_v39 = vsel %vm1583_vm9, %v1580_v36, %v1586_v38 }
 0xb36   :  { %1659 = vmatmul.f32.vlgmr.msrb.gmra.mxu1 %v9056_v39  ;;  %v1592_v44 = vmul.f32 %v9056_v39, %v9056_v39 }
 0xb3a   :  { %v1557_v40 = vpop.f32.mrf.mxu3 }
 0xb3b   :  { %v1558_v41 = vadd.f32 %v1557_v40, %v1515_v22 }
 0xb3d   :  { %v1581_v45 = vmul.f32 %v1558_v41, %v8178_v4 }
 0xb3e   :  { %1662 = vmatmul.f32.gmra.mxu1 %v1592_v44 }
 0xb3f   :  { %vm1584_vm10 = vcmp.ge.f32.partialorder %v1581_v45, 0.0  ;;  %v1587_v48 = vmul.f32 0.01, %v1581_v45 }
 0xb40   :  { %v1577_v46 = vpop.f32.mrf.mxu2 }
 0xb41   :  { %v1578_v49 = vadd.f32 %v1577_v46, %v1515_v22  ;;  %v9062_v50 = vsel %vm1584_vm10, %v1581_v45, %v1587_v48 }
 0xb42   :  { %1682 = vmatmul.f32.vlgmr.msrb.gmra.mxu0 %v9062_v50  ;;  %v1593_v14 = vmul.f32 %v9062_v50, %v9062_v50 }
 0xb43   :  { %v1582_v51 = vmul.f32 %v1578_v49, %v8190_v8 }
 0xb45   :  { %vm1585_vm11 = vcmp.ge.f32.partialorder %v1582_v51, 0.0  ;;  %v1588_v52 = vmul.f32 0.01, %v1582_v51 }
 0xb47   :  { %v9066_v54 = vsel %vm1585_vm11, %v1582_v51, %v1588_v52 }
 0xb48   :  { %1705 = vmatmul.f32.vlgmr.msra.gmra.mxu3 %v9066_v54  ;;  %v1594_v19 = vmul.f32 %v9066_v54, %v9066_v54 }
 0xb49   :  { %2411 = vmatpush.msra.mxu3 %v8076_v21 }
 0xb4a   :  { %1685 = vmatmul.f32.gmra.mxu0 %v1593_v14 }
 0xb4b   :  { %2412 = vmatpush.msra.mxu3 %v8076_v21 }
 0xb4d   :  { %2413 = vmatpush.msra.mxu3 %v8076_v21 }
 0xb4f   :  { %2414 = vmatpush.msra.mxu3 %v8076_v21 }
 0xb50   :  { %1708 = vmatmul.f32.gmra.mxu3 %v1594_v19 }
 0xb51   :  { %2415 = vmatpush.msra.mxu3 %v8076_v21 }
 0xb53   :  { %2416 = vmatpush.msra.mxu3 %v8076_v21 }
 0xb55   :  { %2417 = vmatpush.msra.mxu3 %v8076_v21 }
 0xb57   :  { %2418 = vmatpush.msra.mxu3 %v8076_v21 }
 0xb59   :  { %2419 = vmatpush.msra.mxu3 %v8076_v21 }
 0xb5b   :  { %2420 = vmatpush.msra.mxu3 %v8076_v21 }
 0xb5d   :  { %2421 = vmatpush.msra.mxu3 %v8076_v21 }
 0xb5f   :  { %2422 = vmatpush.msra.mxu3 %v8076_v21 }
 0xb61   :  { %2423 = vmatpush.msra.mxu3 %v8076_v21 }
 0xb63   :  { %2424 = vmatpush.msra.mxu3 %v8076_v21 }
 0xb65   :  { %2425 = vmatpush.msra.mxu3 %v8076_v21 }
 0xb67   :  { %2426 = vmatpush.msra.mxu3 %v8076_v21 }
 0xbb3   :  { %v1660_v58 = vpop.f32.mrf.mxu1 }
 0xbbb   :  { %v1663_v1 = vpop.f32.mrf.mxu1 }
 0xbbf   :  { %v1683_v37 = vpop.f32.mrf.mxu0 }
 0xbc0   :  { %v1684_v20 = vadd.f32 %v1683_v37, %v1660_v58 }
 0xbc7   :  { %v1686_v57 = vpop.f32.mrf.mxu0 }
 0xbc8   :  { %v1687_v2 = vadd.f32 %v1686_v57, %v1663_v1 }
 0xbcb   :  { %v1706_v61 = vpop.f32.mrf.mxu3 }
 0xbcc   :  { %v1707_v29 = vadd.f32 %v1706_v61, %v1684_v20 }
 0xbce   :  { %v1750_v53 = vrot.slane %v1707_v29, 4 }
 0xbd0   :  { %v1752_v33 = vadd.f32 %v1750_v53, %v1707_v29 }
 0xbd2   :  { %v1754_v34 = vrot.slane %v1752_v33, 4 }
 0xbd3   :  { %v1709_v9 = vpop.f32.mrf.mxu3 }
 0xbd4   :  { %v1710_v11 = vadd.f32 %v1709_v9, %v1687_v2  ;;  %v1756_v26 = vsel %vm226_vm5, %v1752_v33, %v1754_v34 }
 0xbd5   :  { %v1765_v36 = vmul.f32 0.001953125, %v1756_v26 }
 0xbd6   :  { %v1712_v63 = vsel %vm561_vm12, %v1710_v11, 0.0  ;;  %v1758_v31 = vrot.slane %v1710_v11, 4 }
 0xbd7   :  { %v1713_v13 = vrot.slane %v1712_v63, 4  ;;  %v1767_v46 = vmul.f32 %v1765_v36, %v1765_v36 }
 0xbd8   :  { %v1760_v60 = vadd.f32 %v1758_v31, %v1710_v11  ;;  %v1785_v11 = vpop.permute.xlu2 %1784 }
 0xbd9   :  { %v1714_v15 = vadd.f32 %v1713_v13, %v1712_v63 }
 0xbda   :  { %v1762_v55 = vrot.slane %v1760_v60, 4 }
 0xbdb   :  { %v1715_v16 = vrot.slane %v1714_v15, 2 }
 0xbdc   :  { %v1764_v28 = vsel %vm226_vm5, %v1760_v60, %v1762_v55 }
 0xbdd   :  { %v1716_v7 = vadd.f32 %v1715_v16, %v1714_v15  ;;  %v1766_v41 = vmul.f32 0.001953125, %v1764_v28 }
 0xbdf   :  { %v1717_v25 = vrot.slane %v1716_v7, 1  ;;  %v1768_v51 = vsub.f32 %v1766_v41, %v1767_v46 }
 0xbe1   :  { %v1718_v18 = vadd.f32 %v1717_v25, %v1716_v7 }
 0xbe3   :  { %7989 = vrsqrt.f32 %v1718_v18  ;;  %vm1726_vm13 = vcmp.eq.f32.partialorder %v1718_v18, inf  ;;  %v1729_v47 = vand.u32 2147483648, %v1718_v18  ;;  %vm1728_vm14 = vcmp.eq.f32.partialorder %v1718_v18, 0.0 }
 0xbe9   :  { %v7990_v5 = vpop.eup %7989 }
 0xbea   :  { %v1720_v6 = vmul.f32 %v7990_v5, %v1718_v18 }
 0xbec   :  { %v1721_v59 = vmul.f32 %v7990_v5, %v1720_v6 }
 0xbee   :  { %v1722_v10 = vmul.f32 0.5, %v1721_v59 }
 0xbf0   :  { %v1723_v30 = vsub.f32 1.5, %v1722_v10 }
 0xbf2   :  { %v1724_v23 = vmul.f32 %v7990_v5, %v1723_v30 }
 0xbf4   :  { %v1725_v42 = vmul.f32 %v1724_v23, %v1718_v18 }
 0xbf6   :  { %v1727_v27 = vsel %vm1726_vm13, %v1718_v18, %v1725_v42 }
 0xbf7   :  { %v1730_v17 = vsel %vm1728_vm14, %v1729_v47, %v1727_v27 }
 0xbf8   :  { %v1731_v32 = vadd.f32 1e-06, %v1730_v17 }
 0xbfa   :  { %7991 = vrcp.f32 %v1731_v32  ;;  %v1743_v62 = vand.u32 2147483648, %v1731_v32  ;;  %v1741_v40 = vand.u32 2147483647, %v1731_v32  ;;  %vm1737_vm6 = vweird.f32 %v1731_v32 }
 0xbfc   :  { %v1744_v45 = vor.u32 1.1754944e-38, %v1743_v62  ;;  %vm1742_vm8 = vcmp.eq.f32.partialorder %v1741_v40, 8.507059e+37 }
 0xc00   :  { %v7992_v24 = vpop.eup %7991 }
 0xc01   :  { %v1733_v35 = vmul.f32 %v7992_v24, %v1731_v32  ;;  %vm1738_vm15 = vweird.f32 %v7992_v24 }
 0xc02   :  { %vm1739_vm7 = vmor %vm1737_vm6, %vm1738_vm15 }
 0xc03   :  { %v1734_v22 = vsub.f32 1.0, %v1733_v35 }
 0xc05   :  { %v1735_v38 = vmul.f32 %v7992_v24, %v1734_v22 }
 0xc07   :  { %v1736_v44 = vadd.f32 %v7992_v24, %v1735_v38 }
 0xc09   :  { %v1740_v48 = vsel %vm1739_vm7, %v7992_v24, %v1736_v44 }
 0xc0a   :  { %v1745_v49 = vsel %vm1742_vm8, %v1744_v45, %v1740_v48 }
 0xc0b   :  { %v1769_v52 = vmul.f32 %v1745_v49, %v1745_v49  ;;  %v1788_v9 = vmul.f32 %v1765_v36, %v1745_v49 }
 0xc0d   :  { %v1770_v14 = vmul.f32 %v1769_v52, %v1768_v51 }
 0xc0f   :  { %v1771_v19 = vadd.f32 1e-05, %v1770_v14 }
 0xc11   :  { %7993 = vrsqrt.f32 %v1771_v19  ;;  %vm1778_vm10 = vweird.f32 %v1771_v19 }
 0xc17   :  { %v7994_v37 = vpop.eup %7993 }
 0xc18   :  { %v1773_v58 = vmul.f32 %v7994_v37, %v1771_v19  ;;  %vm1779_vm9 = vweird.f32 %v7994_v37 }
 0xc19   :  { %vm1780_vm11 = vmor %vm1778_vm10, %vm1779_vm9 }
 0xc1a   :  { %v1774_v61 = vmul.f32 %v7994_v37, %v1773_v58 }
 0xc1c   :  { %v1775_v57 = vmul.f32 0.5, %v1774_v61  ;;  %v9161_v61 = vld [vmem:[%s11705_s3] sm:$0xff] }
 0xc1e   :  { %v1776_v1 = vsub.f32 1.5, %v1775_v57 }
 0xc20   :  { %v1777_v2 = vmul.f32 %v7994_v37, %v1776_v1  ;;  %v8086_v1 = vmov 4  }
 0xc21   :  { %7400 = vset.pattern.permute.xlu0 %v8086_v1 }
 0xc22   :  { %v1781_v63 = vsel %vm1780_vm11, %v7994_v37, %v1777_v2 }
 0xc23   :  { %v1782_v13 = vmul.f32 %v1781_v63, %v1745_v49  ;;  %v1789_v15 = vmul.f32 %v1788_v9, %v1781_v63 }
 0xc25   :  { %v1787_v16 = vmul.f32 %v1785_v11, %v1782_v13  ;;  %v1790_v7 = vmul.f32 %v1789_v15, %v1785_v11 }
 0xc27   :  { %1792 = vrot.lane.b32.xlu0 %v1790_v7, %s8085_s22  ;;  %1798 = vperm.xlu1 %7346, %v1787_v16  }
 0xc99   :  { %v1793_v25 = vpop.permute.xlu0 %1792  ;;  %v1799_v5 = vpop.permute.xlu1 %1798 }
 0xc9a   :  { %v1795_v18 = vsub.f32 %v8910_v43, %v1793_v25  ;;  %v1801_v6 = vmul.f32 %v1799_v5, %v9056_v39  ;;  %v1802_v59 = vmul.f32 %v1799_v5, %v9062_v50  ;;  %v1803_v10 = vmul.f32 %v1799_v5, %v9066_v54 }
 0xc9c   :  { %1806 = vperm.xlu2 %7347, %v1795_v18  }
 0xca4   :  { %7398 = vset.pattern.permute.xlu2 %v8086_v1 }
 0xcf6   :  { %v1807_v20 = vpop.permute.xlu2 %1806 }
 0xcf7   :  { %v1809_v30 = vadd.f32 %v1807_v20, %v1801_v6  ;;  %v1810_v29 = vadd.f32 %v1807_v20, %v1802_v59  ;;  %v1811_v23 = vadd.f32 %v1807_v20, %v1803_v10 }
 0xcf9   :  { %v9100_v42 = vmul.f32 %v1809_v30, %v8176_v3  ;;  %v9103_v47 = vmul.f32 %v1810_v29, %v8178_v4  ;;  %v9106_v43 = vmul.f32 %v1811_v23, %v8190_v8 }
 0xcfb   :  { %1870 = vrot.lane.b32.xlu1 %v9106_v43, %s8074_s11  ;;  %v7353_v39 = vpack.i.bf16 %v9103_v47, %v9100_v42  ;;  %v7373_v36 = vpack.i.bf16 %v9106_v43, %v9100_v42 }
 0xcfd   :  { %7354 = vrot.lane.b32.xlu2 %v7353_v39, %s8073_s1  ;;  %7349 = vrot.lane.b32.xlu0 %v7353_v39, %s8074_s11 }
 0xd05   :  { %1825 = vrot.lane.b32.xlu0 %v9106_v43, %s8073_s1 }
 0xd0d   :  { %7359 = vrot.lane.b32.xlu0 %v7353_v39, %s8075_s14  ;;  %v7039_v39 = vld [vmem:[%s11706_s2 + $0x20] sm:$0xff] }
 0xd57   :  { %v7355_v50 = vpop.permute.xlu2 %7354 }
 0xd58   :  { %v7357_v54 = vunpack.i.h.bf16 %v7355_v50  ;;  %v7356_v53 = vunpack.i.l.bf16 %v7355_v50 }
 0xd5a   :  { %v9119_v27 = vsel %vm288_vm0, %v7356_v53, %v7357_v54 }
 0xd5b   :  { %v7383_v17 = vpack.i.bf16 %v9106_v43, %v9119_v27 }
 0xd5d   :  { %7384 = vrot.lane.b32.xlu0 %v7383_v17, %s8075_s14 }
 0xd6d   :  { %v1871_v60 = vpop.permute.xlu1 %1870 }
 0xd6f   :  { %v7350_v31 = vpop.permute.xlu0 %7349 }
 0xd70   :  { %v7352_v32 = vunpack.i.h.bf16 %v7350_v31  ;;  %v7351_v33 = vunpack.i.l.bf16 %v7350_v31 }
 0xd72   :  { %v1873_v34 = vsel %vm336_vm1, %v7351_v33, %v7352_v32  ;;  %v1874_v24 = vsel %vm336_vm1, %v1871_v60, %v7351_v33  ;;  %v9130_v55 = vsel %vm336_vm1, %v7352_v32, %v1871_v60 }
 0xd73   :  { %v7368_v35 = vpack.i.bf16 %v1874_v24, %v1873_v34  ;;  %v7363_v26 = vpack.i.bf16 %v9130_v55, %v1873_v34 }
 0xd75   :  { %7369 = vrot.lane.b32.xlu2 %v7368_v35, %s8077_s0  ;;  %7364 = vrot.lane.b32.xlu1 %v7363_v26, %s8075_s14  ;;  %v9250_v26 = vld [vmem:[%s11708_s4] sm:$0xff] }
 0xd77   :  { %v1826_v22 = vpop.permute.xlu0 %1825 }
 0xd78   :  { %v1829_v28 = vsel %vm288_vm0, %v1826_v22, %v7356_v53  ;;  %v9139_v62 = vsel %vm288_vm0, %v7357_v54, %v1826_v22 }
 0xd79   :  { %1843 = vrot.lane.b32.xlu0 %v9139_v62, %s8075_s14  ;;  %v7378_v38 = vpack.i.bf16 %v1829_v28, %v1874_v24  ;;  %v7393_v40 = vpack.i.bf16 %v9103_v47, %v9139_v62  ;;  %v7388_v41 = vpack.i.bf16 %v1829_v28, %v9130_v55 }
 0xd7d   :  { %7374 = vrot.lane.b32.xlu2 %v7373_v36, %s8077_s0  ;;  %7379 = vrot.lane.b32.xlu1 %v7378_v38, %s8075_s14 }
 0xd7f   :  { %v7360_v49 = vpop.permute.xlu0 %7359 }
 0xd80   :  { %v7362_v37 = vunpack.i.h.bf16 %v7360_v49  ;;  %v7361_v58 = vunpack.i.l.bf16 %v7360_v49 }
 0xd81   :  { %2168 = vrot.lane.b32.xlu0 %v9250_v26, %s8087_s29 }
 0xd82   :  { %v1864_v13 = vsel %vm308_vm2, %v7361_v58, %v7362_v37 }
 0xd85   :  { %7394 = vrot.lane.b32.xlu2 %v7393_v40, %s8077_s0  ;;  %7389 = vrot.lane.b32.xlu1 %v7388_v41, %s8077_s0 }
 0xd8d   :  { %1832 = vrot.lane.b32.xlu1 %v9119_v27, %s8077_s0  ;;  %1898 = vperm.xlu2 %7398, %v9161_v61  }
 0xd95   :  { %7399 = vset.pattern.permute.xlu2 %v8078_v56 }
 0xdcf   :  { %v7370_v44 = vpop.permute.xlu2 %7369  ;;  %v7385_v15 = vpop.permute.xlu0 %7384 }
 0xdd0   :  { %v7372_v51 = vunpack.i.h.bf16 %v7370_v44  ;;  %v7371_v52 = vunpack.i.l.bf16 %v7370_v44  ;;  %v7386_v25 = vunpack.i.l.bf16 %v7385_v15  ;;  %v7387_v10 = vunpack.i.h.bf16 %v7385_v15 }
 0xdd2   :  { %v1883_v57 = vsel %vm298_vm3, %v7372_v51, %v7371_v52  ;;  %v1865_v53 = vsel %vm308_vm2, %v7387_v10, %v7361_v58  ;;  %v1863_v33 = vsel %vm308_vm2, %v7362_v37, %v7387_v10 }
 0xdd7   :  { %v9156_v19 = vpop.permute.xlu2 %7374 }
 0xdd8   :  { %v7377_v9 = vunpack.i.h.bf16 %v9156_v19  ;;  %v7376_v11 = vunpack.i.l.bf16 %v9156_v19 }
 0xdda   :  { %v1856_v18 = vsel %vm298_vm3, %v7377_v9, %v7376_v11 }
 0xddf   :  { %v7395_v5 = vpop.permute.xlu2 %7394 }
 0xde0   :  { %v7396_v20 = vunpack.i.l.bf16 %v7395_v5  ;;  %v7397_v54 = vunpack.i.h.bf16 %v7395_v5 }
 0xde2   :  { %v1854_v31 = vsel %vm298_vm3, %v7397_v54, %v7377_v9 }
 0xde7   :  { %v7365_v45 = vpop.permute.xlu1 %7364 }
 0xde8   :  { %v7367_v46 = vunpack.i.h.bf16 %v7365_v45  ;;  %v7366_v48 = vunpack.i.l.bf16 %v7365_v45 }
 0xdea   :  { %v1891_v14 = vsel %vm308_vm2, %v7366_v48, %v7367_v46 }
 0xdeb   :  { %1911 = vmatpush.msra.mxu2 %v1891_v14  ;;  %v1844_v32 = vpop.permute.xlu0 %1843 }
 0xded   :  { %1912 = vmatpush.msra.mxu2 %v1873_v34 }
 0xdef   :  { %v7380_v2 = vpop.permute.xlu1 %7379  ;;  %1913 = vmatpush.msra.mxu2 %v1883_v57 }
 0xdf0   :  { %v7381_v63 = vunpack.i.l.bf16 %v7380_v2  ;;  %v7382_v16 = vunpack.i.h.bf16 %v7380_v2 }
 0xdf1   :  { %1914 = vmatpush.msra.mxu2 %v1864_v13 }
 0xdf2   :  { %v1892_v7 = vsel %vm308_vm2, %v7381_v63, %v7366_v48  ;;  %v1846_v6 = vsel %vm308_vm2, %v7382_v16, %v7386_v25  ;;  %v1890_v50 = vsel %vm308_vm2, %v7367_v46, %v7381_v63  ;;  %v1847_v60 = vsel %vm308_vm2, %v1844_v32, %v7382_v16 }
 0xdf3   :  { %1915 = vmatpush.msra.mxu2 %v9100_v42  ;;  %1951 = vmatpush.msra.mxu1 %v1892_v7 }
 0xdf5   :  { %1916 = vmatpush.msra.mxu2 %v1856_v18  ;;  %1952 = vmatpush.msra.mxu1 %v1874_v24 }
 0xdf7   :  { %v7390_v59 = vpop.permute.xlu1 %7389  ;;  %1917 = vmatpush.msra.mxu2 %v1846_v6 }
 0xdf8   :  { %v7392_v30 = vunpack.i.h.bf16 %v7390_v59  ;;  %v7391_v29 = vunpack.i.l.bf16 %v7390_v59 }
 0xdf9   :  { %1918 = vmatpush.msra.mxu2 %v1829_v28 }
 0xdfa   :  { %v1838_v23 = vsel %vm298_vm3, %v7396_v20, %v7392_v30  ;;  %v1881_v42 = vsel %vm298_vm3, %v7391_v29, %v7372_v51  ;;  %v1882_v17 = vsel %vm298_vm3, %v7371_v52, %v7391_v29 }
 0xdfb   :  { %1919 = vmatpush.msra.mxu2 %v1838_v23  ;;  %1953 = vmatpush.msra.mxu1 %v1881_v42 }
 0xdfc   :  { %7040 = vmatmul.msk.f32.vlgmr.msra.gmra.mxu2 %vm365_vm4, %v7039_v39 }
 0xdfd   :  { %1931 = vmatpush.msrb.mxu2 %v1890_v50  ;;  %1954 = vmatpush.msra.mxu1 %v1865_v53 }
 0xdff   :  { %1932 = vmatpush.msrb.mxu2 %v9130_v55  ;;  %1955 = vmatpush.msra.mxu1 %v9106_v43  ;;  %v1833_v34 = vpop.permute.xlu1 %1832  ;;  %v1855_v43 = vsel %vm298_vm3, %v7376_v11, %v7397_v54  ;;  %v1845_v55 = vsel %vm308_vm2, %v7386_v25, %v1844_v32 }
 0xe00   :  { %v1836_v24 = vsel %vm298_vm3, %v1833_v34, %v7396_v20 }
 0xe01   :  { %1933 = vmatpush.msrb.mxu2 %v1882_v17  ;;  %1956 = vmatpush.msra.mxu1 %v1854_v31 }
 0xe03   :  { %1934 = vmatpush.msrb.mxu2 %v1863_v33  ;;  %1957 = vmatpush.msra.mxu1 %v1847_v60 }
 0xe05   :  { %1935 = vmatpush.msrb.mxu2 %v9103_v47  ;;  %1958 = vmatpush.msra.mxu1 %v9139_v62  ;;  %v1837_v47 = vsel %vm298_vm3, %v7392_v30, %v1833_v34 }
 0xe07   :  { %1936 = vmatpush.msrb.mxu2 %v1855_v43  ;;  %1959 = vmatpush.msra.mxu1 %v1836_v24 }
 0xe08   :  { %7042 = vmatmul.msk.f32.vlgmr.msra.gmra.mxu1 %vm365_vm4, %v7039_v39 }
 0xe09   :  { %1937 = vmatpush.msrb.mxu2 %v1845_v55 }
 0xe0b   :  { %1938 = vmatpush.msrb.mxu2 %v9119_v27  ;;  %v1899_v27 = vpop.permute.xlu2 %1898 }
 0xe0d   :  { %1939 = vmatpush.msrb.mxu2 %v1837_v47 }
 0xe0e   :  { %7041 = vmatmul.msk.f32.vlgmr.msrb.gmra.mxu2 %vm365_vm4, %v7039_v39 }
 0xe0f   :  { %2073 = vmatpush.msra.mxu2 %v8076_v21 }
 0xe11   :  { %2074 = vmatpush.msra.mxu2 %v8076_v21 }
 0xe13   :  { %2075 = vmatpush.msra.mxu2 %v8076_v21 }
 0xe15   :  { %2076 = vmatpush.msra.mxu2 %v8076_v21 }
 0xe17   :  { %2077 = vmatpush.msra.mxu2 %v8076_v21 }
 0xe19   :  { %2078 = vmatpush.msra.mxu2 %v8076_v21 }
 0xe1b   :  { %2079 = vmatpush.msra.mxu2 %v8076_v21 }
 0xe1d   :  { %2080 = vmatpush.msra.mxu2 %v8076_v21 }
 0xe1f   :  { %2081 = vmatpush.msra.mxu2 %v8076_v21 }
 0xe21   :  { %2082 = vmatpush.msra.mxu2 %v8076_v21 }
 0xe23   :  { %2083 = vmatpush.msra.mxu2 %v8076_v21 }
 0xe25   :  { %2084 = vmatpush.msra.mxu2 %v8076_v21 }
 0xe27   :  { %2085 = vmatpush.msra.mxu2 %v8076_v21 }
 0xe29   :  { %2086 = vmatpush.msra.mxu2 %v8076_v21 }
 0xe2b   :  { %2087 = vmatpush.msra.mxu2 %v8076_v21 }
 0xe2d   :  { %2088 = vmatpush.msra.mxu2 %v8076_v21 }
 0xe2f   :  { %2434 = vmatpush.msrb.mxu2 %v8076_v21 }
 0xe31   :  { %2435 = vmatpush.msrb.mxu2 %v8076_v21 }
 0xe33   :  { %2436 = vmatpush.msrb.mxu2 %v8076_v21 }
 0xe35   :  { %2437 = vmatpush.msrb.mxu2 %v8076_v21 }
 0xe37   :  { %2438 = vmatpush.msrb.mxu2 %v8076_v21 }
 0xe39   :  { %2439 = vmatpush.msrb.mxu2 %v8076_v21 }
 0xe3b   :  { %2440 = vmatpush.msrb.mxu2 %v8076_v21 }
 0xe3d   :  { %2441 = vmatpush.msrb.mxu2 %v8076_v21 }
 0xe3f   :  { %2442 = vmatpush.msrb.mxu2 %v8076_v21 }
 0xe41   :  { %2443 = vmatpush.msrb.mxu2 %v8076_v21 }
 0xe43   :  { %2444 = vmatpush.msrb.mxu2 %v8076_v21 }
 0xe45   :  { %2445 = vmatpush.msrb.mxu2 %v8076_v21 }
 0xe47   :  { %2446 = vmatpush.msrb.mxu2 %v8076_v21 }
 0xe49   :  { %2447 = vmatpush.msrb.mxu2 %v8076_v21 }
 0xe4b   :  { %2448 = vmatpush.msrb.mxu2 %v8076_v21 }
 0xe4d   :  { %2449 = vmatpush.msrb.mxu2 %v8076_v21 }
 0xe7f   :  { %v1921_v35 = vpop.f32.mrf.mxu2 }
 0xe80   :  { %v1922_v22 = vadd.f32 %v1921_v35, %v1899_v27 }
 0xe82   :  { %v1964_v28 = vmul.f32 %v1922_v22, %v8176_v3 }
 0xe84   :  { %vm1967_vm13 = vcmp.ge.f32.partialorder %v1964_v28, 0.0  ;;  %v1970_v36 = vmul.f32 0.01, %v1964_v28 }
 0xe85   :  { %v1961_v62 = vpop.f32.mrf.mxu1 }
 0xe86   :  { %v1962_v38 = vadd.f32 %v1961_v62, %v1899_v27  ;;  %v9255_v40 = vsel %vm1967_vm13, %v1964_v28, %v1970_v36 }
 0xe87   :  { %2043 = vmatmul.f32.vlgmr.msra.gmra.mxu0 %v9255_v40  ;;  %v1976_v45 = vmul.f32 %v9255_v40, %v9255_v40 }
 0xe88   :  { %v1966_v41 = vmul.f32 %v1962_v38, %v8190_v8 }
 0xe8a   :  { %vm1969_vm14 = vcmp.ge.f32.partialorder %v1966_v41, 0.0  ;;  %v1972_v44 = vmul.f32 0.01, %v1966_v41 }
 0xe8c   :  { %v9261_v46 = vsel %vm1969_vm14, %v1966_v41, %v1972_v44 }
 0xe8d   :  { %2089 = vmatmul.f32.vlgmr.msra.gmra.mxu2 %v9261_v46  ;;  %v1978_v51 = vmul.f32 %v9261_v46, %v9261_v46 }
 0xe8e   :  { %2686 = vmatpush.msra.mxu2 %v8076_v21 }
 0xe8f   :  { %2046 = vmatmul.f32.gmra.mxu0 %v1976_v45 }
 0xe90   :  { %2687 = vmatpush.msra.mxu2 %v8076_v21 }
 0xe91   :  { %v1941_v48 = vpop.f32.mrf.mxu2 }
 0xe92   :  { %v1942_v49 = vadd.f32 %v1941_v48, %v1899_v27  ;;  %2688 = vmatpush.msra.mxu2 %v8076_v21 }
 0xe94   :  { %v1965_v52 = vmul.f32 %v1942_v49, %v8178_v4  ;;  %2689 = vmatpush.msra.mxu2 %v8076_v21 }
 0xe95   :  { %2092 = vmatmul.f32.gmra.mxu2 %v1978_v51 }
 0xe96   :  { %vm1968_vm15 = vcmp.ge.f32.partialorder %v1965_v52, 0.0  ;;  %v1971_v14 = vmul.f32 0.01, %v1965_v52  ;;  %2690 = vmatpush.msra.mxu2 %v8076_v21 }
 0xe98   :  { %v9272_v19 = vsel %vm1968_vm15, %v1965_v52, %v1971_v14  ;;  %2691 = vmatpush.msra.mxu2 %v8076_v21 }
 0xe99   :  { %2066 = vmatmul.f32.vlgmr.msrb.gmra.mxu3 %v9272_v19  ;;  %v1977_v37 = vmul.f32 %v9272_v19, %v9272_v19 }
 0xe9a   :  { %2663 = vmatpush.msrb.mxu3 %v8076_v21  ;;  %2692 = vmatpush.msra.mxu2 %v8076_v21 }
 0xe9c   :  { %2664 = vmatpush.msrb.mxu3 %v8076_v21  ;;  %2693 = vmatpush.msra.mxu2 %v8076_v21 }
 0xe9e   :  { %2665 = vmatpush.msrb.mxu3 %v8076_v21  ;;  %2694 = vmatpush.msra.mxu2 %v8076_v21 }
 0xea0   :  { %2666 = vmatpush.msrb.mxu3 %v8076_v21  ;;  %2695 = vmatpush.msra.mxu2 %v8076_v21 }
 0xea1   :  { %2069 = vmatmul.f32.gmra.mxu3 %v1977_v37 }
 0xea2   :  { %2667 = vmatpush.msrb.mxu3 %v8076_v21  ;;  %2696 = vmatpush.msra.mxu2 %v8076_v21 }
 0xea4   :  { %2668 = vmatpush.msrb.mxu3 %v8076_v21  ;;  %2697 = vmatpush.msra.mxu2 %v8076_v21 }
 0xea6   :  { %2669 = vmatpush.msrb.mxu3 %v8076_v21  ;;  %2698 = vmatpush.msra.mxu2 %v8076_v21 }
 0xea8   :  { %2670 = vmatpush.msrb.mxu3 %v8076_v21  ;;  %2699 = vmatpush.msra.mxu2 %v8076_v21 }
 0xeaa   :  { %2671 = vmatpush.msrb.mxu3 %v8076_v21  ;;  %2700 = vmatpush.msra.mxu2 %v8076_v21 }
 0xeac   :  { %2672 = vmatpush.msrb.mxu3 %v8076_v21  ;;  %2701 = vmatpush.msra.mxu2 %v8076_v21 }
 0xeae   :  { %2673 = vmatpush.msrb.mxu3 %v8076_v21 }
 0xeb0   :  { %2674 = vmatpush.msrb.mxu3 %v8076_v21 }
 0xeb2   :  { %2675 = vmatpush.msrb.mxu3 %v8076_v21 }
 0xeb4   :  { %2676 = vmatpush.msrb.mxu3 %v8076_v21 }
 0xeb6   :  { %2677 = vmatpush.msrb.mxu3 %v8076_v21 }
 0xeb8   :  { %2678 = vmatpush.msrb.mxu3 %v8076_v21 }
 0xf04   :  { %v2044_v58 = vpop.f32.mrf.mxu0 }
 0xf0c   :  { %v2047_v9 = vpop.f32.mrf.mxu0 }
 0xf10   :  { %v2090_v57 = vpop.f32.mrf.mxu2 }
 0xf18   :  { %v2093_v13 = vpop.f32.mrf.mxu2 }
 0xf1c   :  { %v2067_v2 = vpop.f32.mrf.mxu3 }
 0xf1d   :  { %v2068_v29 = vadd.f32 %v2067_v2, %v2044_v58 }
 0xf1f   :  { %v2091_v39 = vadd.f32 %v2090_v57, %v2068_v29 }
 0xf21   :  { %v2134_v17 = vrot.slane %v2091_v39, 4 }
 0xf23   :  { %v2136_v34 = vadd.f32 %v2134_v17, %v2091_v39 }
 0xf24   :  { %v2070_v11 = vpop.f32.mrf.mxu3 }
 0xf25   :  { %v2071_v63 = vadd.f32 %v2070_v11, %v2047_v9  ;;  %v2138_v24 = vrot.slane %v2136_v34, 4 }
 0xf27   :  { %v2094_v15 = vadd.f32 %v2093_v13, %v2071_v63  ;;  %v2140_v35 = vsel %vm226_vm5, %v2136_v34, %v2138_v24 }
 0xf28   :  { %v2149_v41 = vmul.f32 0.001953125, %v2140_v35 }
 0xf29   :  { %v2096_v16 = vsel %vm561_vm12, %v2094_v15, 0.0  ;;  %v2142_v33 = vrot.slane %v2094_v15, 4 }
 0xf2a   :  { %v2097_v7 = vrot.slane %v2096_v16, 4  ;;  %v2151_v51 = vmul.f32 %v2149_v41, %v2149_v41 }
 0xf2b   :  { %v2144_v43 = vadd.f32 %v2142_v33, %v2094_v15 }
 0xf2c   :  { %v2098_v25 = vadd.f32 %v2097_v7, %v2096_v16  ;;  %v2169_v7 = vpop.permute.xlu0 %2168 }
 0xf2d   :  { %v2146_v47 = vrot.slane %v2144_v43, 4 }
 0xf2e   :  { %v2099_v18 = vrot.slane %v2098_v25, 2 }
 0xf2f   :  { %v2148_v28 = vsel %vm226_vm5, %v2144_v43, %v2146_v47 }
 0xf30   :  { %v2100_v5 = vadd.f32 %v2099_v18, %v2098_v25  ;;  %v2150_v44 = vmul.f32 0.001953125, %v2148_v28 }
 0xf32   :  { %v2101_v6 = vrot.slane %v2100_v5, 1  ;;  %v2152_v14 = vsub.f32 %v2150_v44, %v2151_v51 }
 0xf34   :  { %v2102_v59 = vadd.f32 %v2101_v6, %v2100_v5 }
 0xf36   :  { %7995 = vrsqrt.f32 %v2102_v59  ;;  %vm2110_vm6 = vcmp.eq.f32.partialorder %v2102_v59, inf  ;;  %v2113_v53 = vand.u32 2147483648, %v2102_v59  ;;  %vm2112_vm7 = vcmp.eq.f32.partialorder %v2102_v59, 0.0 }
 0xf3c   :  { %v7996_v10 = vpop.eup %7995 }
 0xf3d   :  { %v2104_v20 = vmul.f32 %v7996_v10, %v2102_v59 }
 0xf3f   :  { %v2105_v30 = vmul.f32 %v7996_v10, %v2104_v20 }
 0xf41   :  { %v2106_v23 = vmul.f32 0.5, %v2105_v30 }
 0xf43   :  { %v2107_v42 = vsub.f32 1.5, %v2106_v23 }
 0xf45   :  { %v2108_v50 = vmul.f32 %v7996_v10, %v2107_v42  ;;  %v9311_v10 = vld [vmem:[%s11709_s5] sm:$0xff] }
 0xf47   :  { %v2109_v54 = vmul.f32 %v2108_v50, %v2102_v59 }
 0xf49   :  { %v2111_v31 = vsel %vm2110_vm6, %v2102_v59, %v2109_v54 }
 0xf4a   :  { %v2114_v32 = vsel %vm2112_vm7, %v2113_v53, %v2111_v31 }
 0xf4b   :  { %v2115_v60 = vadd.f32 1e-06, %v2114_v32 }
 0xf4d   :  { %7997 = vrcp.f32 %v2115_v60  ;;  %v2127_v62 = vand.u32 2147483648, %v2115_v60  ;;  %v2125_v38 = vand.u32 2147483647, %v2115_v60  ;;  %vm2121_vm9 = vweird.f32 %v2115_v60 }
 0xf4f   :  { %v2128_v48 = vor.u32 1.1754944e-38, %v2127_v62  ;;  %vm2126_vm11 = vcmp.eq.f32.partialorder %v2125_v38, 8.507059e+37 }
 0xf53   :  { %v7998_v55 = vpop.eup %7997 }
 0xf54   :  { %v2117_v27 = vmul.f32 %v7998_v55, %v2115_v60  ;;  %vm2122_vm8 = vweird.f32 %v7998_v55 }
 0xf55   :  { %vm2123_vm10 = vmor %vm2121_vm9, %vm2122_vm8 }
 0xf56   :  { %v2118_v22 = vsub.f32 1.0, %v2117_v27 }
 0xf58   :  { %v2119_v36 = vmul.f32 %v7998_v55, %v2118_v22 }
 0xf5a   :  { %v2120_v45 = vadd.f32 %v7998_v55, %v2119_v36 }
 0xf5c   :  { %v2124_v49 = vsel %vm2123_vm10, %v7998_v55, %v2120_v45 }
 0xf5d   :  { %v2129_v52 = vsel %vm2126_vm11, %v2128_v48, %v2124_v49 }
 0xf5e   :  { %v2153_v37 = vmul.f32 %v2129_v52, %v2129_v52  ;;  %v2172_v16 = vmul.f32 %v2149_v41, %v2129_v52 }
 0xf60   :  { %v2154_v58 = vmul.f32 %v2153_v37, %v2152_v14 }
 0xf62   :  { %v2155_v57 = vadd.f32 1e-05, %v2154_v58 }
 0xf64   :  { %7999 = vrsqrt.f32 %v2155_v57  ;;  %vm2162_vm14 = vweird.f32 %v2155_v57 }
 0xf6a   :  { %v8000_v2 = vpop.eup %7999 }
 0xf6b   :  { %v2157_v9 = vmul.f32 %v8000_v2, %v2155_v57  ;;  %vm2163_vm13 = vweird.f32 %v8000_v2 }
 0xf6c   :  { %vm2164_vm15 = vmor %vm2162_vm14, %vm2163_vm13 }
 0xf6d   :  { %v2158_v11 = vmul.f32 %v8000_v2, %v2157_v9 }
 0xf6f   :  { %v2159_v63 = vmul.f32 0.5, %v2158_v11 }
 0xf71   :  { %v2160_v13 = vsub.f32 1.5, %v2159_v63 }
 0xf73   :  { %v2161_v15 = vmul.f32 %v8000_v2, %v2160_v13  ;;  %v8089_v13 = vmov 5  }
 0xf74   :  { %7451 = vset.pattern.permute.xlu1 %v8089_v13 }
 0xf75   :  { %v2165_v25 = vsel %vm2164_vm15, %v8000_v2, %v2161_v15 }
 0xf76   :  { %v2166_v18 = vmul.f32 %v2165_v25, %v2129_v52  ;;  %v2173_v5 = vmul.f32 %v2172_v16, %v2165_v25 }
 0xf78   :  { %v2171_v6 = vmul.f32 %v2169_v7, %v2166_v18  ;;  %v2174_v59 = vmul.f32 %v2173_v5, %v2169_v7 }
 0xf7a   :  { %2176 = vrot.lane.b32.xlu1 %v2174_v59, %s8088_s30  ;;  %2182 = vperm.xlu2 %7399, %v2171_v6  }
 0xf82   :  { %7453 = vset.pattern.permute.xlu2 %v8089_v13 }
 0xfd4   :  { %v2183_v29 = vpop.permute.xlu2 %2182 }
 0xfd5   :  { %v2185_v23 = vmul.f32 %v2183_v29, %v9255_v40  ;;  %v2186_v42 = vmul.f32 %v2183_v29, %v9272_v19  ;;  %v2187_v39 = vmul.f32 %v2183_v29, %v9261_v46 }
 0xfec   :  { %v2177_v20 = vpop.permute.xlu1 %2176 }
 0xfed   :  { %v2179_v30 = vsub.f32 %v9311_v10, %v2177_v20 }
 0xfef   :  { %2190 = vperm.xlu0 %7400, %v2179_v30  }
 0xff7   :  { %7549 = vset.pattern.permute.xlu0 %v8083_v0 }
0x1061   :  { %v2191_v50 = vpop.permute.xlu0 %2190 }
0x1062   :  { %v2193_v54 = vadd.f32 %v2191_v50, %v2185_v23  ;;  %v2194_v53 = vadd.f32 %v2191_v50, %v2186_v42  ;;  %v2195_v17 = vadd.f32 %v2191_v50, %v2187_v39 }
0x1064   :  { %v9319_v31 = vmul.f32 %v2193_v54, %v8176_v3  ;;  %v9322_v32 = vmul.f32 %v2194_v53, %v8178_v4  ;;  %v9325_v33 = vmul.f32 %v2195_v17, %v8190_v8 }
0x1066   :  { %2254 = vrot.lane.b32.xlu2 %v9325_v33, %s8074_s11  ;;  %v7401_v0 = vpack.i.bf16 %v9322_v32, %v9319_v31  ;;  %v7421_v35 = vpack.i.bf16 %v9325_v33, %v9322_v32 }
0x1068   :  { %7402 = vrot.lane.b32.xlu1 %v7401_v0, %s8074_s11 }
0x106e   :  { %2209 = vrot.lane.b32.xlu2 %v9325_v33, %s8073_s1 }
0x1070   :  { %7407 = vrot.lane.b32.xlu1 %v7401_v0, %s8073_s1 }
0x10c0   :  { %v2255_v60 = vpop.permute.xlu2 %2254 }
0x10c8   :  { %v2210_v62 = vpop.permute.xlu2 %2209 }
0x10da   :  { %v7403_v40 = vpop.permute.xlu1 %7402 }
0x10db   :  { %v7405_v46 = vunpack.i.h.bf16 %v7403_v40  ;;  %v7404_v19 = vunpack.i.l.bf16 %v7403_v40 }
0x10dd   :  { %v9337_v34 = vsel %vm336_vm1, %v2255_v60, %v7404_v19  ;;  %v2256_v43 = vsel %vm336_vm1, %v7405_v46, %v2255_v60  ;;  %v2257_v24 = vsel %vm336_vm1, %v7404_v19, %v7405_v46 }
0x10de   :  { %v7416_v55 = vpack.i.bf16 %v9319_v31, %v9337_v34  ;;  %v7426_v47 = vpack.i.bf16 %v2256_v43, %v2257_v24 }
0x10e0   :  { %7417 = vrot.lane.b32.xlu1 %v7416_v55, %s8075_s14  ;;  %7427 = vrot.lane.b32.xlu2 %v7426_v47, %s8077_s0 }
0x10e1   :  { %7412 = vrot.lane.b32.xlu0 %v7426_v47, %s8075_s14 }
0x10e2   :  { %v7408_v27 = vpop.permute.xlu1 %7407 }
0x10e3   :  { %v7410_v22 = vunpack.i.h.bf16 %v7408_v27  ;;  %v7409_v28 = vunpack.i.l.bf16 %v7408_v27 }
0x10e5   :  { %v2212_v36 = vsel %vm288_vm0, %v7409_v28, %v7410_v22  ;;  %v2213_v38 = vsel %vm288_vm0, %v2210_v62, %v7409_v28  ;;  %v9359_v44 = vsel %vm288_vm0, %v7410_v22, %v2210_v62 }
0x10e6   :  { %v7446_v41 = vpack.i.bf16 %v2212_v36, %v2213_v38 }
0x10e8   :  { %7422 = vrot.lane.b32.xlu1 %v7421_v35, %s8075_s14  ;;  %7432 = vrot.lane.b32.xlu2 %v7421_v35, %s8077_s0 }
0x10e9   :  { %7437 = vrot.lane.b32.xlu0 %v7416_v55, %s8077_s0 }
0x10f0   :  { %2227 = vrot.lane.b32.xlu1 %v9359_v44, %s8075_s14  ;;  %7447 = vrot.lane.b32.xlu2 %v7446_v41, %s8077_s0 }
0x10f1   :  { %7442 = vrot.lane.b32.xlu0 %v7446_v41, %s8075_s14 }
0x10f8   :  { %2282 = vperm.xlu1 %7451, %v9161_v61   ;;  %2552 = vrot.lane.b32.xlu2 %v9250_v26, %s8090_s15 }
0x10f9   :  { %2218 = vrot.lane.b32.xlu0 %v9359_v44, %s8077_s0 }
0x1100   :  { %7452 = vset.pattern.permute.xlu1 %v8078_v56 }
0x113a   :  { %v9367_v45 = vpop.permute.xlu2 %7427 }
0x113b   :  { %v7430_v37 = vunpack.i.h.bf16 %v9367_v45  ;;  %v7429_v58 = vunpack.i.l.bf16 %v9367_v45 }
0x113d   :  { %v2266_v63 = vsel %vm298_vm3, %v7429_v58, %v7430_v37 }
0x1142   :  { %v9378_v9 = vpop.permute.xlu2 %7432 }
0x1143   :  { %v7434_v20 = vunpack.i.l.bf16 %v9378_v9  ;;  %v7435_v29 = vunpack.i.h.bf16 %v9378_v9 }
0x114a   :  { %v7448_v23 = vpop.permute.xlu2 %7447 }
0x114b   :  { %v7450_v17 = vunpack.i.h.bf16 %v7448_v23 }
0x1152   :  { %v9369_v48 = vpop.permute.xlu1 %7417 }
0x1153   :  { %v7419_v49 = vunpack.i.l.bf16 %v9369_v48  ;;  %v7413_v51 = vpop.permute.xlu0 %7412  ;;  %v7420_v6 = vunpack.i.h.bf16 %v9369_v48 }
0x1154   :  { %v7415_v52 = vunpack.i.h.bf16 %v7413_v51  ;;  %v7414_v14 = vunpack.i.l.bf16 %v7413_v51 }
0x1156   :  { %v2275_v57 = vsel %vm308_vm2, %v7414_v14, %v7415_v52  ;;  %v2274_v2 = vsel %vm308_vm2, %v7415_v52, %v7419_v49 }
0x1157   :  { %2295 = vmatpush.msrb.mxu1 %v2275_v57  ;;  %2315 = vmatpush.msrb.mxu0 %v2274_v2 }
0x1159   :  { %2296 = vmatpush.msrb.mxu1 %v2257_v24  ;;  %2316 = vmatpush.msrb.mxu0 %v2256_v43  ;;  %v2276_v43 = vsel %vm308_vm2, %v7419_v49, %v7414_v14 }
0x115a   :  { %v7423_v11 = vpop.permute.xlu1 %7422 }
0x115b   :  { %v7425_v15 = vunpack.i.h.bf16 %v7423_v11  ;;  %v7424_v16 = vunpack.i.l.bf16 %v7423_v11  ;;  %v7438_v7 = vpop.permute.xlu0 %7437  ;;  %2317 = vmatpush.msrb.mxu0 %v2266_v63 }
0x115c   :  { %v7439_v25 = vunpack.i.l.bf16 %v7438_v7  ;;  %v7440_v18 = vunpack.i.h.bf16 %v7438_v7 }
0x115d   :  { %v2247_v5 = vsel %vm308_vm2, %v7424_v16, %v7425_v15  ;;  %v2248_v30 = vsel %vm308_vm2, %v7420_v6, %v7424_v16  ;;  %v2249_v55 = vsel %vm308_vm2, %v7425_v15, %v7420_v6 }
0x115e   :  { %v2267_v59 = vsel %vm298_vm3, %v7439_v25, %v7429_v58  ;;  %2318 = vmatpush.msrb.mxu0 %v2247_v5  ;;  %v2239_v61 = vsel %vm298_vm3, %v7440_v18, %v7434_v20  ;;  %v2240_v54 = vsel %vm298_vm3, %v7435_v29, %v7440_v18  ;;  %v2265_v24 = vsel %vm298_vm3, %v7430_v37, %v7439_v25 }
0x115f   :  { %2297 = vmatpush.msrb.mxu1 %v2267_v59 }
0x1160   :  { %2319 = vmatpush.msrb.mxu0 %v9322_v32  ;;  %v7449_v32 = vunpack.i.l.bf16 %v7448_v23 }
0x1161   :  { %2298 = vmatpush.msrb.mxu1 %v2248_v30 }
0x1162   :  { %2320 = vmatpush.msrb.mxu0 %v2239_v61  ;;  %v2228_v53 = vpop.permute.xlu1 %2227  ;;  %v2221_v46 = vsel %vm298_vm3, %v7449_v32, %v7450_v17 }
0x1163   :  { %v7443_v42 = vpop.permute.xlu0 %7442  ;;  %2299 = vmatpush.msrb.mxu1 %v9319_v31  ;;  %v7043_v31 = vld [vmem:[%s11706_s2 + $0x28] sm:$0xff] }
0x1164   :  { %v7445_v39 = vunpack.i.h.bf16 %v7443_v42  ;;  %v7444_v50 = vunpack.i.l.bf16 %v7443_v42 }
0x1165   :  { %2300 = vmatpush.msrb.mxu1 %v2240_v54 }
0x1166   :  { %v2230_v0 = vsel %vm308_vm2, %v7444_v50, %v7445_v39  ;;  %v2229_v40 = vsel %vm308_vm2, %v7445_v39, %v2228_v53  ;;  %v2231_v47 = vsel %vm308_vm2, %v2228_v53, %v7444_v50 }
0x1167   :  { %2301 = vmatpush.msrb.mxu1 %v2230_v0  ;;  %2321 = vmatpush.msrb.mxu0 %v2229_v40 }
0x1169   :  { %2302 = vmatpush.msrb.mxu1 %v2213_v38  ;;  %2322 = vmatpush.msrb.mxu0 %v2212_v36 }
0x116b   :  { %v2219_v19 = vpop.permute.xlu0 %2218  ;;  %2323 = vmatpush.msrb.mxu0 %v2221_v46 }
0x116c   :  { %v2222_v60 = vsel %vm298_vm3, %v2219_v19, %v7449_v32  ;;  %7045 = vmatmul.msk.f32.vlgmr.msrb.gmra.mxu0 %vm365_vm4, %v7043_v31  ;;  %v2220_v27 = vsel %vm298_vm3, %v7450_v17, %v2219_v19 }
0x116d   :  { %2303 = vmatpush.msrb.mxu1 %v2222_v60  ;;  %2457 = vmatpush.msra.mxu0 %v8076_v21 }
0x116e   :  { %7044 = vmatmul.msk.f32.vlgmr.msrb.gmra.mxu1 %vm365_vm4, %v7043_v31 }
0x116f   :  { %2335 = vmatpush.msra.mxu1 %v2276_v43  ;;  %2458 = vmatpush.msra.mxu0 %v8076_v21 }
0x1171   :  { %2336 = vmatpush.msra.mxu1 %v9337_v34  ;;  %2459 = vmatpush.msra.mxu0 %v8076_v21  ;;  %v2238_v34 = vsel %vm298_vm3, %v7434_v20, %v7435_v29 }
0x1173   :  { %2337 = vmatpush.msra.mxu1 %v2265_v24  ;;  %2460 = vmatpush.msra.mxu0 %v8076_v21 }
0x1175   :  { %2338 = vmatpush.msra.mxu1 %v2249_v55  ;;  %2461 = vmatpush.msra.mxu0 %v8076_v21 }
0x1177   :  { %2339 = vmatpush.msra.mxu1 %v9325_v33  ;;  %2462 = vmatpush.msra.mxu0 %v8076_v21  ;;  %v2283_v33 = vpop.permute.xlu1 %2282 }
0x1179   :  { %2340 = vmatpush.msra.mxu1 %v2238_v34  ;;  %2463 = vmatpush.msra.mxu0 %v8076_v21 }
0x117b   :  { %2341 = vmatpush.msra.mxu1 %v2231_v47  ;;  %2464 = vmatpush.msra.mxu0 %v8076_v21 }
0x117d   :  { %2342 = vmatpush.msra.mxu1 %v9359_v44  ;;  %2465 = vmatpush.msra.mxu0 %v8076_v21 }
0x117f   :  { %2343 = vmatpush.msra.mxu1 %v2220_v27  ;;  %2466 = vmatpush.msra.mxu0 %v8076_v21 }
0x1180   :  { %7046 = vmatmul.msk.f32.vlgmr.msra.gmra.mxu1 %vm365_vm4, %v7043_v31 }
0x1181   :  { %2640 = vmatpush.msrb.mxu1 %v8076_v21  ;;  %2467 = vmatpush.msra.mxu0 %v8076_v21 }
0x1183   :  { %2641 = vmatpush.msrb.mxu1 %v8076_v21  ;;  %2468 = vmatpush.msra.mxu0 %v8076_v21 }
0x1185   :  { %2642 = vmatpush.msrb.mxu1 %v8076_v21  ;;  %2469 = vmatpush.msra.mxu0 %v8076_v21 }
0x1187   :  { %2643 = vmatpush.msrb.mxu1 %v8076_v21  ;;  %2470 = vmatpush.msra.mxu0 %v8076_v21 }
0x1189   :  { %2644 = vmatpush.msrb.mxu1 %v8076_v21  ;;  %2471 = vmatpush.msra.mxu0 %v8076_v21 }
0x118b   :  { %2645 = vmatpush.msrb.mxu1 %v8076_v21  ;;  %2472 = vmatpush.msra.mxu0 %v8076_v21 }
0x118d   :  { %2646 = vmatpush.msrb.mxu1 %v8076_v21 }
0x118f   :  { %2647 = vmatpush.msrb.mxu1 %v8076_v21 }
0x1191   :  { %2648 = vmatpush.msrb.mxu1 %v8076_v21 }
0x1193   :  { %2649 = vmatpush.msrb.mxu1 %v8076_v21 }
0x1195   :  { %2650 = vmatpush.msrb.mxu1 %v8076_v21 }
0x1197   :  { %2651 = vmatpush.msrb.mxu1 %v8076_v21 }
0x1199   :  { %2652 = vmatpush.msrb.mxu1 %v8076_v21 }
0x119b   :  { %2653 = vmatpush.msrb.mxu1 %v8076_v21 }
0x119d   :  { %2654 = vmatpush.msrb.mxu1 %v8076_v21 }
0x119f   :  { %2655 = vmatpush.msrb.mxu1 %v8076_v21 }
0x11e9   :  { %v2325_v35 = vpop.f32.mrf.mxu0 }
0x11ea   :  { %v2326_v22 = vadd.f32 %v2325_v35, %v2283_v33 }
0x11eb   :  { %v2305_v28 = vpop.f32.mrf.mxu1 }
0x11ec   :  { %v2349_v62 = vmul.f32 %v2326_v22, %v8178_v4  ;;  %v2306_v36 = vadd.f32 %v2305_v28, %v2283_v33 }
0x11ee   :  { %vm2352_vm6 = vcmp.ge.f32.partialorder %v2349_v62, 0.0  ;;  %v2355_v38 = vmul.f32 0.01, %v2349_v62  ;;  %v2348_v41 = vmul.f32 %v2306_v36, %v8176_v3 }
0x11f0   :  { %v9466_v44 = vsel %vm2352_vm6, %v2349_v62, %v2355_v38  ;;  %vm2351_vm7 = vcmp.ge.f32.partialorder %v2348_v41, 0.0  ;;  %v2354_v45 = vmul.f32 0.01, %v2348_v41 }
0x11f1   :  { %2450 = vmatmul.f32.vlgmr.msrb.gmra.mxu2 %v9466_v44  ;;  %v2361_v49 = vmul.f32 %v9466_v44, %v9466_v44 }
0x11f2   :  { %3031 = vmatpush.msrb.mxu2 %v8076_v21  ;;  %v9470_v48 = vsel %vm2351_vm7, %v2348_v41, %v2354_v45 }
0x11f3   :  { %2427 = vmatmul.f32.vlgmr.msra.gmra.mxu3 %v9470_v48  ;;  %v2360_v51 = vmul.f32 %v9470_v48, %v9470_v48 }
0x11f4   :  { %3032 = vmatpush.msrb.mxu2 %v8076_v21 }
0x11f6   :  { %3033 = vmatpush.msrb.mxu2 %v8076_v21 }
0x11f8   :  { %3034 = vmatpush.msrb.mxu2 %v8076_v21 }
0x11f9   :  { %2453 = vmatmul.f32.gmra.mxu2 %v2361_v49 }
0x11fa   :  { %3035 = vmatpush.msrb.mxu2 %v8076_v21 }
0x11fb   :  { %2430 = vmatmul.f32.gmra.mxu3 %v2360_v51 }
0x11fc   :  { %3036 = vmatpush.msrb.mxu2 %v8076_v21 }
0x11fd   :  { %v2345_v52 = vpop.f32.mrf.mxu1 }
0x11fe   :  { %v2346_v14 = vadd.f32 %v2345_v52, %v2283_v33  ;;  %3037 = vmatpush.msrb.mxu2 %v8076_v21 }
0x1200   :  { %v2350_v37 = vmul.f32 %v2346_v14, %v8190_v8  ;;  %3038 = vmatpush.msrb.mxu2 %v8076_v21 }
0x1202   :  { %vm2353_vm8 = vcmp.ge.f32.partialorder %v2350_v37, 0.0  ;;  %v2356_v58 = vmul.f32 0.01, %v2350_v37  ;;  %3039 = vmatpush.msrb.mxu2 %v8076_v21 }
0x1204   :  { %v9487_v57 = vsel %vm2353_vm8, %v2350_v37, %v2356_v58  ;;  %3040 = vmatpush.msrb.mxu2 %v8076_v21 }
0x1205   :  { %2473 = vmatmul.f32.vlgmr.msra.gmra.mxu0 %v9487_v57  ;;  %v2362_v2 = vmul.f32 %v9487_v57, %v9487_v57 }
0x1206   :  { %3041 = vmatpush.msrb.mxu2 %v8076_v21 }
0x1208   :  { %3042 = vmatpush.msrb.mxu2 %v8076_v21 }
0x120a   :  { %3043 = vmatpush.msrb.mxu2 %v8076_v21 }
0x120c   :  { %3044 = vmatpush.msrb.mxu2 %v8076_v21 }
0x120d   :  { %2476 = vmatmul.f32.gmra.mxu0 %v2362_v2 }
0x120e   :  { %3045 = vmatpush.msrb.mxu2 %v8076_v21 }
0x1210   :  { %3046 = vmatpush.msrb.mxu2 %v8076_v21 }
0x1274   :  { %v2451_v9 = vpop.f32.mrf.mxu2 }
0x1276   :  { %v2428_v26 = vpop.f32.mrf.mxu3 }
0x1277   :  { %v2452_v39 = vadd.f32 %v2451_v9, %v2428_v26 }
0x127c   :  { %v2454_v13 = vpop.f32.mrf.mxu2 }
0x127e   :  { %v2431_v63 = vpop.f32.mrf.mxu3 }
0x127f   :  { %v2455_v15 = vadd.f32 %v2454_v13, %v2431_v63 }
0x1282   :  { %v2474_v11 = vpop.f32.mrf.mxu0 }
0x1283   :  { %v2475_v54 = vadd.f32 %v2474_v11, %v2452_v39 }
0x1285   :  { %v2518_v0 = vrot.slane %v2475_v54, 4 }
0x1287   :  { %v2520_v60 = vadd.f32 %v2518_v0, %v2475_v54 }
0x1289   :  { %v2522_v24 = vrot.slane %v2520_v60, 4 }
0x128a   :  { %v2477_v16 = vpop.f32.mrf.mxu0 }
0x128b   :  { %v2478_v7 = vadd.f32 %v2477_v16, %v2455_v15  ;;  %v2524_v27 = vsel %vm226_vm5, %v2520_v60, %v2522_v24 }
0x128c   :  { %v2533_v28 = vmul.f32 0.001953125, %v2524_v27 }
0x128d   :  { %v2480_v25 = vsel %vm561_vm12, %v2478_v7, 0.0  ;;  %v2526_v46 = vrot.slane %v2478_v7, 4 }
0x128e   :  { %v2481_v18 = vrot.slane %v2480_v25, 4  ;;  %v2535_v49 = vmul.f32 %v2533_v28, %v2533_v28 }
0x128f   :  { %v2528_v43 = vadd.f32 %v2526_v46, %v2478_v7  ;;  %v2553_v7 = vpop.permute.xlu2 %2552 }
0x1290   :  { %v2482_v5 = vadd.f32 %v2481_v18, %v2480_v25 }
0x1291   :  { %v2530_v34 = vrot.slane %v2528_v43, 4 }
0x1292   :  { %v2483_v6 = vrot.slane %v2482_v5, 2 }
0x1293   :  { %v2532_v35 = vsel %vm226_vm5, %v2528_v43, %v2530_v34 }
0x1294   :  { %v2484_v59 = vadd.f32 %v2483_v6, %v2482_v5  ;;  %v2534_v38 = vmul.f32 0.001953125, %v2532_v35 }
0x1296   :  { %v2485_v20 = vrot.slane %v2484_v59, 1  ;;  %v2536_v14 = vsub.f32 %v2534_v38, %v2535_v49 }
0x1298   :  { %v2486_v30 = vadd.f32 %v2485_v20, %v2484_v59 }
0x129a   :  { %8001 = vrsqrt.f32 %v2486_v30  ;;  %vm2494_vm9 = vcmp.eq.f32.partialorder %v2486_v30, inf  ;;  %v2497_v32 = vand.u32 2147483648, %v2486_v30  ;;  %vm2496_vm10 = vcmp.eq.f32.partialorder %v2486_v30, 0.0 }
0x12a0   :  { %v8002_v61 = vpop.eup %8001 }
0x12a1   :  { %v2488_v29 = vmul.f32 %v8002_v61, %v2486_v30 }
0x12a3   :  { %v2489_v23 = vmul.f32 %v8002_v61, %v2488_v29 }
0x12a5   :  { %v2490_v42 = vmul.f32 0.5, %v2489_v23 }
0x12a7   :  { %v2491_v50 = vsub.f32 1.5, %v2490_v42 }
0x12a9   :  { %v2492_v53 = vmul.f32 %v8002_v61, %v2491_v50 }
0x12ab   :  { %v2493_v17 = vmul.f32 %v2492_v53, %v2486_v30 }
0x12ad   :  { %v2495_v40 = vsel %vm2494_vm9, %v2486_v30, %v2493_v17 }
0x12ae   :  { %v2498_v31 = vsel %vm2496_vm10, %v2497_v32, %v2495_v40 }
0x12af   :  { %v2499_v19 = vadd.f32 1e-06, %v2498_v31 }
0x12b1   :  { %8003 = vrcp.f32 %v2499_v19  ;;  %v2511_v22 = vand.u32 2147483648, %v2499_v19  ;;  %v2509_v36 = vand.u32 2147483647, %v2499_v19  ;;  %vm2505_vm13 = vweird.f32 %v2499_v19 }
0x12b3   :  { %v2512_v45 = vor.u32 1.1754944e-38, %v2511_v22  ;;  %vm2510_vm15 = vcmp.eq.f32.partialorder %v2509_v36, 8.507059e+37 }
0x12b7   :  { %v8004_v55 = vpop.eup %8003 }
0x12b8   :  { %v2501_v47 = vmul.f32 %v8004_v55, %v2499_v19  ;;  %vm2506_vm11 = vweird.f32 %v8004_v55 }
0x12b9   :  { %vm2507_vm14 = vmor %vm2505_vm13, %vm2506_vm11 }
0x12ba   :  { %v2502_v33 = vsub.f32 1.0, %v2501_v47 }
0x12bc   :  { %v2503_v62 = vmul.f32 %v8004_v55, %v2502_v33 }
0x12be   :  { %v2504_v41 = vadd.f32 %v8004_v55, %v2503_v62 }
0x12c0   :  { %v2508_v51 = vsel %vm2507_vm14, %v8004_v55, %v2504_v41 }
0x12c1   :  { %v2513_v52 = vsel %vm2510_vm15, %v2512_v45, %v2508_v51 }
0x12c2   :  { %v2537_v37 = vmul.f32 %v2513_v52, %v2513_v52  ;;  %v2556_v16 = vmul.f32 %v2533_v28, %v2513_v52 }
0x12c4   :  { %v2538_v58 = vmul.f32 %v2537_v37, %v2536_v14 }
0x12c6   :  { %v2539_v2 = vadd.f32 1e-05, %v2538_v58 }
0x12c8   :  { %8005 = vrsqrt.f32 %v2539_v2  ;;  %vm2546_vm7 = vweird.f32 %v2539_v2 }
0x12ce   :  { %v8006_v26 = vpop.eup %8005 }
0x12cf   :  { %v2541_v9 = vmul.f32 %v8006_v26, %v2539_v2  ;;  %vm2547_vm6 = vweird.f32 %v8006_v26 }
0x12d0   :  { %vm2548_vm8 = vmor %vm2546_vm7, %vm2547_vm6 }
0x12d1   :  { %v2542_v11 = vmul.f32 %v8006_v26, %v2541_v9 }
0x12d3   :  { %v2543_v63 = vmul.f32 0.5, %v2542_v11 }
0x12d5   :  { %v2544_v13 = vsub.f32 1.5, %v2543_v63 }
0x12d7   :  { %v2545_v15 = vmul.f32 %v8006_v26, %v2544_v13  ;;  %v8092_v13 = vmov 6  }
0x12d9   :  { %v2549_v25 = vsel %vm2548_vm8, %v8006_v26, %v2545_v15  ;;  %v9592_v26 = vld [vmem:[%s11705_s3] sm:$0xff] }
0x12da   :  { %v2550_v18 = vmul.f32 %v2549_v25, %v2513_v52  ;;  %v2557_v5 = vmul.f32 %v2556_v16, %v2549_v25 }
0x12dc   :  { %v2555_v6 = vmul.f32 %v2553_v7, %v2550_v18  ;;  %v2558_v59 = vmul.f32 %v2557_v5, %v2553_v7 }
0x12de   :  { %2560 = vrot.lane.b32.xlu0 %v2558_v59, %s8091_s16  ;;  %2566 = vperm.xlu1 %7452, %v2555_v6  }
0x12e6   :  { %7494 = vset.pattern.permute.xlu1 %v8092_v13 }
0x1350   :  { %v2561_v20 = vpop.permute.xlu0 %2560  ;;  %v2567_v61 = vpop.permute.xlu1 %2566 }
0x1351   :  { %v2563_v30 = vsub.f32 %v9311_v10, %v2561_v20  ;;  %v2569_v29 = vmul.f32 %v2567_v61, %v9470_v48  ;;  %v2570_v23 = vmul.f32 %v2567_v61, %v9466_v44  ;;  %v2571_v42 = vmul.f32 %v2567_v61, %v9487_v57 }
0x1353   :  { %2574 = vperm.xlu2 %7453, %v2563_v30  }
0x135b   :  { %7496 = vset.pattern.permute.xlu2 %v8092_v13 }
0x13ad   :  { %v2575_v39 = vpop.permute.xlu2 %2574 }
0x13ae   :  { %v2577_v50 = vadd.f32 %v2575_v39, %v2569_v29  ;;  %v2578_v54 = vadd.f32 %v2575_v39, %v2570_v23  ;;  %v2579_v53 = vadd.f32 %v2575_v39, %v2571_v42 }
0x13b0   :  { %v9507_v17 = vmul.f32 %v2577_v50, %v8176_v3  ;;  %v9510_v32 = vmul.f32 %v2578_v54, %v8178_v4  ;;  %v9513_v10 = vmul.f32 %v2579_v53, %v8190_v8 }
0x13b2   :  { %2828 = vrot.lane.b32.xlu1 %v9513_v10, %s8074_s11  ;;  %2656 = vmatmul.f32.vlgmr.msrb.gmra.mxu1 %v9507_v17  ;;  %v7459_v44 = vpack.i.bf16 %v9510_v32, %v9507_v17  ;;  %v2589_v48 = vmul.f32 %v9507_v17, %v9507_v17  ;;  %v2590_v57 = vmul.f32 %v9510_v32, %v9510_v32 }
0x13b3   :  { %2679 = vmatmul.f32.vlgmr.msrb.gmra.mxu3 %v9510_v32  ;;  %2702 = vmatmul.f32.vlgmr.msra.gmra.mxu2 %v9513_v10  ;;  %v2591_v0 = vmul.f32 %v9513_v10, %v9513_v10  ;;  %v7464_v40 = vpack.i.bf16 %v9513_v10, %v9507_v17  ;;  %v7474_v38 = vpack.i.bf16 %v9513_v10, %v9510_v32 }
0x13b4   :  { %7460 = vrot.lane.b32.xlu2 %v7459_v44, %s8073_s1  ;;  %7455 = vrot.lane.b32.xlu0 %v7459_v44, %s8074_s11 }
0x13b5   :  { %3392 = vmatpush.msra.mxu2 %v8076_v21 }
0x13b7   :  { %3393 = vmatpush.msra.mxu2 %v8076_v21 }
0x13b9   :  { %3394 = vmatpush.msra.mxu2 %v8076_v21 }
0x13ba   :  { %2659 = vmatmul.f32.gmra.mxu1 %v2589_v48 }
0x13bb   :  { %2682 = vmatmul.f32.gmra.mxu3 %v2590_v57  ;;  %2705 = vmatmul.f32.gmra.mxu2 %v2591_v0  ;;  %v7047_v0 = vld [vmem:[%s11706_s2 + $0x30] sm:$0xff] }
0x13bc   :  { %2783 = vrot.lane.b32.xlu0 %v9513_v10, %s8073_s1  ;;  %3395 = vmatpush.msra.mxu2 %v8076_v21 }
0x13be   :  { %3396 = vmatpush.msra.mxu2 %v8076_v21 }
0x13c0   :  { %3397 = vmatpush.msra.mxu2 %v8076_v21 }
0x13c2   :  { %3398 = vmatpush.msra.mxu2 %v8076_v21 }
0x13c4   :  { %7465 = vrot.lane.b32.xlu0 %v7464_v40, %s8075_s14  ;;  %3399 = vmatpush.msra.mxu2 %v8076_v21 }
0x13c6   :  { %3400 = vmatpush.msra.mxu2 %v8076_v21 }
0x13c8   :  { %3401 = vmatpush.msra.mxu2 %v8076_v21 }
0x13ca   :  { %3402 = vmatpush.msra.mxu2 %v8076_v21 }
0x13cc   :  { %3403 = vmatpush.msra.mxu2 %v8076_v21 }
0x13ce   :  { %3404 = vmatpush.msra.mxu2 %v8076_v21 }
0x13d0   :  { %3405 = vmatpush.msra.mxu2 %v8076_v21 }
0x13d2   :  { %3406 = vmatpush.msra.mxu2 %v8076_v21 }
0x13d4   :  { %3407 = vmatpush.msra.mxu2 %v8076_v21 }
0x140e   :  { %v7461_v34 = vpop.permute.xlu2 %7460 }
0x140f   :  { %v7463_v33 = vunpack.i.h.bf16 %v7461_v34  ;;  %v7462_v35 = vunpack.i.l.bf16 %v7461_v34 }
0x1411   :  { %v9575_v41 = vsel %vm288_vm0, %v7462_v35, %v7463_v33 }
0x1424   :  { %v2829_v60 = vpop.permute.xlu1 %2828 }
0x1426   :  { %v7456_v31 = vpop.permute.xlu0 %7455 }
0x1427   :  { %v7458_v46 = vunpack.i.h.bf16 %v7456_v31  ;;  %v7457_v19 = vunpack.i.l.bf16 %v7456_v31 }
0x1429   :  { %v2830_v43 = vsel %vm336_vm1, %v7458_v46, %v2829_v60  ;;  %v2832_v24 = vsel %vm336_vm1, %v2829_v60, %v7457_v19  ;;  %v2831_v55 = vsel %vm336_vm1, %v7457_v19, %v7458_v46 }
0x142a   :  { %v7479_v47 = vpack.i.bf16 %v2832_v24, %v2830_v43  ;;  %v7469_v27 = vpack.i.bf16 %v2832_v24, %v2831_v55  ;;  %v7489_v45 = vpack.i.bf16 %v9575_v41, %v2831_v55 }
0x142c   :  { %7480 = vrot.lane.b32.xlu2 %v7479_v47, %s8077_s0  ;;  %7470 = vrot.lane.b32.xlu1 %v7469_v27, %s8075_s14 }
0x142e   :  { %v2784_v22 = vpop.permute.xlu0 %2783 }
0x142f   :  { %v9561_v28 = vsel %vm288_vm0, %v2784_v22, %v7462_v35  ;;  %v2785_v62 = vsel %vm288_vm0, %v7463_v33, %v2784_v22  ;;  %v9678_v35 = vpop.f32.mrf.mxu1 }
0x1430   :  { %2801 = vrot.lane.b32.xlu0 %v2785_v62, %s8075_s14  ;;  %v7484_v36 = vpack.i.bf16 %v9561_v28, %v2830_v43 }
0x1434   :  { %7485 = vrot.lane.b32.xlu2 %v7484_v36, %s8075_s14  ;;  %7475 = vrot.lane.b32.xlu1 %v7474_v38, %s8077_s0 }
0x1436   :  { %v7466_v52 = vpop.permute.xlu0 %7465  ;;  %v9676_v33 = vpop.f32.mrf.mxu3 }
0x1437   :  { %v7468_v7 = vunpack.i.h.bf16 %v7466_v52  ;;  %v7467_v25 = vunpack.i.l.bf16 %v7466_v52 }
0x1438   :  { %2817 = vrot.lane.b32.xlu0 %v9510_v32, %s8075_s14 }
0x1439   :  { %v2823_v30 = vsel %vm308_vm2, %v7468_v7, %v7467_v25 }
0x143c   :  { %2792 = vrot.lane.b32.xlu2 %v2785_v62, %s8077_s0  ;;  %7490 = vrot.lane.b32.xlu1 %v7489_v45, %s8077_s0 }
0x143e   :  { %v9680_v22 = vpop.f32.mrf.mxu3 }
0x1440   :  { %2788 = vrot.lane.b32.xlu0 %v9561_v28, %s8077_s0 }
0x1444   :  { %2799 = vrot.lane.b32.xlu2 %v9575_v41, %s8075_s14  ;;  %2806 = vrot.lane.b32.xlu1 %v9507_v17, %s8077_s0 }
0x144c   :  { %2856 = vperm.xlu1 %7494, %v9592_v26  }
0x1454   :  { %7495 = vset.pattern.permute.xlu1 %v8078_v56 }
0x1486   :  { %v7481_v49 = vpop.permute.xlu2 %7480 }
0x1487   :  { %v7483_v15 = vunpack.i.h.bf16 %v7481_v49  ;;  %v7482_v16 = vunpack.i.l.bf16 %v7481_v49 }
0x1489   :  { %v2839_v6 = vsel %vm298_vm3, %v7482_v16, %v7483_v15 }
0x148e   :  { %v9586_v51 = vpop.permute.xlu2 %7485 }
0x148f   :  { %v7487_v37 = vunpack.i.l.bf16 %v9586_v51  ;;  %v7488_v61 = vunpack.i.h.bf16 %v9586_v51 }
0x1496   :  { %v2793_v29 = vpop.permute.xlu2 %2792 }
0x149e   :  { %v7471_v14 = vpop.permute.xlu1 %7470  ;;  %v2800_v46 = vpop.permute.xlu2 %2799 }
0x149f   :  { %v7473_v58 = vunpack.i.h.bf16 %v7471_v14  ;;  %v7472_v2 = vunpack.i.l.bf16 %v7471_v14 }
0x14a1   :  { %v2849_v9 = vsel %vm308_vm2, %v7472_v2, %v7487_v37  ;;  %v2848_v11 = vsel %vm308_vm2, %v7487_v37, %v7473_v58  ;;  %v2850_v63 = vsel %vm308_vm2, %v7473_v58, %v7472_v2 }
0x14a2   :  { %2869 = vmatpush.msrb.mxu0 %v2849_v9  ;;  %2889 = vmatpush.msra.mxu1 %v2848_v11  ;;  %v2802_v18 = vpop.permute.xlu0 %2801 }
0x14a3   :  { %2909 = vmatpush.msra.mxu3 %v2850_v63  ;;  %v2805_v39 = vsel %vm308_vm2, %v2802_v18, %v7488_v61  ;;  %v2803_v34 = vsel %vm308_vm2, %v2800_v46, %v2802_v18  ;;  %v9724_v18 = vpop.f32.mrf.mxu2 }
0x14a4   :  { %2870 = vmatpush.msrb.mxu0 %v2831_v55  ;;  %2890 = vmatpush.msra.mxu1 %v2830_v43 }
0x14a5   :  { %2910 = vmatpush.msra.mxu3 %v2832_v24  ;;  %v2804_v24 = vsel %vm308_vm2, %v7488_v61, %v2800_v46 }
0x14a6   :  { %v7476_v5 = vpop.permute.xlu1 %7475 }
0x14a7   :  { %2911 = vmatpush.msra.mxu3 %v2839_v6  ;;  %v7478_v59 = vunpack.i.h.bf16 %v7476_v5  ;;  %v7477_v20 = vunpack.i.l.bf16 %v7476_v5 }
0x14a9   :  { %2912 = vmatpush.msra.mxu3 %v2823_v30  ;;  %v2812_v23 = vsel %vm298_vm3, %v7477_v20, %v7478_v59 }
0x14aa   :  { %v2818_v53 = vpop.permute.xlu0 %2817 }
0x14ab   :  { %2913 = vmatpush.msra.mxu3 %v9513_v10  ;;  %v2822_v40 = vsel %vm308_vm2, %v7467_v25, %v2818_v53  ;;  %v2821_v31 = vsel %vm308_vm2, %v2818_v53, %v7468_v7  ;;  %v9721_v25 = vld [vmem:[%s11708_s4] sm:$0xff]  ;;  %v9726_v5 = vpop.f32.mrf.mxu2 }
0x14ac   :  { %3126 = vrot.lane.b32.xlu2 %v9721_v25, %s8093_s25  ;;  %s8099_s25 = smov 120  }
0x14ad   :  { %2914 = vmatpush.msra.mxu3 %v2812_v23 }
0x14ae   :  { %v7491_v42 = vpop.permute.xlu1 %7490 }
0x14af   :  { %v7493_v50 = vunpack.i.h.bf16 %v7491_v42  ;;  %v7492_v54 = vunpack.i.l.bf16 %v7491_v42  ;;  %2915 = vmatpush.msra.mxu3 %v2805_v39 }
0x14b1   :  { %2916 = vmatpush.msra.mxu3 %v2785_v62  ;;  %v2841_v44 = vsel %vm298_vm3, %v7483_v15, %v7492_v54  ;;  %v2840_v48 = vsel %vm298_vm3, %v7492_v54, %v7482_v16  ;;  %v2794_v57 = vsel %vm298_vm3, %v7493_v50, %v2793_v29 }
0x14b2   :  { %2871 = vmatpush.msrb.mxu0 %v2841_v44  ;;  %2891 = vmatpush.msra.mxu1 %v2840_v48  ;;  %v2789_v55 = vpop.permute.xlu0 %2788 }
0x14b3   :  { %2917 = vmatpush.msra.mxu3 %v2794_v57  ;;  %v2796_v47 = vsel %vm298_vm3, %v2793_v29, %v2789_v55  ;;  %v2795_v27 = vsel %vm298_vm3, %v2789_v55, %v7493_v50 }
0x14b4   :  { %7050 = vmatmul.msk.f32.vlgmr.msra.gmra.mxu3 %vm365_vm4, %v7047_v0  ;;  %2872 = vmatpush.msrb.mxu0 %v2822_v40 }
0x14b5   :  { %2892 = vmatpush.msra.mxu1 %v2821_v31 }
0x14b6   :  { %v2807_v19 = vpop.permute.xlu1 %2806  ;;  %2873 = vmatpush.msrb.mxu0 %v9507_v17 }
0x14b7   :  { %2893 = vmatpush.msra.mxu1 %v9510_v32  ;;  %v2814_v60 = vsel %vm298_vm3, %v7478_v59, %v2807_v19  ;;  %v2813_v43 = vsel %vm298_vm3, %v2807_v19, %v7477_v20 }
0x14b8   :  { %2874 = vmatpush.msrb.mxu0 %v2814_v60 }
0x14b9   :  { %2894 = vmatpush.msra.mxu1 %v2813_v43 }
0x14ba   :  { %2875 = vmatpush.msrb.mxu0 %v2804_v24 }
0x14bb   :  { %2895 = vmatpush.msra.mxu1 %v2803_v34 }
0x14bc   :  { %2876 = vmatpush.msrb.mxu0 %v9561_v28  ;;  %v9682_v28 = vpop.f32.mrf.mxu1 }
0x14bd   :  { %2896 = vmatpush.msra.mxu1 %v9575_v41 }
0x14be   :  { %2877 = vmatpush.msrb.mxu0 %v2796_v47  ;;  %v2857_v62 = vpop.permute.xlu1 %2856 }
0x14bf   :  { %2897 = vmatpush.msra.mxu1 %v2795_v27  ;;  %7048 = vmatmul.msk.f32.vlgmr.msrb.gmra.mxu0 %vm365_vm4, %v7047_v0 }
0x14c0   :  { %7049 = vmatmul.msk.f32.vlgmr.msra.gmra.mxu1 %vm365_vm4, %v7047_v0  ;;  %2985 = vmatpush.msra.mxu0 %v8076_v21 }
0x14c1   :  { %3008 = vmatpush.msrb.mxu1 %v8076_v21 }
0x14c2   :  { %2986 = vmatpush.msra.mxu0 %v8076_v21 }
0x14c3   :  { %3009 = vmatpush.msrb.mxu1 %v8076_v21 }
0x14c4   :  { %2987 = vmatpush.msra.mxu0 %v8076_v21 }
0x14c5   :  { %3010 = vmatpush.msrb.mxu1 %v8076_v21 }
0x14c6   :  { %2988 = vmatpush.msra.mxu0 %v8076_v21 }
0x14c7   :  { %3011 = vmatpush.msrb.mxu1 %v8076_v21 }
0x14c8   :  { %2989 = vmatpush.msra.mxu0 %v8076_v21 }
0x14c9   :  { %3012 = vmatpush.msrb.mxu1 %v8076_v21 }
0x14ca   :  { %2990 = vmatpush.msra.mxu0 %v8076_v21 }
0x14cb   :  { %3013 = vmatpush.msrb.mxu1 %v8076_v21 }
0x14cc   :  { %2991 = vmatpush.msra.mxu0 %v8076_v21 }
0x14cd   :  { %3014 = vmatpush.msrb.mxu1 %v8076_v21 }
0x14ce   :  { %2992 = vmatpush.msra.mxu0 %v8076_v21 }
0x14cf   :  { %3015 = vmatpush.msrb.mxu1 %v8076_v21 }
0x14d0   :  { %2993 = vmatpush.msra.mxu0 %v8076_v21 }
0x14d1   :  { %3016 = vmatpush.msrb.mxu1 %v8076_v21 }
0x14d2   :  { %2994 = vmatpush.msra.mxu0 %v8076_v21 }
0x14d3   :  { %3017 = vmatpush.msrb.mxu1 %v8076_v21 }
0x14d4   :  { %2995 = vmatpush.msra.mxu0 %v8076_v21 }
0x14d5   :  { %3018 = vmatpush.msrb.mxu1 %v8076_v21 }
0x14d6   :  { %2996 = vmatpush.msra.mxu0 %v8076_v21 }
0x14d7   :  { %3019 = vmatpush.msrb.mxu1 %v8076_v21 }
0x14d8   :  { %2997 = vmatpush.msra.mxu0 %v8076_v21 }
0x14d9   :  { %3020 = vmatpush.msrb.mxu1 %v8076_v21 }
0x14da   :  { %2998 = vmatpush.msra.mxu0 %v8076_v21 }
0x14db   :  { %3021 = vmatpush.msrb.mxu1 %v8076_v21 }
0x14dc   :  { %2999 = vmatpush.msra.mxu0 %v8076_v21 }
0x14dd   :  { %3022 = vmatpush.msrb.mxu1 %v8076_v21 }
0x14de   :  { %3000 = vmatpush.msra.mxu0 %v8076_v21 }
0x14df   :  { %3023 = vmatpush.msrb.mxu1 %v8076_v21 }
0x1537   :  { %v2919_v36 = vpop.f32.mrf.mxu3 }
0x1538   :  { %v2920_v38 = vadd.f32 %v2919_v36, %v2857_v62 }
0x153a   :  { %v2924_v41 = vmul.f32 %v2920_v38, %v8190_v8 }
0x153c   :  { %v2879_v45 = vpop.f32.mrf.mxu0  ;;  %vm2927_vm9 = vcmp.ge.f32.partialorder %v2924_v41, 0.0  ;;  %v2930_v49 = vmul.f32 0.01, %v2924_v41 }
0x153d   :  { %v2880_v51 = vadd.f32 %v2879_v45, %v2857_v62  ;;  %v2899_v52 = vpop.f32.mrf.mxu1 }
0x153e   :  { %v2900_v14 = vadd.f32 %v2899_v52, %v2857_v62  ;;  %v9685_v37 = vsel %vm2927_vm9, %v2924_v41, %v2930_v49 }
0x153f   :  { %v2922_v58 = vmul.f32 %v2880_v51, %v8176_v3  ;;  %3047 = vmatmul.f32.vlgmr.msrb.gmra.mxu2 %v9685_v37  ;;  %v2936_v15 = vmul.f32 %v9685_v37, %v9685_v37 }
0x1540   :  { %v2923_v2 = vmul.f32 %v2900_v14, %v8178_v4  ;;  %3650 = vmatpush.msrb.mxu2 %v8076_v21 }
0x1541   :  { %vm2925_vm10 = vcmp.ge.f32.partialorder %v2922_v58, 0.0  ;;  %v2928_v9 = vmul.f32 0.01, %v2922_v58 }
0x1542   :  { %vm2926_vm11 = vcmp.ge.f32.partialorder %v2923_v2, 0.0  ;;  %v2929_v11 = vmul.f32 0.01, %v2923_v2  ;;  %3651 = vmatpush.msrb.mxu2 %v8076_v21 }
0x1543   :  { %v9692_v63 = vsel %vm2925_vm10, %v2922_v58, %v2928_v9 }
0x1544   :  { %3001 = vmatmul.f32.vlgmr.msra.gmra.mxu0 %v9692_v63  ;;  %v9695_v13 = vsel %vm2926_vm11, %v2923_v2, %v2929_v11  ;;  %3652 = vmatpush.msrb.mxu2 %v8076_v21  ;;  %v2934_v16 = vmul.f32 %v9692_v63, %v9692_v63 }
0x1545   :  { %3024 = vmatmul.f32.vlgmr.msrb.gmra.mxu1 %v9695_v13  ;;  %v2935_v7 = vmul.f32 %v9695_v13, %v9695_v13 }
0x1546   :  { %3653 = vmatpush.msrb.mxu2 %v8076_v21 }
0x1547   :  { %3050 = vmatmul.f32.gmra.mxu2 %v2936_v15 }
0x1548   :  { %3654 = vmatpush.msrb.mxu2 %v8076_v21 }
0x154a   :  { %3655 = vmatpush.msrb.mxu2 %v8076_v21 }
0x154c   :  { %3004 = vmatmul.f32.gmra.mxu0 %v2934_v16  ;;  %3656 = vmatpush.msrb.mxu2 %v8076_v21 }
0x154d   :  { %3027 = vmatmul.f32.gmra.mxu1 %v2935_v7 }
0x154e   :  { %3657 = vmatpush.msrb.mxu2 %v8076_v21 }
0x1550   :  { %3658 = vmatpush.msrb.mxu2 %v8076_v21 }
0x1552   :  { %3659 = vmatpush.msrb.mxu2 %v8076_v21 }
0x1554   :  { %3660 = vmatpush.msrb.mxu2 %v8076_v21 }
0x1556   :  { %3661 = vmatpush.msrb.mxu2 %v8076_v21 }
0x1558   :  { %3662 = vmatpush.msrb.mxu2 %v8076_v21 }
0x155a   :  { %3663 = vmatpush.msrb.mxu2 %v8076_v21 }
0x155c   :  { %3664 = vmatpush.msrb.mxu2 %v8076_v21 }
0x155e   :  { %3665 = vmatpush.msrb.mxu2 %v8076_v21 }
0x15c1   :  { %v3002_v6 = vpop.f32.mrf.mxu0 }
0x15c2   :  { %v3025_v59 = vpop.f32.mrf.mxu1  ;;  %v3048_v20 = vpop.f32.mrf.mxu2 }
0x15c3   :  { %v3026_v46 = vadd.f32 %v3025_v59, %v3002_v6 }
0x15c5   :  { %v3049_v43 = vadd.f32 %v3048_v20, %v3026_v46 }
0x15c7   :  { %v3092_v47 = vrot.slane %v3049_v43, 4 }
0x15c9   :  { %v3005_v30 = vpop.f32.mrf.mxu0  ;;  %v3094_v41 = vadd.f32 %v3092_v47, %v3049_v43 }
0x15ca   :  { %v3028_v61 = vpop.f32.mrf.mxu1  ;;  %v3051_v23 = vpop.f32.mrf.mxu2 }
0x15cb   :  { %v3029_v29 = vadd.f32 %v3028_v61, %v3005_v30  ;;  %v3096_v49 = vrot.slane %v3094_v41, 4 }
0x15cd   :  { %v3052_v42 = vadd.f32 %v3051_v23, %v3029_v29  ;;  %v3098_v58 = vsel %vm226_vm5, %v3094_v41, %v3096_v49 }
0x15ce   :  { %v3107_v15 = vmul.f32 0.001953125, %v3098_v58 }
0x15cf   :  { %v3054_v39 = vsel %vm561_vm12, %v3052_v42, 0.0  ;;  %v3100_v36 = vrot.slane %v3052_v42, 4 }
0x15d0   :  { %v3055_v50 = vrot.slane %v3054_v39, 4  ;;  %v3109_v30 = vmul.f32 %v3107_v15, %v3107_v15 }
0x15d1   :  { %v3102_v45 = vadd.f32 %v3100_v36, %v3052_v42 }
0x15d2   :  { %v3056_v54 = vadd.f32 %v3055_v50, %v3054_v39 }
0x15d3   :  { %v3104_v52 = vrot.slane %v3102_v45, 4 }
0x15d4   :  { %v3057_v53 = vrot.slane %v3056_v54, 2 }
0x15d5   :  { %v3106_v9 = vsel %vm226_vm5, %v3102_v45, %v3104_v52 }
0x15d6   :  { %v3058_v44 = vadd.f32 %v3057_v53, %v3056_v54  ;;  %v3108_v6 = vmul.f32 0.001953125, %v3106_v9 }
0x15d8   :  { %v3059_v48 = vrot.slane %v3058_v44, 1  ;;  %v3110_v23 = vsub.f32 %v3108_v6, %v3109_v30 }
0x15da   :  { %v3060_v57 = vadd.f32 %v3059_v48, %v3058_v44 }
0x15dc   :  { %8007 = vrsqrt.f32 %v3060_v57  ;;  %vm3068_vm13 = vcmp.eq.f32.partialorder %v3060_v57, inf  ;;  %v3071_v34 = vand.u32 2147483648, %v3060_v57  ;;  %vm3070_vm14 = vcmp.eq.f32.partialorder %v3060_v57, 0.0 }
0x15e2   :  { %v8008_v0 = vpop.eup %8007 }
0x15e3   :  { %v3062_v40 = vmul.f32 %v8008_v0, %v3060_v57 }
0x15e5   :  { %v3063_v31 = vmul.f32 %v8008_v0, %v3062_v40 }
0x15e7   :  { %v3064_v19 = vmul.f32 0.5, %v3063_v31  ;;  %v3127_v31 = vpop.permute.xlu2 %3126 }
0x15e9   :  { %v3065_v60 = vsub.f32 1.5, %v3064_v19 }
0x15eb   :  { %v3066_v24 = vmul.f32 %v8008_v0, %v3065_v60 }
0x15ed   :  { %v3067_v55 = vmul.f32 %v3066_v24, %v3060_v57 }
0x15ef   :  { %v3069_v27 = vsel %vm3068_vm13, %v3060_v57, %v3067_v55  ;;  %v9734_v55 = vld [vmem:[%s11709_s5] sm:$0xff] }
0x15f0   :  { %v3072_v62 = vsel %vm3070_vm14, %v3071_v34, %v3069_v27 }
0x15f1   :  { %v3073_v38 = vadd.f32 1e-06, %v3072_v62 }
0x15f3   :  { %8009 = vrcp.f32 %v3073_v38  ;;  %v3085_v11 = vand.u32 2147483648, %v3073_v38  ;;  %v3083_v7 = vand.u32 2147483647, %v3073_v38  ;;  %vm3079_vm6 = vweird.f32 %v3073_v38 }
0x15f5   :  { %v3086_v20 = vor.u32 1.1754944e-38, %v3085_v11  ;;  %vm3084_vm8 = vcmp.eq.f32.partialorder %v3083_v7, 8.507059e+37 }
0x15f9   :  { %v8010_v51 = vpop.eup %8009 }
0x15fa   :  { %v3075_v14 = vmul.f32 %v8010_v51, %v3073_v38  ;;  %vm3080_vm15 = vweird.f32 %v8010_v51 }
0x15fb   :  { %vm3081_vm7 = vmor %vm3079_vm6, %vm3080_vm15 }
0x15fc   :  { %v3076_v2 = vsub.f32 1.0, %v3075_v14 }
0x15fe   :  { %v3077_v16 = vmul.f32 %v8010_v51, %v3076_v2 }
0x1600   :  { %v3078_v59 = vadd.f32 %v8010_v51, %v3077_v16 }
0x1602   :  { %v3082_v61 = vsel %vm3081_vm7, %v8010_v51, %v3078_v59 }
0x1603   :  { %v3087_v29 = vsel %vm3084_vm8, %v3086_v20, %v3082_v61 }
0x1604   :  { %v3111_v42 = vmul.f32 %v3087_v29, %v3087_v29  ;;  %v3130_v40 = vmul.f32 %v3107_v15, %v3087_v29 }
0x1606   :  { %v3112_v39 = vmul.f32 %v3111_v42, %v3110_v23 }
0x1608   :  { %v3113_v50 = vadd.f32 1e-05, %v3112_v39 }
0x160a   :  { %8011 = vrsqrt.f32 %v3113_v50  ;;  %vm3120_vm10 = vweird.f32 %v3113_v50 }
0x1610   :  { %v8012_v54 = vpop.eup %8011 }
0x1611   :  { %v3115_v53 = vmul.f32 %v8012_v54, %v3113_v50  ;;  %vm3121_vm9 = vweird.f32 %v8012_v54 }
0x1612   :  { %vm3122_vm11 = vmor %vm3120_vm10, %vm3121_vm9 }
0x1613   :  { %v3116_v44 = vmul.f32 %v8012_v54, %v3115_v53 }
0x1615   :  { %v3117_v48 = vmul.f32 0.5, %v3116_v44 }
0x1617   :  { %v3118_v57 = vsub.f32 1.5, %v3117_v48  ;;  %v2709_v48 = vld [vmem:[%s11707_s6] sm:$0xff] }
0x1619   :  { %v3119_v0 = vmul.f32 %v8012_v54, %v3118_v57  ;;  %v2681_v57 = vadd.f32 %v9676_v33, %v9678_v35 }
0x161b   :  { %v3123_v46 = vsel %vm3122_vm11, %v8012_v54, %v3119_v0  ;;  %v2684_v0 = vadd.f32 %v9680_v22, %v9682_v28  ;;  %v8096_v28 = vmov 7  }
0x161c   :  { %v3124_v19 = vmul.f32 %v3123_v46, %v3087_v29  ;;  %v3131_v60 = vmul.f32 %v3130_v40, %v3123_v46  ;;  %v2704_v40 = vadd.f32 %v9724_v18, %v2681_v57 }
0x161e   :  { %v3129_v43 = vmul.f32 %v3127_v31, %v3124_v19  ;;  %v3132_v24 = vmul.f32 %v3131_v60, %v3127_v31  ;;  %v2707_v31 = vadd.f32 %v9726_v5, %v2684_v0  ;;  %v2712_v46 = vrot.slane %v2704_v40, 4 }
0x1620   :  { %3134 = vrot.lane.b32.xlu0 %v3132_v24, %s8094_s26  ;;  %3140 = vperm.xlu1 %7495, %v3129_v43   ;;  %v2720_v19 = vrot.slane %v2707_v31, 4  ;;  %v2714_v60 = vadd.f32 %v2712_v46, %v2704_v40  ;;  %s8100_s26 = smov 8  }
0x1622   :  { %v2722_v43 = vadd.f32 %v2720_v19, %v2707_v31  ;;  %v2716_v24 = vrot.slane %v2714_v60, 4 }
0x1692   :  { %v3135_v34 = vpop.permute.xlu0 %3134  ;;  %v3141_v27 = vpop.permute.xlu1 %3140 }
0x1693   :  { %v3137_v47 = vsub.f32 %v9734_v55, %v3135_v34  ;;  %v3143_v62 = vmul.f32 %v3141_v27, %v9692_v63  ;;  %v3144_v36 = vmul.f32 %v3141_v27, %v9695_v13  ;;  %v3145_v38 = vmul.f32 %v3141_v27, %v9685_v37 }
0x1694   :  { %v2724_v34 = vrot.slane %v2722_v43, 4 }
0x1695   :  { %3148 = vperm.xlu2 %7496, %v3137_v47   ;;  %v2718_v47 = vsel %vm226_vm5, %v2714_v60, %v2716_v24 }
0x1696   :  { %v9821_v27 = vmul.f32 0.001953125, %v2718_v47 }
0x1698   :  { %v2729_v35 = vmul.f32 %v9821_v27, %v9821_v27 }
0x169d   :  { %7547 = vset.pattern.permute.xlu2 %v8096_v28 }
0x16ef   :  { %v3149_v41 = vpop.permute.xlu2 %3148 }
0x16f0   :  { %v3151_v45 = vadd.f32 %v3149_v41, %v3143_v62  ;;  %v3152_v49 = vadd.f32 %v3149_v41, %v3144_v36  ;;  %v3153_v51 = vadd.f32 %v3149_v41, %v3145_v38 }
0x16f2   :  { %v9741_v52 = vmul.f32 %v3151_v45, %v8176_v3  ;;  %v9744_v14 = vmul.f32 %v3152_v49, %v8178_v4  ;;  %v9747_v58 = vmul.f32 %v3153_v51, %v8190_v8 }
0x16f4   :  { %3212 = vrot.lane.b32.xlu1 %v9747_v58, %s8074_s11  ;;  %v7502_v63 = vpack.i.bf16 %v9744_v14, %v9741_v52  ;;  %v7522_v23 = vpack.i.bf16 %v9747_v58, %v9741_v52 }
0x16f6   :  { %7503 = vrot.lane.b32.xlu2 %v7502_v63, %s8073_s1  ;;  %7498 = vrot.lane.b32.xlu0 %v7502_v63, %s8074_s11 }
0x16fe   :  { %3167 = vrot.lane.b32.xlu0 %v9747_v58, %s8073_s1 }
0x1706   :  { %7508 = vrot.lane.b32.xlu0 %v7502_v63, %s8075_s14 }
0x1750   :  { %v7504_v7 = vpop.permute.xlu2 %7503 }
0x1751   :  { %v7505_v20 = vunpack.i.l.bf16 %v7504_v7  ;;  %v7506_v39 = vunpack.i.h.bf16 %v7504_v7 }
0x1753   :  { %v9791_v50 = vsel %vm288_vm0, %v7505_v20, %v7506_v39 }
0x1754   :  { %v7537_v44 = vpack.i.bf16 %v9747_v58, %v9791_v50 }
0x1766   :  { %v3213_v9 = vpop.permute.xlu1 %3212 }
0x1768   :  { %v7499_v37 = vpop.permute.xlu0 %7498 }
0x1769   :  { %v7501_v13 = vunpack.i.h.bf16 %v7499_v37  ;;  %v7500_v2 = vunpack.i.l.bf16 %v7499_v37 }
0x176b   :  { %v9760_v11 = vsel %vm336_vm1, %v7500_v2, %v7501_v13  ;;  %v9764_v15 = vsel %vm336_vm1, %v3213_v9, %v7500_v2  ;;  %v9768_v16 = vsel %vm336_vm1, %v7501_v13, %v3213_v9 }
0x176c   :  { %v7517_v6 = vpack.i.bf16 %v9764_v15, %v9760_v11  ;;  %v7512_v59 = vpack.i.bf16 %v9768_v16, %v9760_v11 }
0x176e   :  { %7518 = vrot.lane.b32.xlu2 %v7517_v6, %s8077_s0  ;;  %7513 = vrot.lane.b32.xlu1 %v7512_v59, %s8075_s14 }
0x1770   :  { %v3168_v30 = vpop.permute.xlu0 %3167 }
0x1771   :  { %v9778_v61 = vsel %vm288_vm0, %v3168_v30, %v7505_v20  ;;  %v9795_v54 = vsel %vm288_vm0, %v7506_v39, %v3168_v30 }
0x1772   :  { %v7532_v29 = vpack.i.bf16 %v9778_v61, %v9768_v16  ;;  %v7527_v42 = vpack.i.bf16 %v9778_v61, %v9764_v15  ;;  %v7542_v53 = vpack.i.bf16 %v9744_v14, %v9795_v54 }
0x1774   :  { %7533 = vrot.lane.b32.xlu0 %v7532_v29, %s8077_s0 }
0x1776   :  { %7523 = vrot.lane.b32.xlu2 %v7522_v23, %s8077_s0  ;;  %7528 = vrot.lane.b32.xlu1 %v7527_v42, %s8075_s14 }
0x1778   :  { %v7509_v36 = vpop.permute.xlu0 %7508 }
0x1779   :  { %v7511_v2 = vunpack.i.h.bf16 %v7509_v36 }
0x177c   :  { %3185 = vrot.lane.b32.xlu0 %v9795_v54, %s8075_s14 }
0x177e   :  { %7543 = vrot.lane.b32.xlu2 %v7542_v53, %s8077_s0  ;;  %7538 = vrot.lane.b32.xlu1 %v7537_v44, %s8075_s14 }
0x1784   :  { %2743 = vrot.lane.b32.xlu0 %v2709_v48, %s8084_s21  ;;  %s8101_s21 = smov 119  }
0x1786   :  { %3174 = vrot.lane.b32.xlu1 %v9791_v50, %s8077_s0  ;;  %3240 = vperm.xlu2 %7547, %v9592_v26   ;;  %v7510_v26 = vunpack.i.l.bf16 %v7509_v36 }
0x1788   :  { %v3206_v42 = vsel %vm308_vm2, %v7510_v26, %v7511_v2 }
0x178e   :  { %3510 = vrot.lane.b32.xlu1 %v9721_v25, %s8095_s12  ;;  %v2726_v25 = vsel %vm226_vm5, %v2722_v43, %v2724_v34  ;;  %7548 = vset.pattern.permute.xlu2 %v8078_v56 }
0x178f   :  { %v2728_v33 = vmul.f32 0.001953125, %v2726_v25 }
0x1791   :  { %v2730_v22 = vsub.f32 %v2728_v33, %v2729_v35 }
0x1793   :  { %v2731_v18 = vadd.f32 1e-05, %v2730_v22 }
0x1795   :  { %8013 = vrsqrt.f32 %v2731_v18  ;;  %vm2738_vm14 = vweird.f32 %v2731_v18 }
0x179b   :  { %v8014_v5 = vpop.eup %8013 }
0x179c   :  { %v2733_v38 = vmul.f32 %v8014_v5, %v2731_v18  ;;  %vm2739_vm13 = vweird.f32 %v8014_v5  ;;  %v7051_v18 = vld [vmem:[%s11706_s2 + $0x38] sm:$0xff] }
0x179d   :  { %vm2740_vm15 = vmor %vm2738_vm14, %vm2739_vm13 }
0x179e   :  { %v2734_v51 = vmul.f32 %v8014_v5, %v2733_v38 }
0x17a0   :  { %v2735_v6 = vmul.f32 0.5, %v2734_v51 }
0x17a2   :  { %v2736_v39 = vsub.f32 1.5, %v2735_v6 }
0x17a4   :  { %v2737_v0 = vmul.f32 %v8014_v5, %v2736_v39 }
0x17a6   :  { %v2741_v24 = vsel %vm2740_vm15, %v8014_v5, %v2737_v0 }
0x17a7   :  { %v2747_v35 = vmul.f32 %v2741_v24, %v9821_v27 }
0x17c8   :  { %v7519_v62 = vpop.permute.xlu2 %7518 }
0x17c9   :  { %v7521_v63 = vunpack.i.h.bf16 %v7519_v62  ;;  %v7520_v37 = vunpack.i.l.bf16 %v7519_v62 }
0x17cb   :  { %v3225_v59 = vsel %vm298_vm3, %v7521_v63, %v7520_v37 }
0x17d0   :  { %v7524_v9 = vpop.permute.xlu2 %7523 }
0x17d1   :  { %v7526_v30 = vunpack.i.h.bf16 %v7524_v9  ;;  %v7525_v29 = vunpack.i.l.bf16 %v7524_v9 }
0x17d3   :  { %v3198_v48 = vsel %vm298_vm3, %v7526_v30, %v7525_v29 }
0x17d8   :  { %v7544_v40 = vpop.permute.xlu2 %7543 }
0x17d9   :  { %v7545_v33 = vunpack.i.l.bf16 %v7544_v40 }
0x17e0   :  { %v7514_v41 = vpop.permute.xlu1 %7513 }
0x17e1   :  { %v7516_v45 = vunpack.i.h.bf16 %v7514_v41  ;;  %v7515_v49 = vunpack.i.l.bf16 %v7514_v41 }
0x17e3   :  { %v3233_v13 = vsel %vm308_vm2, %v7515_v49, %v7516_v45 }
0x17e4   :  { %3253 = vmatpush.msrb.mxu3 %v3233_v13 }
0x17e6   :  { %v9830_v7 = vpop.permute.xlu0 %7533  ;;  %3254 = vmatpush.msrb.mxu3 %v9760_v11 }
0x17e7   :  { %v7535_v53 = vunpack.i.l.bf16 %v9830_v7  ;;  %v7536_v34 = vunpack.i.h.bf16 %v9830_v7 }
0x17e8   :  { %v7529_v20 = vpop.permute.xlu1 %7528  ;;  %3255 = vmatpush.msrb.mxu3 %v3225_v59 }
0x17e9   :  { %v7530_v23 = vunpack.i.l.bf16 %v7529_v20  ;;  %v3224_v31 = vsel %vm298_vm3, %v7520_v37, %v7535_v53  ;;  %v7531_v19 = vunpack.i.h.bf16 %v7529_v20  ;;  %v3180_v36 = vsel %vm298_vm3, %v7545_v33, %v7536_v34 }
0x17ea   :  { %3256 = vmatpush.msrb.mxu3 %v3206_v42 }
0x17eb   :  { %v3232_v44 = vsel %vm308_vm2, %v7516_v45, %v7530_v23  ;;  %v3234_v11 = vsel %vm308_vm2, %v7530_v23, %v7515_v49 }
0x17ec   :  { %3257 = vmatpush.msrb.mxu3 %v9741_v52  ;;  %3273 = vmatpush.msrb.mxu0 %v3232_v44  ;;  %v3223_v52 = vsel %vm298_vm3, %v7535_v53, %v7521_v63 }
0x17ed   :  { %3293 = vmatpush.msra.mxu1 %v3234_v11 }
0x17ee   :  { %v3186_v57 = vpop.permute.xlu0 %3185  ;;  %3258 = vmatpush.msrb.mxu3 %v3198_v48  ;;  %3274 = vmatpush.msrb.mxu0 %v9768_v16  ;;  %v7546_v16 = vunpack.i.h.bf16 %v7544_v40 }
0x17ef   :  { %3294 = vmatpush.msra.mxu1 %v9764_v15 }
0x17f0   :  { %v7539_v46 = vpop.permute.xlu1 %7538  ;;  %3275 = vmatpush.msrb.mxu0 %v3224_v31  ;;  %v3197_v38 = vsel %vm298_vm3, %v7525_v29, %v7546_v16 }
0x17f1   :  { %v7541_v60 = vunpack.i.h.bf16 %v7539_v46  ;;  %v7540_v43 = vunpack.i.l.bf16 %v7539_v46  ;;  %3295 = vmatpush.msra.mxu1 %v3223_v52 }
0x17f3   :  { %v3188_v15 = vsel %vm308_vm2, %v7531_v19, %v7540_v43  ;;  %v3205_v47 = vsel %vm308_vm2, %v7511_v2, %v7541_v60  ;;  %v3207_v25 = vsel %vm308_vm2, %v7541_v60, %v7510_v26 }
0x17f4   :  { %3259 = vmatpush.msrb.mxu3 %v3188_v15  ;;  %3276 = vmatpush.msrb.mxu0 %v3205_v47 }
0x17f5   :  { %3296 = vmatpush.msra.mxu1 %v3207_v25 }
0x17f6   :  { %v2744_v22 = vpop.permute.xlu0 %2743  ;;  %3260 = vmatpush.msrb.mxu3 %v9778_v61  ;;  %3277 = vmatpush.msrb.mxu0 %v9744_v14  ;;  %v3196_v61 = vsel %vm298_vm3, %v7546_v16, %v7526_v30  ;;  %v3187_v14 = vsel %vm308_vm2, %v7540_v43, %v3186_v57 }
0x17f7   :  { %v2746_v5 = vmul.f32 %v2744_v22, %v2741_v24  ;;  %v2748_v62 = vmul.f32 %v2747_v35, %v2744_v22  ;;  %3297 = vmatpush.msra.mxu1 %v9747_v58  ;;  %v3189_v58 = vsel %vm308_vm2, %v3186_v57, %v7531_v19 }
0x17f8   :  { %3261 = vmatpush.msrb.mxu3 %v3180_v36  ;;  %3278 = vmatpush.msrb.mxu0 %v3197_v38  ;;  %v3175_v27 = vpop.permute.xlu1 %3174 }
0x17f9   :  { %3298 = vmatpush.msra.mxu1 %v3196_v61  ;;  %7052 = vmatmul.msk.f32.vlgmr.msrb.gmra.mxu3 %vm365_vm4, %v7051_v18  ;;  %v3179_v41 = vsel %vm298_vm3, %v7536_v34, %v3175_v27  ;;  %v3178_v45 = vsel %vm298_vm3, %v3175_v27, %v7545_v33 }
0x17fa   :  { %2750 = vrot.lane.b32.xlu2 %v2748_v62, %s8085_s22  ;;  %2756 = vperm.xlu1 %7495, %v2746_v5   ;;  %s8097_s22 = smov 7  }
0x17fb   :  { %3279 = vmatpush.msrb.mxu0 %v3187_v14  ;;  %3299 = vmatpush.msra.mxu1 %v3189_v58 }
0x17fc   :  { %3369 = vmatpush.msra.mxu3 %v8076_v21 }
0x17fd   :  { %3280 = vmatpush.msrb.mxu0 %v9791_v50  ;;  %3300 = vmatpush.msra.mxu1 %v9795_v54  ;;  %v3241_v50 = vpop.permute.xlu2 %3240 }
0x17fe   :  { %3370 = vmatpush.msra.mxu3 %v8076_v21 }
0x17ff   :  { %3281 = vmatpush.msrb.mxu0 %v3179_v41  ;;  %3301 = vmatpush.msra.mxu1 %v3178_v45 }
0x1800   :  { %7053 = vmatmul.msk.f32.vlgmr.msrb.gmra.mxu0 %vm365_vm4, %v7051_v18  ;;  %7054 = vmatmul.msk.f32.vlgmr.msra.gmra.mxu1 %vm365_vm4, %v7051_v18 }
0x1801   :  { %3415 = vmatpush.msra.mxu0 %v8076_v21  ;;  %3371 = vmatpush.msra.mxu3 %v8076_v21 }
0x1802   :  { %7550 = vset.pattern.permute.xlu1 %v8096_v28  ;;  %3604 = vmatpush.msrb.mxu1 %v8076_v21 }
0x1803   :  { %3416 = vmatpush.msra.mxu0 %v8076_v21  ;;  %3372 = vmatpush.msra.mxu3 %v8076_v21 }
0x1804   :  { %3605 = vmatpush.msrb.mxu1 %v8076_v21 }
0x1805   :  { %3417 = vmatpush.msra.mxu0 %v8076_v21  ;;  %3373 = vmatpush.msra.mxu3 %v8076_v21 }
0x1806   :  { %3606 = vmatpush.msrb.mxu1 %v8076_v21 }
0x1807   :  { %3418 = vmatpush.msra.mxu0 %v8076_v21  ;;  %3374 = vmatpush.msra.mxu3 %v8076_v21 }
0x1808   :  { %3607 = vmatpush.msrb.mxu1 %v8076_v21 }
0x1809   :  { %3419 = vmatpush.msra.mxu0 %v8076_v21  ;;  %3375 = vmatpush.msra.mxu3 %v8076_v21 }
0x180a   :  { %3608 = vmatpush.msrb.mxu1 %v8076_v21 }
0x180b   :  { %3420 = vmatpush.msra.mxu0 %v8076_v21  ;;  %3376 = vmatpush.msra.mxu3 %v8076_v21 }
0x180c   :  { %3609 = vmatpush.msrb.mxu1 %v8076_v21 }
0x180d   :  { %3421 = vmatpush.msra.mxu0 %v8076_v21  ;;  %3377 = vmatpush.msra.mxu3 %v8076_v21 }
0x180e   :  { %3610 = vmatpush.msrb.mxu1 %v8076_v21 }
0x180f   :  { %3422 = vmatpush.msra.mxu0 %v8076_v21  ;;  %3378 = vmatpush.msra.mxu3 %v8076_v21 }
0x1810   :  { %3611 = vmatpush.msrb.mxu1 %v8076_v21 }
0x1811   :  { %3423 = vmatpush.msra.mxu0 %v8076_v21  ;;  %3379 = vmatpush.msra.mxu3 %v8076_v21 }
0x1812   :  { %3612 = vmatpush.msrb.mxu1 %v8076_v21 }
0x1813   :  { %3424 = vmatpush.msra.mxu0 %v8076_v21  ;;  %3380 = vmatpush.msra.mxu3 %v8076_v21 }
0x1814   :  { %3613 = vmatpush.msrb.mxu1 %v8076_v21 }
0x1815   :  { %3425 = vmatpush.msra.mxu0 %v8076_v21  ;;  %3381 = vmatpush.msra.mxu3 %v8076_v21 }
0x1816   :  { %3614 = vmatpush.msrb.mxu1 %v8076_v21 }
0x1817   :  { %3426 = vmatpush.msra.mxu0 %v8076_v21  ;;  %3382 = vmatpush.msra.mxu3 %v8076_v21 }
0x1818   :  { %3615 = vmatpush.msrb.mxu1 %v8076_v21 }
0x1819   :  { %3427 = vmatpush.msra.mxu0 %v8076_v21  ;;  %3383 = vmatpush.msra.mxu3 %v8076_v21 }
0x181a   :  { %3616 = vmatpush.msrb.mxu1 %v8076_v21 }
0x181b   :  { %3428 = vmatpush.msra.mxu0 %v8076_v21  ;;  %3384 = vmatpush.msra.mxu3 %v8076_v21 }
0x181c   :  { %3617 = vmatpush.msrb.mxu1 %v8076_v21 }
0x181d   :  { %3627 = vmatpush.msrb.mxu3 %v8076_v21  ;;  %3429 = vmatpush.msra.mxu0 %v8076_v21 }
0x181e   :  { %3618 = vmatpush.msrb.mxu1 %v8076_v21 }
0x181f   :  { %3628 = vmatpush.msrb.mxu3 %v8076_v21  ;;  %3430 = vmatpush.msra.mxu0 %v8076_v21 }
0x1820   :  { %3619 = vmatpush.msrb.mxu1 %v8076_v21 }
0x1821   :  { %3629 = vmatpush.msrb.mxu3 %v8076_v21 }
0x1823   :  { %3630 = vmatpush.msrb.mxu3 %v8076_v21 }
0x1825   :  { %3631 = vmatpush.msrb.mxu3 %v8076_v21 }
0x1827   :  { %3632 = vmatpush.msrb.mxu3 %v8076_v21 }
0x1829   :  { %3633 = vmatpush.msrb.mxu3 %v8076_v21 }
0x182b   :  { %3634 = vmatpush.msrb.mxu3 %v8076_v21 }
0x182d   :  { %3635 = vmatpush.msrb.mxu3 %v8076_v21 }
0x182f   :  { %3636 = vmatpush.msrb.mxu3 %v8076_v21 }
0x1831   :  { %3637 = vmatpush.msrb.mxu3 %v8076_v21 }
0x1833   :  { %3638 = vmatpush.msrb.mxu3 %v8076_v21 }
0x1835   :  { %3639 = vmatpush.msrb.mxu3 %v8076_v21 }
0x1837   :  { %3640 = vmatpush.msrb.mxu3 %v8076_v21 }
0x1839   :  { %3641 = vmatpush.msrb.mxu3 %v8076_v21 }
0x183b   :  { %3642 = vmatpush.msrb.mxu3 %v8076_v21 }
0x187c   :  { %v3263_v54 = vpop.f32.mrf.mxu3 }
0x187d   :  { %v3264_v49 = vadd.f32 %v3263_v54, %v3241_v50  ;;  %v3283_v51 = vpop.f32.mrf.mxu0  ;;  %v3303_v63 = vpop.f32.mrf.mxu1 }
0x187e   :  { %v3284_v37 = vadd.f32 %v3283_v51, %v3241_v50  ;;  %v3304_v13 = vadd.f32 %v3303_v63, %v3241_v50 }
0x187f   :  { %v3306_v2 = vmul.f32 %v3264_v49, %v8176_v3 }
0x1880   :  { %v3307_v26 = vmul.f32 %v3284_v37, %v8178_v4  ;;  %v3308_v9 = vmul.f32 %v3304_v13, %v8190_v8 }
0x1881   :  { %v3312_v7 = vmul.f32 0.01, %v3306_v2  ;;  %vm3309_vm6 = vcmp.ge.f32.partialorder %v3306_v2, 0.0 }
0x1882   :  { %v3313_v6 = vmul.f32 0.01, %v3307_v26  ;;  %v3314_v59 = vmul.f32 0.01, %v3308_v9  ;;  %vm3310_vm7 = vcmp.ge.f32.partialorder %v3307_v26, 0.0  ;;  %vm3311_vm8 = vcmp.ge.f32.partialorder %v3308_v9, 0.0 }
0x1883   :  { %v9953_v20 = vsel %vm3309_vm6, %v3306_v2, %v3312_v7 }
0x1884   :  { %3385 = vmatmul.f32.vlgmr.msra.gmra.mxu3 %v9953_v20  ;;  %v9956_v30 = vsel %vm3310_vm7, %v3307_v26, %v3313_v6  ;;  %v9958_v29 = vsel %vm3311_vm8, %v3308_v9, %v3314_v59  ;;  %v3318_v23 = vmul.f32 %v9953_v20, %v9953_v20 }
0x1885   :  { %3408 = vmatmul.f32.vlgmr.msra.gmra.mxu2 %v9956_v30  ;;  %3431 = vmatmul.f32.vlgmr.msra.gmra.mxu0 %v9958_v29  ;;  %v3319_v42 = vmul.f32 %v9956_v30, %v9956_v30  ;;  %v3320_v39 = vmul.f32 %v9958_v29, %v9958_v29 }
0x1886   :  { %3995 = vmatpush.msra.mxu2 %v8076_v21 }
0x1888   :  { %3996 = vmatpush.msra.mxu2 %v8076_v21 }
0x188a   :  { %3997 = vmatpush.msra.mxu2 %v8076_v21 }
0x188c   :  { %3388 = vmatmul.f32.gmra.mxu3 %v3318_v23  ;;  %3998 = vmatpush.msra.mxu2 %v8076_v21 }
0x188d   :  { %3411 = vmatmul.f32.gmra.mxu2 %v3319_v42  ;;  %3434 = vmatmul.f32.gmra.mxu0 %v3320_v39 }
0x188e   :  { %3999 = vmatpush.msra.mxu2 %v8076_v21 }
0x1890   :  { %4000 = vmatpush.msra.mxu2 %v8076_v21 }
0x1892   :  { %4001 = vmatpush.msra.mxu2 %v8076_v21 }
0x1894   :  { %4002 = vmatpush.msra.mxu2 %v8076_v21 }
0x1896   :  { %4003 = vmatpush.msra.mxu2 %v8076_v21 }
0x1898   :  { %4004 = vmatpush.msra.mxu2 %v8076_v21 }
0x189a   :  { %4005 = vmatpush.msra.mxu2 %v8076_v21 }
0x189c   :  { %4006 = vmatpush.msra.mxu2 %v8076_v21 }
0x189e   :  { %4007 = vmatpush.msra.mxu2 %v8076_v21 }
0x18a0   :  { %4008 = vmatpush.msra.mxu2 %v8076_v21 }
0x18a2   :  { %4009 = vmatpush.msra.mxu2 %v8076_v21 }
0x18a4   :  { %4010 = vmatpush.msra.mxu2 %v8076_v21 }
0x1902   :  { %v3432_v44 = vpop.f32.mrf.mxu0 }
0x1907   :  { %v3386_v53 = vpop.f32.mrf.mxu3 }
0x1908   :  { %v3409_v11 = vpop.f32.mrf.mxu2 }
0x1909   :  { %v3410_v25 = vadd.f32 %v3409_v11, %v3386_v53 }
0x190a   :  { %v3435_v40 = vpop.f32.mrf.mxu0 }
0x190b   :  { %v3433_v22 = vadd.f32 %v3432_v44, %v3410_v25  ;;  %v2751_v25 = vpop.permute.xlu2 %2750 }
0x190d   :  { %v3476_v36 = vrot.slane %v3433_v22, 4 }
0x190f   :  { %v3389_v48 = vpop.f32.mrf.mxu3  ;;  %v3478_v27 = vadd.f32 %v3476_v36, %v3433_v22 }
0x1910   :  { %v3412_v57 = vpop.f32.mrf.mxu2 }
0x1911   :  { %v3413_v0 = vadd.f32 %v3412_v57, %v3389_v48  ;;  %v3480_v45 = vrot.slane %v3478_v27, 4 }
0x1913   :  { %v3436_v31 = vadd.f32 %v3435_v40, %v3413_v0  ;;  %v3482_v51 = vsel %vm226_vm5, %v3478_v27, %v3480_v45 }
0x1914   :  { %v3491_v2 = vmul.f32 0.001953125, %v3482_v51 }
0x1915   :  { %v3438_v46 = vsel %vm561_vm12, %v3436_v31, 0.0  ;;  %v3484_v14 = vrot.slane %v3436_v31, 4 }
0x1916   :  { %v3439_v52 = vrot.slane %v3438_v46, 4  ;;  %v3493_v23 = vmul.f32 %v3491_v2, %v3491_v2 }
0x1917   :  { %v3486_v41 = vadd.f32 %v3484_v14, %v3436_v31 }
0x1918   :  { %v3440_v19 = vadd.f32 %v3439_v52, %v3438_v46 }
0x1919   :  { %v3488_v54 = vrot.slane %v3486_v41, 4 }
0x191a   :  { %v3441_v60 = vrot.slane %v3440_v19, 2 }
0x191b   :  { %v3490_v37 = vsel %vm226_vm5, %v3486_v41, %v3488_v54 }
0x191c   :  { %v3442_v43 = vadd.f32 %v3441_v60, %v3440_v19  ;;  %v3492_v7 = vmul.f32 0.001953125, %v3490_v37 }
0x191e   :  { %v3443_v16 = vrot.slane %v3442_v43, 1  ;;  %v3494_v53 = vsub.f32 %v3492_v7, %v3493_v23 }
0x1920   :  { %v3444_v24 = vadd.f32 %v3443_v16, %v3442_v43 }
0x1922   :  { %8015 = vrsqrt.f32 %v3444_v24  ;;  %vm3452_vm9 = vcmp.eq.f32.partialorder %v3444_v24, inf  ;;  %v3455_v62 = vand.u32 2147483648, %v3444_v24  ;;  %vm3454_vm10 = vcmp.eq.f32.partialorder %v3444_v24, 0.0 }
0x1928   :  { %v8016_v34 = vpop.eup %8015 }
0x1929   :  { %v3446_v15 = vmul.f32 %v8016_v34, %v3444_v24 }
0x192b   :  { %v3447_v47 = vmul.f32 %v8016_v34, %v3446_v15 }
0x192d   :  { %v3448_v33 = vmul.f32 0.5, %v3447_v47  ;;  %v2710_v47 = vld [vmem:[%s11710_s7] sm:$0xff] }
0x192f   :  { %v3449_v35 = vsub.f32 1.5, %v3448_v33  ;;  %v2753_v33 = vsub.f32 %v2710_v47, %v2751_v25 }
0x1931   :  { %v3450_v18 = vmul.f32 %v8016_v34, %v3449_v35 }
0x1933   :  { %v3451_v5 = vmul.f32 %v3450_v18, %v3444_v24 }
0x1935   :  { %v3453_v38 = vsel %vm3452_vm9, %v3444_v24, %v3451_v5  ;;  %v3511_v24 = vpop.permute.xlu1 %3510 }
0x1936   :  { %v3456_v61 = vsel %vm3454_vm10, %v3455_v62, %v3453_v38 }
0x1937   :  { %v3457_v58 = vadd.f32 1e-06, %v3456_v61 }
0x1939   :  { %8017 = vrcp.f32 %v3457_v58  ;;  %v3469_v13 = vand.u32 2147483648, %v3457_v58  ;;  %v3467_v9 = vand.u32 2147483647, %v3457_v58  ;;  %vm3463_vm13 = vweird.f32 %v3457_v58 }
0x193b   :  { %v3470_v59 = vor.u32 1.1754944e-38, %v3469_v13  ;;  %vm3468_vm15 = vcmp.eq.f32.partialorder %v3467_v9, 8.507059e+37 }
0x193d   :  { %v2757_v18 = vpop.permute.xlu1 %2756 }
0x193e   :  { %v2759_v62 = vmul.f32 %v2757_v18, %v9507_v17  ;;  %v2760_v36 = vmul.f32 %v2757_v18, %v9510_v32  ;;  %v2761_v61 = vmul.f32 %v2757_v18, %v9513_v10 }
0x193f   :  { %v8018_v50 = vpop.eup %8017 }
0x1940   :  { %v3459_v49 = vmul.f32 %v8018_v50, %v3457_v58  ;;  %vm3464_vm11 = vweird.f32 %v8018_v50 }
0x1941   :  { %vm3465_vm14 = vmor %vm3463_vm13, %vm3464_vm11 }
0x1942   :  { %v3460_v63 = vsub.f32 1.0, %v3459_v49 }
0x1944   :  { %v3461_v26 = vmul.f32 %v8018_v50, %v3460_v63 }
0x1946   :  { %v3462_v6 = vadd.f32 %v8018_v50, %v3461_v26 }
0x1948   :  { %v3466_v42 = vsel %vm3465_vm14, %v8018_v50, %v3462_v6 }
0x1949   :  { %v3471_v39 = vsel %vm3468_vm15, %v3470_v59, %v3466_v42 }
0x194a   :  { %v3495_v44 = vmul.f32 %v3471_v39, %v3471_v39  ;;  %v3514_v19 = vmul.f32 %v3491_v2, %v3471_v39 }
0x194c   :  { %v3496_v11 = vmul.f32 %v3495_v44, %v3494_v53 }
0x194e   :  { %v3497_v48 = vadd.f32 1e-05, %v3496_v11 }
0x1950   :  { %8019 = vrsqrt.f32 %v3497_v48  ;;  %vm3504_vm7 = vweird.f32 %v3497_v48 }
0x1956   :  { %v8020_v57 = vpop.eup %8019 }
0x1957   :  { %v3499_v0 = vmul.f32 %v8020_v57, %v3497_v48  ;;  %vm3505_vm6 = vweird.f32 %v8020_v57 }
0x1958   :  { %vm3506_vm8 = vmor %vm3504_vm7, %vm3505_vm6 }
0x1959   :  { %v3500_v40 = vmul.f32 %v8020_v57, %v3499_v0 }
0x195b   :  { %v3501_v31 = vmul.f32 0.5, %v3500_v40 }
0x195d   :  { %v3502_v46 = vsub.f32 1.5, %v3501_v31 }
0x195f   :  { %v3503_v52 = vmul.f32 %v8020_v57, %v3502_v46 }
0x1961   :  { %v3507_v60 = vsel %vm3506_vm8, %v8020_v57, %v3503_v52 }
0x1962   :  { %v3515_v43 = vmul.f32 %v3514_v19, %v3507_v60  ;;  %v3508_v16 = vmul.f32 %v3507_v60, %v3471_v39 }
0x1964   :  { %v3516_v34 = vmul.f32 %v3515_v43, %v3511_v24  ;;  %v3513_v15 = vmul.f32 %v3511_v24, %v3508_v16 }
0x1966   :  { %3518 = vrot.lane.b32.xlu0 %v3516_v34, %s8097_s22  ;;  %3524 = vperm.xlu2 %7548, %v3513_v15  }
0x196e   :  { %2764 = vperm.xlu0 %7549, %v2753_v33  }
0x1976   :  { %7646 = vset.pattern.permute.xlu0 %v8086_v1 }
0x19c0   :  { %v3525_v38 = vpop.permute.xlu2 %3524 }
0x19c1   :  { %v3527_v27 = vmul.f32 %v3525_v38, %v9953_v20  ;;  %v3528_v41 = vmul.f32 %v3525_v38, %v9956_v30  ;;  %v3529_v1 = vmul.f32 %v3525_v38, %v9958_v29  ;;  %v10094_v38 = vld [vmem:[%s11705_s3] sm:$0xff] }
0x19d8   :  { %v3519_v35 = vpop.permute.xlu0 %3518 }
0x19d9   :  { %v3521_v22 = vsub.f32 %v9734_v55, %v3519_v35 }
0x19db   :  { %3532 = vperm.xlu1 %7550, %v3521_v22  }
0x19e0   :  { %v2765_v5 = vpop.permute.xlu0 %2764 }
0x19e1   :  { %v2767_v14 = vadd.f32 %v2765_v5, %v2759_v62  ;;  %v2768_v58 = vadd.f32 %v2765_v5, %v2760_v36  ;;  %v2769_v45 = vadd.f32 %v2765_v5, %v2761_v61 }
0x19e3   :  { %v2770_v17 = vmul.f32 %v2767_v14, %v8176_v3  ;;  %v2771_v32 = vmul.f32 %v2768_v58, %v8178_v4  ;;  %v2772_v51 = vmul.f32 %v2769_v45, %v8190_v8 }
0x1a4d   :  { %v3533_v55 = vpop.permute.xlu1 %3532 }
0x1a4e   :  { %v3535_v50 = vadd.f32 %v3533_v55, %v3527_v27  ;;  %v3536_v54 = vadd.f32 %v3533_v55, %v3528_v41  ;;  %v3537_v49 = vadd.f32 %v3533_v55, %v3529_v1  ;;  %v8098_v27 = vmov 8  }
0x1a4f   :  { %7591 = vset.pattern.permute.xlu1 %v8098_v27  ;;  %7593 = vset.pattern.permute.xlu2 %v8098_v27 }
0x1a50   :  { %v3538_v10 = vmul.f32 %v3535_v50, %v8176_v3  ;;  %v3539_v63 = vmul.f32 %v3536_v54, %v8178_v4  ;;  %v3540_v20 = vmul.f32 %v3537_v49, %v8190_v8 }
0x1a52   :  { %v10005_v30 = vadd.f32 %v3538_v10, %v2770_v17  ;;  %v10007_v29 = vadd.f32 %v3539_v63, %v2771_v32  ;;  %v10009_v37 = vadd.f32 %v3540_v20, %v2772_v51 }
0x1a54   :  { %3747 = vrot.lane.b32.xlu0 %v10009_v37, %s8073_s1  ;;  %3792 = vrot.lane.b32.xlu1 %v10009_v37, %s8074_s11  ;;  %v7551_v13 = vpack.i.bf16 %v10007_v29, %v10005_v30  ;;  %v7561_v2 = vpack.i.bf16 %v10009_v37, %v10005_v30  ;;  %v3554_v26 = vmul.f32 %v10007_v29, %v10007_v29 }
0x1a55   :  { %3620 = vmatmul.f32.vlgmr.msrb.gmra.mxu1 %v10005_v30  ;;  %3643 = vmatmul.f32.vlgmr.msrb.gmra.mxu3 %v10007_v29  ;;  %v3553_v9 = vmul.f32 %v10005_v30, %v10005_v30  ;;  %v3555_v7 = vmul.f32 %v10009_v37, %v10009_v37  ;;  %v7571_v60 = vpack.i.bf16 %v10009_v37, %v10007_v29 }
0x1a56   :  { %3666 = vmatmul.f32.vlgmr.msrb.gmra.mxu2 %v10009_v37  ;;  %7552 = vrot.lane.b32.xlu2 %v7551_v13, %s8074_s11 }
0x1a57   :  { %4333 = vmatpush.msrb.mxu2 %v8076_v21 }
0x1a59   :  { %4334 = vmatpush.msrb.mxu2 %v8076_v21 }
0x1a5b   :  { %4335 = vmatpush.msrb.mxu2 %v8076_v21 }
0x1a5c   :  { %7562 = vrot.lane.b32.xlu0 %v7561_v2, %s8075_s14 }
0x1a5d   :  { %3646 = vmatmul.f32.gmra.mxu3 %v3554_v26  ;;  %3623 = vmatmul.f32.gmra.mxu1 %v3553_v9 }
0x1a5e   :  { %3669 = vmatmul.f32.gmra.mxu2 %v3555_v7  ;;  %7557 = vrot.lane.b32.xlu2 %v7551_v13, %s8073_s1 }
0x1a5f   :  { %4336 = vmatpush.msrb.mxu2 %v8076_v21 }
0x1a61   :  { %4337 = vmatpush.msrb.mxu2 %v8076_v21 }
0x1a63   :  { %4338 = vmatpush.msrb.mxu2 %v8076_v21 }
0x1a65   :  { %4339 = vmatpush.msrb.mxu2 %v8076_v21 }
0x1a67   :  { %4340 = vmatpush.msrb.mxu2 %v8076_v21 }
0x1a69   :  { %4341 = vmatpush.msrb.mxu2 %v8076_v21 }
0x1a6b   :  { %4342 = vmatpush.msrb.mxu2 %v8076_v21 }
0x1a6d   :  { %4343 = vmatpush.msrb.mxu2 %v8076_v21 }
0x1a6f   :  { %4344 = vmatpush.msrb.mxu2 %v8076_v21 }
0x1a71   :  { %4345 = vmatpush.msrb.mxu2 %v8076_v21 }
0x1a73   :  { %4346 = vmatpush.msrb.mxu2 %v8076_v21 }
0x1a75   :  { %4347 = vmatpush.msrb.mxu2 %v8076_v21 }
0x1a77   :  { %4348 = vmatpush.msrb.mxu2 %v8076_v21 }
0x1ab0   :  { %v7553_v6 = vpop.permute.xlu2 %7552 }
0x1ab1   :  { %v7555_v23 = vunpack.i.h.bf16 %v7553_v6  ;;  %v7554_v42 = vunpack.i.l.bf16 %v7553_v6 }
0x1ab3   :  { %v3795_v57 = vsel %vm336_vm1, %v7554_v42, %v7555_v23 }
0x1ab8   :  { %v7558_v59 = vpop.permute.xlu2 %7557 }
0x1ab9   :  { %v7560_v39 = vunpack.i.h.bf16 %v7558_v59  ;;  %v7559_v46 = vunpack.i.l.bf16 %v7558_v59 }
0x1abb   :  { %v10074_v43 = vsel %vm288_vm0, %v7559_v46, %v7560_v39 }
0x1abc   :  { %v7586_v34 = vpack.i.bf16 %v10074_v43, %v3795_v57 }
0x1ac6   :  { %v3748_v53 = vpop.permute.xlu0 %3747  ;;  %v3793_v44 = vpop.permute.xlu1 %3792 }
0x1ac7   :  { %v3794_v11 = vsel %vm336_vm1, %v7555_v23, %v3793_v44  ;;  %v3796_v48 = vsel %vm336_vm1, %v3793_v44, %v7554_v42  ;;  %v10055_v0 = vsel %vm288_vm0, %v7560_v39, %v3748_v53  ;;  %v10063_v52 = vsel %vm288_vm0, %v3748_v53, %v7559_v46  ;;  %v7055_v42 = vld [vmem:[%s11706_s2 + $0x40] sm:$0xff] }
0x1ac8   :  { %v7576_v40 = vpack.i.bf16 %v3796_v48, %v3794_v11  ;;  %v7566_v31 = vpack.i.bf16 %v3796_v48, %v3795_v57  ;;  %3765 = vrot.lane.b32.xlu0 %v10055_v0, %s8075_s14  ;;  %v7581_v19 = vpack.i.bf16 %v10063_v52, %v3794_v11 }
0x1aca   :  { %7577 = vrot.lane.b32.xlu2 %v7576_v40, %s8077_s0  ;;  %7567 = vrot.lane.b32.xlu1 %v7566_v31, %s8075_s14 }
0x1ace   :  { %v7563_v22 = vpop.permute.xlu0 %7562 }
0x1acf   :  { %v7565_v45 = vunpack.i.h.bf16 %v7563_v22  ;;  %v7564_v55 = vunpack.i.l.bf16 %v7563_v22 }
0x1ad0   :  { %3781 = vrot.lane.b32.xlu0 %v10007_v29, %s8075_s14 }
0x1ad1   :  { %v3787_v51 = vsel %vm308_vm2, %v7565_v45, %v7564_v55 }
0x1ad2   :  { %7582 = vrot.lane.b32.xlu2 %v7581_v19, %s8075_s14  ;;  %7572 = vrot.lane.b32.xlu1 %v7571_v60, %s8077_s0  ;;  %v3621_v16 = vpop.f32.mrf.mxu1 }
0x1ad8   :  { %v3644_v24 = vpop.f32.mrf.mxu3  ;;  %3752 = vrot.lane.b32.xlu0 %v10063_v52, %s8077_s0 }
0x1ad9   :  { %v3645_v15 = vadd.f32 %v3644_v24, %v3621_v16  ;;  %v3667_v47 = vpop.f32.mrf.mxu2 }
0x1ada   :  { %3756 = vrot.lane.b32.xlu2 %v10055_v0, %s8077_s0  ;;  %7587 = vrot.lane.b32.xlu1 %v7586_v34, %s8077_s0  ;;  %v10181_v60 = vpop.f32.mrf.mxu1 }
0x1adb   :  { %v10082_v25 = vadd.f32 %v3667_v47, %v3645_v15 }
0x1ae2   :  { %3763 = vrot.lane.b32.xlu2 %v10074_v43, %s8075_s14  ;;  %3770 = vrot.lane.b32.xlu1 %v10005_v30, %s8077_s0 }
0x1aea   :  { %3820 = vperm.xlu1 %7591, %v10094_v38  }
0x1af2   :  { %7592 = vset.pattern.permute.xlu1 %v8078_v56 }
0x1b24   :  { %v7578_v33 = vpop.permute.xlu2 %7577 }
0x1b25   :  { %v7580_v41 = vunpack.i.h.bf16 %v7578_v33  ;;  %v7579_v1 = vunpack.i.l.bf16 %v7578_v33 }
0x1b27   :  { %v3803_v49 = vsel %vm298_vm3, %v7579_v1, %v7580_v41 }
0x1b2c   :  { %v10088_v35 = vpop.permute.xlu2 %7582 }
0x1b2d   :  { %v7584_v5 = vunpack.i.l.bf16 %v10088_v35  ;;  %v7585_v10 = vunpack.i.h.bf16 %v10088_v35 }
0x1b34   :  { %v3757_v63 = vpop.permute.xlu2 %3756 }
0x1b3a   :  { %v3766_v50 = vpop.permute.xlu0 %3765 }
0x1b3b   :  { %v3769_v2 = vsel %vm308_vm2, %v3766_v50, %v7585_v10 }
0x1b3c   :  { %v7568_v18 = vpop.permute.xlu1 %7567  ;;  %v3764_v44 = vpop.permute.xlu2 %3763 }
0x1b3d   :  { %v7570_v62 = vunpack.i.h.bf16 %v7568_v18  ;;  %v7569_v36 = vunpack.i.l.bf16 %v7568_v18  ;;  %v3767_v31 = vsel %vm308_vm2, %v3764_v44, %v3766_v50 }
0x1b3f   :  { %v3813_v61 = vsel %vm308_vm2, %v7569_v36, %v7584_v5  ;;  %v3812_v14 = vsel %vm308_vm2, %v7584_v5, %v7570_v62  ;;  %v3814_v58 = vsel %vm308_vm2, %v7570_v62, %v7569_v36 }
0x1b40   :  { %3833 = vmatpush.msrb.mxu0 %v3813_v61  ;;  %3853 = vmatpush.msra.mxu1 %v3812_v14 }
0x1b41   :  { %3873 = vmatpush.msra.mxu3 %v3814_v58 }
0x1b42   :  { %3834 = vmatpush.msrb.mxu0 %v3795_v57  ;;  %3854 = vmatpush.msra.mxu1 %v3794_v11  ;;  %v3782_v7 = vpop.permute.xlu0 %3781 }
0x1b43   :  { %3874 = vmatpush.msra.mxu3 %v3796_v48  ;;  %v3786_v39 = vsel %vm308_vm2, %v7564_v55, %v3782_v7  ;;  %v3785_v53 = vsel %vm308_vm2, %v3782_v7, %v7565_v45  ;;  %v10204_v45 = vld [vmem:[%s11708_s4] sm:$0xff]  ;;  %v10207_v55 = vpop.f32.mrf.mxu2 }
0x1b44   :  { %v7573_v54 = vpop.permute.xlu1 %7572  ;;  %4090 = vrot.lane.b32.xlu2 %v10204_v45, %s8099_s25  ;;  %s8105_s25 = smov 118  }
0x1b45   :  { %3875 = vmatpush.msra.mxu3 %v3803_v49  ;;  %v7575_v17 = vunpack.i.h.bf16 %v7573_v54  ;;  %v7574_v32 = vunpack.i.l.bf16 %v7573_v54 }
0x1b47   :  { %3876 = vmatpush.msra.mxu3 %v3787_v51  ;;  %v3776_v20 = vsel %vm298_vm3, %v7574_v32, %v7575_v17 }
0x1b49   :  { %3877 = vmatpush.msra.mxu3 %v10009_v37 }
0x1b4a   :  { %v3753_v40 = vpop.permute.xlu0 %3752 }
0x1b4b   :  { %3878 = vmatpush.msra.mxu3 %v3776_v20  ;;  %v3760_v46 = vsel %vm298_vm3, %v3757_v63, %v3753_v40 }
0x1b4c   :  { %v7588_v13 = vpop.permute.xlu1 %7587 }
0x1b4d   :  { %v7590_v26 = vunpack.i.h.bf16 %v7588_v13  ;;  %v7589_v9 = vunpack.i.l.bf16 %v7588_v13  ;;  %3879 = vmatpush.msra.mxu3 %v3769_v2 }
0x1b4f   :  { %3880 = vmatpush.msra.mxu3 %v10055_v0  ;;  %v3805_v6 = vsel %vm298_vm3, %v7580_v41, %v7589_v9  ;;  %v3804_v59 = vsel %vm298_vm3, %v7589_v9, %v7579_v1  ;;  %v3758_v23 = vsel %vm298_vm3, %v7590_v26, %v3757_v63  ;;  %v3768_v0 = vsel %vm308_vm2, %v7585_v10, %v3764_v44 }
0x1b50   :  { %3835 = vmatpush.msrb.mxu0 %v3805_v6  ;;  %3855 = vmatpush.msra.mxu1 %v3804_v59  ;;  %v3759_v19 = vsel %vm298_vm3, %v3753_v40, %v7590_v26 }
0x1b51   :  { %3881 = vmatpush.msra.mxu3 %v3758_v23 }
0x1b52   :  { %7058 = vmatmul.msk.f32.vlgmr.msra.gmra.mxu3 %vm365_vm4, %v7055_v42  ;;  %3836 = vmatpush.msrb.mxu0 %v3786_v39 }
0x1b53   :  { %3856 = vmatpush.msra.mxu1 %v3785_v53 }
0x1b54   :  { %v3771_v11 = vpop.permute.xlu1 %3770  ;;  %3837 = vmatpush.msrb.mxu0 %v10005_v30 }
0x1b55   :  { %3857 = vmatpush.msra.mxu1 %v10007_v29  ;;  %v3778_v48 = vsel %vm298_vm3, %v7575_v17, %v3771_v11  ;;  %v3777_v57 = vsel %vm298_vm3, %v3771_v11, %v7574_v32 }
0x1b56   :  { %3838 = vmatpush.msrb.mxu0 %v3778_v48 }
0x1b57   :  { %3858 = vmatpush.msra.mxu1 %v3777_v57 }
0x1b58   :  { %3839 = vmatpush.msrb.mxu0 %v3768_v0 }
0x1b59   :  { %3859 = vmatpush.msra.mxu1 %v3767_v31 }
0x1b5a   :  { %3840 = vmatpush.msrb.mxu0 %v10063_v52  ;;  %v10179_v52 = vpop.f32.mrf.mxu3 }
0x1b5b   :  { %3860 = vmatpush.msra.mxu1 %v10074_v43 }
0x1b5c   :  { %3841 = vmatpush.msrb.mxu0 %v3760_v46  ;;  %v3821_v43 = vpop.permute.xlu1 %3820 }
0x1b5d   :  { %3861 = vmatpush.msra.mxu1 %v3759_v19  ;;  %7056 = vmatmul.msk.f32.vlgmr.msrb.gmra.mxu0 %vm365_vm4, %v7055_v42 }
0x1b5e   :  { %7057 = vmatmul.msk.f32.vlgmr.msra.gmra.mxu1 %vm365_vm4, %v7055_v42  ;;  %3949 = vmatpush.msra.mxu0 %v8076_v21 }
0x1b5f   :  { %3972 = vmatpush.msrb.mxu1 %v8076_v21 }
0x1b60   :  { %3950 = vmatpush.msra.mxu0 %v8076_v21 }
0x1b61   :  { %3973 = vmatpush.msrb.mxu1 %v8076_v21 }
0x1b62   :  { %3951 = vmatpush.msra.mxu0 %v8076_v21 }
0x1b63   :  { %3974 = vmatpush.msrb.mxu1 %v8076_v21 }
0x1b64   :  { %3952 = vmatpush.msra.mxu0 %v8076_v21 }
0x1b65   :  { %3975 = vmatpush.msrb.mxu1 %v8076_v21 }
0x1b66   :  { %3953 = vmatpush.msra.mxu0 %v8076_v21 }
0x1b67   :  { %3976 = vmatpush.msrb.mxu1 %v8076_v21 }
0x1b68   :  { %3954 = vmatpush.msra.mxu0 %v8076_v21 }
0x1b69   :  { %3977 = vmatpush.msrb.mxu1 %v8076_v21 }
0x1b6a   :  { %3955 = vmatpush.msra.mxu0 %v8076_v21 }
0x1b6b   :  { %3978 = vmatpush.msrb.mxu1 %v8076_v21 }
0x1b6c   :  { %3956 = vmatpush.msra.mxu0 %v8076_v21 }
0x1b6d   :  { %3979 = vmatpush.msrb.mxu1 %v8076_v21 }
0x1b6e   :  { %3957 = vmatpush.msra.mxu0 %v8076_v21 }
0x1b6f   :  { %3980 = vmatpush.msrb.mxu1 %v8076_v21 }
0x1b70   :  { %3958 = vmatpush.msra.mxu0 %v8076_v21 }
0x1b71   :  { %3981 = vmatpush.msrb.mxu1 %v8076_v21 }
0x1b72   :  { %3959 = vmatpush.msra.mxu0 %v8076_v21 }
0x1b73   :  { %3982 = vmatpush.msrb.mxu1 %v8076_v21 }
0x1b74   :  { %3960 = vmatpush.msra.mxu0 %v8076_v21 }
0x1b75   :  { %3983 = vmatpush.msrb.mxu1 %v8076_v21 }
0x1b76   :  { %3961 = vmatpush.msra.mxu0 %v8076_v21 }
0x1b77   :  { %3984 = vmatpush.msrb.mxu1 %v8076_v21 }
0x1b78   :  { %3962 = vmatpush.msra.mxu0 %v8076_v21 }
0x1b79   :  { %3985 = vmatpush.msrb.mxu1 %v8076_v21 }
0x1b7a   :  { %3963 = vmatpush.msra.mxu0 %v8076_v21 }
0x1b7b   :  { %3986 = vmatpush.msrb.mxu1 %v8076_v21 }
0x1b7c   :  { %3964 = vmatpush.msra.mxu0 %v8076_v21 }
0x1b7d   :  { %3987 = vmatpush.msrb.mxu1 %v8076_v21 }
0x1bd5   :  { %v3883_v16 = vpop.f32.mrf.mxu3 }
0x1bd6   :  { %v3884_v24 = vadd.f32 %v3883_v16, %v3821_v43 }
0x1bd8   :  { %v3888_v34 = vmul.f32 %v3884_v24, %v8190_v8 }
0x1bda   :  { %v3894_v15 = vmul.f32 0.01, %v3888_v34  ;;  %v3843_v47 = vpop.f32.mrf.mxu0  ;;  %vm3891_vm9 = vcmp.ge.f32.partialorder %v3888_v34, 0.0 }
0x1bdb   :  { %v3844_v33 = vadd.f32 %v3843_v47, %v3821_v43  ;;  %v3863_v35 = vpop.f32.mrf.mxu1 }
0x1bdc   :  { %v3864_v22 = vadd.f32 %v3863_v35, %v3821_v43  ;;  %v10184_v18 = vsel %vm3891_vm9, %v3888_v34, %v3894_v15 }
0x1bdd   :  { %v3886_v5 = vmul.f32 %v3844_v33, %v8176_v3  ;;  %4011 = vmatmul.f32.vlgmr.msra.gmra.mxu2 %v10184_v18  ;;  %v3900_v27 = vmul.f32 %v10184_v18, %v10184_v18 }
0x1bde   :  { %v3887_v62 = vmul.f32 %v3864_v22, %v8178_v4 }
0x1bdf   :  { %vm3889_vm10 = vcmp.ge.f32.partialorder %v3886_v5, 0.0  ;;  %v3892_v36 = vmul.f32 0.01, %v3886_v5 }
0x1be0   :  { %v3893_v61 = vmul.f32 0.01, %v3887_v62  ;;  %vm3890_vm11 = vcmp.ge.f32.partialorder %v3887_v62, 0.0 }
0x1be1   :  { %v10189_v14 = vsel %vm3889_vm10, %v3886_v5, %v3892_v36 }
0x1be2   :  { %3965 = vmatmul.f32.vlgmr.msra.gmra.mxu0 %v10189_v14  ;;  %v10192_v58 = vsel %vm3890_vm11, %v3887_v62, %v3893_v61  ;;  %v3898_v41 = vmul.f32 %v10189_v14, %v10189_v14 }
0x1be3   :  { %3988 = vmatmul.f32.vlgmr.msrb.gmra.mxu1 %v10192_v58  ;;  %v3899_v1 = vmul.f32 %v10192_v58, %v10192_v58 }
0x1be5   :  { %4014 = vmatmul.f32.gmra.mxu2 %v3900_v27 }
0x1bea   :  { %3968 = vmatmul.f32.gmra.mxu0 %v3898_v41 }
0x1beb   :  { %3991 = vmatmul.f32.gmra.mxu1 %v3899_v1 }
0x1c5f   :  { %v3966_v50 = vpop.f32.mrf.mxu0 }
0x1c60   :  { %v3989_v54 = vpop.f32.mrf.mxu1  ;;  %v4012_v49 = vpop.f32.mrf.mxu2 }
0x1c61   :  { %v3990_v39 = vadd.f32 %v3989_v54, %v3966_v50 }
0x1c63   :  { %v4013_v11 = vadd.f32 %v4012_v49, %v3990_v39 }
0x1c65   :  { %v4056_v40 = vrot.slane %v4013_v11, 4 }
0x1c67   :  { %v3969_v17 = vpop.f32.mrf.mxu0  ;;  %v4058_v16 = vadd.f32 %v4056_v40, %v4013_v11  ;;  %v10215_v11 = vld [vmem:[%s11709_s5] sm:$0xff] }
0x1c68   :  { %v3992_v32 = vpop.f32.mrf.mxu1  ;;  %v4015_v10 = vpop.f32.mrf.mxu2 }
0x1c69   :  { %v3993_v51 = vadd.f32 %v3992_v32, %v3969_v17  ;;  %v4060_v34 = vrot.slane %v4058_v16, 4 }
0x1c6b   :  { %v4016_v63 = vadd.f32 %v4015_v10, %v3993_v51  ;;  %v4062_v35 = vsel %vm226_vm5, %v4058_v16, %v4060_v34 }
0x1c6c   :  { %v4071_v36 = vmul.f32 0.001953125, %v4062_v35 }
0x1c6d   :  { %v4018_v20 = vsel %vm561_vm12, %v4016_v63, 0.0  ;;  %v4064_v19 = vrot.slane %v4016_v63, 4 }
0x1c6e   :  { %v4019_v13 = vrot.slane %v4018_v20, 4  ;;  %v4073_v54 = vmul.f32 %v4071_v36, %v4071_v36 }
0x1c6f   :  { %v4066_v24 = vadd.f32 %v4064_v19, %v4016_v63 }
0x1c70   :  { %v4020_v2 = vadd.f32 %v4019_v13, %v4018_v20 }
0x1c71   :  { %v4068_v47 = vrot.slane %v4066_v24, 4 }
0x1c72   :  { %v4021_v26 = vrot.slane %v4020_v2, 2 }
0x1c73   :  { %v4070_v5 = vsel %vm226_vm5, %v4066_v24, %v4068_v47 }
0x1c74   :  { %v4022_v9 = vadd.f32 %v4021_v26, %v4020_v2  ;;  %v4072_v41 = vmul.f32 0.001953125, %v4070_v5 }
0x1c76   :  { %v4023_v7 = vrot.slane %v4022_v9, 1  ;;  %v4074_v32 = vsub.f32 %v4072_v41, %v4073_v54 }
0x1c78   :  { %v4024_v6 = vadd.f32 %v4023_v7, %v4022_v9 }
0x1c7a   :  { %8021 = vrsqrt.f32 %v4024_v6  ;;  %vm4032_vm13 = vcmp.eq.f32.partialorder %v4024_v6, inf  ;;  %v4035_v0 = vand.u32 2147483648, %v4024_v6  ;;  %vm4034_vm14 = vcmp.eq.f32.partialorder %v4024_v6, 0.0 }
0x1c80   :  { %v8022_v59 = vpop.eup %8021 }
0x1c81   :  { %v4026_v23 = vmul.f32 %v8022_v59, %v4024_v6 }
0x1c83   :  { %v4027_v42 = vmul.f32 %v8022_v59, %v4026_v23 }
0x1c85   :  { %v4028_v53 = vmul.f32 0.5, %v4027_v42 }
0x1c87   :  { %v4029_v44 = vsub.f32 1.5, %v4028_v53 }
0x1c89   :  { %v4030_v48 = vmul.f32 %v8022_v59, %v4029_v44  ;;  %v4091_v59 = vpop.permute.xlu2 %4090 }
0x1c8b   :  { %v4031_v57 = vmul.f32 %v4030_v48, %v4024_v6 }
0x1c8d   :  { %v4033_v31 = vsel %vm4032_vm13, %v4024_v6, %v4031_v57 }
0x1c8e   :  { %v4036_v46 = vsel %vm4034_vm14, %v4035_v0, %v4033_v31 }
0x1c8f   :  { %v4037_v43 = vadd.f32 1e-06, %v4036_v46 }
0x1c91   :  { %8023 = vrcp.f32 %v4037_v43  ;;  %v4049_v62 = vand.u32 2147483648, %v4037_v43  ;;  %v4047_v27 = vand.u32 2147483647, %v4037_v43  ;;  %vm4043_vm6 = vweird.f32 %v4037_v43 }
0x1c93   :  { %v4050_v50 = vor.u32 1.1754944e-38, %v4049_v62  ;;  %vm4048_vm8 = vcmp.eq.f32.partialorder %v4047_v27, 8.507059e+37 }
0x1c97   :  { %v8024_v15 = vpop.eup %8023 }
0x1c98   :  { %v4039_v33 = vmul.f32 %v8024_v15, %v4037_v43  ;;  %vm4044_vm15 = vweird.f32 %v8024_v15 }
0x1c99   :  { %vm4045_vm7 = vmor %vm4043_vm6, %vm4044_vm15 }
0x1c9a   :  { %v4040_v22 = vsub.f32 1.0, %v4039_v33 }
0x1c9c   :  { %v4041_v61 = vmul.f32 %v8024_v15, %v4040_v22 }
0x1c9e   :  { %v4042_v1 = vadd.f32 %v8024_v15, %v4041_v61 }
0x1ca0   :  { %v4046_v49 = vsel %vm4045_vm7, %v8024_v15, %v4042_v1 }
0x1ca1   :  { %v4051_v17 = vsel %vm4048_vm8, %v4050_v50, %v4046_v49 }
0x1ca2   :  { %v4075_v51 = vmul.f32 %v4051_v17, %v4051_v17  ;;  %v4094_v6 = vmul.f32 %v4071_v36, %v4051_v17 }
0x1ca4   :  { %v4076_v10 = vmul.f32 %v4075_v51, %v4074_v32 }
0x1ca6   :  { %v4077_v63 = vadd.f32 1e-05, %v4076_v10 }
0x1ca8   :  { %8025 = vrsqrt.f32 %v4077_v63  ;;  %vm4084_vm10 = vweird.f32 %v4077_v63 }
0x1cae   :  { %v8026_v20 = vpop.eup %8025 }
0x1caf   :  { %v4079_v13 = vmul.f32 %v8026_v20, %v4077_v63  ;;  %vm4085_vm9 = vweird.f32 %v8026_v20 }
0x1cb0   :  { %vm4086_vm11 = vmor %vm4084_vm10, %vm4085_vm9 }
0x1cb1   :  { %v4080_v2 = vmul.f32 %v8026_v20, %v4079_v13  ;;  %v3673_v13 = vld [vmem:[%s11707_s6] sm:$0xff] }
0x1cb3   :  { %v4081_v26 = vmul.f32 0.5, %v4080_v2  ;;  %v3648_v2 = vadd.f32 %v10179_v52, %v10181_v60 }
0x1cb5   :  { %v4082_v9 = vsub.f32 1.5, %v4081_v26  ;;  %v3671_v26 = vadd.f32 %v10207_v55, %v3648_v2  ;;  %v8102_v55 = vmov 9  }
0x1cb7   :  { %v4083_v7 = vmul.f32 %v8026_v20, %v4082_v9  ;;  %v3676_v9 = vrot.slane %v10082_v25, 4 }
0x1cb9   :  { %v4087_v23 = vsel %vm4086_vm11, %v8026_v20, %v4083_v7  ;;  %v3684_v7 = vrot.slane %v3671_v26, 4 }
0x1cba   :  { %v4088_v42 = vmul.f32 %v4087_v23, %v4051_v17  ;;  %v4095_v39 = vmul.f32 %v4094_v6, %v4087_v23  ;;  %v3678_v6 = vadd.f32 %v3676_v9, %v10082_v25 }
0x1cbc   :  { %v4093_v53 = vmul.f32 %v4091_v59, %v4088_v42  ;;  %v4096_v44 = vmul.f32 %v4095_v39, %v4091_v59  ;;  %v3686_v59 = vadd.f32 %v3684_v7, %v3671_v26  ;;  %v3680_v23 = vrot.slane %v3678_v6, 4 }
0x1cbe   :  { %4098 = vrot.lane.b32.xlu0 %v4096_v44, %s8100_s26  ;;  %4104 = vperm.xlu1 %7592, %v4093_v53   ;;  %v3688_v42 = vrot.slane %v3686_v59, 4  ;;  %v3682_v39 = vsel %vm226_vm5, %v3678_v6, %v3680_v23  ;;  %s8106_s26 = smov 10  }
0x1cbf   :  { %v10300_v44 = vmul.f32 0.001953125, %v3682_v39 }
0x1cc0   :  { %v3690_v53 = vsel %vm226_vm5, %v3686_v59, %v3688_v42 }
0x1cc1   :  { %v3693_v52 = vmul.f32 %v10300_v44, %v10300_v44 }
0x1d30   :  { %v4099_v48 = vpop.permute.xlu0 %4098  ;;  %v4105_v0 = vpop.permute.xlu1 %4104 }
0x1d31   :  { %v4101_v57 = vsub.f32 %v10215_v11, %v4099_v48  ;;  %v4107_v40 = vmul.f32 %v4105_v0, %v10189_v14  ;;  %v4108_v31 = vmul.f32 %v4105_v0, %v10192_v58  ;;  %v4109_v46 = vmul.f32 %v4105_v0, %v10184_v18 }
0x1d33   :  { %4112 = vperm.xlu2 %7593, %v4101_v57  }
0x1d3b   :  { %7644 = vset.pattern.permute.xlu2 %v8102_v55 }
0x1d8d   :  { %v4113_v19 = vpop.permute.xlu2 %4112 }
0x1d8e   :  { %v4115_v43 = vadd.f32 %v4113_v19, %v4107_v40  ;;  %v4116_v16 = vadd.f32 %v4113_v19, %v4108_v31  ;;  %v4117_v24 = vadd.f32 %v4113_v19, %v4109_v46 }
0x1d90   :  { %v10222_v34 = vmul.f32 %v4115_v43, %v8176_v3  ;;  %v10225_v15 = vmul.f32 %v4116_v16, %v8178_v4  ;;  %v10228_v47 = vmul.f32 %v4117_v24, %v8190_v8 }
0x1d92   :  { %4176 = vrot.lane.b32.xlu1 %v10228_v47, %s8074_s11  ;;  %v7599_v14 = vpack.i.bf16 %v10225_v15, %v10222_v34  ;;  %v7619_v17 = vpack.i.bf16 %v10228_v47, %v10222_v34 }
0x1d94   :  { %7600 = vrot.lane.b32.xlu2 %v7599_v14, %s8073_s1  ;;  %7595 = vrot.lane.b32.xlu0 %v7599_v14, %s8074_s11 }
0x1d9c   :  { %4131 = vrot.lane.b32.xlu0 %v10228_v47, %s8073_s1 }
0x1da4   :  { %7605 = vrot.lane.b32.xlu0 %v7599_v14, %s8075_s14 }
0x1dee   :  { %v7601_v36 = vpop.permute.xlu2 %7600 }
0x1def   :  { %v7602_v41 = vunpack.i.l.bf16 %v7601_v36  ;;  %v7603_v32 = vunpack.i.h.bf16 %v7601_v36 }
0x1df1   :  { %v10272_v51 = vsel %vm288_vm0, %v7602_v41, %v7603_v32 }
0x1df2   :  { %v7634_v20 = vpack.i.bf16 %v10228_v47, %v10272_v51 }
0x1e04   :  { %v4177_v35 = vpop.permute.xlu1 %4176 }
0x1e06   :  { %v7596_v18 = vpop.permute.xlu0 %7595 }
0x1e07   :  { %v7598_v58 = vunpack.i.h.bf16 %v7596_v18  ;;  %v7597_v33 = vunpack.i.l.bf16 %v7596_v18 }
0x1e09   :  { %v10241_v22 = vsel %vm336_vm1, %v7598_v58, %v4177_v35  ;;  %v10245_v5 = vsel %vm336_vm1, %v7597_v33, %v7598_v58  ;;  %v10249_v62 = vsel %vm336_vm1, %v4177_v35, %v7597_v33 }
0x1e0a   :  { %v7614_v61 = vpack.i.bf16 %v10249_v62, %v10245_v5  ;;  %v7609_v27 = vpack.i.bf16 %v10241_v22, %v10245_v5 }
0x1e0c   :  { %7615 = vrot.lane.b32.xlu2 %v7614_v61, %s8077_s0  ;;  %7610 = vrot.lane.b32.xlu1 %v7609_v27, %s8075_s14 }
0x1e0e   :  { %v4132_v1 = vpop.permute.xlu0 %4131 }
0x1e0f   :  { %v10259_v50 = vsel %vm288_vm0, %v4132_v1, %v7602_v41  ;;  %v10276_v10 = vsel %vm288_vm0, %v7603_v32, %v4132_v1 }
0x1e10   :  { %v7629_v54 = vpack.i.bf16 %v10259_v50, %v10241_v22  ;;  %v7624_v49 = vpack.i.bf16 %v10259_v50, %v10249_v62  ;;  %v7639_v63 = vpack.i.bf16 %v10225_v15, %v10276_v10 }
0x1e12   :  { %7630 = vrot.lane.b32.xlu0 %v7629_v54, %s8077_s0 }
0x1e14   :  { %7620 = vrot.lane.b32.xlu2 %v7619_v17, %s8077_s0  ;;  %7625 = vrot.lane.b32.xlu1 %v7624_v49, %s8075_s14 }
0x1e16   :  { %v7606_v0 = vpop.permute.xlu0 %7605 }
0x1e17   :  { %v7608_v18 = vunpack.i.h.bf16 %v7606_v0 }
0x1e1a   :  { %4149 = vrot.lane.b32.xlu0 %v10276_v10, %s8075_s14 }
0x1e1c   :  { %7640 = vrot.lane.b32.xlu2 %v7639_v63, %s8077_s0  ;;  %7635 = vrot.lane.b32.xlu1 %v7634_v20, %s8075_s14 }
0x1e22   :  { %3707 = vrot.lane.b32.xlu0 %v3673_v13, %s8087_s29  ;;  %s8109_s29 = smov 11  }
0x1e24   :  { %4138 = vrot.lane.b32.xlu1 %v10272_v51, %s8077_s0  ;;  %4204 = vperm.xlu2 %7644, %v10094_v38   ;;  %v7607_v38 = vunpack.i.l.bf16 %v7606_v0 }
0x1e26   :  { %v4170_v54 = vsel %vm308_vm2, %v7607_v38, %v7608_v18 }
0x1e2c   :  { %4474 = vrot.lane.b32.xlu1 %v10204_v45, %s8101_s21  ;;  %v3692_v45 = vmul.f32 0.001953125, %v3690_v53  ;;  %7645 = vset.pattern.permute.xlu2 %v8078_v56  ;;  %s8108_s21 = smov 117  }
0x1e2e   :  { %v3694_v60 = vsub.f32 %v3692_v45, %v3693_v52 }
0x1e30   :  { %v3695_v25 = vadd.f32 1e-05, %v3694_v60 }
0x1e32   :  { %8027 = vrsqrt.f32 %v3695_v25  ;;  %vm3702_vm14 = vweird.f32 %v3695_v25 }
0x1e38   :  { %v8028_v48 = vpop.eup %8027 }
0x1e39   :  { %v3697_v40 = vmul.f32 %v8028_v48, %v3695_v25  ;;  %vm3703_vm13 = vweird.f32 %v8028_v48  ;;  %v7059_v25 = vld [vmem:[%s11706_s2 + $0x48] sm:$0xff] }
0x1e3a   :  { %vm3704_vm15 = vmor %vm3702_vm14, %vm3703_vm13 }
0x1e3b   :  { %v3698_v43 = vmul.f32 %v8028_v48, %v3697_v40 }
0x1e3d   :  { %v3699_v35 = vmul.f32 0.5, %v3698_v43 }
0x1e3f   :  { %v3700_v49 = vsub.f32 1.5, %v3699_v35 }
0x1e41   :  { %v3701_v13 = vmul.f32 %v8028_v48, %v3700_v49 }
0x1e43   :  { %v3705_v23 = vsel %vm3704_vm15, %v8028_v48, %v3701_v13 }
0x1e44   :  { %v3711_v52 = vmul.f32 %v3705_v23, %v10300_v44 }
0x1e66   :  { %v7616_v57 = vpop.permute.xlu2 %7615 }
0x1e67   :  { %v7618_v16 = vunpack.i.h.bf16 %v7616_v57  ;;  %v7617_v24 = vunpack.i.l.bf16 %v7616_v57 }
0x1e69   :  { %v4189_v36 = vsel %vm298_vm3, %v7618_v16, %v7617_v24 }
0x1e6e   :  { %v7621_v58 = vpop.permute.xlu2 %7620 }
0x1e6f   :  { %v7623_v27 = vunpack.i.h.bf16 %v7621_v58  ;;  %v7622_v41 = vunpack.i.l.bf16 %v7621_v58 }
0x1e71   :  { %v4162_v63 = vsel %vm298_vm3, %v7623_v27, %v7622_v41 }
0x1e76   :  { %v7641_v2 = vpop.permute.xlu2 %7640 }
0x1e77   :  { %v7642_v45 = vunpack.i.l.bf16 %v7641_v2 }
0x1e7e   :  { %v7611_v31 = vpop.permute.xlu1 %7610 }
0x1e7f   :  { %v7613_v46 = vunpack.i.h.bf16 %v7611_v31  ;;  %v7612_v19 = vunpack.i.l.bf16 %v7611_v31 }
0x1e81   :  { %v4197_v14 = vsel %vm308_vm2, %v7612_v19, %v7613_v46 }
0x1e82   :  { %4217 = vmatpush.msrb.mxu3 %v4197_v14 }
0x1e84   :  { %v10309_v33 = vpop.permute.xlu0 %7630  ;;  %4218 = vmatpush.msrb.mxu3 %v10245_v5 }
0x1e85   :  { %v7632_v17 = vunpack.i.l.bf16 %v10309_v33  ;;  %v7633_v42 = vunpack.i.h.bf16 %v10309_v33 }
0x1e86   :  { %v7626_v61 = vpop.permute.xlu1 %7625  ;;  %4219 = vmatpush.msrb.mxu3 %v4189_v36 }
0x1e87   :  { %v7627_v1 = vunpack.i.l.bf16 %v7626_v61  ;;  %v4188_v26 = vsel %vm298_vm3, %v7617_v24, %v7632_v17  ;;  %v7628_v7 = vunpack.i.h.bf16 %v7626_v61  ;;  %v4144_v0 = vsel %vm298_vm3, %v7642_v45, %v7633_v42 }
0x1e88   :  { %4220 = vmatpush.msrb.mxu3 %v4170_v54 }
0x1e89   :  { %v4196_v32 = vsel %vm308_vm2, %v7613_v46, %v7627_v1  ;;  %v4198_v5 = vsel %vm308_vm2, %v7627_v1, %v7612_v19 }
0x1e8a   :  { %4221 = vmatpush.msrb.mxu3 %v10222_v34  ;;  %4237 = vmatpush.msrb.mxu0 %v4196_v32  ;;  %v4187_v34 = vsel %vm298_vm3, %v7632_v17, %v7618_v16 }
0x1e8b   :  { %4257 = vmatpush.msra.mxu1 %v4198_v5 }
0x1e8c   :  { %v4150_v20 = vpop.permute.xlu0 %4149  ;;  %4222 = vmatpush.msrb.mxu3 %v4162_v63  ;;  %4238 = vmatpush.msrb.mxu0 %v10241_v22  ;;  %v7643_v22 = vunpack.i.h.bf16 %v7641_v2 }
0x1e8d   :  { %4258 = vmatpush.msra.mxu1 %v10249_v62 }
0x1e8e   :  { %v7636_v9 = vpop.permute.xlu1 %7635  ;;  %4239 = vmatpush.msrb.mxu0 %v4188_v26  ;;  %v4161_v40 = vsel %vm298_vm3, %v7622_v41, %v7643_v22 }
0x1e8f   :  { %v7638_v6 = vunpack.i.h.bf16 %v7636_v9  ;;  %v7637_v59 = vunpack.i.l.bf16 %v7636_v9  ;;  %4259 = vmatpush.msra.mxu1 %v4187_v34 }
0x1e91   :  { %v4152_v62 = vsel %vm308_vm2, %v7628_v7, %v7637_v59  ;;  %v4169_v39 = vsel %vm308_vm2, %v7608_v18, %v7638_v6  ;;  %v4171_v53 = vsel %vm308_vm2, %v7638_v6, %v7607_v38 }
0x1e92   :  { %4223 = vmatpush.msrb.mxu3 %v4152_v62  ;;  %4240 = vmatpush.msrb.mxu0 %v4169_v39 }
0x1e93   :  { %4260 = vmatpush.msra.mxu1 %v4171_v53 }
0x1e94   :  { %v3708_v60 = vpop.permute.xlu0 %3707  ;;  %4224 = vmatpush.msrb.mxu3 %v10259_v50  ;;  %4241 = vmatpush.msrb.mxu0 %v10225_v15  ;;  %v4160_v50 = vsel %vm298_vm3, %v7643_v22, %v7623_v27  ;;  %v4151_v15 = vsel %vm308_vm2, %v7637_v59, %v4150_v20 }
0x1e95   :  { %v3710_v48 = vmul.f32 %v3708_v60, %v3705_v23  ;;  %v3712_v57 = vmul.f32 %v3711_v52, %v3708_v60  ;;  %4261 = vmatpush.msra.mxu1 %v10228_v47  ;;  %v4153_v47 = vsel %vm308_vm2, %v4150_v20, %v7628_v7 }
0x1e96   :  { %4225 = vmatpush.msrb.mxu3 %v4144_v0  ;;  %4242 = vmatpush.msrb.mxu0 %v4161_v40  ;;  %v4139_v44 = vpop.permute.xlu1 %4138 }
0x1e97   :  { %4262 = vmatpush.msra.mxu1 %v4160_v50  ;;  %7060 = vmatmul.msk.f32.vlgmr.msrb.gmra.mxu3 %vm365_vm4, %v7059_v25  ;;  %v4143_v31 = vsel %vm298_vm3, %v7633_v42, %v4139_v44  ;;  %v4142_v46 = vsel %vm298_vm3, %v4139_v44, %v7642_v45 }
0x1e98   :  { %3714 = vrot.lane.b32.xlu2 %v3712_v57, %s8088_s30  ;;  %3720 = vperm.xlu1 %7592, %v3710_v48   ;;  %s8103_s30 = smov 9  }
0x1e99   :  { %4243 = vmatpush.msrb.mxu0 %v4151_v15  ;;  %4263 = vmatpush.msra.mxu1 %v4153_v47 }
0x1e9a   :  { %4356 = vmatpush.msra.mxu3 %v8076_v21 }
0x1e9b   :  { %4244 = vmatpush.msrb.mxu0 %v10272_v51  ;;  %4264 = vmatpush.msra.mxu1 %v10276_v10  ;;  %v4205_v51 = vpop.permute.xlu2 %4204 }
0x1e9c   :  { %4357 = vmatpush.msra.mxu3 %v8076_v21 }
0x1e9d   :  { %4245 = vmatpush.msrb.mxu0 %v4143_v31  ;;  %4265 = vmatpush.msra.mxu1 %v4142_v46 }
0x1e9e   :  { %7061 = vmatmul.msk.f32.vlgmr.msrb.gmra.mxu0 %vm365_vm4, %v7059_v25  ;;  %7062 = vmatmul.msk.f32.vlgmr.msra.gmra.mxu1 %vm365_vm4, %v7059_v25 }
0x1e9f   :  { %4379 = vmatpush.msra.mxu0 %v8076_v21  ;;  %4358 = vmatpush.msra.mxu3 %v8076_v21 }
0x1ea0   :  { %7647 = vset.pattern.permute.xlu1 %v8102_v55 }
0x1ea1   :  { %4380 = vmatpush.msra.mxu0 %v8076_v21  ;;  %4359 = vmatpush.msra.mxu3 %v8076_v21 }
0x1ea3   :  { %4381 = vmatpush.msra.mxu0 %v8076_v21  ;;  %4360 = vmatpush.msra.mxu3 %v8076_v21 }
0x1ea5   :  { %4382 = vmatpush.msra.mxu0 %v8076_v21  ;;  %4361 = vmatpush.msra.mxu3 %v8076_v21 }
0x1ea7   :  { %4383 = vmatpush.msra.mxu0 %v8076_v21  ;;  %4362 = vmatpush.msra.mxu3 %v8076_v21 }
0x1ea9   :  { %4384 = vmatpush.msra.mxu0 %v8076_v21  ;;  %4363 = vmatpush.msra.mxu3 %v8076_v21 }
0x1eab   :  { %4385 = vmatpush.msra.mxu0 %v8076_v21  ;;  %4364 = vmatpush.msra.mxu3 %v8076_v21 }
0x1ead   :  { %4386 = vmatpush.msra.mxu0 %v8076_v21  ;;  %4365 = vmatpush.msra.mxu3 %v8076_v21 }
0x1eaf   :  { %4387 = vmatpush.msra.mxu0 %v8076_v21  ;;  %4366 = vmatpush.msra.mxu3 %v8076_v21 }
0x1eb1   :  { %4388 = vmatpush.msra.mxu0 %v8076_v21  ;;  %4367 = vmatpush.msra.mxu3 %v8076_v21 }
0x1eb3   :  { %4389 = vmatpush.msra.mxu0 %v8076_v21  ;;  %4368 = vmatpush.msra.mxu3 %v8076_v21 }
0x1eb5   :  { %4390 = vmatpush.msra.mxu0 %v8076_v21  ;;  %4369 = vmatpush.msra.mxu3 %v8076_v21 }
0x1eb7   :  { %4391 = vmatpush.msra.mxu0 %v8076_v21  ;;  %4370 = vmatpush.msra.mxu3 %v8076_v21 }
0x1eb9   :  { %4392 = vmatpush.msra.mxu0 %v8076_v21  ;;  %4371 = vmatpush.msra.mxu3 %v8076_v21 }
0x1ebb   :  { %4393 = vmatpush.msra.mxu0 %v8076_v21 }
0x1ebd   :  { %4394 = vmatpush.msra.mxu0 %v8076_v21 }
0x1ebf   :  { %4746 = vmatpush.msrb.mxu0 %v8076_v21 }
0x1ec1   :  { %4747 = vmatpush.msrb.mxu0 %v8076_v21 }
0x1ec3   :  { %4748 = vmatpush.msrb.mxu0 %v8076_v21 }
0x1ec5   :  { %4749 = vmatpush.msrb.mxu0 %v8076_v21 }
0x1ec7   :  { %4750 = vmatpush.msrb.mxu0 %v8076_v21 }
0x1ec9   :  { %4751 = vmatpush.msrb.mxu0 %v8076_v21 }
0x1ecb   :  { %4752 = vmatpush.msrb.mxu0 %v8076_v21 }
0x1ecd   :  { %4753 = vmatpush.msrb.mxu0 %v8076_v21 }
0x1ecf   :  { %4754 = vmatpush.msrb.mxu0 %v8076_v21 }
0x1ed1   :  { %4755 = vmatpush.msrb.mxu0 %v8076_v21 }
0x1ed3   :  { %4756 = vmatpush.msrb.mxu0 %v8076_v21 }
0x1ed5   :  { %4757 = vmatpush.msrb.mxu0 %v8076_v21 }
0x1ed7   :  { %4758 = vmatpush.msrb.mxu0 %v8076_v21 }
0x1ed9   :  { %4759 = vmatpush.msrb.mxu0 %v8076_v21 }
0x1edb   :  { %4760 = vmatpush.msrb.mxu0 %v8076_v21 }
0x1edd   :  { %4761 = vmatpush.msrb.mxu0 %v8076_v21 }
0x1f1a   :  { %v4227_v10 = vpop.f32.mrf.mxu3 }
0x1f1b   :  { %v4228_v55 = vadd.f32 %v4227_v10, %v4205_v51  ;;  %v4247_v19 = vpop.f32.mrf.mxu0  ;;  %v4267_v43 = vpop.f32.mrf.mxu1 }
0x1f1c   :  { %v4248_v16 = vadd.f32 %v4247_v19, %v4205_v51  ;;  %v4268_v24 = vadd.f32 %v4267_v43, %v4205_v51 }
0x1f1d   :  { %v4270_v14 = vmul.f32 %v4228_v55, %v8176_v3 }
0x1f1e   :  { %v4271_v18 = vmul.f32 %v4248_v16, %v8178_v4  ;;  %v4272_v38 = vmul.f32 %v4268_v24, %v8190_v8 }
0x1f1f   :  { %vm4273_vm6 = vcmp.ge.f32.partialorder %v4270_v14, 0.0  ;;  %v4276_v58 = vmul.f32 0.01, %v4270_v14 }
0x1f20   :  { %vm4274_vm7 = vcmp.ge.f32.partialorder %v4271_v18, 0.0  ;;  %v4277_v33 = vmul.f32 0.01, %v4271_v18  ;;  %vm4275_vm8 = vcmp.ge.f32.partialorder %v4272_v38, 0.0  ;;  %v4278_v35 = vmul.f32 0.01, %v4272_v38 }
0x1f21   :  { %v10416_v36 = vsel %vm4273_vm6, %v4270_v14, %v4276_v58 }
0x1f22   :  { %4349 = vmatmul.f32.vlgmr.msrb.gmra.mxu2 %v10416_v36  ;;  %v10419_v61 = vsel %vm4274_vm7, %v4271_v18, %v4277_v33  ;;  %v10421_v27 = vsel %vm4275_vm8, %v4272_v38, %v4278_v35  ;;  %v4282_v41 = vmul.f32 %v10416_v36, %v10416_v36 }
0x1f23   :  { %4372 = vmatmul.f32.vlgmr.msra.gmra.mxu3 %v10419_v61  ;;  %4395 = vmatmul.f32.vlgmr.msra.gmra.mxu0 %v10421_v27  ;;  %v4283_v1 = vmul.f32 %v10419_v61, %v10419_v61  ;;  %v4284_v54 = vmul.f32 %v10421_v27, %v10421_v27 }
0x1f24   :  { %5107 = vmatpush.msra.mxu0 %v8076_v21 }
0x1f26   :  { %5108 = vmatpush.msra.mxu0 %v8076_v21 }
0x1f28   :  { %5109 = vmatpush.msra.mxu0 %v8076_v21 }
0x1f2a   :  { %4352 = vmatmul.f32.gmra.mxu2 %v4282_v41  ;;  %5110 = vmatpush.msra.mxu0 %v8076_v21 }
0x1f2b   :  { %4375 = vmatmul.f32.gmra.mxu3 %v4283_v1  ;;  %4398 = vmatmul.f32.gmra.mxu0 %v4284_v54 }
0x1f2c   :  { %5111 = vmatpush.msra.mxu0 %v8076_v21 }
0x1f2e   :  { %5112 = vmatpush.msra.mxu0 %v8076_v21 }
0x1f30   :  { %5113 = vmatpush.msra.mxu0 %v8076_v21 }
0x1f32   :  { %5114 = vmatpush.msra.mxu0 %v8076_v21 }
0x1f34   :  { %5115 = vmatpush.msra.mxu0 %v8076_v21 }
0x1f36   :  { %5116 = vmatpush.msra.mxu0 %v8076_v21 }
0x1f38   :  { %5117 = vmatpush.msra.mxu0 %v8076_v21 }
0x1f3a   :  { %5118 = vmatpush.msra.mxu0 %v8076_v21 }
0x1f3c   :  { %5119 = vmatpush.msra.mxu0 %v8076_v21 }
0x1f3e   :  { %5120 = vmatpush.msra.mxu0 %v8076_v21 }
0x1f40   :  { %5121 = vmatpush.msra.mxu0 %v8076_v21 }
0x1f42   :  { %5122 = vmatpush.msra.mxu0 %v8076_v21 }
0x1fa0   :  { %v4396_v17 = vpop.f32.mrf.mxu0 }
0x1fa5   :  { %v4350_v49 = vpop.f32.mrf.mxu2 }
0x1fa6   :  { %v4373_v32 = vpop.f32.mrf.mxu3 }
0x1fa7   :  { %v4374_v39 = vadd.f32 %v4373_v32, %v4350_v49 }
0x1fa8   :  { %v4399_v13 = vpop.f32.mrf.mxu0 }
0x1fa9   :  { %v4397_v52 = vadd.f32 %v4396_v17, %v4374_v39 }
0x1fab   :  { %v4440_v57 = vrot.slane %v4397_v52, 4 }
0x1fad   :  { %v4353_v5 = vpop.f32.mrf.mxu2  ;;  %v4442_v47 = vadd.f32 %v4440_v57, %v4397_v52 }
0x1fae   :  { %v4376_v63 = vpop.f32.mrf.mxu3 }
0x1faf   :  { %v4377_v20 = vadd.f32 %v4376_v63, %v4353_v5  ;;  %v4444_v31 = vrot.slane %v4442_v47, 4 }
0x1fb1   :  { %v4400_v2 = vadd.f32 %v4399_v13, %v4377_v20  ;;  %v4446_v55 = vsel %vm226_vm5, %v4442_v47, %v4444_v31 }
0x1fb2   :  { %v4455_v24 = vmul.f32 0.001953125, %v4446_v55 }
0x1fb3   :  { %v4402_v26 = vsel %vm561_vm12, %v4400_v2, 0.0  ;;  %v4448_v50 = vrot.slane %v4400_v2, 4 }
0x1fb4   :  { %v4403_v9 = vrot.slane %v4402_v26, 4  ;;  %v4457_v35 = vmul.f32 %v4455_v24, %v4455_v24 }
0x1fb5   :  { %v4450_v44 = vadd.f32 %v4448_v50, %v4400_v2 }
0x1fb6   :  { %v4404_v34 = vadd.f32 %v4403_v9, %v4402_v26 }
0x1fb7   :  { %v4452_v51 = vrot.slane %v4450_v44, 4 }
0x1fb8   :  { %v4405_v7 = vrot.slane %v4404_v34, 2 }
0x1fb9   :  { %v4454_v43 = vsel %vm226_vm5, %v4450_v44, %v4452_v51 }
0x1fba   :  { %v4406_v6 = vadd.f32 %v4405_v7, %v4404_v34  ;;  %v4456_v38 = vmul.f32 0.001953125, %v4454_v43 }
0x1fbc   :  { %v4407_v59 = vrot.slane %v4406_v6, 1  ;;  %v4458_v54 = vsub.f32 %v4456_v38, %v4457_v35 }
0x1fbe   :  { %v4408_v22 = vadd.f32 %v4407_v59, %v4406_v6  ;;  %v4475_v59 = vpop.permute.xlu1 %4474 }
0x1fc0   :  { %8029 = vrsqrt.f32 %v4408_v22  ;;  %vm4416_vm9 = vcmp.eq.f32.partialorder %v4408_v22, inf  ;;  %v4419_v48 = vand.u32 2147483648, %v4408_v22  ;;  %vm4418_vm10 = vcmp.eq.f32.partialorder %v4408_v22, 0.0 }
0x1fc6   :  { %v8030_v23 = vpop.eup %8029  ;;  %v3721_v52 = vpop.permute.xlu1 %3720 }
0x1fc7   :  { %v4410_v42 = vmul.f32 %v8030_v23, %v4408_v22 }
0x1fc9   :  { %v4411_v62 = vmul.f32 %v8030_v23, %v4410_v42  ;;  %v3674_v42 = vld [vmem:[%s11710_s7] sm:$0xff] }
0x1fcb   :  { %v4412_v53 = vmul.f32 0.5, %v4411_v62  ;;  %v3715_v62 = vpop.permute.xlu2 %3714 }
0x1fcc   :  { %v3717_v39 = vsub.f32 %v3674_v42, %v3715_v62 }
0x1fcd   :  { %v4413_v45 = vsub.f32 1.5, %v4412_v53 }
0x1fcf   :  { %v4414_v60 = vmul.f32 %v8030_v23, %v4413_v45 }
0x1fd1   :  { %v4415_v25 = vmul.f32 %v4414_v60, %v4408_v22 }
0x1fd3   :  { %v4417_v0 = vsel %vm4416_vm9, %v4408_v22, %v4415_v25  ;;  %v3723_v25 = vmul.f32 %v3721_v52, %v10005_v30 }
0x1fd4   :  { %v4420_v40 = vsel %vm4418_vm10, %v4419_v48, %v4417_v0  ;;  %v3724_v48 = vmul.f32 %v3721_v52, %v10007_v29  ;;  %v3725_v0 = vmul.f32 %v3721_v52, %v10009_v37 }
0x1fd5   :  { %v4421_v15 = vadd.f32 1e-06, %v4420_v40 }
0x1fd7   :  { %8031 = vrcp.f32 %v4421_v15  ;;  %v4433_v16 = vand.u32 2147483648, %v4421_v15  ;;  %v4431_v18 = vand.u32 2147483647, %v4421_v15  ;;  %vm4427_vm13 = vweird.f32 %v4421_v15 }
0x1fd9   :  { %v4434_v33 = vor.u32 1.1754944e-38, %v4433_v16  ;;  %vm4432_vm15 = vcmp.eq.f32.partialorder %v4431_v18, 8.507059e+37 }
0x1fdd   :  { %v8032_v46 = vpop.eup %8031 }
0x1fde   :  { %v4423_v10 = vmul.f32 %v8032_v46, %v4421_v15  ;;  %vm4428_vm11 = vweird.f32 %v8032_v46 }
0x1fdf   :  { %vm4429_vm14 = vmor %vm4427_vm13, %vm4428_vm11 }
0x1fe0   :  { %v4424_v19 = vsub.f32 1.0, %v4423_v10 }
0x1fe2   :  { %v4425_v14 = vmul.f32 %v8032_v46, %v4424_v19 }
0x1fe4   :  { %v4426_v58 = vadd.f32 %v8032_v46, %v4425_v14 }
0x1fe6   :  { %v4430_v41 = vsel %vm4429_vm14, %v8032_v46, %v4426_v58 }
0x1fe7   :  { %v4435_v1 = vsel %vm4432_vm15, %v4434_v33, %v4430_v41 }
0x1fe8   :  { %v4459_v49 = vmul.f32 %v4435_v1, %v4435_v1  ;;  %v4478_v9 = vmul.f32 %v4455_v24, %v4435_v1 }
0x1fea   :  { %v4460_v17 = vmul.f32 %v4459_v49, %v4458_v54 }
0x1fec   :  { %v4461_v32 = vadd.f32 1e-05, %v4460_v17 }
0x1fee   :  { %8033 = vrsqrt.f32 %v4461_v32  ;;  %vm4468_vm7 = vweird.f32 %v4461_v32 }
0x1ff4   :  { %v8034_v5 = vpop.eup %8033 }
0x1ff5   :  { %v4463_v63 = vmul.f32 %v8034_v5, %v4461_v32  ;;  %vm4469_vm6 = vweird.f32 %v8034_v5 }
0x1ff6   :  { %vm4470_vm8 = vmor %vm4468_vm7, %vm4469_vm6 }
0x1ff7   :  { %v4464_v20 = vmul.f32 %v8034_v5, %v4463_v63 }
0x1ff9   :  { %v4465_v13 = vmul.f32 0.5, %v4464_v20 }
0x1ffb   :  { %v4466_v2 = vsub.f32 1.5, %v4465_v13 }
0x1ffd   :  { %v4467_v26 = vmul.f32 %v8034_v5, %v4466_v2 }
0x1fff   :  { %v4471_v34 = vsel %vm4470_vm8, %v8034_v5, %v4467_v26 }
0x2000   :  { %v4479_v7 = vmul.f32 %v4478_v9, %v4471_v34  ;;  %v4472_v6 = vmul.f32 %v4471_v34, %v4435_v1 }
0x2002   :  { %v4480_v22 = vmul.f32 %v4479_v7, %v4475_v59  ;;  %v4477_v23 = vmul.f32 %v4475_v59, %v4472_v6  ;;  %v10523_v59 = vld [vmem:[%s11705_s3] sm:$0xff] }
0x2004   :  { %4482 = vrot.lane.b32.xlu0 %v4480_v22, %s8103_s30  ;;  %4488 = vperm.xlu2 %7645, %v4477_v23   ;;  %v8104_v22 = vmov 10   ;;  %s8117_s30 = smov 114  }
0x200c   :  { %3728 = vperm.xlu0 %7646, %v3717_v39   ;;  %7698 = vset.pattern.permute.xlu2 %v8104_v22 }
0x2014   :  { %7700 = vset.pattern.permute.xlu0 %v8104_v22 }
0x205e   :  { %v4489_v57 = vpop.permute.xlu2 %4488 }
0x205f   :  { %v4491_v15 = vmul.f32 %v4489_v57, %v10416_v36  ;;  %v4492_v47 = vmul.f32 %v4489_v57, %v10419_v61  ;;  %v4493_v44 = vmul.f32 %v4489_v57, %v10421_v27 }
0x2076   :  { %v4483_v53 = vpop.permute.xlu0 %4482 }
0x2077   :  { %v4485_v45 = vsub.f32 %v10215_v11, %v4483_v53 }
0x2079   :  { %4496 = vperm.xlu1 %7647, %v4485_v45  }
0x207e   :  { %v3729_v60 = vpop.permute.xlu0 %3728 }
0x207f   :  { %v3731_v40 = vadd.f32 %v3729_v60, %v3723_v25  ;;  %v3732_v50 = vadd.f32 %v3729_v60, %v3724_v48  ;;  %v3733_v31 = vadd.f32 %v3729_v60, %v3725_v0 }
0x2081   :  { %v3734_v30 = vmul.f32 %v3731_v40, %v8176_v3  ;;  %v3735_v29 = vmul.f32 %v3732_v50, %v8178_v4  ;;  %v3736_v55 = vmul.f32 %v3733_v31, %v8190_v8 }
0x20eb   :  { %v4497_v11 = vpop.permute.xlu1 %4496 }
0x20ec   :  { %v4499_v46 = vadd.f32 %v4497_v11, %v4491_v15  ;;  %v4500_v51 = vadd.f32 %v4497_v11, %v4492_v47  ;;  %v4501_v10 = vadd.f32 %v4497_v11, %v4493_v44 }
0x20ee   :  { %v4502_v37 = vmul.f32 %v4499_v46, %v8176_v3  ;;  %v4503_v19 = vmul.f32 %v4500_v51, %v8178_v4  ;;  %v4504_v36 = vmul.f32 %v4501_v10, %v8190_v8 }
0x20f0   :  { %v10466_v61 = vadd.f32 %v4502_v37, %v3734_v30  ;;  %v10468_v27 = vadd.f32 %v4503_v19, %v3735_v29  ;;  %v10470_v43 = vadd.f32 %v4504_v36, %v3736_v55 }
0x20f2   :  { %4521 = vrot.lane.b32.xlu0 %v10470_v43, %s8073_s1  ;;  %4566 = vrot.lane.b32.xlu1 %v10470_v43, %s8074_s11  ;;  %v7648_v16 = vpack.i.bf16 %v10468_v27, %v10466_v61  ;;  %v7678_v17 = vpack.i.bf16 %v10466_v61, %v10470_v43  ;;  %v7663_v5 = vpack.i.bf16 %v10468_v27, %v10470_v43 }
0x20f4   :  { %7649 = vrot.lane.b32.xlu2 %v7648_v16, %s8074_s11 }
0x20fc   :  { %7654 = vrot.lane.b32.xlu2 %v7648_v16, %s8073_s1 }
0x214e   :  { %v7650_v24 = vpop.permute.xlu2 %7649 }
0x214f   :  { %v7652_v14 = vunpack.i.h.bf16 %v7650_v24  ;;  %v7651_v18 = vunpack.i.l.bf16 %v7650_v24 }
0x2151   :  { %v4569_v35 = vsel %vm336_vm1, %v7651_v18, %v7652_v14 }
0x2152   :  { %v7683_v32 = vpack.i.bf16 %v10468_v27, %v4569_v35 }
0x2156   :  { %v7655_v49 = vpop.permute.xlu2 %7654 }
0x2157   :  { %v7657_v20 = vunpack.i.h.bf16 %v7655_v49  ;;  %v7656_v13 = vunpack.i.l.bf16 %v7655_v49 }
0x2159   :  { %v10508_v9 = vsel %vm288_vm0, %v7656_v13, %v7657_v20 }
0x2164   :  { %v4567_v38 = vpop.permute.xlu1 %4566  ;;  %v4522_v63 = vpop.permute.xlu0 %4521 }
0x2165   :  { %v4568_v58 = vsel %vm336_vm1, %v7652_v14, %v4567_v38  ;;  %v4570_v33 = vsel %vm336_vm1, %v4567_v38, %v7651_v18  ;;  %v10500_v2 = vsel %vm288_vm0, %v7657_v20, %v4522_v63  ;;  %v10504_v26 = vsel %vm288_vm0, %v4522_v63, %v7656_v13 }
0x2166   :  { %v7673_v41 = vpack.i.bf16 %v10466_v61, %v4568_v58  ;;  %v7668_v1 = vpack.i.bf16 %v4570_v33, %v4568_v58  ;;  %v7658_v54 = vpack.i.bf16 %v4570_v33, %v4569_v35  ;;  %v7693_v34 = vpack.i.bf16 %v10500_v2, %v10508_v9 }
0x2167   :  { %v7688_v7 = vpack.i.bf16 %v10500_v2, %v10504_v26 }
0x2168   :  { %7674 = vrot.lane.b32.xlu0 %v7673_v41, %s8075_s14  ;;  %7669 = vrot.lane.b32.xlu2 %v7668_v1, %s8077_s0  ;;  %v7063_v41 = vld [vmem:[%s11706_s2 + $0x50] sm:$0xff] }
0x2169   :  { %7659 = vrot.lane.b32.xlu1 %v7658_v54, %s8075_s14 }
0x2170   :  { %7679 = vrot.lane.b32.xlu0 %v7678_v17, %s8077_s0  ;;  %7684 = vrot.lane.b32.xlu2 %v7683_v32, %s8077_s0  ;;  %v10626_v32 = vld [vmem:[%s11708_s4] sm:$0xff] }
0x2171   :  { %7664 = vrot.lane.b32.xlu1 %v7663_v5, %s8075_s14 }
0x2178   :  { %4537 = vrot.lane.b32.xlu0 %v10508_v9, %s8075_s14  ;;  %7694 = vrot.lane.b32.xlu2 %v7693_v34, %s8077_s0 }
0x2179   :  { %7689 = vrot.lane.b32.xlu1 %v7688_v7, %s8075_s14 }
0x2180   :  { %4594 = vperm.xlu2 %7698, %v10523_v59   ;;  %4864 = vrot.lane.b32.xlu0 %v10626_v32, %s8105_s25 }
0x2181   :  { %4526 = vrot.lane.b32.xlu1 %v10504_v26, %s8077_s0 }
0x2188   :  { %7699 = vset.pattern.permute.xlu2 %v8078_v56 }
0x21c2   :  { %v7670_v6 = vpop.permute.xlu2 %7669 }
0x21c3   :  { %v7672_v57 = vunpack.i.h.bf16 %v7670_v6  ;;  %v7671_v0 = vunpack.i.l.bf16 %v7670_v6 }
0x21c5   :  { %v4577_v44 = vsel %vm298_vm3, %v7671_v0, %v7672_v57 }
0x21ca   :  { %v7685_v42 = vpop.permute.xlu2 %7684 }
0x21cb   :  { %v7686_v52 = vunpack.i.l.bf16 %v7685_v42  ;;  %v7687_v37 = vunpack.i.h.bf16 %v7685_v42 }
0x21cd   :  { %v4579_v50 = vsel %vm298_vm3, %v7672_v57, %v7686_v52  ;;  %v4578_v15 = vsel %vm298_vm3, %v7686_v52, %v7671_v0 }
0x21d2   :  { %v7695_v14 = vpop.permute.xlu2 %7694 }
0x21da   :  { %v7675_v23 = vpop.permute.xlu0 %7674  ;;  %v4595_v5 = vpop.permute.xlu2 %4594 }
0x21db   :  { %v7676_v62 = vunpack.i.l.bf16 %v7675_v23  ;;  %v7660_v39 = vpop.permute.xlu1 %7659  ;;  %v7677_v31 = vunpack.i.h.bf16 %v7675_v23 }
0x21dc   :  { %v7662_v53 = vunpack.i.h.bf16 %v7660_v39  ;;  %v7661_v45 = vunpack.i.l.bf16 %v7660_v39 }
0x21de   :  { %v4587_v60 = vsel %vm308_vm2, %v7661_v45, %v7676_v62  ;;  %v4586_v25 = vsel %vm308_vm2, %v7676_v62, %v7662_v53  ;;  %v4588_v48 = vsel %vm308_vm2, %v7662_v53, %v7661_v45 }
0x21df   :  { %4607 = vmatpush.msrb.mxu1 %v4587_v60  ;;  %4627 = vmatpush.msra.mxu2 %v4586_v25 }
0x21e0   :  { %4647 = vmatpush.msrb.mxu3 %v4588_v48 }
0x21e1   :  { %4608 = vmatpush.msrb.mxu1 %v4569_v35  ;;  %4628 = vmatpush.msra.mxu2 %v4568_v58  ;;  %v7696_v35 = vunpack.i.l.bf16 %v7695_v14 }
0x21e2   :  { %4648 = vmatpush.msrb.mxu3 %v4570_v33  ;;  %v7680_v40 = vpop.permute.xlu0 %7679  ;;  %v7697_v33 = vunpack.i.h.bf16 %v7695_v14 }
0x21e3   :  { %v7665_v47 = vpop.permute.xlu1 %7664  ;;  %4609 = vmatpush.msrb.mxu1 %v4579_v50  ;;  %4629 = vmatpush.msra.mxu2 %v4578_v15  ;;  %v7682_v51 = vunpack.i.h.bf16 %v7680_v40  ;;  %v7681_v10 = vunpack.i.l.bf16 %v7680_v40 }
0x21e4   :  { %v7667_v11 = vunpack.i.h.bf16 %v7665_v47  ;;  %v7666_v46 = vunpack.i.l.bf16 %v7665_v47  ;;  %4649 = vmatpush.msrb.mxu3 %v4577_v44  ;;  %v4532_v54 = vsel %vm298_vm3, %v7696_v35, %v7697_v33 }
0x21e5   :  { %v4552_v19 = vsel %vm298_vm3, %v7681_v10, %v7682_v51  ;;  %v4551_v36 = vsel %vm298_vm3, %v7682_v51, %v7687_v37  ;;  %v4550_v24 = vsel %vm298_vm3, %v7687_v37, %v7681_v10 }
0x21e6   :  { %v4560_v30 = vsel %vm308_vm2, %v7677_v31, %v7667_v11  ;;  %v4559_v29 = vsel %vm308_vm2, %v7667_v11, %v7666_v46  ;;  %v4561_v55 = vsel %vm308_vm2, %v7666_v46, %v7677_v31 }
0x21e7   :  { %4610 = vmatpush.msrb.mxu1 %v4560_v30  ;;  %4630 = vmatpush.msra.mxu2 %v4559_v29 }
0x21e8   :  { %4650 = vmatpush.msrb.mxu3 %v4561_v55 }
0x21e9   :  { %4611 = vmatpush.msrb.mxu1 %v10466_v61  ;;  %4631 = vmatpush.msra.mxu2 %v10468_v27 }
0x21ea   :  { %4651 = vmatpush.msrb.mxu3 %v10470_v43  ;;  %v4538_v61 = vpop.permute.xlu0 %4537 }
0x21eb   :  { %v7690_v16 = vpop.permute.xlu1 %7689  ;;  %4612 = vmatpush.msrb.mxu1 %v4552_v19  ;;  %4632 = vmatpush.msra.mxu2 %v4551_v36 }
0x21ec   :  { %v7692_v18 = vunpack.i.h.bf16 %v7690_v16  ;;  %v7691_v38 = vunpack.i.l.bf16 %v7690_v16  ;;  %4652 = vmatpush.msrb.mxu3 %v4550_v24 }
0x21ee   :  { %v4542_v27 = vsel %vm308_vm2, %v7691_v38, %v4538_v61  ;;  %v4541_v43 = vsel %vm308_vm2, %v4538_v61, %v7692_v18  ;;  %v4543_v58 = vsel %vm308_vm2, %v7692_v18, %v7691_v38 }
0x21ef   :  { %4613 = vmatpush.msrb.mxu1 %v4542_v27  ;;  %4633 = vmatpush.msra.mxu2 %v4541_v43 }
0x21f0   :  { %4653 = vmatpush.msrb.mxu3 %v4543_v58 }
0x21f1   :  { %4614 = vmatpush.msrb.mxu1 %v10504_v26  ;;  %4634 = vmatpush.msra.mxu2 %v10508_v9 }
0x21f2   :  { %4654 = vmatpush.msrb.mxu3 %v10500_v2 }
0x21f3   :  { %v4527_v1 = vpop.permute.xlu1 %4526 }
0x21f4   :  { %4655 = vmatpush.msrb.mxu3 %v4532_v54  ;;  %v4534_v49 = vsel %vm298_vm3, %v7697_v33, %v4527_v1  ;;  %v4533_v17 = vsel %vm298_vm3, %v4527_v1, %v7696_v35 }
0x21f5   :  { %7066 = vmatmul.msk.f32.vlgmr.msrb.gmra.mxu3 %vm365_vm4, %v7063_v41  ;;  %4615 = vmatpush.msrb.mxu1 %v4534_v49 }
0x21f6   :  { %4635 = vmatpush.msra.mxu2 %v4533_v17  ;;  %7064 = vmatmul.msk.f32.vlgmr.msrb.gmra.mxu1 %vm365_vm4, %v7063_v41 }
0x21f7   :  { %7065 = vmatmul.msk.f32.vlgmr.msra.gmra.mxu2 %vm365_vm4, %v7063_v41  ;;  %4723 = vmatpush.msra.mxu1 %v8076_v21 }
0x21f8   :  { %4769 = vmatpush.msrb.mxu2 %v8076_v21 }
0x21f9   :  { %4724 = vmatpush.msra.mxu1 %v8076_v21 }
0x21fa   :  { %4770 = vmatpush.msrb.mxu2 %v8076_v21 }
0x21fb   :  { %4725 = vmatpush.msra.mxu1 %v8076_v21 }
0x21fc   :  { %4771 = vmatpush.msrb.mxu2 %v8076_v21 }
0x21fd   :  { %4726 = vmatpush.msra.mxu1 %v8076_v21 }
0x21fe   :  { %4772 = vmatpush.msrb.mxu2 %v8076_v21 }
0x21ff   :  { %4727 = vmatpush.msra.mxu1 %v8076_v21 }
0x2200   :  { %4773 = vmatpush.msrb.mxu2 %v8076_v21 }
0x2201   :  { %4728 = vmatpush.msra.mxu1 %v8076_v21 }
0x2202   :  { %4774 = vmatpush.msrb.mxu2 %v8076_v21 }
0x2203   :  { %4729 = vmatpush.msra.mxu1 %v8076_v21 }
0x2204   :  { %4775 = vmatpush.msrb.mxu2 %v8076_v21 }
0x2205   :  { %4730 = vmatpush.msra.mxu1 %v8076_v21 }
0x2206   :  { %4776 = vmatpush.msrb.mxu2 %v8076_v21 }
0x2207   :  { %4731 = vmatpush.msra.mxu1 %v8076_v21 }
0x2208   :  { %4777 = vmatpush.msrb.mxu2 %v8076_v21 }
0x2209   :  { %4732 = vmatpush.msra.mxu1 %v8076_v21 }
0x220a   :  { %4778 = vmatpush.msrb.mxu2 %v8076_v21 }
0x220b   :  { %4733 = vmatpush.msra.mxu1 %v8076_v21 }
0x220c   :  { %4779 = vmatpush.msrb.mxu2 %v8076_v21 }
0x220d   :  { %4734 = vmatpush.msra.mxu1 %v8076_v21 }
0x220e   :  { %4780 = vmatpush.msrb.mxu2 %v8076_v21 }
0x220f   :  { %4735 = vmatpush.msra.mxu1 %v8076_v21 }
0x2210   :  { %4781 = vmatpush.msrb.mxu2 %v8076_v21 }
0x2211   :  { %4736 = vmatpush.msra.mxu1 %v8076_v21 }
0x2212   :  { %4782 = vmatpush.msrb.mxu2 %v8076_v21 }
0x2213   :  { %4737 = vmatpush.msra.mxu1 %v8076_v21 }
0x2214   :  { %4783 = vmatpush.msrb.mxu2 %v8076_v21 }
0x2215   :  { %4738 = vmatpush.msra.mxu1 %v8076_v21 }
0x2216   :  { %4784 = vmatpush.msrb.mxu2 %v8076_v21 }
0x2218   :  { %5130 = vmatpush.msra.mxu2 %v8076_v21 }
0x221a   :  { %5131 = vmatpush.msra.mxu2 %v8076_v21 }
0x221c   :  { %5132 = vmatpush.msra.mxu2 %v8076_v21 }
0x221e   :  { %5133 = vmatpush.msra.mxu2 %v8076_v21 }
0x2220   :  { %5134 = vmatpush.msra.mxu2 %v8076_v21 }
0x2222   :  { %5135 = vmatpush.msra.mxu2 %v8076_v21 }
0x2224   :  { %5136 = vmatpush.msra.mxu2 %v8076_v21 }
0x2226   :  { %5137 = vmatpush.msra.mxu2 %v8076_v21 }
0x2228   :  { %5138 = vmatpush.msra.mxu2 %v8076_v21 }
0x222a   :  { %5139 = vmatpush.msra.mxu2 %v8076_v21 }
0x222c   :  { %5140 = vmatpush.msra.mxu2 %v8076_v21 }
0x222e   :  { %5141 = vmatpush.msra.mxu2 %v8076_v21 }
0x2230   :  { %5142 = vmatpush.msra.mxu2 %v8076_v21 }
0x2232   :  { %5143 = vmatpush.msra.mxu2 %v8076_v21 }
0x2234   :  { %5144 = vmatpush.msra.mxu2 %v8076_v21 }
0x2236   :  { %5145 = vmatpush.msra.mxu2 %v8076_v21 }
0x2273   :  { %v4617_v63 = vpop.f32.mrf.mxu1 }
0x2274   :  { %v4618_v20 = vadd.f32 %v4617_v63, %v4595_v5 }
0x2276   :  { %v4660_v13 = vmul.f32 %v4618_v20, %v8176_v3 }
0x2278   :  { %vm4663_vm9 = vcmp.ge.f32.partialorder %v4660_v13, 0.0  ;;  %v4666_v2 = vmul.f32 0.01, %v4660_v13  ;;  %v4657_v26 = vpop.f32.mrf.mxu3 }
0x2279   :  { %v4658_v9 = vadd.f32 %v4657_v26, %v4595_v5 }
0x227a   :  { %v4637_v34 = vpop.f32.mrf.mxu2  ;;  %v10630_v7 = vsel %vm4663_vm9, %v4660_v13, %v4666_v2 }
0x227b   :  { %v4662_v6 = vmul.f32 %v4658_v9, %v8190_v8  ;;  %v4638_v22 = vadd.f32 %v4637_v34, %v4595_v5  ;;  %4739 = vmatmul.f32.vlgmr.msra.gmra.mxu1 %v10630_v7  ;;  %v4672_v45 = vmul.f32 %v10630_v7, %v10630_v7 }
0x227d   :  { %vm4665_vm10 = vcmp.ge.f32.partialorder %v4662_v6, 0.0  ;;  %v4668_v23 = vmul.f32 0.01, %v4662_v6  ;;  %v4661_v42 = vmul.f32 %v4638_v22, %v8178_v4 }
0x227f   :  { %vm4664_vm11 = vcmp.ge.f32.partialorder %v4661_v42, 0.0  ;;  %v4667_v62 = vmul.f32 0.01, %v4661_v42  ;;  %v10635_v39 = vsel %vm4665_vm10, %v4662_v6, %v4668_v23 }
0x2280   :  { %4785 = vmatmul.f32.vlgmr.msrb.gmra.mxu2 %v10635_v39  ;;  %v4674_v52 = vmul.f32 %v10635_v39, %v10635_v39 }
0x2281   :  { %v10638_v53 = vsel %vm4664_vm11, %v4661_v42, %v4667_v62  ;;  %5491 = vmatpush.msrb.mxu2 %v8076_v21 }
0x2282   :  { %4762 = vmatmul.f32.vlgmr.msrb.gmra.mxu0 %v10638_v53  ;;  %v4673_v60 = vmul.f32 %v10638_v53, %v10638_v53 }
0x2283   :  { %4742 = vmatmul.f32.gmra.mxu1 %v4672_v45  ;;  %5492 = vmatpush.msrb.mxu2 %v8076_v21 }
0x2285   :  { %5493 = vmatpush.msrb.mxu2 %v8076_v21 }
0x2287   :  { %5494 = vmatpush.msrb.mxu2 %v8076_v21 }
0x2288   :  { %4788 = vmatmul.f32.gmra.mxu2 %v4674_v52 }
0x2289   :  { %5495 = vmatpush.msrb.mxu2 %v8076_v21 }
0x228a   :  { %4765 = vmatmul.f32.gmra.mxu0 %v4673_v60 }
0x228b   :  { %5496 = vmatpush.msrb.mxu2 %v8076_v21 }
0x228d   :  { %5497 = vmatpush.msrb.mxu2 %v8076_v21 }
0x228f   :  { %5498 = vmatpush.msrb.mxu2 %v8076_v21 }
0x2291   :  { %5499 = vmatpush.msrb.mxu2 %v8076_v21 }
0x2293   :  { %5500 = vmatpush.msrb.mxu2 %v8076_v21 }
0x2295   :  { %5501 = vmatpush.msrb.mxu2 %v8076_v21 }
0x2297   :  { %5502 = vmatpush.msrb.mxu2 %v8076_v21 }
0x2299   :  { %5503 = vmatpush.msrb.mxu2 %v8076_v21 }
0x229b   :  { %5504 = vmatpush.msrb.mxu2 %v8076_v21 }
0x229d   :  { %5505 = vmatpush.msrb.mxu2 %v8076_v21 }
0x229f   :  { %5506 = vmatpush.msrb.mxu2 %v8076_v21 }
0x22f8   :  { %v4740_v25 = vpop.f32.mrf.mxu1 }
0x22ff   :  { %v4763_v48 = vpop.f32.mrf.mxu0 }
0x2300   :  { %v4743_v40 = vpop.f32.mrf.mxu1  ;;  %v4764_v36 = vadd.f32 %v4763_v48, %v4740_v25 }
0x2303   :  { %v4786_v57 = vpop.f32.mrf.mxu2 }
0x2304   :  { %v4787_v24 = vadd.f32 %v4786_v57, %v4764_v36 }
0x2306   :  { %v4830_v61 = vrot.slane %v4787_v24, 4 }
0x2307   :  { %v4766_v0 = vpop.f32.mrf.mxu0 }
0x2308   :  { %v4767_v50 = vadd.f32 %v4766_v0, %v4743_v40  ;;  %v4832_v35 = vadd.f32 %v4830_v61, %v4787_v24 }
0x230a   :  { %v4834_v1 = vrot.slane %v4832_v35, 4 }
0x230b   :  { %v4789_v15 = vpop.f32.mrf.mxu2 }
0x230c   :  { %v4790_v47 = vadd.f32 %v4789_v15, %v4767_v50  ;;  %v4836_v5 = vsel %vm226_vm5, %v4832_v35, %v4834_v1 }
0x230d   :  { %v4845_v2 = vmul.f32 0.001953125, %v4836_v5 }
0x230e   :  { %v4792_v44 = vsel %vm561_vm12, %v4790_v47, 0.0  ;;  %v4838_v58 = vrot.slane %v4790_v47, 4 }
0x230f   :  { %v4793_v31 = vrot.slane %v4792_v44, 4  ;;  %v4847_v23 = vmul.f32 %v4845_v2, %v4845_v2 }
0x2310   :  { %v4840_v41 = vadd.f32 %v4838_v58, %v4790_v47 }
0x2311   :  { %v4794_v11 = vadd.f32 %v4793_v31, %v4792_v44  ;;  %v4865_v44 = vpop.permute.xlu0 %4864 }
0x2312   :  { %v4842_v49 = vrot.slane %v4840_v41, 4 }
0x2313   :  { %v4795_v46 = vrot.slane %v4794_v11, 2 }
0x2314   :  { %v4844_v20 = vsel %vm226_vm5, %v4840_v41, %v4842_v49 }
0x2315   :  { %v4796_v51 = vadd.f32 %v4795_v46, %v4794_v11  ;;  %v4846_v34 = vmul.f32 0.001953125, %v4844_v20 }
0x2317   :  { %v4797_v10 = vrot.slane %v4796_v51, 1  ;;  %v4848_v45 = vsub.f32 %v4846_v34, %v4847_v23 }
0x2319   :  { %v4798_v30 = vadd.f32 %v4797_v10, %v4796_v51 }
0x231b   :  { %8035 = vrsqrt.f32 %v4798_v30  ;;  %vm4806_vm13 = vcmp.eq.f32.partialorder %v4798_v30, inf  ;;  %v4809_v38 = vand.u32 2147483648, %v4798_v30  ;;  %vm4808_vm14 = vcmp.eq.f32.partialorder %v4798_v30, 0.0 }
0x2321   :  { %v8036_v29 = vpop.eup %8035 }
0x2322   :  { %v4800_v55 = vmul.f32 %v8036_v29, %v4798_v30 }
0x2324   :  { %v4801_v37 = vmul.f32 %v8036_v29, %v4800_v55 }
0x2326   :  { %v4802_v19 = vmul.f32 0.5, %v4801_v37 }
0x2328   :  { %v4803_v16 = vsub.f32 1.5, %v4802_v19 }
0x232a   :  { %v4804_v14 = vmul.f32 %v8036_v29, %v4803_v16 }
0x232c   :  { %v4805_v18 = vmul.f32 %v4804_v14, %v4798_v30 }
0x232e   :  { %v4807_v27 = vsel %vm4806_vm13, %v4798_v30, %v4805_v18  ;;  %v10669_v30 = vld [vmem:[%s11709_s5] sm:$0xff] }
0x232f   :  { %v4810_v43 = vsel %vm4808_vm14, %v4809_v38, %v4807_v27 }
0x2330   :  { %v4811_v33 = vadd.f32 1e-06, %v4810_v43 }
0x2332   :  { %8037 = vrcp.f32 %v4811_v33  ;;  %v4823_v13 = vand.u32 2147483648, %v4811_v33  ;;  %v4821_v9 = vand.u32 2147483647, %v4811_v33  ;;  %vm4817_vm6 = vweird.f32 %v4811_v33 }
0x2334   :  { %v4824_v22 = vor.u32 1.1754944e-38, %v4823_v13  ;;  %vm4822_vm8 = vcmp.eq.f32.partialorder %v4821_v9, 8.507059e+37 }
0x2338   :  { %v8038_v54 = vpop.eup %8037 }
0x2339   :  { %v4813_v17 = vmul.f32 %v8038_v54, %v4811_v33  ;;  %vm4818_vm15 = vweird.f32 %v8038_v54 }
0x233a   :  { %vm4819_vm7 = vmor %vm4817_vm6, %vm4818_vm15 }
0x233b   :  { %v4814_v63 = vsub.f32 1.0, %v4813_v17 }
0x233d   :  { %v4815_v26 = vmul.f32 %v8038_v54, %v4814_v63 }
0x233f   :  { %v4816_v6 = vadd.f32 %v8038_v54, %v4815_v26 }
0x2341   :  { %v4820_v42 = vsel %vm4819_vm7, %v8038_v54, %v4816_v6 }
0x2342   :  { %v4825_v62 = vsel %vm4822_vm8, %v4824_v22, %v4820_v42 }
0x2343   :  { %v4849_v52 = vmul.f32 %v4825_v62, %v4825_v62  ;;  %v4868_v47 = vmul.f32 %v4845_v2, %v4825_v62 }
0x2345   :  { %v4850_v60 = vmul.f32 %v4849_v52, %v4848_v45 }
0x2347   :  { %v4851_v25 = vadd.f32 1e-05, %v4850_v60 }
0x2349   :  { %8039 = vrsqrt.f32 %v4851_v25  ;;  %vm4858_vm10 = vweird.f32 %v4851_v25 }
0x234f   :  { %v8040_v48 = vpop.eup %8039 }
0x2350   :  { %v4853_v57 = vmul.f32 %v8040_v48, %v4851_v25  ;;  %vm4859_vm9 = vweird.f32 %v8040_v48 }
0x2351   :  { %vm4860_vm11 = vmor %vm4858_vm10, %vm4859_vm9 }
0x2352   :  { %v4854_v0 = vmul.f32 %v8040_v48, %v4853_v57 }
0x2354   :  { %v4855_v40 = vmul.f32 0.5, %v4854_v0 }
0x2356   :  { %v4856_v50 = vsub.f32 1.5, %v4855_v40 }
0x2358   :  { %v4857_v15 = vmul.f32 %v8040_v48, %v4856_v50 }
0x235a   :  { %v4861_v31 = vsel %vm4860_vm11, %v8040_v48, %v4857_v15 }
0x235b   :  { %v4862_v11 = vmul.f32 %v4861_v31, %v4825_v62  ;;  %v4869_v46 = vmul.f32 %v4868_v47, %v4861_v31 }
0x235d   :  { %v4867_v51 = vmul.f32 %v4865_v44, %v4862_v11  ;;  %v4870_v10 = vmul.f32 %v4869_v46, %v4865_v44  ;;  %v8107_v46 = vmov 11  }
0x235e   :  { %7751 = vset.pattern.permute.xlu1 %v8107_v46 }
0x235f   :  { %4872 = vrot.lane.b32.xlu1 %v4870_v10, %s8106_s26  ;;  %4878 = vperm.xlu2 %7699, %v4867_v51  }
0x2367   :  { %7753 = vset.pattern.permute.xlu2 %v8107_v46 }
0x23b9   :  { %v4879_v37 = vpop.permute.xlu2 %4878 }
0x23ba   :  { %v4881_v19 = vmul.f32 %v4879_v37, %v10630_v7  ;;  %v4882_v36 = vmul.f32 %v4879_v37, %v10638_v53  ;;  %v4883_v16 = vmul.f32 %v4879_v37, %v10635_v39 }
0x23d1   :  { %v4873_v29 = vpop.permute.xlu1 %4872 }
0x23d2   :  { %v4875_v55 = vsub.f32 %v10669_v30, %v4873_v29 }
0x23d4   :  { %4886 = vperm.xlu0 %7700, %v4875_v55  }
0x2446   :  { %v4887_v24 = vpop.permute.xlu0 %4886 }
0x2447   :  { %v4889_v14 = vadd.f32 %v4887_v24, %v4881_v19  ;;  %v4890_v18 = vadd.f32 %v4887_v24, %v4882_v36  ;;  %v4891_v38 = vadd.f32 %v4887_v24, %v4883_v16 }
0x2449   :  { %v10676_v61 = vmul.f32 %v4889_v14, %v8176_v3  ;;  %v10679_v27 = vmul.f32 %v4890_v18, %v8178_v4  ;;  %v10682_v43 = vmul.f32 %v4891_v38, %v8190_v8 }
0x244b   :  { %4950 = vrot.lane.b32.xlu2 %v10682_v43, %s8074_s11  ;;  %v7701_v7 = vpack.i.bf16 %v10679_v27, %v10676_v61  ;;  %v7726_v2 = vpack.i.bf16 %v10682_v43, %v10676_v61 }
0x244d   :  { %7702 = vrot.lane.b32.xlu1 %v7701_v7, %s8074_s11 }
0x2453   :  { %4905 = vrot.lane.b32.xlu2 %v10682_v43, %s8073_s1 }
0x2455   :  { %7707 = vrot.lane.b32.xlu1 %v7701_v7, %s8073_s1 }
0x245b   :  { %7712 = vrot.lane.b32.xlu2 %v7701_v7, %s8075_s14 }
0x24a5   :  { %v4951_v39 = vpop.permute.xlu2 %4950 }
0x24ad   :  { %v4906_v63 = vpop.permute.xlu2 %4905 }
0x24b5   :  { %v10736_v60 = vpop.permute.xlu2 %7712 }
0x24b6   :  { %v7715_v0 = vunpack.i.h.bf16 %v10736_v60  ;;  %v7714_v40 = vunpack.i.l.bf16 %v10736_v60 }
0x24b8   :  { %v4944_v11 = vsel %vm308_vm2, %v7714_v40, %v7715_v0 }
0x24bf   :  { %v7703_v53 = vpop.permute.xlu1 %7702 }
0x24c0   :  { %v7705_v58 = vunpack.i.h.bf16 %v7703_v53  ;;  %v7704_v33 = vunpack.i.l.bf16 %v7703_v53 }
0x24c2   :  { %v4952_v35 = vsel %vm336_vm1, %v7705_v58, %v4951_v39  ;;  %v4953_v41 = vsel %vm336_vm1, %v7704_v33, %v7705_v58  ;;  %v10699_v1 = vsel %vm336_vm1, %v4951_v39, %v7704_v33  ;;  %v7067_v33 = vld [vmem:[%s11706_s2 + $0x58] sm:$0xff] }
0x24c3   :  { %v7721_v54 = vpack.i.bf16 %v10699_v1, %v4953_v41  ;;  %v7716_v49 = vpack.i.bf16 %v4952_v35, %v4953_v41 }
0x24c5   :  { %7722 = vrot.lane.b32.xlu1 %v7721_v54, %s8077_s0  ;;  %7717 = vrot.lane.b32.xlu0 %v7716_v49, %s8075_s14 }
0x24c7   :  { %v7708_v17 = vpop.permute.xlu1 %7707 }
0x24c8   :  { %v7709_v5 = vunpack.i.l.bf16 %v7708_v17  ;;  %v7710_v9 = vunpack.i.h.bf16 %v7708_v17 }
0x24ca   :  { %v10706_v20 = vsel %vm288_vm0, %v4906_v63, %v7709_v5  ;;  %v10718_v34 = vsel %vm288_vm0, %v7710_v9, %v4906_v63  ;;  %v10722_v6 = vsel %vm288_vm0, %v7709_v5, %v7710_v9 }
0x24cb   :  { %v7736_v13 = vpack.i.bf16 %v10706_v20, %v4952_v35  ;;  %v7731_v26 = vpack.i.bf16 %v10706_v20, %v10699_v1  ;;  %v7746_v22 = vpack.i.bf16 %v10679_v27, %v10718_v34  ;;  %v7741_v23 = vpack.i.bf16 %v10682_v43, %v10722_v6 }
0x24cd   :  { %7737 = vrot.lane.b32.xlu2 %v7736_v13, %s8077_s0  ;;  %7727 = vrot.lane.b32.xlu1 %v7726_v2, %s8077_s0 }
0x24ce   :  { %7732 = vrot.lane.b32.xlu0 %v7731_v26, %s8075_s14 }
0x24d5   :  { %4923 = vrot.lane.b32.xlu2 %v10718_v34, %s8075_s14  ;;  %7747 = vrot.lane.b32.xlu1 %v7746_v22, %s8077_s0 }
0x24d6   :  { %7742 = vrot.lane.b32.xlu0 %v7741_v23, %s8075_s14 }
0x24dd   :  { %4978 = vperm.xlu1 %7751, %v10523_v59   ;;  %5248 = vrot.lane.b32.xlu2 %v10626_v32, %s8108_s21 }
0x24de   :  { %4912 = vrot.lane.b32.xlu0 %v10722_v6, %s8077_s0 }
0x24e5   :  { %7752 = vset.pattern.permute.xlu1 %v8078_v56 }
0x2527   :  { %v7738_v10 = vpop.permute.xlu2 %7737 }
0x2528   :  { %v7739_v37 = vunpack.i.l.bf16 %v7738_v10  ;;  %v7740_v39 = vunpack.i.h.bf16 %v7738_v10 }
0x2537   :  { %v10734_v42 = vpop.permute.xlu1 %7722  ;;  %v7718_v62 = vpop.permute.xlu0 %7717 }
0x2538   :  { %v7720_v45 = vunpack.i.h.bf16 %v7718_v62  ;;  %v7719_v52 = vunpack.i.l.bf16 %v7718_v62  ;;  %v7725_v25 = vunpack.i.h.bf16 %v10734_v42  ;;  %v7724_v48 = vunpack.i.l.bf16 %v10734_v42 }
0x253a   :  { %v4971_v57 = vsel %vm308_vm2, %v7719_v52, %v7720_v45  ;;  %v4963_v50 = vsel %vm298_vm3, %v7725_v25, %v7724_v48  ;;  %v4962_v19 = vsel %vm298_vm3, %v7724_v48, %v7739_v37  ;;  %v4961_v49 = vsel %vm298_vm3, %v7739_v37, %v7725_v25 }
0x253b   :  { %4991 = vmatpush.msra.mxu3 %v4971_v57 }
0x253d   :  { %4992 = vmatpush.msra.mxu3 %v4953_v41 }
0x253f   :  { %v7728_v15 = vpop.permute.xlu1 %7727  ;;  %4993 = vmatpush.msra.mxu3 %v4963_v50 }
0x2540   :  { %v7730_v47 = vunpack.i.h.bf16 %v7728_v15  ;;  %v7729_v44 = vunpack.i.l.bf16 %v7728_v15  ;;  %v7733_v31 = vpop.permute.xlu0 %7732 }
0x2541   :  { %v7734_v51 = vunpack.i.l.bf16 %v7733_v31  ;;  %4994 = vmatpush.msra.mxu3 %v4944_v11  ;;  %v7735_v59 = vunpack.i.h.bf16 %v7733_v31 }
0x2542   :  { %v4936_v55 = vsel %vm298_vm3, %v7730_v47, %v7729_v44 }
0x2543   :  { %4995 = vmatpush.msra.mxu3 %v10676_v61  ;;  %v4970_v29 = vsel %vm308_vm2, %v7720_v45, %v7734_v51  ;;  %v4972_v41 = vsel %vm308_vm2, %v7734_v51, %v7719_v52 }
0x2544   :  { %5011 = vmatpush.msrb.mxu1 %v4970_v29 }
0x2545   :  { %4996 = vmatpush.msra.mxu3 %v4936_v55 }
0x2546   :  { %5012 = vmatpush.msrb.mxu1 %v4952_v35  ;;  %v4924_v35 = vpop.permute.xlu2 %4923 }
0x2547   :  { %v7748_v36 = vpop.permute.xlu1 %7747  ;;  %v4927_v63 = vsel %vm308_vm2, %v4924_v35, %v7735_v59 }
0x2548   :  { %v7743_v16 = vpop.permute.xlu0 %7742  ;;  %5013 = vmatpush.msrb.mxu1 %v4962_v19  ;;  %v7750_v18 = vunpack.i.h.bf16 %v7748_v36  ;;  %v7749_v38 = vunpack.i.l.bf16 %v7748_v36 }
0x2549   :  { %v7745_v24 = vunpack.i.h.bf16 %v7743_v16  ;;  %v7744_v14 = vunpack.i.l.bf16 %v7743_v16 }
0x254a   :  { %v4918_v53 = vsel %vm298_vm3, %v7749_v38, %v7740_v39  ;;  %v4935_v58 = vsel %vm298_vm3, %v7729_v44, %v7750_v18 }
0x254b   :  { %v4926_v61 = vsel %vm308_vm2, %v7735_v59, %v7744_v14  ;;  %v4943_v7 = vsel %vm308_vm2, %v7715_v0, %v7745_v24  ;;  %v4945_v5 = vsel %vm308_vm2, %v7745_v24, %v7714_v40 }
0x254c   :  { %4997 = vmatpush.msra.mxu3 %v4926_v61  ;;  %5014 = vmatpush.msrb.mxu1 %v4943_v7 }
0x254e   :  { %4998 = vmatpush.msra.mxu3 %v10706_v20  ;;  %5015 = vmatpush.msrb.mxu1 %v10679_v27  ;;  %v4925_v27 = vsel %vm308_vm2, %v7744_v14, %v4924_v35 }
0x2550   :  { %4999 = vmatpush.msra.mxu3 %v4918_v53  ;;  %5016 = vmatpush.msrb.mxu1 %v4935_v58  ;;  %v4913_v54 = vpop.permute.xlu0 %4912 }
0x2551   :  { %7068 = vmatmul.msk.f32.vlgmr.msra.gmra.mxu3 %vm365_vm4, %v7067_v33  ;;  %v4917_v17 = vsel %vm298_vm3, %v7740_v39, %v4913_v54  ;;  %v4916_v20 = vsel %vm298_vm3, %v4913_v54, %v7749_v38 }
0x2552   :  { %5031 = vmatpush.msrb.mxu3 %v4972_v41  ;;  %5017 = vmatpush.msrb.mxu1 %v4925_v27 }
0x2554   :  { %5032 = vmatpush.msrb.mxu3 %v10699_v1  ;;  %5018 = vmatpush.msrb.mxu1 %v10722_v6  ;;  %v4934_v1 = vsel %vm298_vm3, %v7750_v18, %v7730_v47 }
0x2556   :  { %5033 = vmatpush.msrb.mxu3 %v4961_v49  ;;  %5019 = vmatpush.msrb.mxu1 %v4917_v17 }
0x2557   :  { %7069 = vmatmul.msk.f32.vlgmr.msrb.gmra.mxu1 %vm365_vm4, %v7067_v33 }
0x2558   :  { %5034 = vmatpush.msrb.mxu3 %v4945_v5  ;;  %5153 = vmatpush.msra.mxu1 %v8076_v21 }
0x255a   :  { %5035 = vmatpush.msrb.mxu3 %v10682_v43  ;;  %5154 = vmatpush.msra.mxu1 %v8076_v21  ;;  %v4979_v43 = vpop.permute.xlu1 %4978 }
0x255c   :  { %5036 = vmatpush.msrb.mxu3 %v4934_v1  ;;  %5155 = vmatpush.msra.mxu1 %v8076_v21 }
0x255e   :  { %5037 = vmatpush.msrb.mxu3 %v4927_v63  ;;  %5156 = vmatpush.msra.mxu1 %v8076_v21 }
0x2560   :  { %5038 = vmatpush.msrb.mxu3 %v10718_v34  ;;  %5157 = vmatpush.msra.mxu1 %v8076_v21 }
0x2562   :  { %5039 = vmatpush.msrb.mxu3 %v4916_v20  ;;  %5158 = vmatpush.msra.mxu1 %v8076_v21 }
0x2563   :  { %7070 = vmatmul.msk.f32.vlgmr.msrb.gmra.mxu3 %vm365_vm4, %v7067_v33 }
0x2564   :  { %5159 = vmatpush.msra.mxu1 %v8076_v21 }
0x2566   :  { %5160 = vmatpush.msra.mxu1 %v8076_v21 }
0x2568   :  { %5161 = vmatpush.msra.mxu1 %v8076_v21 }
0x256a   :  { %5162 = vmatpush.msra.mxu1 %v8076_v21 }
0x256c   :  { %5163 = vmatpush.msra.mxu1 %v8076_v21 }
0x256e   :  { %5164 = vmatpush.msra.mxu1 %v8076_v21 }
0x2570   :  { %5165 = vmatpush.msra.mxu1 %v8076_v21 }
0x2572   :  { %5166 = vmatpush.msra.mxu1 %v8076_v21 }
0x2574   :  { %5167 = vmatpush.msra.mxu1 %v8076_v21 }
0x2576   :  { %5168 = vmatpush.msra.mxu1 %v8076_v21 }
0x2578   :  { %5514 = vmatpush.msrb.mxu1 %v8076_v21 }
0x257a   :  { %5515 = vmatpush.msrb.mxu1 %v8076_v21 }
0x257c   :  { %5516 = vmatpush.msrb.mxu1 %v8076_v21 }
0x257e   :  { %5517 = vmatpush.msrb.mxu1 %v8076_v21 }
0x2580   :  { %5518 = vmatpush.msrb.mxu1 %v8076_v21 }
0x2582   :  { %5519 = vmatpush.msrb.mxu1 %v8076_v21 }
0x2584   :  { %5520 = vmatpush.msrb.mxu1 %v8076_v21 }
0x2586   :  { %5521 = vmatpush.msrb.mxu1 %v8076_v21 }
0x2588   :  { %5522 = vmatpush.msrb.mxu1 %v8076_v21 }
0x258a   :  { %5523 = vmatpush.msrb.mxu1 %v8076_v21 }
0x258c   :  { %5524 = vmatpush.msrb.mxu1 %v8076_v21 }
0x258e   :  { %5525 = vmatpush.msrb.mxu1 %v8076_v21 }
0x2590   :  { %5526 = vmatpush.msrb.mxu1 %v8076_v21 }
0x2592   :  { %5527 = vmatpush.msrb.mxu1 %v8076_v21 }
0x2594   :  { %5528 = vmatpush.msrb.mxu1 %v8076_v21 }
0x2596   :  { %5529 = vmatpush.msrb.mxu1 %v8076_v21 }
0x25d4   :  { %v5021_v13 = vpop.f32.mrf.mxu1  ;;  %v5001_v26 = vpop.f32.mrf.mxu3 }
0x25d5   :  { %v5022_v2 = vadd.f32 %v5021_v13, %v4979_v43  ;;  %v5002_v9 = vadd.f32 %v5001_v26, %v4979_v43 }
0x25d7   :  { %v5045_v34 = vmul.f32 %v5022_v2, %v8178_v4  ;;  %v5044_v6 = vmul.f32 %v5002_v9, %v8176_v3 }
0x25d9   :  { %vm5048_vm13 = vcmp.ge.f32.partialorder %v5045_v34, 0.0  ;;  %v5051_v22 = vmul.f32 0.01, %v5045_v34  ;;  %vm5047_vm14 = vcmp.ge.f32.partialorder %v5044_v6, 0.0  ;;  %v5050_v23 = vmul.f32 0.01, %v5044_v6 }
0x25db   :  { %v10827_v42 = vsel %vm5048_vm13, %v5045_v34, %v5051_v22  ;;  %v10830_v62 = vsel %vm5047_vm14, %v5044_v6, %v5050_v23 }
0x25dc   :  { %5146 = vmatmul.f32.vlgmr.msra.gmra.mxu2 %v10827_v42  ;;  %5123 = vmatmul.f32.vlgmr.msra.gmra.mxu0 %v10830_v62  ;;  %v5057_v45 = vmul.f32 %v10827_v42, %v10827_v42  ;;  %v5056_v52 = vmul.f32 %v10830_v62, %v10830_v62 }
0x25e4   :  { %5149 = vmatmul.f32.gmra.mxu2 %v5057_v45  ;;  %5126 = vmatmul.f32.gmra.mxu0 %v5056_v52 }
0x25e6   :  { %v5041_v60 = vpop.f32.mrf.mxu3 }
0x25e7   :  { %v5042_v25 = vadd.f32 %v5041_v60, %v4979_v43 }
0x25e9   :  { %v5046_v48 = vmul.f32 %v5042_v25, %v8190_v8 }
0x25eb   :  { %vm5049_vm15 = vcmp.ge.f32.partialorder %v5046_v48, 0.0  ;;  %v5052_v57 = vmul.f32 0.01, %v5046_v48 }
0x25ed   :  { %v10839_v0 = vsel %vm5049_vm15, %v5046_v48, %v5052_v57 }
0x25ee   :  { %5169 = vmatmul.f32.vlgmr.msra.gmra.mxu1 %v10839_v0  ;;  %v5058_v40 = vmul.f32 %v10839_v0, %v10839_v0 }
0x25ef   :  { %5875 = vmatpush.msra.mxu1 %v8076_v21 }
0x25f1   :  { %5876 = vmatpush.msra.mxu1 %v8076_v21 }
0x25f3   :  { %5877 = vmatpush.msra.mxu1 %v8076_v21 }
0x25f5   :  { %5878 = vmatpush.msra.mxu1 %v8076_v21 }
0x25f6   :  { %5172 = vmatmul.f32.gmra.mxu1 %v5058_v40 }
0x25f7   :  { %5879 = vmatpush.msra.mxu1 %v8076_v21 }
0x25f9   :  { %5880 = vmatpush.msra.mxu1 %v8076_v21 }
0x25fb   :  { %5881 = vmatpush.msra.mxu1 %v8076_v21 }
0x25fd   :  { %5882 = vmatpush.msra.mxu1 %v8076_v21 }
0x25ff   :  { %5883 = vmatpush.msra.mxu1 %v8076_v21 }
0x2601   :  { %5884 = vmatpush.msra.mxu1 %v8076_v21 }
0x2603   :  { %5885 = vmatpush.msra.mxu1 %v8076_v21 }
0x2605   :  { %5886 = vmatpush.msra.mxu1 %v8076_v21 }
0x2607   :  { %5887 = vmatpush.msra.mxu1 %v8076_v21 }
0x2609   :  { %5888 = vmatpush.msra.mxu1 %v8076_v21 }
0x260b   :  { %5889 = vmatpush.msra.mxu1 %v8076_v21 }
0x260d   :  { %5890 = vmatpush.msra.mxu1 %v8076_v21 }
0x2659   :  { %v5124_v50 = vpop.f32.mrf.mxu0 }
0x265f   :  { %v5147_v32 = vpop.f32.mrf.mxu2 }
0x2660   :  { %v5148_v18 = vadd.f32 %v5147_v32, %v5124_v50 }
0x2661   :  { %v5127_v44 = vpop.f32.mrf.mxu0 }
0x2667   :  { %v5150_v47 = vpop.f32.mrf.mxu2 }
0x2668   :  { %v5151_v31 = vadd.f32 %v5150_v47, %v5127_v44 }
0x266b   :  { %v5170_v15 = vpop.f32.mrf.mxu1 }
0x266c   :  { %v5171_v61 = vadd.f32 %v5170_v15, %v5148_v18 }
0x266e   :  { %v5214_v58 = vrot.slane %v5171_v61, 4 }
0x2670   :  { %v5216_v54 = vadd.f32 %v5214_v58, %v5171_v61 }
0x2672   :  { %v5218_v17 = vrot.slane %v5216_v54, 4 }
0x2673   :  { %v5173_v11 = vpop.f32.mrf.mxu1 }
0x2674   :  { %v5174_v46 = vadd.f32 %v5173_v11, %v5151_v31  ;;  %v5220_v20 = vsel %vm226_vm5, %v5216_v54, %v5218_v17 }
0x2675   :  { %v5229_v26 = vmul.f32 0.001953125, %v5220_v20 }
0x2676   :  { %v5176_v51 = vsel %vm561_vm12, %v5174_v46, 0.0  ;;  %v5222_v41 = vrot.slane %v5174_v46, 4 }
0x2677   :  { %v5177_v10 = vrot.slane %v5176_v51, 4  ;;  %v5231_v45 = vmul.f32 %v5229_v26, %v5229_v26 }
0x2678   :  { %v5224_v49 = vadd.f32 %v5222_v41, %v5174_v46  ;;  %v5249_v46 = vpop.permute.xlu2 %5248 }
0x2679   :  { %v5178_v29 = vadd.f32 %v5177_v10, %v5176_v51 }
0x267a   :  { %v5226_v1 = vrot.slane %v5224_v49, 4 }
0x267b   :  { %v5179_v55 = vrot.slane %v5178_v29, 2 }
0x267c   :  { %v5228_v13 = vsel %vm226_vm5, %v5224_v49, %v5226_v1 }
0x267d   :  { %v5180_v37 = vadd.f32 %v5179_v55, %v5178_v29  ;;  %v5230_v6 = vmul.f32 0.001953125, %v5228_v13 }
0x267f   :  { %v5181_v19 = vrot.slane %v5180_v37, 1  ;;  %v5232_v25 = vsub.f32 %v5230_v6, %v5231_v45 }
0x2681   :  { %v5182_v36 = vadd.f32 %v5181_v19, %v5180_v37 }
0x2683   :  { %8041 = vrsqrt.f32 %v5182_v36  ;;  %vm5190_vm6 = vcmp.eq.f32.partialorder %v5182_v36, inf  ;;  %v5193_v53 = vand.u32 2147483648, %v5182_v36  ;;  %vm5192_vm7 = vcmp.eq.f32.partialorder %v5182_v36, 0.0 }
0x2689   :  { %v8042_v16 = vpop.eup %8041 }
0x268a   :  { %v5184_v59 = vmul.f32 %v8042_v16, %v5182_v36 }
0x268c   :  { %v5185_v24 = vmul.f32 %v8042_v16, %v5184_v59 }
0x268e   :  { %v5186_v14 = vmul.f32 0.5, %v5185_v24 }
0x2690   :  { %v5187_v38 = vsub.f32 1.5, %v5186_v14 }
0x2692   :  { %v5188_v7 = vmul.f32 %v8042_v16, %v5187_v38 }
0x2694   :  { %v5189_v39 = vmul.f32 %v5188_v7, %v5182_v36 }
0x2696   :  { %v5191_v33 = vsel %vm5190_vm6, %v5182_v36, %v5189_v39 }
0x2697   :  { %v5194_v35 = vsel %vm5192_vm7, %v5193_v53, %v5191_v33 }
0x2698   :  { %v5195_v27 = vadd.f32 1e-06, %v5194_v35 }
0x269a   :  { %8043 = vrcp.f32 %v5195_v27  ;;  %v5207_v2 = vand.u32 2147483648, %v5195_v27  ;;  %v5205_v34 = vand.u32 2147483647, %v5195_v27  ;;  %vm5201_vm9 = vweird.f32 %v5195_v27 }
0x269c   :  { %v5208_v23 = vor.u32 1.1754944e-38, %v5207_v2  ;;  %vm5206_vm11 = vcmp.eq.f32.partialorder %v5205_v34, 8.507059e+37 }
0x26a0   :  { %v8044_v5 = vpop.eup %8043 }
0x26a1   :  { %v5197_v63 = vmul.f32 %v8044_v5, %v5195_v27  ;;  %vm5202_vm8 = vweird.f32 %v8044_v5 }
0x26a2   :  { %vm5203_vm10 = vmor %vm5201_vm9, %vm5202_vm8 }
0x26a3   :  { %v5198_v43 = vsub.f32 1.0, %v5197_v63 }
0x26a5   :  { %v5199_v9 = vmul.f32 %v8044_v5, %v5198_v43 }
0x26a7   :  { %v5200_v22 = vadd.f32 %v8044_v5, %v5199_v9 }
0x26a9   :  { %v5204_v52 = vsel %vm5203_vm10, %v8044_v5, %v5200_v22 }
0x26aa   :  { %v5209_v60 = vsel %vm5206_vm11, %v5208_v23, %v5204_v52 }
0x26ab   :  { %v5233_v48 = vmul.f32 %v5209_v60, %v5209_v60  ;;  %v5252_v11 = vmul.f32 %v5229_v26, %v5209_v60 }
0x26ad   :  { %v5234_v57 = vmul.f32 %v5233_v48, %v5232_v25 }
0x26af   :  { %v5235_v40 = vadd.f32 1e-05, %v5234_v57 }
0x26b1   :  { %8045 = vrsqrt.f32 %v5235_v40  ;;  %vm5242_vm14 = vweird.f32 %v5235_v40 }
0x26b7   :  { %v8046_v32 = vpop.eup %8045 }
0x26b8   :  { %v5237_v50 = vmul.f32 %v8046_v32, %v5235_v40  ;;  %vm5243_vm13 = vweird.f32 %v8046_v32 }
0x26b9   :  { %vm5244_vm15 = vmor %vm5242_vm14, %vm5243_vm13 }
0x26ba   :  { %v5238_v15 = vmul.f32 %v8046_v32, %v5237_v50 }
0x26bc   :  { %v5239_v47 = vmul.f32 0.5, %v5238_v15  ;;  %v10929_v15 = vld [vmem:[%s11705_s3] sm:$0xff] }
0x26be   :  { %v5240_v44 = vsub.f32 1.5, %v5239_v47 }
0x26c0   :  { %v5241_v31 = vmul.f32 %v8046_v32, %v5240_v44  ;;  %v8110_v44 = vmov 12  }
0x26c1   :  { %7806 = vset.pattern.permute.xlu0 %v8110_v44 }
0x26c2   :  { %v5245_v51 = vsel %vm5244_vm15, %v8046_v32, %v5241_v31 }
0x26c3   :  { %v5246_v10 = vmul.f32 %v5245_v51, %v5209_v60  ;;  %v5253_v29 = vmul.f32 %v5252_v11, %v5245_v51 }
0x26c5   :  { %v5251_v55 = vmul.f32 %v5249_v46, %v5246_v10  ;;  %v5254_v37 = vmul.f32 %v5253_v29, %v5249_v46 }
0x26c7   :  { %5256 = vrot.lane.b32.xlu0 %v5254_v37, %s8109_s29  ;;  %5262 = vperm.xlu1 %7752, %v5251_v55  }
0x2739   :  { %v5257_v19 = vpop.permute.xlu0 %5256  ;;  %v5263_v16 = vpop.permute.xlu1 %5262 }
0x273a   :  { %v5259_v36 = vsub.f32 %v10669_v30, %v5257_v19  ;;  %v5265_v59 = vmul.f32 %v5263_v16, %v10830_v62  ;;  %v5266_v24 = vmul.f32 %v5263_v16, %v10827_v42  ;;  %v5267_v14 = vmul.f32 %v5263_v16, %v10839_v0 }
0x273c   :  { %5270 = vperm.xlu2 %7753, %v5259_v36  }
0x2744   :  { %7804 = vset.pattern.permute.xlu2 %v8110_v44 }
0x2796   :  { %v5271_v18 = vpop.permute.xlu2 %5270 }
0x2797   :  { %v5273_v38 = vadd.f32 %v5271_v18, %v5265_v59  ;;  %v5274_v61 = vadd.f32 %v5271_v18, %v5266_v24  ;;  %v5275_v7 = vadd.f32 %v5271_v18, %v5267_v14 }
0x2799   :  { %v10868_v39 = vmul.f32 %v5273_v38, %v8176_v3  ;;  %v10871_v53 = vmul.f32 %v5274_v61, %v8178_v4  ;;  %v10874_v30 = vmul.f32 %v5275_v7, %v8190_v8 }
0x279b   :  { %5334 = vrot.lane.b32.xlu1 %v10874_v30, %s8074_s11  ;;  %v7759_v42 = vpack.i.bf16 %v10871_v53, %v10868_v39  ;;  %v7779_v9 = vpack.i.bf16 %v10874_v30, %v10868_v39 }
0x279d   :  { %7760 = vrot.lane.b32.xlu2 %v7759_v42, %s8073_s1  ;;  %7755 = vrot.lane.b32.xlu0 %v7759_v42, %s8074_s11 }
0x27a5   :  { %5289 = vrot.lane.b32.xlu0 %v10874_v30, %s8073_s1 }
0x27ad   :  { %7765 = vrot.lane.b32.xlu0 %v7759_v42, %s8075_s14  ;;  %v7071_v42 = vld [vmem:[%s11706_s2 + $0x60] sm:$0xff] }
0x27f7   :  { %v7761_v62 = vpop.permute.xlu2 %7760 }
0x27f8   :  { %v7763_v0 = vunpack.i.h.bf16 %v7761_v62  ;;  %v7762_v58 = vunpack.i.l.bf16 %v7761_v62 }
0x27fa   :  { %v10887_v33 = vsel %vm288_vm0, %v7762_v58, %v7763_v0 }
0x27fb   :  { %v7789_v35 = vpack.i.bf16 %v10874_v30, %v10887_v33 }
0x27fd   :  { %7790 = vrot.lane.b32.xlu0 %v7789_v35, %s8075_s14 }
0x280d   :  { %v5335_v49 = vpop.permute.xlu1 %5334 }
0x280f   :  { %v7756_v41 = vpop.permute.xlu0 %7755 }
0x2810   :  { %v7758_v27 = vunpack.i.h.bf16 %v7756_v41  ;;  %v7757_v54 = vunpack.i.l.bf16 %v7756_v41 }
0x2812   :  { %v10894_v17 = vsel %vm336_vm1, %v7758_v27, %v5335_v49  ;;  %v5337_v5 = vsel %vm336_vm1, %v7757_v54, %v7758_v27  ;;  %v5338_v1 = vsel %vm336_vm1, %v5335_v49, %v7757_v54 }
0x2813   :  { %v7774_v63 = vpack.i.bf16 %v5338_v1, %v5337_v5  ;;  %v7769_v20 = vpack.i.bf16 %v10894_v17, %v5337_v5 }
0x2815   :  { %7775 = vrot.lane.b32.xlu2 %v7774_v63, %s8077_s0  ;;  %7770 = vrot.lane.b32.xlu1 %v7769_v20, %s8075_s14  ;;  %v11016_v20 = vld [vmem:[%s11708_s4] sm:$0xff] }
0x2817   :  { %v5290_v43 = vpop.permute.xlu0 %5289 }
0x2818   :  { %v10905_v13 = vsel %vm288_vm0, %v7763_v0, %v5290_v43  ;;  %v5293_v2 = vsel %vm288_vm0, %v5290_v43, %v7762_v58 }
0x2819   :  { %5307 = vrot.lane.b32.xlu0 %v10905_v13, %s8075_s14  ;;  %v7784_v26 = vpack.i.bf16 %v5293_v2, %v5338_v1  ;;  %v7799_v34 = vpack.i.bf16 %v10871_v53, %v10905_v13  ;;  %v7794_v6 = vpack.i.bf16 %v5293_v2, %v10894_v17 }
0x281d   :  { %7780 = vrot.lane.b32.xlu2 %v7779_v9, %s8077_s0  ;;  %7785 = vrot.lane.b32.xlu1 %v7784_v26, %s8075_s14 }
0x281f   :  { %v7766_v60 = vpop.permute.xlu0 %7765 }
0x2820   :  { %v7768_v32 = vunpack.i.h.bf16 %v7766_v60  ;;  %v7767_v50 = vunpack.i.l.bf16 %v7766_v60 }
0x2821   :  { %5632 = vrot.lane.b32.xlu0 %v11016_v20, %s8111_s19 }
0x2822   :  { %v5328_v10 = vsel %vm308_vm2, %v7767_v50, %v7768_v32 }
0x2825   :  { %7800 = vrot.lane.b32.xlu2 %v7799_v34, %s8077_s0  ;;  %7795 = vrot.lane.b32.xlu1 %v7794_v6, %s8077_s0 }
0x282d   :  { %5296 = vrot.lane.b32.xlu1 %v10887_v33, %s8077_s0  ;;  %5362 = vperm.xlu2 %7804, %v10929_v15  }
0x2835   :  { %7805 = vset.pattern.permute.xlu2 %v8078_v56 }
0x286f   :  { %v7776_v22 = vpop.permute.xlu2 %7775  ;;  %v7791_v29 = vpop.permute.xlu0 %7790 }
0x2870   :  { %v7778_v25 = vunpack.i.h.bf16 %v7776_v22  ;;  %v7777_v48 = vunpack.i.l.bf16 %v7776_v22  ;;  %v7792_v19 = vunpack.i.l.bf16 %v7791_v29  ;;  %v7793_v14 = vunpack.i.h.bf16 %v7791_v29 }
0x2872   :  { %v5347_v47 = vsel %vm298_vm3, %v7778_v25, %v7777_v48  ;;  %v5329_v58 = vsel %vm308_vm2, %v7793_v14, %v7767_v50  ;;  %v5327_v54 = vsel %vm308_vm2, %v7768_v32, %v7793_v14 }
0x2877   :  { %v10924_v40 = vpop.permute.xlu2 %7780 }
0x2878   :  { %v7783_v11 = vunpack.i.h.bf16 %v10924_v40  ;;  %v7782_v46 = vunpack.i.l.bf16 %v10924_v40 }
0x287a   :  { %v5320_v36 = vsel %vm298_vm3, %v7783_v11, %v7782_v46 }
0x287f   :  { %v7801_v16 = vpop.permute.xlu2 %7800 }
0x2880   :  { %v7802_v18 = vunpack.i.l.bf16 %v7801_v16  ;;  %v7803_v0 = vunpack.i.h.bf16 %v7801_v16 }
0x2882   :  { %v5318_v41 = vsel %vm298_vm3, %v7803_v0, %v7783_v11 }
0x2887   :  { %v7771_v23 = vpop.permute.xlu1 %7770 }
0x2888   :  { %v7773_v45 = vunpack.i.h.bf16 %v7771_v23  ;;  %v7772_v52 = vunpack.i.l.bf16 %v7771_v23 }
0x288a   :  { %v5355_v57 = vsel %vm308_vm2, %v7772_v52, %v7773_v45 }
0x288b   :  { %5375 = vmatpush.msra.mxu3 %v5355_v57  ;;  %v5308_v27 = vpop.permute.xlu0 %5307 }
0x288d   :  { %5376 = vmatpush.msra.mxu3 %v5337_v5 }
0x288f   :  { %v7786_v31 = vpop.permute.xlu1 %7785  ;;  %5377 = vmatpush.msra.mxu3 %v5347_v47 }
0x2890   :  { %v7787_v51 = vunpack.i.l.bf16 %v7786_v31  ;;  %v7788_v55 = vunpack.i.h.bf16 %v7786_v31 }
0x2891   :  { %5378 = vmatpush.msra.mxu3 %v5328_v10 }
0x2892   :  { %v5356_v37 = vsel %vm308_vm2, %v7787_v51, %v7772_v52  ;;  %v5310_v59 = vsel %vm308_vm2, %v7788_v55, %v7792_v19  ;;  %v5354_v62 = vsel %vm308_vm2, %v7773_v45, %v7787_v51  ;;  %v5311_v49 = vsel %vm308_vm2, %v5308_v27, %v7788_v55 }
0x2893   :  { %5379 = vmatpush.msra.mxu3 %v10868_v39  ;;  %5415 = vmatpush.msrb.mxu0 %v5356_v37 }
0x2895   :  { %5380 = vmatpush.msra.mxu3 %v5320_v36  ;;  %5416 = vmatpush.msrb.mxu0 %v5338_v1  ;;  %v5309_v1 = vsel %vm308_vm2, %v7792_v19, %v5308_v27 }
0x2897   :  { %v7796_v24 = vpop.permute.xlu1 %7795  ;;  %5381 = vmatpush.msra.mxu3 %v5310_v59 }
0x2898   :  { %v7798_v38 = vunpack.i.h.bf16 %v7796_v24  ;;  %v7797_v61 = vunpack.i.l.bf16 %v7796_v24 }
0x2899   :  { %5382 = vmatpush.msra.mxu3 %v5293_v2 }
0x289a   :  { %v5302_v7 = vsel %vm298_vm3, %v7802_v18, %v7798_v38  ;;  %v5345_v39 = vsel %vm298_vm3, %v7797_v61, %v7778_v25  ;;  %v5346_v35 = vsel %vm298_vm3, %v7777_v48, %v7797_v61 }
0x289b   :  { %5383 = vmatpush.msra.mxu3 %v5302_v7  ;;  %5417 = vmatpush.msrb.mxu0 %v5345_v39 }
0x289c   :  { %7072 = vmatmul.msk.f32.vlgmr.msra.gmra.mxu3 %vm365_vm4, %v7071_v42 }
0x289d   :  { %5395 = vmatpush.msrb.mxu3 %v5354_v62  ;;  %5418 = vmatpush.msrb.mxu0 %v5329_v58 }
0x289f   :  { %5396 = vmatpush.msrb.mxu3 %v10894_v17  ;;  %5419 = vmatpush.msrb.mxu0 %v10874_v30  ;;  %v5297_v5 = vpop.permute.xlu1 %5296  ;;  %v5319_v30 = vsel %vm298_vm3, %v7782_v46, %v7803_v0 }
0x28a0   :  { %v5300_v17 = vsel %vm298_vm3, %v5297_v5, %v7802_v18 }
0x28a1   :  { %5397 = vmatpush.msrb.mxu3 %v5346_v35  ;;  %5420 = vmatpush.msrb.mxu0 %v5318_v41 }
0x28a3   :  { %5398 = vmatpush.msrb.mxu3 %v5327_v54  ;;  %5421 = vmatpush.msrb.mxu0 %v5311_v49 }
0x28a5   :  { %5399 = vmatpush.msrb.mxu3 %v10871_v53  ;;  %5422 = vmatpush.msrb.mxu0 %v10905_v13  ;;  %v5301_v53 = vsel %vm298_vm3, %v7798_v38, %v5297_v5 }
0x28a7   :  { %5400 = vmatpush.msrb.mxu3 %v5319_v30  ;;  %5423 = vmatpush.msrb.mxu0 %v5300_v17 }
0x28a8   :  { %7074 = vmatmul.msk.f32.vlgmr.msrb.gmra.mxu0 %vm365_vm4, %v7071_v42 }
0x28a9   :  { %5401 = vmatpush.msrb.mxu3 %v5309_v1 }
0x28ab   :  { %5402 = vmatpush.msrb.mxu3 %v10887_v33  ;;  %v5363_v33 = vpop.permute.xlu2 %5362 }
0x28ad   :  { %5403 = vmatpush.msrb.mxu3 %v5301_v53 }
0x28ae   :  { %7073 = vmatmul.msk.f32.vlgmr.msrb.gmra.mxu3 %vm365_vm4, %v7071_v42 }
0x28af   :  { %5537 = vmatpush.msra.mxu3 %v8076_v21 }
0x28b1   :  { %5538 = vmatpush.msra.mxu3 %v8076_v21 }
0x28b3   :  { %5539 = vmatpush.msra.mxu3 %v8076_v21 }
0x28b5   :  { %5540 = vmatpush.msra.mxu3 %v8076_v21 }
0x28b7   :  { %5541 = vmatpush.msra.mxu3 %v8076_v21 }
0x28b9   :  { %5542 = vmatpush.msra.mxu3 %v8076_v21 }
0x28bb   :  { %5543 = vmatpush.msra.mxu3 %v8076_v21 }
0x28bd   :  { %5544 = vmatpush.msra.mxu3 %v8076_v21 }
0x28bf   :  { %5545 = vmatpush.msra.mxu3 %v8076_v21 }
0x28c1   :  { %5546 = vmatpush.msra.mxu3 %v8076_v21 }
0x28c3   :  { %5547 = vmatpush.msra.mxu3 %v8076_v21 }
0x28c5   :  { %5548 = vmatpush.msra.mxu3 %v8076_v21 }
0x28c7   :  { %5549 = vmatpush.msra.mxu3 %v8076_v21 }
0x28c9   :  { %5550 = vmatpush.msra.mxu3 %v8076_v21 }
0x28cb   :  { %5551 = vmatpush.msra.mxu3 %v8076_v21 }
0x28cd   :  { %5552 = vmatpush.msra.mxu3 %v8076_v21 }
0x28cf   :  { %5898 = vmatpush.msrb.mxu3 %v8076_v21 }
0x28d1   :  { %5899 = vmatpush.msrb.mxu3 %v8076_v21 }
0x28d3   :  { %5900 = vmatpush.msrb.mxu3 %v8076_v21 }
0x28d5   :  { %5901 = vmatpush.msrb.mxu3 %v8076_v21 }
0x28d7   :  { %5902 = vmatpush.msrb.mxu3 %v8076_v21 }
0x28d9   :  { %5903 = vmatpush.msrb.mxu3 %v8076_v21 }
0x28db   :  { %5904 = vmatpush.msrb.mxu3 %v8076_v21 }
0x28dd   :  { %5905 = vmatpush.msrb.mxu3 %v8076_v21 }
0x28df   :  { %5906 = vmatpush.msrb.mxu3 %v8076_v21 }
0x28e1   :  { %5907 = vmatpush.msrb.mxu3 %v8076_v21 }
0x28e3   :  { %5908 = vmatpush.msrb.mxu3 %v8076_v21 }
0x28e5   :  { %5909 = vmatpush.msrb.mxu3 %v8076_v21 }
0x28e7   :  { %5910 = vmatpush.msrb.mxu3 %v8076_v21 }
0x28e9   :  { %5911 = vmatpush.msrb.mxu3 %v8076_v21 }
0x28eb   :  { %5912 = vmatpush.msrb.mxu3 %v8076_v21 }
0x28ed   :  { %5913 = vmatpush.msrb.mxu3 %v8076_v21 }
0x291f   :  { %v5385_v63 = vpop.f32.mrf.mxu3 }
0x2920   :  { %v5386_v43 = vadd.f32 %v5385_v63, %v5363_v33 }
0x2922   :  { %v5428_v13 = vmul.f32 %v5386_v43, %v8176_v3 }
0x2924   :  { %vm5431_vm6 = vcmp.ge.f32.partialorder %v5428_v13, 0.0  ;;  %v5434_v2 = vmul.f32 0.01, %v5428_v13 }
0x2925   :  { %v5425_v26 = vpop.f32.mrf.mxu0 }
0x2926   :  { %v5426_v9 = vadd.f32 %v5425_v26, %v5363_v33  ;;  %v11020_v34 = vsel %vm5431_vm6, %v5428_v13, %v5434_v2 }
0x2927   :  { %5507 = vmatmul.f32.vlgmr.msrb.gmra.mxu2 %v11020_v34  ;;  %v5440_v45 = vmul.f32 %v11020_v34, %v11020_v34 }
0x2928   :  { %v5430_v6 = vmul.f32 %v5426_v9, %v8190_v8 }
0x292a   :  { %vm5433_vm7 = vcmp.ge.f32.partialorder %v5430_v6, 0.0  ;;  %v5436_v22 = vmul.f32 0.01, %v5430_v6 }
0x292c   :  { %v11024_v23 = vsel %vm5433_vm7, %v5430_v6, %v5436_v22 }
0x292d   :  { %5553 = vmatmul.f32.vlgmr.msra.gmra.mxu3 %v11024_v23  ;;  %v5442_v48 = vmul.f32 %v11024_v23, %v11024_v23 }
0x292e   :  { %6150 = vmatpush.msra.mxu3 %v8076_v21 }
0x292f   :  { %5510 = vmatmul.f32.gmra.mxu2 %v5440_v45 }
0x2930   :  { %6151 = vmatpush.msra.mxu3 %v8076_v21 }
0x2931   :  { %v5405_v52 = vpop.f32.mrf.mxu3 }
0x2932   :  { %v5406_v60 = vadd.f32 %v5405_v52, %v5363_v33  ;;  %6152 = vmatpush.msra.mxu3 %v8076_v21 }
0x2934   :  { %v5429_v25 = vmul.f32 %v5406_v60, %v8178_v4  ;;  %6153 = vmatpush.msra.mxu3 %v8076_v21 }
0x2935   :  { %5556 = vmatmul.f32.gmra.mxu3 %v5442_v48 }
0x2936   :  { %vm5432_vm8 = vcmp.ge.f32.partialorder %v5429_v25, 0.0  ;;  %v5435_v57 = vmul.f32 0.01, %v5429_v25  ;;  %6154 = vmatpush.msra.mxu3 %v8076_v21 }
0x2938   :  { %v11037_v40 = vsel %vm5432_vm8, %v5429_v25, %v5435_v57  ;;  %6155 = vmatpush.msra.mxu3 %v8076_v21 }
0x2939   :  { %5530 = vmatmul.f32.vlgmr.msrb.gmra.mxu1 %v11037_v40  ;;  %v5441_v32 = vmul.f32 %v11037_v40, %v11037_v40 }
0x293a   :  { %6127 = vmatpush.msrb.mxu1 %v8076_v21  ;;  %6156 = vmatpush.msra.mxu3 %v8076_v21 }
0x293c   :  { %6128 = vmatpush.msrb.mxu1 %v8076_v21  ;;  %6157 = vmatpush.msra.mxu3 %v8076_v21 }
0x293e   :  { %6129 = vmatpush.msrb.mxu1 %v8076_v21  ;;  %6158 = vmatpush.msra.mxu3 %v8076_v21 }
0x2940   :  { %6130 = vmatpush.msrb.mxu1 %v8076_v21  ;;  %6159 = vmatpush.msra.mxu3 %v8076_v21 }
0x2941   :  { %5533 = vmatmul.f32.gmra.mxu1 %v5441_v32 }
0x2942   :  { %6131 = vmatpush.msrb.mxu1 %v8076_v21  ;;  %6160 = vmatpush.msra.mxu3 %v8076_v21 }
0x2944   :  { %6132 = vmatpush.msrb.mxu1 %v8076_v21  ;;  %6161 = vmatpush.msra.mxu3 %v8076_v21 }
0x2946   :  { %6133 = vmatpush.msrb.mxu1 %v8076_v21  ;;  %6162 = vmatpush.msra.mxu3 %v8076_v21 }
0x2948   :  { %6134 = vmatpush.msrb.mxu1 %v8076_v21  ;;  %6163 = vmatpush.msra.mxu3 %v8076_v21 }
0x294a   :  { %6135 = vmatpush.msrb.mxu1 %v8076_v21  ;;  %6164 = vmatpush.msra.mxu3 %v8076_v21 }
0x294c   :  { %6136 = vmatpush.msrb.mxu1 %v8076_v21  ;;  %6165 = vmatpush.msra.mxu3 %v8076_v21 }
0x294e   :  { %6137 = vmatpush.msrb.mxu1 %v8076_v21 }
0x2950   :  { %6138 = vmatpush.msrb.mxu1 %v8076_v21 }
0x2952   :  { %6139 = vmatpush.msrb.mxu1 %v8076_v21 }
0x2954   :  { %6140 = vmatpush.msrb.mxu1 %v8076_v21 }
0x2956   :  { %6141 = vmatpush.msrb.mxu1 %v8076_v21 }
0x2958   :  { %6142 = vmatpush.msrb.mxu1 %v8076_v21 }
0x29aa   :  { %v5508_v50 = vpop.f32.mrf.mxu2 }
0x29b0   :  { %v5554_v47 = vpop.f32.mrf.mxu3 }
0x29b2   :  { %v5511_v31 = vpop.f32.mrf.mxu2 }
0x29b6   :  { %v5531_v44 = vpop.f32.mrf.mxu1 }
0x29b7   :  { %v5532_v38 = vadd.f32 %v5531_v44, %v5508_v50 }
0x29b8   :  { %v5557_v51 = vpop.f32.mrf.mxu3 }
0x29b9   :  { %v5555_v39 = vadd.f32 %v5554_v47, %v5532_v38 }
0x29bb   :  { %v5598_v58 = vrot.slane %v5555_v39, 4 }
0x29bd   :  { %v5600_v49 = vadd.f32 %v5598_v58, %v5555_v39 }
0x29be   :  { %v5534_v11 = vpop.f32.mrf.mxu1 }
0x29bf   :  { %v5535_v46 = vadd.f32 %v5534_v11, %v5511_v31  ;;  %v5602_v30 = vrot.slane %v5600_v49, 4 }
0x29c1   :  { %v5558_v10 = vadd.f32 %v5557_v51, %v5535_v46  ;;  %v5604_v33 = vsel %vm226_vm5, %v5600_v49, %v5602_v30 }
0x29c2   :  { %v5613_v9 = vmul.f32 0.001953125, %v5604_v33 }
0x29c3   :  { %v5560_v29 = vsel %vm561_vm12, %v5558_v10, 0.0  ;;  %v5606_v27 = vrot.slane %v5558_v10, 4 }
0x29c4   :  { %v5561_v55 = vrot.slane %v5560_v29, 4  ;;  %v5615_v60 = vmul.f32 %v5613_v9, %v5613_v9 }
0x29c5   :  { %v5608_v5 = vadd.f32 %v5606_v27, %v5558_v10 }
0x29c6   :  { %v5562_v37 = vadd.f32 %v5561_v55, %v5560_v29  ;;  %v5633_v29 = vpop.permute.xlu0 %5632 }
0x29c7   :  { %v5610_v1 = vrot.slane %v5608_v5, 4 }
0x29c8   :  { %v5563_v19 = vrot.slane %v5562_v37, 2 }
0x29c9   :  { %v5612_v43 = vsel %vm226_vm5, %v5608_v5, %v5610_v1 }
0x29ca   :  { %v5564_v36 = vadd.f32 %v5563_v19, %v5562_v37  ;;  %v5614_v6 = vmul.f32 0.001953125, %v5612_v43 }
0x29cc   :  { %v5565_v16 = vrot.slane %v5564_v36, 1  ;;  %v5616_v48 = vsub.f32 %v5614_v6, %v5615_v60 }
0x29ce   :  { %v5566_v59 = vadd.f32 %v5565_v16, %v5564_v36 }
0x29d0   :  { %8047 = vrsqrt.f32 %v5566_v59  ;;  %vm5574_vm9 = vcmp.eq.f32.partialorder %v5566_v59, inf  ;;  %v5577_v0 = vand.u32 2147483648, %v5566_v59  ;;  %vm5576_vm10 = vcmp.eq.f32.partialorder %v5566_v59, 0.0 }
0x29d6   :  { %v8048_v24 = vpop.eup %8047 }
0x29d7   :  { %v5568_v14 = vmul.f32 %v8048_v24, %v5566_v59 }
0x29d9   :  { %v5569_v18 = vmul.f32 %v8048_v24, %v5568_v14 }
0x29db   :  { %v5570_v61 = vmul.f32 0.5, %v5569_v18 }
0x29dd   :  { %v5571_v7 = vsub.f32 1.5, %v5570_v61 }
0x29df   :  { %v5572_v42 = vmul.f32 %v8048_v24, %v5571_v7 }
0x29e1   :  { %v5573_v62 = vmul.f32 %v5572_v42, %v5566_v59 }
0x29e3   :  { %v5575_v35 = vsel %vm5574_vm9, %v5566_v59, %v5573_v62  ;;  %v11075_v59 = vld [vmem:[%s11709_s5] sm:$0xff] }
0x29e4   :  { %v5578_v41 = vsel %vm5576_vm10, %v5577_v0, %v5575_v35 }
0x29e5   :  { %v5579_v54 = vadd.f32 1e-06, %v5578_v41 }
0x29e7   :  { %8049 = vrcp.f32 %v5579_v54  ;;  %v5591_v13 = vand.u32 2147483648, %v5579_v54  ;;  %v5589_v26 = vand.u32 2147483647, %v5579_v54  ;;  %vm5585_vm13 = vweird.f32 %v5579_v54 }
0x29e9   :  { %v5592_v45 = vor.u32 1.1754944e-38, %v5591_v13  ;;  %vm5590_vm15 = vcmp.eq.f32.partialorder %v5589_v26, 8.507059e+37 }
0x29ed   :  { %v8050_v17 = vpop.eup %8049 }
0x29ee   :  { %v5581_v53 = vmul.f32 %v8050_v17, %v5579_v54  ;;  %vm5586_vm11 = vweird.f32 %v8050_v17 }
0x29ef   :  { %vm5587_vm14 = vmor %vm5585_vm13, %vm5586_vm11 }
0x29f0   :  { %v5582_v63 = vsub.f32 1.0, %v5581_v53 }
0x29f2   :  { %v5583_v2 = vmul.f32 %v8050_v17, %v5582_v63 }
0x29f4   :  { %v5584_v22 = vadd.f32 %v8050_v17, %v5583_v2 }
0x29f6   :  { %v5588_v52 = vsel %vm5587_vm14, %v8050_v17, %v5584_v22 }
0x29f7   :  { %v5593_v25 = vsel %vm5590_vm15, %v5592_v45, %v5588_v52 }
0x29f8   :  { %v5617_v57 = vmul.f32 %v5593_v25, %v5593_v25  ;;  %v5636_v10 = vmul.f32 %v5613_v9, %v5593_v25 }
0x29fa   :  { %v5618_v32 = vmul.f32 %v5617_v57, %v5616_v48 }
0x29fc   :  { %v5619_v50 = vadd.f32 1e-05, %v5618_v32 }
0x29fe   :  { %8051 = vrsqrt.f32 %v5619_v50  ;;  %vm5626_vm7 = vweird.f32 %v5619_v50 }
0x2a04   :  { %v8052_v47 = vpop.eup %8051 }
0x2a05   :  { %v5621_v44 = vmul.f32 %v8052_v47, %v5619_v50  ;;  %vm5627_vm6 = vweird.f32 %v8052_v47 }
0x2a06   :  { %vm5628_vm8 = vmor %vm5626_vm7, %vm5627_vm6 }
0x2a07   :  { %v5622_v31 = vmul.f32 %v8052_v47, %v5621_v44 }
0x2a09   :  { %v5623_v11 = vmul.f32 0.5, %v5622_v31 }
0x2a0b   :  { %v5624_v46 = vsub.f32 1.5, %v5623_v11 }
0x2a0d   :  { %v5625_v51 = vmul.f32 %v8052_v47, %v5624_v46  ;;  %v8113_v46 = vmov 13  }
0x2a0e   :  { %7857 = vset.pattern.permute.xlu1 %v8113_v46 }
0x2a0f   :  { %v5629_v55 = vsel %vm5628_vm8, %v8052_v47, %v5625_v51 }
0x2a10   :  { %v5630_v37 = vmul.f32 %v5629_v55, %v5593_v25  ;;  %v5637_v19 = vmul.f32 %v5636_v10, %v5629_v55 }
0x2a12   :  { %v5635_v36 = vmul.f32 %v5633_v29, %v5630_v37  ;;  %v5638_v16 = vmul.f32 %v5637_v19, %v5633_v29 }
0x2a14   :  { %5640 = vrot.lane.b32.xlu1 %v5638_v16, %s8112_s20  ;;  %5646 = vperm.xlu2 %7805, %v5635_v36  }
0x2a1c   :  { %7859 = vset.pattern.permute.xlu2 %v8113_v46 }
0x2a6e   :  { %v5647_v18 = vpop.permute.xlu2 %5646 }
0x2a6f   :  { %v5649_v38 = vmul.f32 %v5647_v18, %v11020_v34  ;;  %v5650_v61 = vmul.f32 %v5647_v18, %v11037_v40  ;;  %v5651_v7 = vmul.f32 %v5647_v18, %v11024_v23 }
0x2a86   :  { %v5641_v24 = vpop.permute.xlu1 %5640 }
0x2a87   :  { %v5643_v14 = vsub.f32 %v11075_v59, %v5641_v24 }
0x2a89   :  { %5654 = vperm.xlu0 %7806, %v5643_v14  }
0x2afb   :  { %v5655_v39 = vpop.permute.xlu0 %5654 }
0x2afc   :  { %v5657_v42 = vadd.f32 %v5655_v39, %v5649_v38  ;;  %v5658_v62 = vadd.f32 %v5655_v39, %v5650_v61  ;;  %v5659_v0 = vadd.f32 %v5655_v39, %v5651_v7 }
0x2afe   :  { %v11082_v58 = vmul.f32 %v5657_v42, %v8176_v3  ;;  %v11085_v35 = vmul.f32 %v5658_v62, %v8178_v4  ;;  %v11088_v41 = vmul.f32 %v5659_v0, %v8190_v8 }
0x2b00   :  { %5718 = vrot.lane.b32.xlu2 %v11088_v41, %s8074_s11  ;;  %v7807_v34 = vpack.i.bf16 %v11085_v35, %v11082_v58  ;;  %v7827_v33 = vpack.i.bf16 %v11088_v41, %v11085_v35 }
0x2b02   :  { %7808 = vrot.lane.b32.xlu1 %v7807_v34, %s8074_s11 }
0x2b08   :  { %5673 = vrot.lane.b32.xlu2 %v11088_v41, %s8073_s1 }
0x2b0a   :  { %7813 = vrot.lane.b32.xlu1 %v7807_v34, %s8073_s1 }
0x2b5a   :  { %v5719_v54 = vpop.permute.xlu2 %5718 }
0x2b62   :  { %v5674_v13 = vpop.permute.xlu2 %5673 }
0x2b74   :  { %v7809_v23 = vpop.permute.xlu1 %7808 }
0x2b75   :  { %v7811_v40 = vunpack.i.h.bf16 %v7809_v23  ;;  %v7810_v27 = vunpack.i.l.bf16 %v7809_v23 }
0x2b77   :  { %v5720_v49 = vsel %vm336_vm1, %v7811_v40, %v5719_v54  ;;  %v5721_v5 = vsel %vm336_vm1, %v7810_v27, %v7811_v40  ;;  %v11104_v30 = vsel %vm336_vm1, %v5719_v54, %v7810_v27 }
0x2b78   :  { %v7822_v17 = vpack.i.bf16 %v11082_v58, %v11104_v30  ;;  %v7832_v1 = vpack.i.bf16 %v5720_v49, %v5721_v5 }
0x2b7a   :  { %7823 = vrot.lane.b32.xlu1 %v7822_v17, %s8075_s14  ;;  %7833 = vrot.lane.b32.xlu2 %v7832_v1, %s8077_s0 }
0x2b7b   :  { %7818 = vrot.lane.b32.xlu0 %v7832_v1, %s8075_s14 }
0x2b7c   :  { %v7814_v53 = vpop.permute.xlu1 %7813 }
0x2b7d   :  { %v7816_v63 = vunpack.i.h.bf16 %v7814_v53  ;;  %v7815_v43 = vunpack.i.l.bf16 %v7814_v53 }
0x2b7f   :  { %v5676_v2 = vsel %vm288_vm0, %v7815_v43, %v7816_v63  ;;  %v5677_v26 = vsel %vm288_vm0, %v5674_v13, %v7815_v43  ;;  %v11122_v6 = vsel %vm288_vm0, %v7816_v63, %v5674_v13 }
0x2b80   :  { %v7852_v9 = vpack.i.bf16 %v5676_v2, %v5677_v26 }
0x2b82   :  { %7828 = vrot.lane.b32.xlu1 %v7827_v33, %s8075_s14  ;;  %7838 = vrot.lane.b32.xlu2 %v7827_v33, %s8077_s0 }
0x2b83   :  { %7843 = vrot.lane.b32.xlu0 %v7822_v17, %s8077_s0 }
0x2b8a   :  { %5691 = vrot.lane.b32.xlu1 %v11122_v6, %s8075_s14  ;;  %7853 = vrot.lane.b32.xlu2 %v7852_v9, %s8077_s0 }
0x2b8b   :  { %7848 = vrot.lane.b32.xlu0 %v7852_v9, %s8075_s14 }
0x2b92   :  { %5746 = vperm.xlu1 %7857, %v10929_v15   ;;  %6016 = vrot.lane.b32.xlu2 %v11016_v20, %s8114_s27 }
0x2b93   :  { %5682 = vrot.lane.b32.xlu0 %v11122_v6, %s8077_s0 }
0x2b9a   :  { %7858 = vset.pattern.permute.xlu1 %v8078_v56 }
0x2bd4   :  { %v11130_v22 = vpop.permute.xlu2 %7833 }
0x2bd5   :  { %v7836_v57 = vunpack.i.h.bf16 %v11130_v22  ;;  %v7835_v32 = vunpack.i.l.bf16 %v11130_v22 }
0x2bd7   :  { %v5730_v11 = vsel %vm298_vm3, %v7835_v32, %v7836_v57 }
0x2bdc   :  { %v11141_v44 = vpop.permute.xlu2 %7838 }
0x2bdd   :  { %v7840_v24 = vunpack.i.l.bf16 %v11141_v44  ;;  %v7841_v18 = vunpack.i.h.bf16 %v11141_v44 }
0x2be4   :  { %v7854_v38 = vpop.permute.xlu2 %7853 }
0x2be5   :  { %v7856_v0 = vunpack.i.h.bf16 %v7854_v38 }
0x2bec   :  { %v11132_v45 = vpop.permute.xlu1 %7823 }
0x2bed   :  { %v7825_v52 = vunpack.i.l.bf16 %v11132_v45  ;;  %v7819_v60 = vpop.permute.xlu0 %7818  ;;  %v7826_v36 = vunpack.i.h.bf16 %v11132_v45 }
0x2bee   :  { %v7821_v25 = vunpack.i.h.bf16 %v7819_v60  ;;  %v7820_v48 = vunpack.i.l.bf16 %v7819_v60 }
0x2bf0   :  { %v5739_v50 = vsel %vm308_vm2, %v7820_v48, %v7821_v25  ;;  %v5738_v47 = vsel %vm308_vm2, %v7821_v25, %v7825_v52 }
0x2bf1   :  { %5759 = vmatpush.msra.mxu0 %v5739_v50  ;;  %5779 = vmatpush.msra.mxu2 %v5738_v47 }
0x2bf3   :  { %5760 = vmatpush.msra.mxu0 %v5721_v5  ;;  %5780 = vmatpush.msra.mxu2 %v5720_v49  ;;  %v5740_v49 = vsel %vm308_vm2, %v7825_v52, %v7820_v48 }
0x2bf4   :  { %v7829_v31 = vpop.permute.xlu1 %7828 }
0x2bf5   :  { %v7831_v51 = vunpack.i.h.bf16 %v7829_v31  ;;  %v7830_v10 = vunpack.i.l.bf16 %v7829_v31  ;;  %v7844_v29 = vpop.permute.xlu0 %7843  ;;  %5781 = vmatpush.msra.mxu2 %v5730_v11 }
0x2bf6   :  { %v7845_v55 = vunpack.i.l.bf16 %v7844_v29  ;;  %v7846_v37 = vunpack.i.h.bf16 %v7844_v29 }
0x2bf7   :  { %v5711_v19 = vsel %vm308_vm2, %v7830_v10, %v7831_v51  ;;  %v5712_v14 = vsel %vm308_vm2, %v7826_v36, %v7830_v10  ;;  %v5713_v17 = vsel %vm308_vm2, %v7831_v51, %v7826_v36 }
0x2bf8   :  { %v5731_v16 = vsel %vm298_vm3, %v7845_v55, %v7835_v32  ;;  %5782 = vmatpush.msra.mxu2 %v5711_v19  ;;  %v5703_v15 = vsel %vm298_vm3, %v7846_v37, %v7840_v24  ;;  %v5704_v42 = vsel %vm298_vm3, %v7841_v18, %v7846_v37  ;;  %v5729_v5 = vsel %vm298_vm3, %v7836_v57, %v7845_v55 }
0x2bf9   :  { %5761 = vmatpush.msra.mxu0 %v5731_v16 }
0x2bfa   :  { %5783 = vmatpush.msra.mxu2 %v11085_v35  ;;  %v7855_v35 = vunpack.i.l.bf16 %v7854_v38 }
0x2bfb   :  { %5762 = vmatpush.msra.mxu0 %v5712_v14 }
0x2bfc   :  { %5784 = vmatpush.msra.mxu2 %v5703_v15  ;;  %v5692_v62 = vpop.permute.xlu1 %5691  ;;  %v5685_v40 = vsel %vm298_vm3, %v7855_v35, %v7856_v0 }
0x2bfd   :  { %v7849_v61 = vpop.permute.xlu0 %7848  ;;  %5763 = vmatpush.msra.mxu0 %v11082_v58  ;;  %v7075_v58 = vld [vmem:[%s11706_s2 + $0x68] sm:$0xff] }
0x2bfe   :  { %v7851_v7 = vunpack.i.h.bf16 %v7849_v61  ;;  %v7850_v39 = vunpack.i.l.bf16 %v7849_v61 }
0x2bff   :  { %5764 = vmatpush.msra.mxu0 %v5704_v42 }
0x2c00   :  { %v5694_v34 = vsel %vm308_vm2, %v7850_v39, %v7851_v7  ;;  %v5693_v23 = vsel %vm308_vm2, %v7851_v7, %v5692_v62  ;;  %v5695_v1 = vsel %vm308_vm2, %v5692_v62, %v7850_v39 }
0x2c01   :  { %5765 = vmatpush.msra.mxu0 %v5694_v34  ;;  %5785 = vmatpush.msra.mxu2 %v5693_v23 }
0x2c03   :  { %5766 = vmatpush.msra.mxu0 %v5677_v26  ;;  %5786 = vmatpush.msra.mxu2 %v5676_v2 }
0x2c05   :  { %v5683_v27 = vpop.permute.xlu0 %5682  ;;  %5787 = vmatpush.msra.mxu2 %v5685_v40 }
0x2c06   :  { %7077 = vmatmul.msk.f32.vlgmr.msra.gmra.mxu2 %vm365_vm4, %v7075_v58  ;;  %v5686_v54 = vsel %vm298_vm3, %v5683_v27, %v7855_v35  ;;  %v5684_v53 = vsel %vm298_vm3, %v7856_v0, %v5683_v27 }
0x2c07   :  { %5767 = vmatpush.msra.mxu0 %v5686_v54  ;;  %5921 = vmatpush.msrb.mxu2 %v8076_v21 }
0x2c08   :  { %7076 = vmatmul.msk.f32.vlgmr.msra.gmra.mxu0 %vm365_vm4, %v7075_v58 }
0x2c09   :  { %5799 = vmatpush.msrb.mxu0 %v5740_v49  ;;  %5922 = vmatpush.msrb.mxu2 %v8076_v21 }
0x2c0b   :  { %5800 = vmatpush.msrb.mxu0 %v11104_v30  ;;  %5923 = vmatpush.msrb.mxu2 %v8076_v21  ;;  %v5702_v30 = vsel %vm298_vm3, %v7840_v24, %v7841_v18 }
0x2c0d   :  { %5801 = vmatpush.msrb.mxu0 %v5729_v5  ;;  %5924 = vmatpush.msrb.mxu2 %v8076_v21 }
0x2c0f   :  { %5802 = vmatpush.msrb.mxu0 %v5713_v17  ;;  %5925 = vmatpush.msrb.mxu2 %v8076_v21 }
0x2c11   :  { %5803 = vmatpush.msrb.mxu0 %v11088_v41  ;;  %5926 = vmatpush.msrb.mxu2 %v8076_v21  ;;  %v5747_v41 = vpop.permute.xlu1 %5746 }
0x2c13   :  { %5804 = vmatpush.msrb.mxu0 %v5702_v30  ;;  %5927 = vmatpush.msrb.mxu2 %v8076_v21 }
0x2c15   :  { %5805 = vmatpush.msrb.mxu0 %v5695_v1  ;;  %5928 = vmatpush.msrb.mxu2 %v8076_v21 }
0x2c17   :  { %5806 = vmatpush.msrb.mxu0 %v11122_v6  ;;  %5929 = vmatpush.msrb.mxu2 %v8076_v21 }
0x2c19   :  { %5807 = vmatpush.msrb.mxu0 %v5684_v53  ;;  %5930 = vmatpush.msrb.mxu2 %v8076_v21 }
0x2c1a   :  { %7078 = vmatmul.msk.f32.vlgmr.msrb.gmra.mxu0 %vm365_vm4, %v7075_v58 }
0x2c1b   :  { %6104 = vmatpush.msra.mxu0 %v8076_v21  ;;  %5931 = vmatpush.msrb.mxu2 %v8076_v21 }
0x2c1d   :  { %6105 = vmatpush.msra.mxu0 %v8076_v21  ;;  %5932 = vmatpush.msrb.mxu2 %v8076_v21 }
0x2c1f   :  { %6106 = vmatpush.msra.mxu0 %v8076_v21  ;;  %5933 = vmatpush.msrb.mxu2 %v8076_v21 }
0x2c21   :  { %6107 = vmatpush.msra.mxu0 %v8076_v21  ;;  %5934 = vmatpush.msrb.mxu2 %v8076_v21 }
0x2c23   :  { %6108 = vmatpush.msra.mxu0 %v8076_v21  ;;  %5935 = vmatpush.msrb.mxu2 %v8076_v21 }
0x2c25   :  { %6109 = vmatpush.msra.mxu0 %v8076_v21  ;;  %5936 = vmatpush.msrb.mxu2 %v8076_v21 }
0x2c27   :  { %6110 = vmatpush.msra.mxu0 %v8076_v21 }
0x2c29   :  { %6111 = vmatpush.msra.mxu0 %v8076_v21 }
0x2c2b   :  { %6112 = vmatpush.msra.mxu0 %v8076_v21 }
0x2c2d   :  { %6113 = vmatpush.msra.mxu0 %v8076_v21 }
0x2c2f   :  { %6114 = vmatpush.msra.mxu0 %v8076_v21 }
0x2c31   :  { %6115 = vmatpush.msra.mxu0 %v8076_v21 }
0x2c33   :  { %6116 = vmatpush.msra.mxu0 %v8076_v21 }
0x2c35   :  { %6117 = vmatpush.msra.mxu0 %v8076_v21 }
0x2c37   :  { %6118 = vmatpush.msra.mxu0 %v8076_v21 }
0x2c39   :  { %6119 = vmatpush.msra.mxu0 %v8076_v21 }
0x2c85   :  { %v5769_v33 = vpop.f32.mrf.mxu0 }
0x2c86   :  { %v5770_v63 = vadd.f32 %v5769_v33, %v5747_v41 }
0x2c88   :  { %v5812_v43 = vmul.f32 %v5770_v63, %v8176_v3 }
0x2c89   :  { %v5789_v13 = vpop.f32.mrf.mxu2 }
0x2c8a   :  { %v5790_v2 = vadd.f32 %v5789_v13, %v5747_v41  ;;  %vm5815_vm9 = vcmp.ge.f32.partialorder %v5812_v43, 0.0  ;;  %v5818_v26 = vmul.f32 0.01, %v5812_v43 }
0x2c8c   :  { %v5813_v9 = vmul.f32 %v5790_v2, %v8178_v4  ;;  %v11229_v6 = vsel %vm5815_vm9, %v5812_v43, %v5818_v26 }
0x2c8d   :  { %5891 = vmatmul.f32.vlgmr.msra.gmra.mxu1 %v11229_v6  ;;  %v5824_v52 = vmul.f32 %v11229_v6, %v11229_v6 }
0x2c8e   :  { %vm5816_vm10 = vcmp.ge.f32.partialorder %v5813_v9, 0.0  ;;  %v5819_v22 = vmul.f32 0.01, %v5813_v9 }
0x2c90   :  { %v11232_v45 = vsel %vm5816_vm10, %v5813_v9, %v5819_v22 }
0x2c91   :  { %5914 = vmatmul.f32.vlgmr.msrb.gmra.mxu3 %v11232_v45  ;;  %v5825_v60 = vmul.f32 %v11232_v45, %v11232_v45 }
0x2c92   :  { %6495 = vmatpush.msrb.mxu3 %v8076_v21 }
0x2c94   :  { %6496 = vmatpush.msrb.mxu3 %v8076_v21 }
0x2c95   :  { %5894 = vmatmul.f32.gmra.mxu1 %v5824_v52 }
0x2c96   :  { %6497 = vmatpush.msrb.mxu3 %v8076_v21 }
0x2c97   :  { %v5809_v25 = vpop.f32.mrf.mxu0 }
0x2c98   :  { %v5810_v48 = vadd.f32 %v5809_v25, %v5747_v41  ;;  %6498 = vmatpush.msrb.mxu3 %v8076_v21 }
0x2c99   :  { %5917 = vmatmul.f32.gmra.mxu3 %v5825_v60 }
0x2c9a   :  { %v5814_v57 = vmul.f32 %v5810_v48, %v8190_v8  ;;  %6499 = vmatpush.msrb.mxu3 %v8076_v21 }
0x2c9c   :  { %vm5817_vm11 = vcmp.ge.f32.partialorder %v5814_v57, 0.0  ;;  %v5820_v32 = vmul.f32 0.01, %v5814_v57  ;;  %6500 = vmatpush.msrb.mxu3 %v8076_v21 }
0x2c9e   :  { %v11246_v50 = vsel %vm5817_vm11, %v5814_v57, %v5820_v32  ;;  %6501 = vmatpush.msrb.mxu3 %v8076_v21 }
0x2c9f   :  { %5937 = vmatmul.f32.vlgmr.msrb.gmra.mxu2 %v11246_v50  ;;  %v5826_v47 = vmul.f32 %v11246_v50, %v11246_v50 }
0x2ca0   :  { %6502 = vmatpush.msrb.mxu3 %v8076_v21 }
0x2ca2   :  { %6503 = vmatpush.msrb.mxu3 %v8076_v21 }
0x2ca4   :  { %6504 = vmatpush.msrb.mxu3 %v8076_v21 }
0x2ca6   :  { %6505 = vmatpush.msrb.mxu3 %v8076_v21 }
0x2ca7   :  { %5940 = vmatmul.f32.gmra.mxu2 %v5826_v47 }
0x2ca8   :  { %6506 = vmatpush.msrb.mxu3 %v8076_v21 }
0x2caa   :  { %6507 = vmatpush.msrb.mxu3 %v8076_v21 }
0x2cac   :  { %6508 = vmatpush.msrb.mxu3 %v8076_v21 }
0x2cae   :  { %6509 = vmatpush.msrb.mxu3 %v8076_v21 }
0x2cb0   :  { %6510 = vmatpush.msrb.mxu3 %v8076_v21 }
0x2d0a   :  { %v5892_v44 = vpop.f32.mrf.mxu1 }
0x2d12   :  { %v5895_v46 = vpop.f32.mrf.mxu1 }
0x2d14   :  { %v5915_v20 = vpop.f32.mrf.mxu3 }
0x2d15   :  { %v5916_v7 = vadd.f32 %v5915_v20, %v5892_v44 }
0x2d1c   :  { %v5918_v11 = vpop.f32.mrf.mxu3 }
0x2d1d   :  { %v5919_v51 = vadd.f32 %v5918_v11, %v5895_v46 }
0x2d22   :  { %v5938_v31 = vpop.f32.mrf.mxu2 }
0x2d23   :  { %v5939_v42 = vadd.f32 %v5938_v31, %v5916_v7 }
0x2d25   :  { %v5982_v34 = vrot.slane %v5939_v42, 4 }
0x2d27   :  { %v5984_v54 = vadd.f32 %v5982_v34, %v5939_v42 }
0x2d29   :  { %v5986_v5 = vrot.slane %v5984_v54, 4 }
0x2d2a   :  { %v5941_v10 = vpop.f32.mrf.mxu2 }
0x2d2b   :  { %v5942_v29 = vadd.f32 %v5941_v10, %v5919_v51  ;;  %v5988_v53 = vsel %vm226_vm5, %v5984_v54, %v5986_v5 }
0x2d2c   :  { %v5997_v43 = vmul.f32 0.001953125, %v5988_v53 }
0x2d2d   :  { %v5944_v55 = vsel %vm561_vm12, %v5942_v29, 0.0  ;;  %v5990_v40 = vrot.slane %v5942_v29, 4 }
0x2d2e   :  { %v5945_v37 = vrot.slane %v5944_v55, 4  ;;  %v5999_v52 = vmul.f32 %v5997_v43, %v5997_v43 }
0x2d2f   :  { %v5992_v49 = vadd.f32 %v5990_v40, %v5942_v29  ;;  %v6017_v29 = vpop.permute.xlu2 %6016 }
0x2d30   :  { %v5946_v19 = vadd.f32 %v5945_v37, %v5944_v55 }
0x2d31   :  { %v5994_v30 = vrot.slane %v5992_v49, 4 }
0x2d32   :  { %v5947_v36 = vrot.slane %v5946_v19, 2 }
0x2d33   :  { %v5996_v33 = vsel %vm226_vm5, %v5992_v49, %v5994_v30 }
0x2d34   :  { %v5948_v16 = vadd.f32 %v5947_v36, %v5946_v19  ;;  %v5998_v26 = vmul.f32 0.001953125, %v5996_v33 }
0x2d36   :  { %v5949_v24 = vrot.slane %v5948_v16, 1  ;;  %v6000_v48 = vsub.f32 %v5998_v26, %v5999_v52 }
0x2d38   :  { %v5950_v14 = vadd.f32 %v5949_v24, %v5948_v16 }
0x2d3a   :  { %8053 = vrsqrt.f32 %v5950_v14  ;;  %vm5958_vm13 = vcmp.eq.f32.partialorder %v5950_v14, inf  ;;  %v5961_v35 = vand.u32 2147483648, %v5950_v14  ;;  %vm5960_vm14 = vcmp.eq.f32.partialorder %v5950_v14, 0.0 }
0x2d40   :  { %v8054_v15 = vpop.eup %8053 }
0x2d41   :  { %v5952_v18 = vmul.f32 %v8054_v15, %v5950_v14 }
0x2d43   :  { %v5953_v38 = vmul.f32 %v8054_v15, %v5952_v18 }
0x2d45   :  { %v5954_v61 = vmul.f32 0.5, %v5953_v38 }
0x2d47   :  { %v5955_v39 = vsub.f32 1.5, %v5954_v61 }
0x2d49   :  { %v5956_v62 = vmul.f32 %v8054_v15, %v5955_v39 }
0x2d4b   :  { %v5957_v0 = vmul.f32 %v5956_v62, %v5950_v14 }
0x2d4d   :  { %v5959_v23 = vsel %vm5958_vm13, %v5950_v14, %v5957_v0 }
0x2d4e   :  { %v5962_v58 = vsel %vm5960_vm14, %v5961_v35, %v5959_v23 }
0x2d4f   :  { %v5963_v27 = vadd.f32 1e-06, %v5962_v58 }
0x2d51   :  { %8055 = vrcp.f32 %v5963_v27  ;;  %v5975_v63 = vand.u32 2147483648, %v5963_v27  ;;  %v5973_v2 = vand.u32 2147483647, %v5963_v27  ;;  %vm5969_vm6 = vweird.f32 %v5963_v27 }
0x2d53   :  { %v5976_v22 = vor.u32 1.1754944e-38, %v5975_v63  ;;  %vm5974_vm8 = vcmp.eq.f32.partialorder %v5973_v2, 8.507059e+37 }
0x2d57   :  { %v8056_v17 = vpop.eup %8055 }
0x2d58   :  { %v5965_v1 = vmul.f32 %v8056_v17, %v5963_v27  ;;  %vm5970_vm15 = vweird.f32 %v8056_v17 }
0x2d59   :  { %vm5971_vm7 = vmor %vm5969_vm6, %vm5970_vm15 }
0x2d5a   :  { %v5966_v41 = vsub.f32 1.0, %v5965_v1 }
0x2d5c   :  { %v5967_v13 = vmul.f32 %v8056_v17, %v5966_v41 }
0x2d5e   :  { %v5968_v9 = vadd.f32 %v8056_v17, %v5967_v13 }
0x2d60   :  { %v5972_v60 = vsel %vm5971_vm7, %v8056_v17, %v5968_v9 }
0x2d61   :  { %v5977_v25 = vsel %vm5974_vm8, %v5976_v22, %v5972_v60 }
0x2d62   :  { %v6001_v57 = vmul.f32 %v5977_v25, %v5977_v25  ;;  %v6020_v10 = vmul.f32 %v5997_v43, %v5977_v25 }
0x2d64   :  { %v6002_v32 = vmul.f32 %v6001_v57, %v6000_v48 }
0x2d66   :  { %v6003_v47 = vadd.f32 1e-05, %v6002_v32 }
0x2d68   :  { %8057 = vrsqrt.f32 %v6003_v47  ;;  %vm6010_vm10 = vweird.f32 %v6003_v47 }
0x2d6e   :  { %v8058_v20 = vpop.eup %8057 }
0x2d6f   :  { %v6005_v44 = vmul.f32 %v8058_v20, %v6003_v47  ;;  %vm6011_vm9 = vweird.f32 %v8058_v20 }
0x2d70   :  { %vm6012_vm11 = vmor %vm6010_vm10, %vm6011_vm9 }
0x2d71   :  { %v6006_v31 = vmul.f32 %v8058_v20, %v6005_v44 }
0x2d73   :  { %v6007_v11 = vmul.f32 0.5, %v6006_v31 }
0x2d75   :  { %v6008_v46 = vsub.f32 1.5, %v6007_v11 }
0x2d77   :  { %v6009_v51 = vmul.f32 %v8058_v20, %v6008_v46  ;;  %v11350_v46 = vld [vmem:[%s11705_s3] sm:$0xff] }
0x2d79   :  { %v6013_v55 = vsel %vm6012_vm11, %v8058_v20, %v6009_v51 }
0x2d7a   :  { %v6014_v37 = vmul.f32 %v6013_v55, %v5977_v25  ;;  %v6021_v19 = vmul.f32 %v6020_v10, %v6013_v55  ;;  %v8116_v55 = vmov 14  }
0x2d7b   :  { %7912 = vset.pattern.permute.xlu0 %v8116_v55 }
0x2d7c   :  { %v6019_v36 = vmul.f32 %v6017_v29, %v6014_v37  ;;  %v6022_v16 = vmul.f32 %v6021_v19, %v6017_v29 }
0x2d7e   :  { %6024 = vrot.lane.b32.xlu0 %v6022_v16, %s8115_s28  ;;  %6030 = vperm.xlu1 %7858, %v6019_v36  }
0x2df0   :  { %v6025_v24 = vpop.permute.xlu0 %6024  ;;  %v6031_v15 = vpop.permute.xlu1 %6030 }
0x2df1   :  { %v6027_v14 = vsub.f32 %v11075_v59, %v6025_v24  ;;  %v6033_v18 = vmul.f32 %v6031_v15, %v11229_v6  ;;  %v6034_v38 = vmul.f32 %v6031_v15, %v11232_v45  ;;  %v6035_v61 = vmul.f32 %v6031_v15, %v11246_v50 }
0x2df3   :  { %6038 = vperm.xlu2 %7859, %v6027_v14  }
0x2dfb   :  { %7910 = vset.pattern.permute.xlu2 %v8116_v55 }
0x2e4d   :  { %v6039_v7 = vpop.permute.xlu2 %6038 }
0x2e4e   :  { %v6041_v39 = vadd.f32 %v6039_v7, %v6033_v18  ;;  %v6042_v42 = vadd.f32 %v6039_v7, %v6034_v38  ;;  %v6043_v62 = vadd.f32 %v6039_v7, %v6035_v61 }
0x2e50   :  { %v11270_v0 = vmul.f32 %v6041_v39, %v8176_v3  ;;  %v11273_v35 = vmul.f32 %v6042_v42, %v8178_v4  ;;  %v11276_v59 = vmul.f32 %v6043_v62, %v8190_v8 }
0x2e52   :  { %6292 = vrot.lane.b32.xlu1 %v11276_v59, %s8074_s11  ;;  %6120 = vmatmul.f32.vlgmr.msra.gmra.mxu0 %v11270_v0  ;;  %v7865_v6 = vpack.i.bf16 %v11273_v35, %v11270_v0  ;;  %v6053_v45 = vmul.f32 %v11270_v0, %v11270_v0  ;;  %v6054_v50 = vmul.f32 %v11273_v35, %v11273_v35 }
0x2e53   :  { %6143 = vmatmul.f32.vlgmr.msrb.gmra.mxu1 %v11273_v35  ;;  %6166 = vmatmul.f32.vlgmr.msra.gmra.mxu3 %v11276_v59  ;;  %v6055_v34 = vmul.f32 %v11276_v59, %v11276_v59  ;;  %v7885_v60 = vpack.i.bf16 %v11276_v59, %v11270_v0 }
0x2e54   :  { %7866 = vrot.lane.b32.xlu2 %v7865_v6, %s8073_s1  ;;  %7861 = vrot.lane.b32.xlu0 %v7865_v6, %s8074_s11 }
0x2e55   :  { %6856 = vmatpush.msra.mxu3 %v8076_v21 }
0x2e57   :  { %6857 = vmatpush.msra.mxu3 %v8076_v21 }
0x2e59   :  { %6858 = vmatpush.msra.mxu3 %v8076_v21 }
0x2e5a   :  { %6123 = vmatmul.f32.gmra.mxu0 %v6053_v45 }
0x2e5b   :  { %6146 = vmatmul.f32.gmra.mxu1 %v6054_v50  ;;  %6169 = vmatmul.f32.gmra.mxu3 %v6055_v34 }
0x2e5c   :  { %6247 = vrot.lane.b32.xlu0 %v11276_v59, %s8073_s1  ;;  %6859 = vmatpush.msra.mxu3 %v8076_v21 }
0x2e5e   :  { %6860 = vmatpush.msra.mxu3 %v8076_v21 }
0x2e60   :  { %6861 = vmatpush.msra.mxu3 %v8076_v21 }
0x2e62   :  { %6862 = vmatpush.msra.mxu3 %v8076_v21 }
0x2e64   :  { %7871 = vrot.lane.b32.xlu0 %v7865_v6, %s8075_s14  ;;  %6863 = vmatpush.msra.mxu3 %v8076_v21 }
0x2e66   :  { %6864 = vmatpush.msra.mxu3 %v8076_v21 }
0x2e68   :  { %6865 = vmatpush.msra.mxu3 %v8076_v21 }
0x2e6a   :  { %6866 = vmatpush.msra.mxu3 %v8076_v21 }
0x2e6c   :  { %6867 = vmatpush.msra.mxu3 %v8076_v21 }
0x2e6e   :  { %6868 = vmatpush.msra.mxu3 %v8076_v21 }
0x2e70   :  { %6869 = vmatpush.msra.mxu3 %v8076_v21 }
0x2e72   :  { %6870 = vmatpush.msra.mxu3 %v8076_v21 }
0x2e74   :  { %6871 = vmatpush.msra.mxu3 %v8076_v21 }
0x2eae   :  { %v7867_v23 = vpop.permute.xlu2 %7866 }
0x2eaf   :  { %v7869_v58 = vunpack.i.h.bf16 %v7867_v23  ;;  %v7868_v40 = vunpack.i.l.bf16 %v7867_v23 }
0x2eb1   :  { %v11314_v27 = vsel %vm288_vm0, %v7868_v40, %v7869_v58 }
0x2eb2   :  { %v7895_v54 = vpack.i.bf16 %v11276_v59, %v11314_v27 }
0x2eb4   :  { %7896 = vrot.lane.b32.xlu0 %v7895_v54, %s8075_s14 }
0x2ec4   :  { %v6293_v30 = vpop.permute.xlu1 %6292 }
0x2ec6   :  { %v7862_v49 = vpop.permute.xlu0 %7861 }
0x2ec7   :  { %v7864_v5 = vunpack.i.h.bf16 %v7862_v49  ;;  %v7863_v17 = vunpack.i.l.bf16 %v7862_v49  ;;  %v7079_v49 = vld [vmem:[%s11706_s2 + $0x70] sm:$0xff] }
0x2ec9   :  { %v6294_v1 = vsel %vm336_vm1, %v7864_v5, %v6293_v30  ;;  %v6295_v53 = vsel %vm336_vm1, %v7863_v17, %v7864_v5  ;;  %v6296_v41 = vsel %vm336_vm1, %v6293_v30, %v7863_v17 }
0x2eca   :  { %v7880_v33 = vpack.i.bf16 %v6296_v41, %v6295_v53  ;;  %v7875_v63 = vpack.i.bf16 %v6294_v1, %v6295_v53 }
0x2ecc   :  { %7881 = vrot.lane.b32.xlu2 %v7880_v33, %s8077_s0  ;;  %7876 = vrot.lane.b32.xlu1 %v7875_v63, %s8075_s14 }
0x2ece   :  { %v6248_v43 = vpop.permute.xlu0 %6247 }
0x2ecf   :  { %v11329_v13 = vsel %vm288_vm0, %v7869_v58, %v6248_v43  ;;  %v6251_v2 = vsel %vm288_vm0, %v6248_v43, %v7868_v40  ;;  %v6121_v26 = vpop.f32.mrf.mxu0 }
0x2ed0   :  { %v6144_v9 = vpop.f32.mrf.mxu1  ;;  %6265 = vrot.lane.b32.xlu0 %v11329_v13, %s8075_s14  ;;  %v7890_v52 = vpack.i.bf16 %v6251_v2, %v6296_v41  ;;  %v7905_v57 = vpack.i.bf16 %v11273_v35, %v11329_v13  ;;  %v7900_v32 = vpack.i.bf16 %v6251_v2, %v6294_v1 }
0x2ed1   :  { %v6145_v22 = vadd.f32 %v6144_v9, %v6121_v26 }
0x2ed4   :  { %7886 = vrot.lane.b32.xlu2 %v7885_v60, %s8077_s0  ;;  %7891 = vrot.lane.b32.xlu1 %v7890_v52, %s8075_s14 }
0x2ed6   :  { %v6167_v25 = vpop.f32.mrf.mxu3  ;;  %v7872_v11 = vpop.permute.xlu0 %7871 }
0x2ed7   :  { %v11339_v48 = vadd.f32 %v6167_v25, %v6145_v22  ;;  %v7874_v19 = vunpack.i.h.bf16 %v7872_v11  ;;  %v7873_v36 = vunpack.i.l.bf16 %v7872_v11 }
0x2ed8   :  { %v11441_v25 = vpop.f32.mrf.mxu1 }
0x2ed9   :  { %v6286_v38 = vsel %vm308_vm2, %v7873_v36, %v7874_v19 }
0x2edc   :  { %7906 = vrot.lane.b32.xlu2 %v7905_v57, %s8077_s0  ;;  %7901 = vrot.lane.b32.xlu1 %v7900_v32, %s8077_s0 }
0x2ee4   :  { %6254 = vrot.lane.b32.xlu1 %v11314_v27, %s8077_s0  ;;  %6320 = vperm.xlu2 %7910, %v11350_v46  }
0x2eec   :  { %7911 = vset.pattern.permute.xlu2 %v8078_v56 }
0x2f26   :  { %v7882_v47 = vpop.permute.xlu2 %7881  ;;  %v7897_v61 = vpop.permute.xlu0 %7896 }
0x2f27   :  { %v7884_v51 = vunpack.i.h.bf16 %v7882_v47  ;;  %v7883_v10 = vunpack.i.l.bf16 %v7882_v47  ;;  %v7898_v62 = vunpack.i.l.bf16 %v7897_v61  ;;  %v7899_v23 = vunpack.i.h.bf16 %v7897_v61 }
0x2f29   :  { %v6305_v16 = vsel %vm298_vm3, %v7884_v51, %v7883_v10 }
0x2f2e   :  { %v7887_v37 = vpop.permute.xlu2 %7886 }
0x2f2f   :  { %v7889_v14 = vunpack.i.h.bf16 %v7887_v37  ;;  %v7888_v15 = vunpack.i.l.bf16 %v7887_v37 }
0x2f31   :  { %v6278_v6 = vsel %vm298_vm3, %v7889_v14, %v7888_v15 }
0x2f36   :  { %v7907_v45 = vpop.permute.xlu2 %7906 }
0x2f37   :  { %v7908_v58 = vunpack.i.l.bf16 %v7907_v45 }
0x2f3e   :  { %v7877_v20 = vpop.permute.xlu1 %7876  ;;  %v6321_v60 = vpop.permute.xlu2 %6320 }
0x2f3f   :  { %v7879_v44 = vunpack.i.h.bf16 %v7877_v20  ;;  %v7878_v31 = vunpack.i.l.bf16 %v7877_v20 }
0x2f41   :  { %v6313_v29 = vsel %vm308_vm2, %v7878_v31, %v7879_v44 }
0x2f42   :  { %6333 = vmatpush.msra.mxu2 %v6313_v29  ;;  %v6266_v33 = vpop.permute.xlu0 %6265 }
0x2f44   :  { %6334 = vmatpush.msra.mxu2 %v6295_v53  ;;  %v6285_v53 = vsel %vm308_vm2, %v7874_v19, %v7899_v23 }
0x2f46   :  { %v7892_v24 = vpop.permute.xlu1 %7891  ;;  %6335 = vmatpush.msra.mxu2 %v6305_v16 }
0x2f47   :  { %v7893_v18 = vunpack.i.l.bf16 %v7892_v24  ;;  %v7894_v7 = vunpack.i.h.bf16 %v7892_v24 }
0x2f48   :  { %6336 = vmatpush.msra.mxu2 %v6286_v38 }
0x2f49   :  { %v6312_v39 = vsel %vm308_vm2, %v7879_v44, %v7893_v18  ;;  %v6314_v42 = vsel %vm308_vm2, %v7893_v18, %v7878_v31  ;;  %v6268_v50 = vsel %vm308_vm2, %v7894_v7, %v7898_v62  ;;  %v6269_v9 = vsel %vm308_vm2, %v6266_v33, %v7894_v7  ;;  %v11461_v18 = vpop.f32.mrf.mxu3 }
0x2f4a   :  { %6337 = vmatpush.msra.mxu2 %v11270_v0  ;;  %6353 = vmatpush.msrb.mxu0 %v6312_v39 }
0x2f4b   :  { %6373 = vmatpush.msra.mxu1 %v6314_v42 }
0x2f4c   :  { %6338 = vmatpush.msra.mxu2 %v6278_v6  ;;  %6354 = vmatpush.msrb.mxu0 %v6294_v1  ;;  %v7909_v1 = vunpack.i.h.bf16 %v7907_v45 }
0x2f4d   :  { %6374 = vmatpush.msra.mxu1 %v6296_v41  ;;  %v6287_v41 = vsel %vm308_vm2, %v7899_v23, %v7873_v36 }
0x2f4e   :  { %v7902_v34 = vpop.permute.xlu1 %7901  ;;  %6339 = vmatpush.msra.mxu2 %v6268_v50  ;;  %v6277_v63 = vsel %vm298_vm3, %v7888_v15, %v7909_v1  ;;  %v6276_v43 = vsel %vm298_vm3, %v7909_v1, %v7889_v14 }
0x2f4f   :  { %v7904_v40 = vunpack.i.h.bf16 %v7902_v34  ;;  %v7903_v54 = vunpack.i.l.bf16 %v7902_v34 }
0x2f50   :  { %6340 = vmatpush.msra.mxu2 %v6251_v2  ;;  %v6267_v2 = vsel %vm308_vm2, %v7898_v62, %v6266_v33 }
0x2f51   :  { %v6260_v5 = vsel %vm298_vm3, %v7908_v58, %v7904_v40  ;;  %v6304_v17 = vsel %vm298_vm3, %v7883_v10, %v7903_v54  ;;  %v6303_v30 = vsel %vm298_vm3, %v7903_v54, %v7884_v51 }
0x2f52   :  { %6341 = vmatpush.msra.mxu2 %v6260_v5  ;;  %6355 = vmatpush.msrb.mxu0 %v6304_v17 }
0x2f53   :  { %6375 = vmatpush.msra.mxu1 %v6303_v30  ;;  %7080 = vmatmul.msk.f32.vlgmr.msra.gmra.mxu2 %vm365_vm4, %v7079_v49 }
0x2f54   :  { %6356 = vmatpush.msrb.mxu0 %v6285_v53  ;;  %6449 = vmatpush.msrb.mxu2 %v8076_v21 }
0x2f55   :  { %6376 = vmatpush.msra.mxu1 %v6287_v41 }
0x2f56   :  { %6357 = vmatpush.msrb.mxu0 %v11273_v35  ;;  %6450 = vmatpush.msrb.mxu2 %v8076_v21  ;;  %v6255_v26 = vpop.permute.xlu1 %6254 }
0x2f57   :  { %6377 = vmatpush.msra.mxu1 %v11276_v59  ;;  %v6259_v22 = vsel %vm298_vm3, %v7904_v40, %v6255_v26  ;;  %v6258_v52 = vsel %vm298_vm3, %v6255_v26, %v7908_v58 }
0x2f58   :  { %6358 = vmatpush.msrb.mxu0 %v6277_v63  ;;  %6451 = vmatpush.msrb.mxu2 %v8076_v21 }
0x2f59   :  { %6378 = vmatpush.msra.mxu1 %v6276_v43 }
0x2f5a   :  { %6359 = vmatpush.msrb.mxu0 %v6267_v2  ;;  %6452 = vmatpush.msrb.mxu2 %v8076_v21 }
0x2f5b   :  { %6379 = vmatpush.msra.mxu1 %v6269_v9 }
0x2f5c   :  { %6360 = vmatpush.msrb.mxu0 %v11314_v27  ;;  %6453 = vmatpush.msrb.mxu2 %v8076_v21  ;;  %v11436_v27 = vld [vmem:[%s11708_s4] sm:$0xff]  ;;  %s8118_s4 = smov 14  }
0x2f5d   :  { %6380 = vmatpush.msra.mxu1 %v11329_v13  ;;  %6590 = vrot.lane.b32.xlu0 %v11436_v27, %s8117_s30  ;;  %v11439_v13 = vpop.f32.mrf.mxu0 }
0x2f5e   :  { %6361 = vmatpush.msrb.mxu0 %v6259_v22  ;;  %6454 = vmatpush.msrb.mxu2 %v8076_v21 }
0x2f5f   :  { %6381 = vmatpush.msra.mxu1 %v6258_v52  ;;  %7081 = vmatmul.msk.f32.vlgmr.msrb.gmra.mxu0 %vm365_vm4, %v7079_v49 }
0x2f60   :  { %7082 = vmatmul.msk.f32.vlgmr.msra.gmra.mxu1 %vm365_vm4, %v7079_v49  ;;  %6472 = vmatpush.msra.mxu0 %v8076_v21 }
0x2f61   :  { %6455 = vmatpush.msrb.mxu2 %v8076_v21 }
0x2f62   :  { %6473 = vmatpush.msra.mxu0 %v8076_v21 }
0x2f63   :  { %6456 = vmatpush.msrb.mxu2 %v8076_v21 }
0x2f64   :  { %6474 = vmatpush.msra.mxu0 %v8076_v21 }
0x2f65   :  { %6457 = vmatpush.msrb.mxu2 %v8076_v21 }
0x2f66   :  { %6475 = vmatpush.msra.mxu0 %v8076_v21 }
0x2f67   :  { %6458 = vmatpush.msrb.mxu2 %v8076_v21 }
0x2f68   :  { %6476 = vmatpush.msra.mxu0 %v8076_v21 }
0x2f69   :  { %6459 = vmatpush.msrb.mxu2 %v8076_v21 }
0x2f6a   :  { %6477 = vmatpush.msra.mxu0 %v8076_v21 }
0x2f6b   :  { %6460 = vmatpush.msrb.mxu2 %v8076_v21 }
0x2f6c   :  { %6478 = vmatpush.msra.mxu0 %v8076_v21 }
0x2f6d   :  { %6461 = vmatpush.msrb.mxu2 %v8076_v21 }
0x2f6e   :  { %6479 = vmatpush.msra.mxu0 %v8076_v21 }
0x2f6f   :  { %6462 = vmatpush.msrb.mxu2 %v8076_v21 }
0x2f70   :  { %6480 = vmatpush.msra.mxu0 %v8076_v21 }
0x2f71   :  { %6463 = vmatpush.msrb.mxu2 %v8076_v21 }
0x2f72   :  { %6481 = vmatpush.msra.mxu0 %v8076_v21 }
0x2f73   :  { %6464 = vmatpush.msrb.mxu2 %v8076_v21 }
0x2f74   :  { %6482 = vmatpush.msra.mxu0 %v8076_v21 }
0x2f76   :  { %6483 = vmatpush.msra.mxu0 %v8076_v21 }
0x2f78   :  { %6484 = vmatpush.msra.mxu0 %v8076_v21 }
0x2f7a   :  { %6485 = vmatpush.msra.mxu0 %v8076_v21 }
0x2f7c   :  { %6486 = vmatpush.msra.mxu0 %v8076_v21 }
0x2f7e   :  { %6487 = vmatpush.msra.mxu0 %v8076_v21 }
0x2fd6   :  { %v6343_v57 = vpop.f32.mrf.mxu2 }
0x2fd7   :  { %v6344_v32 = vadd.f32 %v6343_v57, %v6321_v60 }
0x2fd9   :  { %v6386_v47 = vmul.f32 %v6344_v32, %v8176_v3 }
0x2fdb   :  { %vm6389_vm13 = vcmp.ge.f32.partialorder %v6386_v47, 0.0  ;;  %v6392_v20 = vmul.f32 0.01, %v6386_v47 }
0x2fdc   :  { %v6363_v44 = vpop.f32.mrf.mxu0 }
0x2fdd   :  { %v6364_v31 = vadd.f32 %v6363_v44, %v6321_v60  ;;  %v6383_v11 = vpop.f32.mrf.mxu1  ;;  %v11444_v51 = vsel %vm6389_vm13, %v6386_v47, %v6392_v20 }
0x2fde   :  { %v6384_v10 = vadd.f32 %v6383_v11, %v6321_v60  ;;  %6465 = vmatmul.f32.vlgmr.msrb.gmra.mxu2 %v11444_v51  ;;  %v6398_v24 = vmul.f32 %v11444_v51, %v11444_v51 }
0x2fdf   :  { %v6387_v29 = vmul.f32 %v6364_v31, %v8178_v4 }
0x2fe0   :  { %v6388_v55 = vmul.f32 %v6384_v10, %v8190_v8 }
0x2fe1   :  { %vm6390_vm14 = vcmp.ge.f32.partialorder %v6387_v29, 0.0  ;;  %v6393_v37 = vmul.f32 0.01, %v6387_v29 }
0x2fe2   :  { %vm6391_vm15 = vcmp.ge.f32.partialorder %v6388_v55, 0.0  ;;  %v6394_v19 = vmul.f32 0.01, %v6388_v55 }
0x2fe3   :  { %v11449_v36 = vsel %vm6390_vm14, %v6387_v29, %v6393_v37 }
0x2fe4   :  { %6488 = vmatmul.f32.vlgmr.msra.gmra.mxu0 %v11449_v36  ;;  %v11452_v16 = vsel %vm6391_vm15, %v6388_v55, %v6394_v19  ;;  %v6399_v14 = vmul.f32 %v11449_v36, %v11449_v36 }
0x2fe5   :  { %6511 = vmatmul.f32.vlgmr.msrb.gmra.mxu3 %v11452_v16  ;;  %v6400_v15 = vmul.f32 %v11452_v16, %v11452_v16 }
0x2fe6   :  { %6468 = vmatmul.f32.gmra.mxu2 %v6398_v24 }
0x2fec   :  { %6491 = vmatmul.f32.gmra.mxu0 %v6399_v14 }
0x2fed   :  { %6514 = vmatmul.f32.gmra.mxu3 %v6400_v15 }
0x3061   :  { %v6466_v38 = vpop.f32.mrf.mxu2  ;;  %v6489_v61 = vpop.f32.mrf.mxu0 }
0x3062   :  { %v6490_v53 = vadd.f32 %v6489_v61, %v6466_v38 }
0x3068   :  { %v6512_v7 = vpop.f32.mrf.mxu3 }
0x3069   :  { %v6469_v39 = vpop.f32.mrf.mxu2  ;;  %v6492_v42 = vpop.f32.mrf.mxu0  ;;  %v6513_v33 = vadd.f32 %v6512_v7, %v6490_v53 }
0x306a   :  { %v6493_v62 = vadd.f32 %v6492_v42, %v6469_v39 }
0x306b   :  { %v6556_v26 = vrot.slane %v6513_v33, 4 }
0x306d   :  { %v6558_v57 = vadd.f32 %v6556_v26, %v6513_v33  ;;  %v11470_v33 = vld [vmem:[%s11709_s5] sm:$0xff] }
0x306f   :  { %v6560_v47 = vrot.slane %v6558_v57, 4 }
0x3070   :  { %v6515_v6 = vpop.f32.mrf.mxu3 }
0x3071   :  { %v6516_v45 = vadd.f32 %v6515_v6, %v6493_v62  ;;  %v6562_v11 = vsel %vm226_vm5, %v6558_v57, %v6560_v47 }
0x3072   :  { %v6571_v37 = vmul.f32 0.001953125, %v6562_v11 }
0x3073   :  { %v6518_v50 = vsel %vm561_vm12, %v6516_v45, 0.0  ;;  %v6564_v52 = vrot.slane %v6516_v45, 4 }
0x3074   :  { %v6519_v34 = vrot.slane %v6518_v50, 4  ;;  %v6573_v61 = vmul.f32 %v6571_v37, %v6571_v37 }
0x3075   :  { %v6566_v32 = vadd.f32 %v6564_v52, %v6516_v45 }
0x3076   :  { %v6520_v23 = vadd.f32 %v6519_v34, %v6518_v50 }
0x3077   :  { %v6568_v44 = vrot.slane %v6566_v32, 4 }
0x3078   :  { %v6521_v58 = vrot.slane %v6520_v23, 2 }
0x3079   :  { %v6570_v29 = vsel %vm226_vm5, %v6566_v32, %v6568_v44 }
0x307a   :  { %v6522_v40 = vadd.f32 %v6521_v58, %v6520_v23  ;;  %v6572_v14 = vmul.f32 0.001953125, %v6570_v29 }
0x307c   :  { %v6523_v54 = vrot.slane %v6522_v40, 1  ;;  %v6574_v42 = vsub.f32 %v6572_v14, %v6573_v61 }
0x307e   :  { %v6524_v49 = vadd.f32 %v6523_v54, %v6522_v40 }
0x3080   :  { %8059 = vrsqrt.f32 %v6524_v49  ;;  %vm6532_vm6 = vcmp.eq.f32.partialorder %v6524_v49, inf  ;;  %v6535_v2 = vand.u32 2147483648, %v6524_v49  ;;  %vm6534_vm7 = vcmp.eq.f32.partialorder %v6524_v49, 0.0 }
0x3086   :  { %v8060_v5 = vpop.eup %8059 }
0x3087   :  { %v6526_v17 = vmul.f32 %v8060_v5, %v6524_v49 }
0x3089   :  { %v6527_v30 = vmul.f32 %v8060_v5, %v6526_v17 }
0x308b   :  { %v6528_v1 = vmul.f32 0.5, %v6527_v30 }
0x308d   :  { %v6529_v41 = vsub.f32 1.5, %v6528_v1 }
0x308f   :  { %v6530_v63 = vmul.f32 %v8060_v5, %v6529_v41  ;;  %v6591_v5 = vpop.permute.xlu0 %6590 }
0x3091   :  { %v6531_v43 = vmul.f32 %v6530_v63, %v6524_v49 }
0x3093   :  { %v6533_v9 = vsel %vm6532_vm6, %v6524_v49, %v6531_v43 }
0x3094   :  { %v6536_v22 = vsel %vm6534_vm7, %v6535_v2, %v6533_v9 }
0x3095   :  { %v6537_v60 = vadd.f32 1e-06, %v6536_v22 }
0x3097   :  { %8061 = vrcp.f32 %v6537_v60  ;;  %v6549_v55 = vand.u32 2147483648, %v6537_v60  ;;  %v6547_v24 = vand.u32 2147483647, %v6537_v60  ;;  %vm6543_vm9 = vweird.f32 %v6537_v60 }
0x3099   :  { %v6550_v38 = vor.u32 1.1754944e-38, %v6549_v55  ;;  %vm6548_vm11 = vcmp.eq.f32.partialorder %v6547_v24, 8.507059e+37 }
0x309d   :  { %v8062_v20 = vpop.eup %8061 }
0x309e   :  { %v6539_v31 = vmul.f32 %v8062_v20, %v6537_v60  ;;  %vm6544_vm8 = vweird.f32 %v8062_v20 }
0x309f   :  { %vm6545_vm10 = vmor %vm6543_vm9, %vm6544_vm8 }
0x30a0   :  { %v6540_v10 = vsub.f32 1.0, %v6539_v31 }
0x30a2   :  { %v6541_v19 = vmul.f32 %v8062_v20, %v6540_v10 }
0x30a4   :  { %v6542_v15 = vadd.f32 %v8062_v20, %v6541_v19 }
0x30a6   :  { %v6546_v7 = vsel %vm6545_vm10, %v8062_v20, %v6542_v15 }
0x30a7   :  { %v6551_v39 = vsel %vm6548_vm11, %v6550_v38, %v6546_v7 }
0x30a8   :  { %v6575_v62 = vmul.f32 %v6551_v39, %v6551_v39  ;;  %v6594_v49 = vmul.f32 %v6571_v37, %v6551_v39 }
0x30aa   :  { %v6576_v6 = vmul.f32 %v6575_v62, %v6574_v42 }
0x30ac   :  { %v6577_v45 = vadd.f32 1e-05, %v6576_v6 }
0x30ae   :  { %8063 = vrsqrt.f32 %v6577_v45  ;;  %vm6584_vm14 = vweird.f32 %v6577_v45 }
0x30b4   :  { %v8064_v50 = vpop.eup %8063 }
0x30b5   :  { %v6579_v34 = vmul.f32 %v8064_v50, %v6577_v45  ;;  %vm6585_vm13 = vweird.f32 %v8064_v50 }
0x30b6   :  { %vm6586_vm15 = vmor %vm6584_vm14, %vm6585_vm13 }
0x30b7   :  { %v6580_v23 = vmul.f32 %v8064_v50, %v6579_v34  ;;  %v6148_v34 = vadd.f32 %v11441_v25, %v11439_v13 }
0x30b9   :  { %v6581_v58 = vmul.f32 0.5, %v6580_v23  ;;  %v6171_v23 = vadd.f32 %v11461_v18, %v6148_v34 }
0x30bb   :  { %v6582_v40 = vsub.f32 1.5, %v6581_v58  ;;  %v6176_v58 = vrot.slane %v11339_v48, 4 }
0x30bd   :  { %v6583_v54 = vmul.f32 %v8064_v50, %v6582_v40  ;;  %v6184_v40 = vrot.slane %v6171_v23, 4 }
0x30bf   :  { %v6587_v17 = vsel %vm6586_vm15, %v8064_v50, %v6583_v54  ;;  %v6173_v50 = vld [vmem:[%s11707_s6] sm:$0xff]  ;;  %v6178_v54 = vadd.f32 %v6176_v58, %v11339_v48 }
0x30c0   :  { %v6588_v30 = vmul.f32 %v6587_v17, %v6551_v39  ;;  %v6595_v1 = vmul.f32 %v6594_v49, %v6587_v17  ;;  %v6186_v49 = vadd.f32 %v6184_v40, %v6171_v23 }
0x30c2   :  { %v6593_v53 = vmul.f32 %v6591_v5, %v6588_v30  ;;  %v6596_v41 = vmul.f32 %v6595_v1, %v6591_v5  ;;  %v6180_v5 = vrot.slane %v6178_v54, 4  ;;  %v6188_v17 = vrot.slane %v6186_v49, 4 }
0x30c4   :  { %6598 = vrot.lane.b32.xlu1 %v6596_v41, %s8118_s4  ;;  %6604 = vperm.xlu2 %7911, %v6593_v53   ;;  %v6182_v30 = vsel %vm226_vm5, %v6178_v54, %v6180_v5  ;;  %v6190_v1 = vsel %vm226_vm5, %v6186_v49, %v6188_v17 }
0x30c5   :  { %v6191_v53 = vmul.f32 0.001953125, %v6182_v30  ;;  %v6192_v41 = vmul.f32 0.001953125, %v6190_v1 }
0x30cc   :  { %7966 = vset.pattern.permute.xlu2 %v8096_v28 }
0x311e   :  { %v6605_v2 = vpop.permute.xlu2 %6604 }
0x311f   :  { %v6607_v26 = vmul.f32 %v6605_v2, %v11444_v51  ;;  %v6608_v9 = vmul.f32 %v6605_v2, %v11449_v36  ;;  %v6609_v22 = vmul.f32 %v6605_v2, %v11452_v16 }
0x3136   :  { %v6599_v63 = vpop.permute.xlu1 %6598 }
0x3137   :  { %v6601_v43 = vsub.f32 %v11470_v33, %v6599_v63 }
0x3139   :  { %6612 = vperm.xlu0 %7912, %v6601_v43   ;;  %v8120_v43 = vmov 15  }
0x313a   :  { %7963 = vset.pattern.permute.xlu1 %v8120_v43 }
0x3141   :  { %7964 = vset.pattern.permute.xlu0 %v8078_v56 }
0x31ab   :  { %v6613_v52 = vpop.permute.xlu0 %6612 }
0x31ac   :  { %v6615_v28 = vadd.f32 %v6613_v52, %v6607_v26  ;;  %v6616_v60 = vadd.f32 %v6613_v52, %v6608_v9  ;;  %v6617_v57 = vadd.f32 %v6613_v52, %v6609_v22 }
0x31ae   :  { %v11478_v32 = vmul.f32 %v6615_v28, %v8176_v3  ;;  %v11481_v47 = vmul.f32 %v6616_v60, %v8178_v4  ;;  %v11484_v20 = vmul.f32 %v6617_v57, %v8190_v8 }
0x31b0   :  { %6676 = vrot.lane.b32.xlu2 %v11484_v20, %s8074_s11  ;;  %v7913_v51 = vpack.i.bf16 %v11481_v47, %v11478_v32  ;;  %v7923_v36 = vpack.i.bf16 %v11484_v20, %v11481_v47 }
0x31b2   :  { %7914 = vrot.lane.b32.xlu1 %v7913_v51, %s8074_s11  ;;  %s8119_s11 = smov 113  }
0x31b8   :  { %6631 = vrot.lane.b32.xlu2 %v11484_v20, %s8073_s1 }
0x31ba   :  { %7919 = vrot.lane.b32.xlu1 %v7913_v51, %s8073_s1 }
0x31c0   :  { %7924 = vrot.lane.b32.xlu2 %v7923_v36, %s8075_s14 }
0x320a   :  { %v6677_v16 = vpop.permute.xlu2 %6676 }
0x3212   :  { %v6632_v38 = vpop.permute.xlu2 %6631 }
0x321a   :  { %v11559_v25 = vpop.permute.xlu2 %7924 }
0x3224   :  { %v7915_v44 = vpop.permute.xlu1 %7914 }
0x3225   :  { %v7917_v31 = vunpack.i.h.bf16 %v7915_v44  ;;  %v7916_v11 = vunpack.i.l.bf16 %v7915_v44 }
0x3227   :  { %v11499_v10 = vsel %vm336_vm1, %v7917_v31, %v6677_v16  ;;  %v11503_v29 = vsel %vm336_vm1, %v7916_v11, %v7917_v31  ;;  %v11507_v55 = vsel %vm336_vm1, %v6677_v16, %v7916_v11 }
0x3228   :  { %v7928_v37 = vpack.i.bf16 %v11507_v55, %v11499_v10  ;;  %v7933_v19 = vpack.i.bf16 %v11499_v10, %v11503_v29 }
0x322a   :  { %7929 = vrot.lane.b32.xlu0 %v7928_v37, %s8075_s14  ;;  %7934 = vrot.lane.b32.xlu1 %v7933_v19, %s8077_s0 }
0x322c   :  { %v7920_v24 = vpop.permute.xlu1 %7919 }
0x322d   :  { %v7922_v14 = vunpack.i.h.bf16 %v7920_v24  ;;  %v7921_v15 = vunpack.i.l.bf16 %v7920_v24  ;;  %v7927_v24 = vunpack.i.h.bf16 %v11559_v25 }
0x322f   :  { %v11517_v61 = vsel %vm288_vm0, %v7922_v14, %v6632_v38  ;;  %v11521_v7 = vsel %vm288_vm0, %v7921_v15, %v7922_v14  ;;  %v11532_v62 = vsel %vm288_vm0, %v6632_v38, %v7921_v15  ;;  %v7926_v14 = vunpack.i.l.bf16 %v11559_v25 }
0x3230   :  { %v7948_v39 = vpack.i.bf16 %v11478_v32, %v11517_v61  ;;  %v7943_v42 = vpack.i.bf16 %v11521_v7, %v11503_v29  ;;  %v7953_v6 = vpack.i.bf16 %v11532_v62, %v11507_v55  ;;  %v7958_v45 = vpack.i.bf16 %v11484_v20, %v11521_v7 }
0x3232   :  { %7949 = vrot.lane.b32.xlu2 %v7948_v39, %s8075_s14  ;;  %7944 = vrot.lane.b32.xlu0 %v7943_v42, %s8075_s14 }
0x3233   :  { %7939 = vrot.lane.b32.xlu1 %v7913_v51, %s8077_s0 }
0x323a   :  { %6645 = vrot.lane.b32.xlu2 %v11532_v62, %s8075_s14  ;;  %7954 = vrot.lane.b32.xlu0 %v7953_v6, %s8077_s0  ;;  %v6669_v6 = vsel %vm308_vm2, %v7926_v14, %v7927_v24 }
0x323b   :  { %7959 = vrot.lane.b32.xlu1 %v7958_v45, %s8077_s0 }
0x3242   :  { %6207 = vrot.lane.b32.xlu2 %v6173_v50, %s8095_s12  ;;  %6640 = vrot.lane.b32.xlu0 %v11517_v61, %s8077_s0 }
0x3243   :  { %6704 = vperm.xlu1 %7963, %v11350_v46  }
0x324a   :  { %6974 = vrot.lane.b32.xlu0 %v11436_v27, %s8119_s11  ;;  %v6193_v27 = vmul.f32 %v6191_v53, %v6191_v53 }
0x324b   :  { %7965 = vset.pattern.permute.xlu1 %v8078_v56 }
0x324c   :  { %v6194_v63 = vsub.f32 %v6192_v41, %v6193_v27 }
0x324e   :  { %v6195_v13 = vadd.f32 1e-05, %v6194_v63 }
0x3250   :  { %8065 = vrsqrt.f32 %v6195_v13  ;;  %vm6202_vm1 = vweird.f32 %v6195_v13 }
0x3256   :  { %v8066_v48 = vpop.eup %8065 }
0x3257   :  { %v6197_v18 = vmul.f32 %v8066_v48, %v6195_v13  ;;  %vm6203_vm0 = vweird.f32 %v8066_v48 }
0x3258   :  { %vm6204_vm6 = vmor %vm6202_vm1, %vm6203_vm0 }
0x3259   :  { %v6198_v2 = vmul.f32 %v8066_v48, %v6197_v18 }
0x325b   :  { %v6199_v9 = vmul.f32 0.5, %v6198_v2 }
0x325d   :  { %v6200_v22 = vsub.f32 1.5, %v6199_v9 }
0x325f   :  { %v6201_v28 = vmul.f32 %v8066_v48, %v6200_v22 }
0x3261   :  { %v6205_v46 = vsel %vm6204_vm6, %v8066_v48, %v6201_v28 }
0x3262   :  { %v6211_v60 = vmul.f32 %v6205_v46, %v6191_v53 }
0x328c   :  { %v11561_v26 = vpop.permute.xlu2 %7949 }
0x328d   :  { %v7951_v58 = vunpack.i.l.bf16 %v11561_v26  ;;  %v7952_v5 = vunpack.i.h.bf16 %v11561_v26 }
0x328f   :  { %v6671_v63 = vsel %vm308_vm2, %v7927_v24, %v7952_v5 }
0x3294   :  { %v11563_v52 = vpop.permute.xlu2 %6645 }
0x329c   :  { %v6208_v57 = vpop.permute.xlu2 %6207  ;;  %v7930_v51 = vpop.permute.xlu0 %7929 }
0x329d   :  { %v6210_v56 = vmul.f32 %v6208_v57, %v6205_v46  ;;  %v6212_v36 = vmul.f32 %v6211_v60, %v6208_v57  ;;  %v7932_v16 = vunpack.i.h.bf16 %v7930_v51  ;;  %v7931_v44 = vunpack.i.l.bf16 %v7930_v51  ;;  %v7935_v31 = vpop.permute.xlu1 %7934 }
0x329e   :  { %v7937_v11 = vunpack.i.h.bf16 %v7935_v31  ;;  %v7936_v37 = vunpack.i.l.bf16 %v7935_v31 }
0x329f   :  { %6214 = vrot.lane.b32.xlu1 %v6212_v36, %s8097_s22  ;;  %6220 = vperm.xlu0 %7964, %v6210_v56   ;;  %v6696_v19 = vsel %vm308_vm2, %v7931_v44, %v7932_v16 }
0x32a0   :  { %6737 = vmatpush.msra.mxu2 %v6696_v19  ;;  %v6688_v15 = vsel %vm298_vm3, %v7936_v37, %v7937_v11 }
0x32a2   :  { %6738 = vmatpush.msra.mxu2 %v11499_v10 }
0x32a4   :  { %v7945_v38 = vpop.permute.xlu0 %7944  ;;  %6739 = vmatpush.msra.mxu2 %v6688_v15 }
0x32a5   :  { %v7946_v39 = vunpack.i.l.bf16 %v7945_v38  ;;  %v7940_v42 = vpop.permute.xlu1 %7939  ;;  %v7947_v34 = vunpack.i.h.bf16 %v7945_v38 }
0x32a6   :  { %v7942_v45 = vunpack.i.h.bf16 %v7940_v42  ;;  %v7941_v50 = vunpack.i.l.bf16 %v7940_v42  ;;  %6740 = vmatpush.msra.mxu2 %v6669_v6 }
0x32a7   :  { %v6697_v23 = vsel %vm308_vm2, %v7946_v39, %v7931_v44  ;;  %v6698_v10 = vsel %vm308_vm2, %v7932_v16, %v7946_v39  ;;  %7968 = vset.pattern.permute.xlu0 %v8120_v43  ;;  %v6651_v54 = vsel %vm308_vm2, %v7947_v34, %v7951_v58  ;;  %v6652_v25 = vsel %vm308_vm2, %v11563_v52, %v7947_v34 }
0x32a8   :  { %6717 = vmatpush.msrb.mxu1 %v6697_v23  ;;  %6741 = vmatpush.msra.mxu2 %v11481_v47  ;;  %v6661_v40 = vsel %vm298_vm3, %v7941_v50, %v7942_v45 }
0x32a9   :  { %6757 = vmatpush.msrb.mxu0 %v6698_v10 }
0x32aa   :  { %6718 = vmatpush.msrb.mxu1 %v11503_v29  ;;  %6742 = vmatpush.msra.mxu2 %v6661_v40 }
0x32ab   :  { %6758 = vmatpush.msrb.mxu0 %v11507_v55  ;;  %v7083_v55 = vld [vmem:[%s11706_s2 + $0x78] sm:$0xff]  ;;  %s8121_s2 = smov 15  }
0x32ac   :  { %v7955_v49 = vpop.permute.xlu0 %7954  ;;  %6743 = vmatpush.msra.mxu2 %v6651_v54 }
0x32ad   :  { %v7957_v17 = vunpack.i.h.bf16 %v7955_v49  ;;  %v7956_v47 = vunpack.i.l.bf16 %v7955_v49  ;;  %v7960_v30 = vpop.permute.xlu1 %7959 }
0x32ae   :  { %v7961_v1 = vunpack.i.l.bf16 %v7960_v30  ;;  %6744 = vmatpush.msra.mxu2 %v11521_v7  ;;  %v7962_v27 = vunpack.i.h.bf16 %v7960_v30  ;;  %v6670_v7 = vsel %vm308_vm2, %v7952_v5, %v7926_v14 }
0x32af   :  { %v6689_v53 = vsel %vm298_vm3, %v7956_v47, %v7936_v37  ;;  %v6687_v29 = vsel %vm298_vm3, %v7937_v11, %v7956_v47 }
0x32b0   :  { %6719 = vmatpush.msrb.mxu1 %v6689_v53  ;;  %v6643_v41 = vsel %vm298_vm3, %v7957_v17, %v7961_v1  ;;  %6759 = vmatpush.msrb.mxu0 %v6687_v29  ;;  %v6662_v13 = vsel %vm298_vm3, %v7962_v27, %v7941_v50  ;;  %v6660_v48 = vsel %vm298_vm3, %v7942_v45, %v7962_v27 }
0x32b1   :  { %6745 = vmatpush.msra.mxu2 %v6643_v41 }
0x32b2   :  { %7085 = vmatmul.msk.f32.vlgmr.msra.gmra.mxu2 %vm365_vm4, %v7083_v55  ;;  %6720 = vmatpush.msrb.mxu1 %v6670_v7 }
0x32b3   :  { %6760 = vmatpush.msrb.mxu0 %v6671_v63  ;;  %6879 = vmatpush.msrb.mxu2 %v8076_v21 }
0x32b4   :  { %6721 = vmatpush.msrb.mxu1 %v11478_v32  ;;  %v6641_v18 = vpop.permute.xlu0 %6640  ;;  %v6653_v32 = vsel %vm308_vm2, %v7951_v58, %v11563_v52 }
0x32b5   :  { %6761 = vmatpush.msrb.mxu0 %v11484_v20  ;;  %6880 = vmatpush.msrb.mxu2 %v8076_v21  ;;  %v6644_v20 = vsel %vm298_vm3, %v6641_v18, %v7957_v17  ;;  %v6642_v2 = vsel %vm298_vm3, %v7961_v1, %v6641_v18  ;;  %v6705_v12 = vpop.permute.xlu1 %6704 }
0x32b6   :  { %6722 = vmatpush.msrb.mxu1 %v6662_v13 }
0x32b7   :  { %6762 = vmatpush.msrb.mxu0 %v6660_v48  ;;  %6881 = vmatpush.msrb.mxu2 %v8076_v21 }
0x32b8   :  { %6723 = vmatpush.msrb.mxu1 %v6652_v25 }
0x32b9   :  { %6763 = vmatpush.msrb.mxu0 %v6653_v32  ;;  %6882 = vmatpush.msrb.mxu2 %v8076_v21 }
0x32ba   :  { %6724 = vmatpush.msrb.mxu1 %v11532_v62 }
0x32bb   :  { %6764 = vmatpush.msrb.mxu0 %v11517_v61  ;;  %6883 = vmatpush.msrb.mxu2 %v8076_v21 }
0x32bc   :  { %6725 = vmatpush.msrb.mxu1 %v6644_v20 }
0x32bd   :  { %6765 = vmatpush.msrb.mxu0 %v6642_v2  ;;  %7084 = vmatmul.msk.f32.vlgmr.msrb.gmra.mxu1 %vm365_vm4, %v7083_v55 }
0x32be   :  { %7086 = vmatmul.msk.f32.vlgmr.msrb.gmra.mxu0 %vm365_vm4, %v7083_v55  ;;  %6833 = vmatpush.msra.mxu1 %v8076_v21 }
0x32bf   :  { %6884 = vmatpush.msrb.mxu2 %v8076_v21 }
0x32c0   :  { %6834 = vmatpush.msra.mxu1 %v8076_v21 }
0x32c1   :  { %6885 = vmatpush.msrb.mxu2 %v8076_v21 }
0x32c2   :  { %6835 = vmatpush.msra.mxu1 %v8076_v21 }
0x32c3   :  { %6886 = vmatpush.msrb.mxu2 %v8076_v21 }
0x32c4   :  { %6836 = vmatpush.msra.mxu1 %v8076_v21 }
0x32c5   :  { %6887 = vmatpush.msrb.mxu2 %v8076_v21 }
0x32c6   :  { %6837 = vmatpush.msra.mxu1 %v8076_v21 }
0x32c7   :  { %6888 = vmatpush.msrb.mxu2 %v8076_v21 }
0x32c8   :  { %6838 = vmatpush.msra.mxu1 %v8076_v21 }
0x32c9   :  { %6889 = vmatpush.msrb.mxu2 %v8076_v21 }
0x32ca   :  { %6839 = vmatpush.msra.mxu1 %v8076_v21 }
0x32cb   :  { %6890 = vmatpush.msrb.mxu2 %v8076_v21 }
0x32cc   :  { %6840 = vmatpush.msra.mxu1 %v8076_v21 }
0x32cd   :  { %6891 = vmatpush.msrb.mxu2 %v8076_v21 }
0x32ce   :  { %6841 = vmatpush.msra.mxu1 %v8076_v21 }
0x32cf   :  { %6892 = vmatpush.msrb.mxu2 %v8076_v21 }
0x32d0   :  { %6842 = vmatpush.msra.mxu1 %v8076_v21 }
0x32d1   :  { %6893 = vmatpush.msrb.mxu2 %v8076_v21 }
0x32d2   :  { %6843 = vmatpush.msra.mxu1 %v8076_v21 }
0x32d3   :  { %6894 = vmatpush.msrb.mxu2 %v8076_v21 }
0x32d4   :  { %6844 = vmatpush.msra.mxu1 %v8076_v21 }
0x32d6   :  { %6845 = vmatpush.msra.mxu1 %v8076_v21 }
0x32d8   :  { %6846 = vmatpush.msra.mxu1 %v8076_v21 }
0x32da   :  { %6847 = vmatpush.msra.mxu1 %v8076_v21 }
0x32dc   :  { %6848 = vmatpush.msra.mxu1 %v8076_v21 }
0x3335   :  { %v6747_v61 = vpop.f32.mrf.mxu2 }
0x3336   :  { %v6748_v62 = vadd.f32 %v6747_v61, %v6705_v12 }
0x3338   :  { %v6771_v26 = vmul.f32 %v6748_v62, %v8178_v4 }
0x333a   :  { %vm6774_vm2 = vcmp.ge.f32.partialorder %v6771_v26, 0.0  ;;  %v6777_v9 = vmul.f32 0.01, %v6771_v26  ;;  %v6727_v22 = vpop.f32.mrf.mxu1 }
0x333b   :  { %v6728_v52 = vadd.f32 %v6727_v22, %v6705_v12  ;;  %v6767_v28 = vpop.f32.mrf.mxu0 }
0x333c   :  { %v6768_v46 = vadd.f32 %v6767_v28, %v6705_v12  ;;  %v11657_v60 = vsel %vm6774_vm2, %v6771_v26, %v6777_v9 }
0x333d   :  { %v6770_v57 = vmul.f32 %v6728_v52, %v8176_v3  ;;  %6872 = vmatmul.f32.vlgmr.msra.gmra.mxu3 %v11657_v60  ;;  %v6783_v44 = vmul.f32 %v11657_v60, %v11657_v60 }
0x333e   :  { %v6772_v51 = vmul.f32 %v6768_v46, %v8190_v8 }
0x333f   :  { %vm6773_vm3 = vcmp.ge.f32.partialorder %v6770_v57, 0.0  ;;  %v6776_v21 = vmul.f32 0.01, %v6770_v57 }
0x3340   :  { %vm6775_vm4 = vcmp.ge.f32.partialorder %v6772_v51, 0.0  ;;  %v6778_v56 = vmul.f32 0.01, %v6772_v51 }
0x3341   :  { %v11662_v36 = vsel %vm6773_vm3, %v6770_v57, %v6776_v21 }
0x3342   :  { %6849 = vmatmul.f32.vlgmr.msra.gmra.mxu1 %v11662_v36  ;;  %v11665_v16 = vsel %vm6775_vm4, %v6772_v51, %v6778_v56  ;;  %v6782_v31 = vmul.f32 %v11662_v36, %v11662_v36 }
0x3343   :  { %6895 = vmatmul.f32.vlgmr.msrb.gmra.mxu2 %v11665_v16  ;;  %v6784_v11 = vmul.f32 %v11665_v16, %v11665_v16 }
0x3345   :  { %6875 = vmatmul.f32.gmra.mxu3 %v6783_v44 }
0x334a   :  { %6852 = vmatmul.f32.gmra.mxu1 %v6782_v31 }
0x334b   :  { %6898 = vmatmul.f32.gmra.mxu2 %v6784_v11 }
0x33bf   :  { %v6850_v37 = vpop.f32.mrf.mxu1 }
0x33c0   :  { %v6873_v19 = vpop.f32.mrf.mxu3 }
0x33c1   :  { %v6874_v17 = vadd.f32 %v6873_v19, %v6850_v37 }
0x33c6   :  { %v6896_v24 = vpop.f32.mrf.mxu2 }
0x33c7   :  { %v6853_v14 = vpop.f32.mrf.mxu1  ;;  %v6897_v30 = vadd.f32 %v6896_v24, %v6874_v17 }
0x33c8   :  { %v6876_v15 = vpop.f32.mrf.mxu3 }
0x33c9   :  { %v6877_v38 = vadd.f32 %v6876_v15, %v6853_v14  ;;  %v6940_v55 = vrot.slane %v6897_v30, 4 }
0x33cb   :  { %v6942_v13 = vadd.f32 %v6940_v55, %v6897_v30 }
0x33cd   :  { %v6944_v25 = vrot.slane %v6942_v13, 4 }
0x33ce   :  { %v6899_v39 = vpop.f32.mrf.mxu2 }
0x33cf   :  { %v6900_v42 = vadd.f32 %v6899_v39, %v6877_v38  ;;  %v6946_v2 = vsel %vm226_vm5, %v6942_v13, %v6944_v25 }
0x33d0   :  { %v6955_v26 = vmul.f32 0.001953125, %v6946_v2 }
0x33d1   :  { %v6902_v6 = vsel %vm561_vm12, %v6900_v42, 0.0  ;;  %v6948_v63 = vrot.slane %v6900_v42, 4 }
0x33d2   :  { %v6903_v45 = vrot.slane %v6902_v6, 4  ;;  %v6957_v57 = vmul.f32 %v6955_v26, %v6955_v26 }
0x33d3   :  { %v6950_v48 = vadd.f32 %v6948_v63, %v6900_v42 }
0x33d4   :  { %v6904_v50 = vadd.f32 %v6903_v45, %v6902_v6 }
0x33d5   :  { %v6952_v32 = vrot.slane %v6950_v48, 4 }
0x33d6   :  { %v6905_v34 = vrot.slane %v6904_v50, 2 }
0x33d7   :  { %v6954_v62 = vsel %vm226_vm5, %v6950_v48, %v6952_v32 }
0x33d8   :  { %v6906_v23 = vadd.f32 %v6905_v34, %v6904_v50  ;;  %v6956_v28 = vmul.f32 0.001953125, %v6954_v62  ;;  %v6975_v50 = vpop.permute.xlu0 %6974 }
0x33da   :  { %v6907_v10 = vrot.slane %v6906_v23, 1  ;;  %v6958_v56 = vsub.f32 %v6956_v28, %v6957_v57 }
0x33dc   :  { %v6908_v58 = vadd.f32 %v6907_v10, %v6906_v23  ;;  %v6174_v10 = vld [vmem:[%s11710_s7] sm:$0xff] }
0x33de   :  { %8067 = vrsqrt.f32 %v6908_v58  ;;  %vm6916_vm7 = vcmp.eq.f32.partialorder %v6908_v58, inf  ;;  %v6919_v29 = vand.u32 2147483648, %v6908_v58  ;;  %vm6918_vm12 = vcmp.eq.f32.partialorder %v6908_v58, 0.0 }
0x33e0   :  { %v6221_v17 = vpop.permute.xlu0 %6220 }
0x33e1   :  { %v6223_v30 = vmul.f32 %v6221_v17, %v11270_v0 }
0x33e4   :  { %v8068_v40 = vpop.eup %8067 }
0x33e5   :  { %v6910_v54 = vmul.f32 %v8068_v40, %v6908_v58 }
0x33e7   :  { %v6911_v49 = vmul.f32 %v8068_v40, %v6910_v54 }
0x33e9   :  { %v6912_v5 = vmul.f32 0.5, %v6911_v49 }
0x33eb   :  { %v6913_v47 = vsub.f32 1.5, %v6912_v5 }
0x33ed   :  { %v6914_v1 = vmul.f32 %v8068_v40, %v6913_v47 }
0x33ef   :  { %v6915_v53 = vmul.f32 %v6914_v1, %v6908_v58  ;;  %v6224_v1 = vmul.f32 %v6221_v17, %v11273_v35 }
0x33f1   :  { %v6917_v41 = vsel %vm6916_vm7, %v6908_v58, %v6915_v53  ;;  %v6215_v58 = vpop.permute.xlu1 %6214  ;;  %v6225_v53 = vmul.f32 %v6221_v17, %v11276_v59 }
0x33f2   :  { %v6920_v27 = vsel %vm6918_vm12, %v6919_v29, %v6917_v41  ;;  %v6217_v40 = vsub.f32 %v6174_v10, %v6215_v58 }
0x33f3   :  { %v6921_v7 = vadd.f32 1e-06, %v6920_v27 }
0x33f5   :  { %8069 = vrcp.f32 %v6921_v7  ;;  %v6933_v61 = vand.u32 2147483648, %v6921_v7  ;;  %v6931_v22 = vand.u32 2147483647, %v6921_v7  ;;  %vm6927_vm9 = vweird.f32 %v6921_v7 }
0x33f7   :  { %v6934_v46 = vor.u32 1.1754944e-38, %v6933_v61  ;;  %vm6932_vm11 = vcmp.eq.f32.partialorder %v6931_v22, 8.507059e+37 }
0x33fb   :  { %v8070_v18 = vpop.eup %8069 }
0x33fc   :  { %v6923_v20 = vmul.f32 %v8070_v18, %v6921_v7  ;;  %vm6928_vm8 = vweird.f32 %v8070_v18 }
0x33fd   :  { %vm6929_vm10 = vmor %vm6927_vm9, %vm6928_vm8 }
0x33fe   :  { %v6924_v12 = vsub.f32 1.0, %v6923_v20 }
0x3400   :  { %v6925_v9 = vmul.f32 %v8070_v18, %v6924_v12 }
0x3402   :  { %v6926_v52 = vadd.f32 %v8070_v18, %v6925_v9 }
0x3404   :  { %v6930_v51 = vsel %vm6929_vm10, %v8070_v18, %v6926_v52 }
0x3405   :  { %v6935_v21 = vsel %vm6932_vm11, %v6934_v46, %v6930_v51 }
0x3406   :  { %v6959_v44 = vmul.f32 %v6935_v21, %v6935_v21  ;;  %v6978_v39 = vmul.f32 %v6955_v26, %v6935_v21 }
0x3408   :  { %v6960_v31 = vmul.f32 %v6959_v44, %v6958_v56 }
0x340a   :  { %v6961_v11 = vadd.f32 1e-05, %v6960_v31 }
0x340c   :  { %8071 = vrsqrt.f32 %v6961_v11  ;;  %vm6968_vm13 = vweird.f32 %v6961_v11 }
0x3412   :  { %v8072_v37 = vpop.eup %8071 }
0x3413   :  { %v6963_v19 = vmul.f32 %v8072_v37, %v6961_v11  ;;  %vm6969_vm5 = vweird.f32 %v8072_v37 }
0x3414   :  { %vm6970_vm14 = vmor %vm6968_vm13, %vm6969_vm5 }
0x3415   :  { %v6964_v24 = vmul.f32 %v8072_v37, %v6963_v19 }
0x3417   :  { %v6965_v14 = vmul.f32 0.5, %v6964_v24 }
0x3419   :  { %v6966_v15 = vsub.f32 1.5, %v6965_v14 }
0x341b   :  { %v6967_v38 = vmul.f32 %v8072_v37, %v6966_v15 }
0x341d   :  { %v6971_v42 = vsel %vm6970_vm14, %v8072_v37, %v6967_v38 }
0x341e   :  { %v6979_v6 = vmul.f32 %v6978_v39, %v6971_v42  ;;  %v6972_v45 = vmul.f32 %v6971_v42, %v6935_v21 }
0x3420   :  { %v6980_v34 = vmul.f32 %v6979_v6, %v6975_v50  ;;  %v6977_v23 = vmul.f32 %v6975_v50, %v6972_v45 }
0x3422   :  { %6982 = vrot.lane.b32.xlu2 %v6980_v34, %s8121_s2  ;;  %6988 = vperm.xlu1 %7965, %v6977_v23  }
0x342a   :  { %6228 = vperm.xlu2 %7966, %v6217_v40   ;;  %7967 = vset.pattern.permute.xlu1 %v8120_v43 }
0x347c   :  { %v6983_v54 = vpop.permute.xlu2 %6982 }
0x347d   :  { %v6985_v49 = vsub.f32 %v11470_v33, %v6983_v54 }
0x347f   :  { %6996 = vperm.xlu1 %7967, %v6985_v49  }
0x3484   :  { %v6229_v47 = vpop.permute.xlu2 %6228 }
0x3485   :  { %v6231_v29 = vadd.f32 %v6229_v47, %v6223_v30  ;;  %v6232_v55 = vadd.f32 %v6229_v47, %v6224_v1  ;;  %v6233_v41 = vadd.f32 %v6229_v47, %v6225_v53 }
0x3487   :  { %v6234_v25 = vmul.f32 %v6231_v29, %v8176_v3  ;;  %v6235_v0 = vmul.f32 %v6232_v55, %v8178_v4  ;;  %v6236_v35 = vmul.f32 %v6233_v41, %v8190_v8 }
0x3494   :  { %v6989_v5 = vpop.permute.xlu1 %6988 }
0x3495   :  { %v6991_v27 = vmul.f32 %v6989_v5, %v11662_v36  ;;  %v6992_v43 = vmul.f32 %v6989_v5, %v11657_v60  ;;  %v6993_v7 = vmul.f32 %v6989_v5, %v11665_v16 }
0x34f1   :  { %v6997_v33 = vpop.permute.xlu1 %6996 }
0x34f2   :  { %v6999_v63 = vadd.f32 %v6997_v33, %v6991_v27  ;;  %v7000_v13 = vadd.f32 %v6997_v33, %v6992_v43  ;;  %v7001_v48 = vadd.f32 %v6997_v33, %v6993_v7 }
0x34f4   :  { %v7002_v59 = vmul.f32 %v6999_v63, %v8176_v3  ;;  %v7003_v18 = vmul.f32 %v7000_v13, %v8178_v4  ;;  %v7004_v36 = vmul.f32 %v7001_v48, %v8190_v8 }
0x34f6   :  { %v7008_v32 = vadd.f32 %v7002_v59, %v6234_v25  ;;  %v7009_v60 = vadd.f32 %v7003_v18, %v6235_v0  ;;  %v7010_v20 = vadd.f32 %v7004_v36, %v6236_v35 }
0x34f8   :  { %7017 = vst [vmem:[%s11711_s8] sm:$0xff] %v7008_v32 }
0x34f9   :  { %7018 = vst [vmem:[%s11711_s8 + $0x8] sm:$0xff] %v7009_v60 }
0x34fa   :  { %7019 = vst [vmem:[%s11711_s8 + $0x10] sm:$0xff] %v7010_v20 }

</bundles_post_ra>
